<compile_context>
chip_gen: v6e
topology: v6e:2x2x1
jax: 0.10.0
libtpu: 0.0.40
codegen_flags: <defaults>
</compile_context>

<pallas_src>
import functools

import jax
import jax.numpy as jnp
from jax.experimental import pallas as pl
from jax.experimental.pallas import tpu as pltpu


# 48 MiB scoped-VMEM cap: leaves headroom on v7x (64 MiB physical / TC) and is
# far above the worst per-call footprint here; also fine on v5e/v6e (128 MiB).
_VMEM_LIMIT = 48 * 1024 * 1024


def _round_up(x, m):
    return (x + m - 1) // m * m


def _pad_channels(c):
    # lane-friendly channel padding: big layers -> multiple of 128, small -> 8
    return _round_up(c, 128) if c > 32 else _round_up(c, 8)


def _pick_row_tile(h):
    # Cap at 56 rows so the kx-folded staging buffer + f32 accumulator of the
    # 112-wide layers stay comfortably inside the 48 MiB budget on v7x
    # (v5e/v6e could take 112-row tiles; kept uniform for safety).
    for tr in (56, 32, 28, 16, 8):
        if h % tr == 0:
            return tr
    return h


# ----------------------------------------------------------------------------
# Fused Conv2d(3x3,'same') + bias + ReLU (+ optional fused MaxPool2d(2,2)),
# summed over one or more input/weight groups (used to fuse the identity block).
# ----------------------------------------------------------------------------
def _conv3x3_kernel(*refs, n_in, tr, width, pool):
    x_refs = refs[:n_in]                           # (1, H+2, W+2, cin_pad)     bf16
    w_refs = refs[n_in:2 * n_in]                   # (3, 3*cin_pad, cout_pad)   bf16
    b_ref = refs[2 * n_in]                         # (1, cout_pad)              f32
    o_ref = refs[2 * n_in + 1]                     # (1, tr_out, w_out, cout)   bf16
    fold_refs = refs[2 * n_in + 2:3 * n_in + 2]    # (tr+2, W, 3*cin_pad)       bf16
    acc_ref = refs[3 * n_in + 2]                   # (tr*W, cout_pad)           f32

    cout = o_ref.shape[-1]
    r0 = pl.program_id(1) * tr
    if tr % 8 == 0:
        r0 = pl.multiple_of(r0, 8)

    # Stage the (tr+2)-row halo window in VMEM, folding the 3 kx taps into the
    # lane axis (K = 3*cin_pad) so the matmuls below only need leading-dim
    # (ky) slices -- no per-tap sublane-offset slices feeding the MXU.
    for i in range(n_in):
        cin = fold_refs[i].shape[-1] // 3
        for kx in range(3):
            fold_refs[i][:, :, kx * cin:(kx + 1) * cin] = (
                x_refs[i][0, pl.ds(r0, tr + 2), kx:kx + width, :])

    # 3 MXU matmuls per input group; first tap writes '=' (no zero-fill pass).
    first = True
    for i in range(n_in):
        for ky in range(3):
            win = fold_refs[i][ky:ky + tr, :, :].reshape(tr * width, -1)
            contrib = jnp.dot(win, w_refs[i][ky],
                              preferred_element_type=jnp.float32)
            if first:
                acc_ref[...] = contrib
                first = False
            else:
                acc_ref[...] += contrib

    y = jnp.maximum(acc_ref[...] + b_ref[...], 0.0)          # bias + ReLU (f32)
    if pool:                                                 # fused MaxPool2d(2, 2)
        y = y.reshape(tr // 2, 2, width, cout)
        y = jnp.max(y, axis=1)                               # rows: leading-dim split
        y = y.reshape(tr // 2, width // 2, 2, cout)
        y = jnp.max(y, axis=2)                               # cols
        o_ref[0] = y.astype(o_ref.dtype)
    else:
        o_ref[0] = y.reshape(tr, width, cout).astype(o_ref.dtype)


def conv2d_relu(inputs, weights, bias, *, pool=False):
    """3x3 'same' conv + bias + ReLU (+ optional fused 2x2 maxpool) over the
    summed contributions of several (input, weight) groups (NHWC layout)."""
    B, H, W, _ = inputs[0].shape
    cout = weights[0].shape[-1]
    cout_pad = _pad_channels(cout)
    assert W % 8 == 0, "width must be a multiple of 8 for free in-kernel reshapes"
    tr = _pick_row_tile(H)
    if pool:
        assert tr % 2 == 0 and W % 2 == 0
    n_tiles = H // tr

    x_pads, w_packed, fold_scratch = [], [], []
    for x, wgt in zip(inputs, weights):
        cin_w = wgt.shape[2]                 # real input channels for this group
        cin_have = x.shape[-1]               # activations may already be lane-padded
        cin_pad = _pad_channels(max(cin_have, cin_w))
        # single pad per layer: spatial 'same' border + channel (lane) pad, bf16
        xp = jnp.pad(x.astype(jnp.bfloat16),
                     ((0, 0), (1, 1), (1, 1), (0, cin_pad - cin_have)))
        x_pads.append(xp)                    # (B, H+2, W+2, cin_pad)
        # weights: (3,3,cin,cout) -> zero-pad -> (3, 3*cin_pad, cout_pad), bf16
        wp = jnp.pad(wgt, ((0, 0), (0, 0), (0, cin_pad - cin_w), (0, cout_pad - cout)))
        w_packed.append(wp.reshape(3, 3 * cin_pad, cout_pad).astype(jnp.bfloat16))
        fold_scratch.append(pltpu.VMEM((tr + 2, W, 3 * cin_pad), jnp.bfloat16))

    b2d = jnp.pad(bias.astype(jnp.float32).reshape(1, cout),
                  ((0, 0), (0, cout_pad - cout)))

    if pool:
        h_out, w_out, tr_out = H // 2, W // 2, tr // 2
    else:
        h_out, w_out, tr_out = H, W, tr

    kernel = functools.partial(_conv3x3_kernel, n_in=len(inputs), tr=tr,
                               width=W, pool=pool)
    in_specs = (
        # full padded image per batch element; block index is constant across
        # the row-tile axis, so it is DMA'd from HBM only once per image.
        [pl.BlockSpec((1, H + 2, W + 2, xp.shape[-1]), lambda b, t: (b, 0, 0, 0))
         for xp in x_pads]
        + [pl.BlockSpec(wp.shape, lambda b, t: (0, 0, 0)) for wp in w_packed]
        + [pl.BlockSpec((1, cout_pad), lambda b, t: (0, 0))])

    return pl.pallas_call(
        kernel,
        out_shape=jax.ShapeDtypeStruct((B, h_out, w_out, cout_pad), jnp.bfloat16),
        grid=(B, n_tiles),
        in_specs=in_specs,
        out_specs=pl.BlockSpec((1, tr_out, w_out, cout_pad),
                               lambda b, t: (b, t, 0, 0)),
        scratch_shapes=fold_scratch + [pltpu.VMEM((tr * W, cout_pad), jnp.float32)],
        compiler_params=pltpu.CompilerParams(
            dimension_semantics=("parallel", "arbitrary"),
            vmem_limit_bytes=_VMEM_LIMIT),
    )(*x_pads, *w_packed, b2d)


# ----------------------------------------------------------------------------
# Linear + LogSoftmax (dim=1): lane-dense transposed-weight streaming reduction
# ----------------------------------------------------------------------------
def _fc_logsoftmax_kernel(x_ref, wt_ref, b_ref, o_ref):
    k = pl.program_id(0)
    # x: (B, f_chunk), wt: (O, f_chunk)  ->  (B, O), contracting dim 1 of both.
    part = jax.lax.dot_general(
        x_ref[...], wt_ref[...],
        dimension_numbers=(((1,), (1,)), ((), ())),
        preferred_element_type=jnp.float32)

    @pl.when(k == 0)
    def _():
        o_ref[...] = part

    @pl.when(k > 0)
    def _():
        o_ref[...] += part

    @pl.when(k == pl.num_programs(0) - 1)
    def _():
        z = o_ref[...] + b_ref[...]
        m = jnp.max(z, axis=-1, keepdims=True)
        lse = m + jnp.log(jnp.sum(jnp.exp(z - m), axis=-1, keepdims=True))
        o_ref[...] = z - lse


def fc_logsoftmax(x, w, b):
    B, F = x.shape
    O = w.shape[-1]
    # large, lane-aligned feature chunks: ~12 grid steps for the 1.5M-feature FC
    f_chunk = min(128 * 1024, _round_up(F, 512))
    f_pad = _round_up(F, f_chunk)
    n_chunks = f_pad // f_chunk
    x_p = jnp.pad(x.astype(jnp.bfloat16), ((0, 0), (0, f_pad - F)))
    # transpose weight to (O, F): each streamed block is lane-dense (f_chunk lanes)
    w_t = jnp.pad(jnp.transpose(w, (1, 0)).astype(jnp.bfloat16),
                  ((0, 0), (0, f_pad - F)))
    return pl.pallas_call(
        _fc_logsoftmax_kernel,
        out_shape=jax.ShapeDtypeStruct((B, O), jnp.float32),
        grid=(n_chunks,),
        in_specs=[pl.BlockSpec((B, f_chunk), lambda k: (0, k)),
                  pl.BlockSpec((O, f_chunk), lambda k: (0, k)),
                  pl.BlockSpec((1, O), lambda k: (0, 0))],
        out_specs=pl.BlockSpec((B, O), lambda k: (0, 0)),
        compiler_params=pltpu.CompilerParams(
            dimension_semantics=("arbitrary",),
            vmem_limit_bytes=_VMEM_LIMIT),
    )(x_p, w_t, b.astype(jnp.float32).reshape(1, O))


# ----------------------------------------------------------------------------
# Parameter init (deterministic, PyTorch-like uniform fan-in init)
# ----------------------------------------------------------------------------
def init_params(key, num_channels, h, w):
    def conv_p(k, cin, cout):
        k1, k2 = jax.random.split(k)
        bound = 1.0 / jnp.sqrt(jnp.float32(cin * 9))
        wgt = jax.random.uniform(k1, (3, 3, cin, cout), jnp.float32, -bound, bound)
        bias = jax.random.uniform(k2, (cout,), jnp.float32, -bound, bound)
        return wgt, bias

    keys = jax.random.split(key, 8)
    params = {
        "conv1": conv_p(keys[0], num_channels, 16),
        "conv2": conv_p(keys[1], 16, 32),
        "id_branch1": conv_p(keys[2], 32, 32),
        "conv3": conv_p(keys[3], 64, 80),
        "conv4": conv_p(keys[4], 80, 100),
        "conv5": conv_p(keys[5], 100, 120),
    }
    # module hardcodes fc in_features=1505280 (224x224 inputs); derived here so
    # the synthetic small-shape test is self-consistent.
    feat = 120 * (h // 2) * (w // 2)
    bound = 1.0 / jnp.sqrt(jnp.float32(feat))
    params["fc_w"] = jax.random.uniform(keys[6], (feat, 8), jnp.float32, -bound, bound)
    params["fc_b"] = jax.random.uniform(keys[7], (8,), jnp.float32, -bound, bound)
    return params


# ----------------------------------------------------------------------------
# ResidualNet forward (Pallas path)
# ----------------------------------------------------------------------------
def residual_net_forward(params, x_nchw):
    x = jnp.transpose(x_nchw, (0, 2, 3, 1)).astype(jnp.float32)   # NCHW -> NHWC

    w1, b1 = params["conv1"]
    out = conv2d_relu([x], [w1], b1, pool=True)           # conv1 + ReLU + MaxPool fused

    w2, b2 = params["conv2"]
    out2 = conv2d_relu([out], [w2], b2)                   # conv2 + ReLU

    wi, bi = params["id_branch1"]
    br1 = conv2d_relu([out2], [wi], bi)                   # identity branch conv

    # identity_Block: relu(cat([br1, out2])) == cat (both already ReLU'd), so
    # conv3 consumes the two branches directly (weight split along Cin); the
    # concatenated tensor is never materialized in HBM.
    w3, b3 = params["conv3"]
    cs = wi.shape[-1]
    out3 = conv2d_relu([br1, out2], [w3[:, :, :cs, :], w3[:, :, cs:, :]], b3)

    w4, b4 = params["conv4"]
    out4 = conv2d_relu([out3], [w4], b4)
    w5, b5 = params["conv5"]
    out5 = conv2d_relu([out4], [w5], b5)

    # strip lane padding, flatten in NCHW order (PyTorch out.reshape(B, -1))
    out5 = out5[..., :w5.shape[-1]]
    flat = jnp.transpose(out5, (0, 3, 1, 2)).reshape(out5.shape[0], -1)

    # TODO(synk): nn.Dropout(0.5) treated as inference-mode identity (no RNG masking).
    return fc_logsoftmax(flat, params["fc_w"], params["fc_b"])


# ----------------------------------------------------------------------------
# Pure-JAX reference (mirrors the kernels' bf16-operand / f32-accumulate math)
# ----------------------------------------------------------------------------
def reference_forward(params, x_nchw):
    x = jnp.transpose(x_nchw, (0, 2, 3, 1)).astype(jnp.float32)

    def conv(t, w, b):
        y = jax.lax.conv_general_dilated(
            t.astype(jnp.bfloat16), w.astype(jnp.bfloat16), (1, 1), "SAME",
            dimension_numbers=("NHWC", "HWIO", "NHWC"),
            preferred_element_type=jnp.float32)
        return jax.nn.relu(y + b).astype(jnp.bfloat16)

    out = conv(x, *params["conv1"])
    out = jax.lax.reduce_window(out, jnp.array(-jnp.inf, out.dtype), jax.lax.max,
                                (1, 2, 2, 1), (1, 2, 2, 1), "VALID")
    out = conv(out, *params["conv2"])
    branch1 = conv(out, *params["id_branch1"])
    out = jax.nn.relu(jnp.concatenate([branch1, out], axis=-1))
    out = conv(out, *params["conv3"])
    out = conv(out, *params["conv4"])
    out = conv(out, *params["conv5"])
    out_nchw = jnp.transpose(out, (0, 3, 1, 2))
    flat = out_nchw.reshape(out_nchw.shape[0], -1)
    z = jnp.dot(flat.astype(jnp.bfloat16), params["fc_w"].astype(jnp.bfloat16),
                preferred_element_type=jnp.float32) + params["fc_b"]
    return jax.nn.log_softmax(z, axis=-1)


if __name__ == "__main__":
    B, C, H, W = 2, 4, 16, 16
    key = jax.random.PRNGKey(0)
    kx_, kp = jax.random.split(key)
    x = jax.random.normal(kx_, (B, C, H, W), jnp.float32)   # NCHW, like PyTorch
    params = init_params(kp, C, H, W)

    out = jax.block_until_ready(jax.jit(residual_net_forward)(params, x))
    assert out.shape == (B, 8)

    ref = jax.block_until_ready(jax.jit(reference_forward)(params, x))
    max_err = float(jnp.max(jnp.abs(out - ref)))
    if max_err > 3e-2:
        raise AssertionError(f"Pallas output mismatch vs reference, max_err={max_err}")

    print("KERNEL_OK")
</pallas_src>

<mosaic_0001>
module attributes {stable_mosaic.version = 11 : i64} {
  func.func @_conv3x3_kernel(%arg0: i32, %arg1: i32, %arg2: memref<1x18x18x8xbf16, #tpu.memory_space<vmem>>, %arg3: memref<3x24x16xbf16, #tpu.memory_space<vmem>>, %arg4: memref<1x16xf32, #tpu.memory_space<vmem>>, %arg5: memref<1x8x8x16xbf16, #tpu.memory_space<vmem>>, %arg6: memref<18x16x24xbf16, #tpu.memory_space<vmem>>, %arg7: memref<256x16xf32, #tpu.memory_space<vmem>>) attributes {dimension_semantics = [#tpu.dimension_semantics<parallel>, #tpu.dimension_semantics<arbitrary>], iteration_bounds = array<i64: 2, 1>, scalar_prefetch = 0 : i64, scratch_operands = 2 : i64, tpu.core_type = #tpu.core_type<tc>, window_params = [{transform_indices = @transform_0, window_bounds = array<i64: 1, 18, 18, 8>}, {pipeline_mode = #tpu.pipeline_mode<synchronous>, transform_indices = @transform_1, window_bounds = array<i64: 3, 24, 16>}, {pipeline_mode = #tpu.pipeline_mode<synchronous>, transform_indices = @transform_2, window_bounds = array<i64: 1, 16>}, {transform_indices = @transform_3, window_bounds = array<i64: 1, 8, 8, 16>}]} {
    %c16_i32 = arith.constant 16 : i32
    %0 = arith.muli %arg1, %c16_i32 : i32
    %1 = tpu.assume_multiple %0, 8 : i32
    %c0 = arith.constant 0 : index
    %2 = arith.index_cast %1 : i32 to index
    %c0_0 = arith.constant 0 : index
    %c0_1 = arith.constant 0 : index
    %3 = vector.load %arg2[%c0, %2, %c0_0, %c0_1] : memref<1x18x18x8xbf16, #tpu.memory_space<vmem>>, vector<1x18x16x8xbf16>
    %4 = vector.shape_cast %3 : vector<1x18x16x8xbf16> to vector<18x16x8xbf16>
    %c0_2 = arith.constant 0 : index
    %c0_3 = arith.constant 0 : index
    %c0_4 = arith.constant 0 : index
    %5 = vector.load %arg6[%c0_2, %c0_3, %c0_4] : memref<18x16x24xbf16, #tpu.memory_space<vmem>>, vector<18x16x8xbf16>
    tpu.vector_store %arg6[%c0_2, %c0_3, %c0_4], %4 {strides = array<i32>} : memref<18x16x24xbf16, #tpu.memory_space<vmem>>, vector<18x16x8xbf16>,
    %c0_5 = arith.constant 0 : index
    %6 = arith.index_cast %1 : i32 to index
    %c1 = arith.constant 1 : index
    %c0_6 = arith.constant 0 : index
    %7 = vector.load %arg2[%c0_5, %6, %c1, %c0_6] : memref<1x18x18x8xbf16, #tpu.memory_space<vmem>>, vector<1x18x16x8xbf16>
    %8 = vector.shape_cast %7 : vector<1x18x16x8xbf16> to vector<18x16x8xbf16>
    %c0_7 = arith.constant 0 : index
    %c0_8 = arith.constant 0 : index
    %c8 = arith.constant 8 : index
    %9 = vector.load %arg6[%c0_7, %c0_8, %c8] : memref<18x16x24xbf16, #tpu.memory_space<vmem>>, vector<18x16x8xbf16>
    tpu.vector_store %arg6[%c0_7, %c0_8, %c8], %8 {strides = array<i32>} : memref<18x16x24xbf16, #tpu.memory_space<vmem>>, vector<18x16x8xbf16>,
    %c0_9 = arith.constant 0 : index
    %10 = arith.index_cast %1 : i32 to index
    %c2 = arith.constant 2 : index
    %c0_10 = arith.constant 0 : index
    %11 = vector.load %arg2[%c0_9, %10, %c2, %c0_10] : memref<1x18x18x8xbf16, #tpu.memory_space<vmem>>, vector<1x18x16x8xbf16>
    %12 = vector.shape_cast %11 : vector<1x18x16x8xbf16> to vector<18x16x8xbf16>
    %c0_11 = arith.constant 0 : index
    %c0_12 = arith.constant 0 : index
    %c16 = arith.constant 16 : index
    %13 = vector.load %arg6[%c0_11, %c0_12, %c16] : memref<18x16x24xbf16, #tpu.memory_space<vmem>>, vector<18x16x8xbf16>
    tpu.vector_store %arg6[%c0_11, %c0_12, %c16], %12 {strides = array<i32>} : memref<18x16x24xbf16, #tpu.memory_space<vmem>>, vector<18x16x8xbf16>,
    %c0_13 = arith.constant 0 : index
    %c0_14 = arith.constant 0 : index
    %c0_15 = arith.constant 0 : index
    %14 = vector.load %arg6[%c0_13, %c0_14, %c0_15] : memref<18x16x24xbf16, #tpu.memory_space<vmem>>, vector<16x16x24xbf16>
    %15 = vector.shape_cast %14 : vector<16x16x24xbf16> to vector<256x24xbf16>
    %c0_16 = arith.constant 0 : index
    %c0_17 = arith.constant 0 : index
    %c0_18 = arith.constant 0 : index
    %16 = vector.load %arg3[%c0_16, %c0_17, %c0_18] : memref<3x24x16xbf16, #tpu.memory_space<vmem>>, vector<1x24x16xbf16>
    %17 = vector.shape_cast %16 : vector<1x24x16xbf16> to vector<24x16xbf16>
    %cst = arith.constant dense<0.000000e+00> : vector<256x16xf32>
    %18 = tpu.matmul %15, %17, %cst {dimension_numbers = #tpu.dot_dimension_numbers<[1], [0], [0], [1], [0, 0, 1, 1], [], []>} : vector<256x24xbf16>, vector<24x16xbf16>, vector<256x16xf32> -> vector<256x16xf32>
    %c0_19 = arith.constant 0 : index
    %c0_20 = arith.constant 0 : index
    %19 = vector.load %arg7[%c0_19, %c0_20] : memref<256x16xf32, #tpu.memory_space<vmem>>, vector<256x16xf32>
    tpu.vector_store %arg7[%c0_19, %c0_20], %18 {strides = array<i32>} : memref<256x16xf32, #tpu.memory_space<vmem>>, vector<256x16xf32>,
    %c1_21 = arith.constant 1 : index
    %c0_22 = arith.constant 0 : index
    %c0_23 = arith.constant 0 : index
    %20 = vector.load %arg6[%c1_21, %c0_22, %c0_23] : memref<18x16x24xbf16, #tpu.memory_space<vmem>>, vector<16x16x24xbf16>
    %21 = vector.shape_cast %20 : vector<16x16x24xbf16> to vector<256x24xbf16>
    %c1_24 = arith.constant 1 : index
    %c0_25 = arith.constant 0 : index
    %c0_26 = arith.constant 0 : index
    %22 = vector.load %arg3[%c1_24, %c0_25, %c0_26] : memref<3x24x16xbf16, #tpu.memory_space<vmem>>, vector<1x24x16xbf16>
    %23 = vector.shape_cast %22 : vector<1x24x16xbf16> to vector<24x16xbf16>
    %cst_27 = arith.constant dense<0.000000e+00> : vector<256x16xf32>
    %24 = tpu.matmul %21, %23, %cst_27 {dimension_numbers = #tpu.dot_dimension_numbers<[1], [0], [0], [1], [0, 0, 1, 1], [], []>} : vector<256x24xbf16>, vector<24x16xbf16>, vector<256x16xf32> -> vector<256x16xf32>
    %c0_28 = arith.constant 0 : index
    %c0_29 = arith.constant 0 : index
    %25 = vector.load %arg7[%c0_28, %c0_29] : memref<256x16xf32, #tpu.memory_space<vmem>>, vector<256x16xf32>
    %26 = arith.addf %25, %24 : vector<256x16xf32>
    %c0_30 = arith.constant 0 : index
    %c0_31 = arith.constant 0 : index
    %27 = vector.load %arg7[%c0_30, %c0_31] : memref<256x16xf32, #tpu.memory_space<vmem>>, vector<256x16xf32>
    tpu.vector_store %arg7[%c0_30, %c0_31], %26 {strides = array<i32>} : memref<256x16xf32, #tpu.memory_space<vmem>>, vector<256x16xf32>,
    %c2_32 = arith.constant 2 : index
    %c0_33 = arith.constant 0 : index
    %c0_34 = arith.constant 0 : index
    %28 = vector.load %arg6[%c2_32, %c0_33, %c0_34] : memref<18x16x24xbf16, #tpu.memory_space<vmem>>, vector<16x16x24xbf16>
    %29 = vector.shape_cast %28 : vector<16x16x24xbf16> to vector<256x24xbf16>
    %c2_35 = arith.constant 2 : index
    %c0_36 = arith.constant 0 : index
    %c0_37 = arith.constant 0 : index
    %30 = vector.load %arg3[%c2_35, %c0_36, %c0_37] : memref<3x24x16xbf16, #tpu.memory_space<vmem>>, vector<1x24x16xbf16>
    %31 = vector.shape_cast %30 : vector<1x24x16xbf16> to vector<24x16xbf16>
    %cst_38 = arith.constant dense<0.000000e+00> : vector<256x16xf32>
    %32 = tpu.matmul %29, %31, %cst_38 {dimension_numbers = #tpu.dot_dimension_numbers<[1], [0], [0], [1], [0, 0, 1, 1], [], []>} : vector<256x24xbf16>, vector<24x16xbf16>, vector<256x16xf32> -> vector<256x16xf32>
    %c0_39 = arith.constant 0 : index
    %c0_40 = arith.constant 0 : index
    %33 = vector.load %arg7[%c0_39, %c0_40] : memref<256x16xf32, #tpu.memory_space<vmem>>, vector<256x16xf32>
    %34 = arith.addf %33, %32 : vector<256x16xf32>
    %c0_41 = arith.constant 0 : index
    %c0_42 = arith.constant 0 : index
    %35 = vector.load %arg7[%c0_41, %c0_42] : memref<256x16xf32, #tpu.memory_space<vmem>>, vector<256x16xf32>
    tpu.vector_store %arg7[%c0_41, %c0_42], %34 {strides = array<i32>} : memref<256x16xf32, #tpu.memory_space<vmem>>, vector<256x16xf32>,
    %c0_43 = arith.constant 0 : index
    %c0_44 = arith.constant 0 : index
    %36 = vector.load %arg7[%c0_43, %c0_44] : memref<256x16xf32, #tpu.memory_space<vmem>>, vector<256x16xf32>
    %c0_45 = arith.constant 0 : index
    %c0_46 = arith.constant 0 : index
    %37 = vector.load %arg4[%c0_45, %c0_46] : memref<1x16xf32, #tpu.memory_space<vmem>>, vector<1x16xf32>
    %38 = vector.broadcast %37 : vector<1x16xf32> to vector<256x16xf32>
    %39 = arith.addf %36, %38 : vector<256x16xf32>
    %cst_47 = arith.constant 0.000000e+00 : f32
    %40 = vector.broadcast %cst_47 : f32 to vector<256x16xf32>
    %41 = arith.maximumf %39, %40 : vector<256x16xf32>
    %42 = vector.shape_cast %41 : vector<256x16xf32> to vector<8x2x16x16xf32>
    %cst_48 = arith.constant dense<0xFF800000> : vector<8x16x16xf32>
    %43 = vector.multi_reduction <maximumf>, %42, %cst_48 [1] : vector<8x2x16x16xf32> to vector<8x16x16xf32>
    %44 = vector.shape_cast %43 : vector<8x16x16xf32> to vector<8x8x2x16xf32>
    %cst_49 = arith.constant dense<0xFF800000> : vector<8x8x16xf32>
    %45 = vector.multi_reduction <maximumf>, %44, %cst_49 [2] : vector<8x8x2x16xf32> to vector<8x8x16xf32>
    %46 = arith.truncf %45 : vector<8x8x16xf32> to vector<8x8x16xbf16>
    %c0_50 = arith.constant 0 : index
    %c0_51 = arith.constant 0 : index
    %c0_52 = arith.constant 0 : index
    %c0_53 = arith.constant 0 : index
    %47 = vector.load %arg5[%c0_50, %c0_51, %c0_52, %c0_53] : memref<1x8x8x16xbf16, #tpu.memory_space<vmem>>, vector<1x8x8x16xbf16>
    %48 = vector.shape_cast %47 : vector<1x8x8x16xbf16> to vector<8x8x16xbf16>
    %49 = vector.shape_cast %46 : vector<8x8x16xbf16> to vector<1x8x8x16xbf16>
    tpu.vector_store %arg5[%c0_50, %c0_51, %c0_52, %c0_53], %49 {strides = array<i32>} : memref<1x8x8x16xbf16, #tpu.memory_space<vmem>>, vector<1x8x8x16xbf16>,
    return
  }
  func.func @transform_0(%arg0: i32, %arg1: i32) -> (i32, i32, i32, i32) {
    %c0_i32 = arith.constant 0 : i32
    %c0_i32_0 = arith.constant 0 : i32
    %c0_i32_1 = arith.constant 0 : i32
    %c0_i32_2 = arith.constant 0 : i32
    return %arg0, %c0_i32, %c0_i32_0, %c0_i32_1 : i32, i32, i32, i32
  }
  func.func @transform_1(%arg0: i32, %arg1: i32) -> (i32, i32, i32) {
    %c0_i32 = arith.constant 0 : i32
    %c0_i32_0 = arith.constant 0 : i32
    %c0_i32_1 = arith.constant 0 : i32
    %c0_i32_2 = arith.constant 0 : i32
    return %c0_i32, %c0_i32_0, %c0_i32_1 : i32, i32, i32
  }
  func.func @transform_2(%arg0: i32, %arg1: i32) -> (i32, i32) {
    %c0_i32 = arith.constant 0 : i32
    %c0_i32_0 = arith.constant 0 : i32
    %c0_i32_1 = arith.constant 0 : i32
    return %c0_i32, %c0_i32_0 : i32, i32
  }
  func.func @transform_3(%arg0: i32, %arg1: i32) -> (i32, i32, i32, i32) {
    %c0_i32 = arith.constant 0 : i32
    %c0_i32_0 = arith.constant 0 : i32
    %c0_i32_1 = arith.constant 0 : i32
    return %arg0, %arg1, %c0_i32, %c0_i32_0 : i32, i32, i32, i32
  }
}

module attributes {stable_mosaic.version = 11 : i64} {
  func.func @_conv3x3_kernel(%arg0: i32, %arg1: i32, %arg2: memref<1x10x10x16xbf16, #tpu.memory_space<vmem>>, %arg3: memref<3x48x32xbf16, #tpu.memory_space<vmem>>, %arg4: memref<1x32xf32, #tpu.memory_space<vmem>>, %arg5: memref<1x8x8x32xbf16, #tpu.memory_space<vmem>>, %arg6: memref<10x8x48xbf16, #tpu.memory_space<vmem>>, %arg7: memref<64x32xf32, #tpu.memory_space<vmem>>) attributes {dimension_semantics = [#tpu.dimension_semantics<parallel>, #tpu.dimension_semantics<arbitrary>], iteration_bounds = array<i64: 2, 1>, scalar_prefetch = 0 : i64, scratch_operands = 2 : i64, tpu.core_type = #tpu.core_type<tc>, window_params = [{transform_indices = @transform_0, window_bounds = array<i64: 1, 10, 10, 16>}, {pipeline_mode = #tpu.pipeline_mode<synchronous>, transform_indices = @transform_1, window_bounds = array<i64: 3, 48, 32>}, {pipeline_mode = #tpu.pipeline_mode<synchronous>, transform_indices = @transform_2, window_bounds = array<i64: 1, 32>}, {transform_indices = @transform_3, window_bounds = array<i64: 1, 8, 8, 32>}]} {
    %c8_i32 = arith.constant 8 : i32
    %0 = arith.muli %arg1, %c8_i32 : i32
    %1 = tpu.assume_multiple %0, 8 : i32
    %c0 = arith.constant 0 : index
    %2 = arith.index_cast %1 : i32 to index
    %c0_0 = arith.constant 0 : index
    %c0_1 = arith.constant 0 : index
    %3 = vector.load %arg2[%c0, %2, %c0_0, %c0_1] : memref<1x10x10x16xbf16, #tpu.memory_space<vmem>>, vector<1x10x8x16xbf16>
    %4 = vector.shape_cast %3 : vector<1x10x8x16xbf16> to vector<10x8x16xbf16>
    %c0_2 = arith.constant 0 : index
    %c0_3 = arith.constant 0 : index
    %c0_4 = arith.constant 0 : index
    %5 = vector.load %arg6[%c0_2, %c0_3, %c0_4] : memref<10x8x48xbf16, #tpu.memory_space<vmem>>, vector<10x8x16xbf16>
    tpu.vector_store %arg6[%c0_2, %c0_3, %c0_4], %4 {strides = array<i32>} : memref<10x8x48xbf16, #tpu.memory_space<vmem>>, vector<10x8x16xbf16>,
    %c0_5 = arith.constant 0 : index
    %6 = arith.index_cast %1 : i32 to index
    %c1 = arith.constant 1 : index
    %c0_6 = arith.constant 0 : index
    %7 = vector.load %arg2[%c0_5, %6, %c1, %c0_6] : memref<1x10x10x16xbf16, #tpu.memory_space<vmem>>, vector<1x10x8x16xbf16>
    %8 = vector.shape_cast %7 : vector<1x10x8x16xbf16> to vector<10x8x16xbf16>
    %c0_7 = arith.constant 0 : index
    %c0_8 = arith.constant 0 : index
    %c16 = arith.constant 16 : index
    %9 = vector.load %arg6[%c0_7, %c0_8, %c16] : memref<10x8x48xbf16, #tpu.memory_space<vmem>>, vector<10x8x16xbf16>
    tpu.vector_store %arg6[%c0_7, %c0_8, %c16], %8 {strides = array<i32>} : memref<10x8x48xbf16, #tpu.memory_space<vmem>>, vector<10x8x16xbf16>,
    %c0_9 = arith.constant 0 : index
    %10 = arith.index_cast %1 : i32 to index
    %c2 = arith.constant 2 : index
    %c0_10 = arith.constant 0 : index
    %11 = vector.load %arg2[%c0_9, %10, %c2, %c0_10] : memref<1x10x10x16xbf16, #tpu.memory_space<vmem>>, vector<1x10x8x16xbf16>
    %12 = vector.shape_cast %11 : vector<1x10x8x16xbf16> to vector<10x8x16xbf16>
    %c0_11 = arith.constant 0 : index
    %c0_12 = arith.constant 0 : index
    %c32 = arith.constant 32 : index
    %13 = vector.load %arg6[%c0_11, %c0_12, %c32] : memref<10x8x48xbf16, #tpu.memory_space<vmem>>, vector<10x8x16xbf16>
    tpu.vector_store %arg6[%c0_11, %c0_12, %c32], %12 {strides = array<i32>} : memref<10x8x48xbf16, #tpu.memory_space<vmem>>, vector<10x8x16xbf16>,
    %c0_13 = arith.constant 0 : index
    %c0_14 = arith.constant 0 : index
    %c0_15 = arith.constant 0 : index
    %14 = vector.load %arg6[%c0_13, %c0_14, %c0_15] : memref<10x8x48xbf16, #tpu.memory_space<vmem>>, vector<8x8x48xbf16>
    %15 = vector.shape_cast %14 : vector<8x8x48xbf16> to vector<64x48xbf16>
    %c0_16 = arith.constant 0 : index
    %c0_17 = arith.constant 0 : index
    %c0_18 = arith.constant 0 : index
    %16 = vector.load %arg3[%c0_16, %c0_17, %c0_18] : memref<3x48x32xbf16, #tpu.memory_space<vmem>>, vector<1x48x32xbf16>
    %17 = vector.shape_cast %16 : vector<1x48x32xbf16> to vector<48x32xbf16>
    %cst = arith.constant dense<0.000000e+00> : vector<64x32xf32>
    %18 = tpu.matmul %15, %17, %cst {dimension_numbers = #tpu.dot_dimension_numbers<[1], [0], [0], [1], [0, 0, 1, 1], [], []>} : vector<64x48xbf16>, vector<48x32xbf16>, vector<64x32xf32> -> vector<64x32xf32>
    %c0_19 = arith.constant 0 : index
    %c0_20 = arith.constant 0 : index
    %19 = vector.load %arg7[%c0_19, %c0_20] : memref<64x32xf32, #tpu.memory_space<vmem>>, vector<64x32xf32>
    tpu.vector_store %arg7[%c0_19, %c0_20], %18 {strides = array<i32>} : memref<64x32xf32, #tpu.memory_space<vmem>>, vector<64x32xf32>,
    %c1_21 = arith.constant 1 : index
    %c0_22 = arith.constant 0 : index
    %c0_23 = arith.constant 0 : index
    %20 = vector.load %arg6[%c1_21, %c0_22, %c0_23] : memref<10x8x48xbf16, #tpu.memory_space<vmem>>, vector<8x8x48xbf16>
    %21 = vector.shape_cast %20 : vector<8x8x48xbf16> to vector<64x48xbf16>
    %c1_24 = arith.constant 1 : index
    %c0_25 = arith.constant 0 : index
    %c0_26 = arith.constant 0 : index
    %22 = vector.load %arg3[%c1_24, %c0_25, %c0_26] : memref<3x48x32xbf16, #tpu.memory_space<vmem>>, vector<1x48x32xbf16>
    %23 = vector.shape_cast %22 : vector<1x48x32xbf16> to vector<48x32xbf16>
    %cst_27 = arith.constant dense<0.000000e+00> : vector<64x32xf32>
    %24 = tpu.matmul %21, %23, %cst_27 {dimension_numbers = #tpu.dot_dimension_numbers<[1], [0], [0], [1], [0, 0, 1, 1], [], []>} : vector<64x48xbf16>, vector<48x32xbf16>, vector<64x32xf32> -> vector<64x32xf32>
    %c0_28 = arith.constant 0 : index
    %c0_29 = arith.constant 0 : index
    %25 = vector.load %arg7[%c0_28, %c0_29] : memref<64x32xf32, #tpu.memory_space<vmem>>, vector<64x32xf32>
    %26 = arith.addf %25, %24 : vector<64x32xf32>
    %c0_30 = arith.constant 0 : index
    %c0_31 = arith.constant 0 : index
    %27 = vector.load %arg7[%c0_30, %c0_31] : memref<64x32xf32, #tpu.memory_space<vmem>>, vector<64x32xf32>
    tpu.vector_store %arg7[%c0_30, %c0_31], %26 {strides = array<i32>} : memref<64x32xf32, #tpu.memory_space<vmem>>, vector<64x32xf32>,
    %c2_32 = arith.constant 2 : index
    %c0_33 = arith.constant 0 : index
    %c0_34 = arith.constant 0 : index
    %28 = vector.load %arg6[%c2_32, %c0_33, %c0_34] : memref<10x8x48xbf16, #tpu.memory_space<vmem>>, vector<8x8x48xbf16>
    %29 = vector.shape_cast %28 : vector<8x8x48xbf16> to vector<64x48xbf16>
    %c2_35 = arith.constant 2 : index
    %c0_36 = arith.constant 0 : index
    %c0_37 = arith.constant 0 : index
    %30 = vector.load %arg3[%c2_35, %c0_36, %c0_37] : memref<3x48x32xbf16, #tpu.memory_space<vmem>>, vector<1x48x32xbf16>
    %31 = vector.shape_cast %30 : vector<1x48x32xbf16> to vector<48x32xbf16>
    %cst_38 = arith.constant dense<0.000000e+00> : vector<64x32xf32>
    %32 = tpu.matmul %29, %31, %cst_38 {dimension_numbers = #tpu.dot_dimension_numbers<[1], [0], [0], [1], [0, 0, 1, 1], [], []>} : vector<64x48xbf16>, vector<48x32xbf16>, vector<64x32xf32> -> vector<64x32xf32>
    %c0_39 = arith.constant 0 : index
    %c0_40 = arith.constant 0 : index
    %33 = vector.load %arg7[%c0_39, %c0_40] : memref<64x32xf32, #tpu.memory_space<vmem>>, vector<64x32xf32>
    %34 = arith.addf %33, %32 : vector<64x32xf32>
    %c0_41 = arith.constant 0 : index
    %c0_42 = arith.constant 0 : index
    %35 = vector.load %arg7[%c0_41, %c0_42] : memref<64x32xf32, #tpu.memory_space<vmem>>, vector<64x32xf32>
    tpu.vector_store %arg7[%c0_41, %c0_42], %34 {strides = array<i32>} : memref<64x32xf32, #tpu.memory_space<vmem>>, vector<64x32xf32>,
    %c0_43 = arith.constant 0 : index
    %c0_44 = arith.constant 0 : index
    %36 = vector.load %arg7[%c0_43, %c0_44] : memref<64x32xf32, #tpu.memory_space<vmem>>, vector<64x32xf32>
    %c0_45 = arith.constant 0 : index
    %c0_46 = arith.constant 0 : index
    %37 = vector.load %arg4[%c0_45, %c0_46] : memref<1x32xf32, #tpu.memory_space<vmem>>, vector<1x32xf32>
    %38 = vector.broadcast %37 : vector<1x32xf32> to vector<64x32xf32>
    %39 = arith.addf %36, %38 : vector<64x32xf32>
    %cst_47 = arith.constant 0.000000e+00 : f32
    %40 = vector.broadcast %cst_47 : f32 to vector<64x32xf32>
    %41 = arith.maximumf %39, %40 : vector<64x32xf32>
    %42 = vector.shape_cast %41 : vector<64x32xf32> to vector<8x8x32xf32>
    %43 = arith.truncf %42 : vector<8x8x32xf32> to vector<8x8x32xbf16>
    %c0_48 = arith.constant 0 : index
    %c0_49 = arith.constant 0 : index
    %c0_50 = arith.constant 0 : index
    %c0_51 = arith.constant 0 : index
    %44 = vector.load %arg5[%c0_48, %c0_49, %c0_50, %c0_51] : memref<1x8x8x32xbf16, #tpu.memory_space<vmem>>, vector<1x8x8x32xbf16>
    %45 = vector.shape_cast %44 : vector<1x8x8x32xbf16> to vector<8x8x32xbf16>
    %46 = vector.shape_cast %43 : vector<8x8x32xbf16> to vector<1x8x8x32xbf16>
    tpu.vector_store %arg5[%c0_48, %c0_49, %c0_50, %c0_51], %46 {strides = array<i32>} : memref<1x8x8x32xbf16, #tpu.memory_space<vmem>>, vector<1x8x8x32xbf16>,
    return
  }
  func.func @transform_0(%arg0: i32, %arg1: i32) -> (i32, i32, i32, i32) {
    %c0_i32 = arith.constant 0 : i32
    %c0_i32_0 = arith.constant 0 : i32
    %c0_i32_1 = arith.constant 0 : i32
    %c0_i32_2 = arith.constant 0 : i32
    return %arg0, %c0_i32, %c0_i32_0, %c0_i32_1 : i32, i32, i32, i32
  }
  func.func @transform_1(%arg0: i32, %arg1: i32) -> (i32, i32, i32) {
    %c0_i32 = arith.constant 0 : i32
    %c0_i32_0 = arith.constant 0 : i32
    %c0_i32_1 = arith.constant 0 : i32
    %c0_i32_2 = arith.constant 0 : i32
    return %c0_i32, %c0_i32_0, %c0_i32_1 : i32, i32, i32
  }
  func.func @transform_2(%arg0: i32, %arg1: i32) -> (i32, i32) {
    %c0_i32 = arith.constant 0 : i32
    %c0_i32_0 = arith.constant 0 : i32
    %c0_i32_1 = arith.constant 0 : i32
    return %c0_i32, %c0_i32_0 : i32, i32
  }
  func.func @transform_3(%arg0: i32, %arg1: i32) -> (i32, i32, i32, i32) {
    %c0_i32 = arith.constant 0 : i32
    %c0_i32_0 = arith.constant 0 : i32
    %c0_i32_1 = arith.constant 0 : i32
    return %arg0, %arg1, %c0_i32, %c0_i32_0 : i32, i32, i32, i32
  }
}

module attributes {stable_mosaic.version = 11 : i64} {
  func.func @_conv3x3_kernel(%arg0: i32, %arg1: i32, %arg2: memref<1x10x10x32xbf16, #tpu.memory_space<vmem>>, %arg3: memref<3x96x32xbf16, #tpu.memory_space<vmem>>, %arg4: memref<1x32xf32, #tpu.memory_space<vmem>>, %arg5: memref<1x8x8x32xbf16, #tpu.memory_space<vmem>>, %arg6: memref<10x8x96xbf16, #tpu.memory_space<vmem>>, %arg7: memref<64x32xf32, #tpu.memory_space<vmem>>) attributes {dimension_semantics = [#tpu.dimension_semantics<parallel>, #tpu.dimension_semantics<arbitrary>], iteration_bounds = array<i64: 2, 1>, scalar_prefetch = 0 : i64, scratch_operands = 2 : i64, tpu.core_type = #tpu.core_type<tc>, window_params = [{transform_indices = @transform_0, window_bounds = array<i64: 1, 10, 10, 32>}, {pipeline_mode = #tpu.pipeline_mode<synchronous>, transform_indices = @transform_1, window_bounds = array<i64: 3, 96, 32>}, {pipeline_mode = #tpu.pipeline_mode<synchronous>, transform_indices = @transform_2, window_bounds = array<i64: 1, 32>}, {transform_indices = @transform_3, window_bounds = array<i64: 1, 8, 8, 32>}]} {
    %c8_i32 = arith.constant 8 : i32
    %0 = arith.muli %arg1, %c8_i32 : i32
    %1 = tpu.assume_multiple %0, 8 : i32
    %c0 = arith.constant 0 : index
    %2 = arith.index_cast %1 : i32 to index
    %c0_0 = arith.constant 0 : index
    %c0_1 = arith.constant 0 : index
    %3 = vector.load %arg2[%c0, %2, %c0_0, %c0_1] : memref<1x10x10x32xbf16, #tpu.memory_space<vmem>>, vector<1x10x8x32xbf16>
    %4 = vector.shape_cast %3 : vector<1x10x8x32xbf16> to vector<10x8x32xbf16>
    %c0_2 = arith.constant 0 : index
    %c0_3 = arith.constant 0 : index
    %c0_4 = arith.constant 0 : index
    %5 = vector.load %arg6[%c0_2, %c0_3, %c0_4] : memref<10x8x96xbf16, #tpu.memory_space<vmem>>, vector<10x8x32xbf16>
    tpu.vector_store %arg6[%c0_2, %c0_3, %c0_4], %4 {strides = array<i32>} : memref<10x8x96xbf16, #tpu.memory_space<vmem>>, vector<10x8x32xbf16>,
    %c0_5 = arith.constant 0 : index
    %6 = arith.index_cast %1 : i32 to index
    %c1 = arith.constant 1 : index
    %c0_6 = arith.constant 0 : index
    %7 = vector.load %arg2[%c0_5, %6, %c1, %c0_6] : memref<1x10x10x32xbf16, #tpu.memory_space<vmem>>, vector<1x10x8x32xbf16>
    %8 = vector.shape_cast %7 : vector<1x10x8x32xbf16> to vector<10x8x32xbf16>
    %c0_7 = arith.constant 0 : index
    %c0_8 = arith.constant 0 : index
    %c32 = arith.constant 32 : index
    %9 = vector.load %arg6[%c0_7, %c0_8, %c32] : memref<10x8x96xbf16, #tpu.memory_space<vmem>>, vector<10x8x32xbf16>
    tpu.vector_store %arg6[%c0_7, %c0_8, %c32], %8 {strides = array<i32>} : memref<10x8x96xbf16, #tpu.memory_space<vmem>>, vector<10x8x32xbf16>,
    %c0_9 = arith.constant 0 : index
    %10 = arith.index_cast %1 : i32 to index
    %c2 = arith.constant 2 : index
    %c0_10 = arith.constant 0 : index
    %11 = vector.load %arg2[%c0_9, %10, %c2, %c0_10] : memref<1x10x10x32xbf16, #tpu.memory_space<vmem>>, vector<1x10x8x32xbf16>
    %12 = vector.shape_cast %11 : vector<1x10x8x32xbf16> to vector<10x8x32xbf16>
    %c0_11 = arith.constant 0 : index
    %c0_12 = arith.constant 0 : index
    %c64 = arith.constant 64 : index
    %13 = vector.load %arg6[%c0_11, %c0_12, %c64] : memref<10x8x96xbf16, #tpu.memory_space<vmem>>, vector<10x8x32xbf16>
    tpu.vector_store %arg6[%c0_11, %c0_12, %c64], %12 {strides = array<i32>} : memref<10x8x96xbf16, #tpu.memory_space<vmem>>, vector<10x8x32xbf16>,
    %c0_13 = arith.constant 0 : index
    %c0_14 = arith.constant 0 : index
    %c0_15 = arith.constant 0 : index
    %14 = vector.load %arg6[%c0_13, %c0_14, %c0_15] : memref<10x8x96xbf16, #tpu.memory_space<vmem>>, vector<8x8x96xbf16>
    %15 = vector.shape_cast %14 : vector<8x8x96xbf16> to vector<64x96xbf16>
    %c0_16 = arith.constant 0 : index
    %c0_17 = arith.constant 0 : index
    %c0_18 = arith.constant 0 : index
    %16 = vector.load %arg3[%c0_16, %c0_17, %c0_18] : memref<3x96x32xbf16, #tpu.memory_space<vmem>>, vector<1x96x32xbf16>
    %17 = vector.shape_cast %16 : vector<1x96x32xbf16> to vector<96x32xbf16>
    %cst = arith.constant dense<0.000000e+00> : vector<64x32xf32>
    %18 = tpu.matmul %15, %17, %cst {dimension_numbers = #tpu.dot_dimension_numbers<[1], [0], [0], [1], [0, 0, 1, 1], [], []>} : vector<64x96xbf16>, vector<96x32xbf16>, vector<64x32xf32> -> vector<64x32xf32>
    %c0_19 = arith.constant 0 : index
    %c0_20 = arith.constant 0 : index
    %19 = vector.load %arg7[%c0_19, %c0_20] : memref<64x32xf32, #tpu.memory_space<vmem>>, vector<64x32xf32>
    tpu.vector_store %arg7[%c0_19, %c0_20], %18 {strides = array<i32>} : memref<64x32xf32, #tpu.memory_space<vmem>>, vector<64x32xf32>,
    %c1_21 = arith.constant 1 : index
    %c0_22 = arith.constant 0 : index
    %c0_23 = arith.constant 0 : index
    %20 = vector.load %arg6[%c1_21, %c0_22, %c0_23] : memref<10x8x96xbf16, #tpu.memory_space<vmem>>, vector<8x8x96xbf16>
    %21 = vector.shape_cast %20 : vector<8x8x96xbf16> to vector<64x96xbf16>
    %c1_24 = arith.constant 1 : index
    %c0_25 = arith.constant 0 : index
    %c0_26 = arith.constant 0 : index
    %22 = vector.load %arg3[%c1_24, %c0_25, %c0_26] : memref<3x96x32xbf16, #tpu.memory_space<vmem>>, vector<1x96x32xbf16>
    %23 = vector.shape_cast %22 : vector<1x96x32xbf16> to vector<96x32xbf16>
    %cst_27 = arith.constant dense<0.000000e+00> : vector<64x32xf32>
    %24 = tpu.matmul %21, %23, %cst_27 {dimension_numbers = #tpu.dot_dimension_numbers<[1], [0], [0], [1], [0, 0, 1, 1], [], []>} : vector<64x96xbf16>, vector<96x32xbf16>, vector<64x32xf32> -> vector<64x32xf32>
    %c0_28 = arith.constant 0 : index
    %c0_29 = arith.constant 0 : index
    %25 = vector.load %arg7[%c0_28, %c0_29] : memref<64x32xf32, #tpu.memory_space<vmem>>, vector<64x32xf32>
    %26 = arith.addf %25, %24 : vector<64x32xf32>
    %c0_30 = arith.constant 0 : index
    %c0_31 = arith.constant 0 : index
    %27 = vector.load %arg7[%c0_30, %c0_31] : memref<64x32xf32, #tpu.memory_space<vmem>>, vector<64x32xf32>
    tpu.vector_store %arg7[%c0_30, %c0_31], %26 {strides = array<i32>} : memref<64x32xf32, #tpu.memory_space<vmem>>, vector<64x32xf32>,
    %c2_32 = arith.constant 2 : index
    %c0_33 = arith.constant 0 : index
    %c0_34 = arith.constant 0 : index
    %28 = vector.load %arg6[%c2_32, %c0_33, %c0_34] : memref<10x8x96xbf16, #tpu.memory_space<vmem>>, vector<8x8x96xbf16>
    %29 = vector.shape_cast %28 : vector<8x8x96xbf16> to vector<64x96xbf16>
    %c2_35 = arith.constant 2 : index
    %c0_36 = arith.constant 0 : index
    %c0_37 = arith.constant 0 : index
    %30 = vector.load %arg3[%c2_35, %c0_36, %c0_37] : memref<3x96x32xbf16, #tpu.memory_space<vmem>>, vector<1x96x32xbf16>
    %31 = vector.shape_cast %30 : vector<1x96x32xbf16> to vector<96x32xbf16>
    %cst_38 = arith.constant dense<0.000000e+00> : vector<64x32xf32>
    %32 = tpu.matmul %29, %31, %cst_38 {dimension_numbers = #tpu.dot_dimension_numbers<[1], [0], [0], [1], [0, 0, 1, 1], [], []>} : vector<64x96xbf16>, vector<96x32xbf16>, vector<64x32xf32> -> vector<64x32xf32>
    %c0_39 = arith.constant 0 : index
    %c0_40 = arith.constant 0 : index
    %33 = vector.load %arg7[%c0_39, %c0_40] : memref<64x32xf32, #tpu.memory_space<vmem>>, vector<64x32xf32>
    %34 = arith.addf %33, %32 : vector<64x32xf32>
    %c0_41 = arith.constant 0 : index
    %c0_42 = arith.constant 0 : index
    %35 = vector.load %arg7[%c0_41, %c0_42] : memref<64x32xf32, #tpu.memory_space<vmem>>, vector<64x32xf32>
    tpu.vector_store %arg7[%c0_41, %c0_42], %34 {strides = array<i32>} : memref<64x32xf32, #tpu.memory_space<vmem>>, vector<64x32xf32>,
    %c0_43 = arith.constant 0 : index
    %c0_44 = arith.constant 0 : index
    %36 = vector.load %arg7[%c0_43, %c0_44] : memref<64x32xf32, #tpu.memory_space<vmem>>, vector<64x32xf32>
    %c0_45 = arith.constant 0 : index
    %c0_46 = arith.constant 0 : index
    %37 = vector.load %arg4[%c0_45, %c0_46] : memref<1x32xf32, #tpu.memory_space<vmem>>, vector<1x32xf32>
    %38 = vector.broadcast %37 : vector<1x32xf32> to vector<64x32xf32>
    %39 = arith.addf %36, %38 : vector<64x32xf32>
    %cst_47 = arith.constant 0.000000e+00 : f32
    %40 = vector.broadcast %cst_47 : f32 to vector<64x32xf32>
    %41 = arith.maximumf %39, %40 : vector<64x32xf32>
    %42 = vector.shape_cast %41 : vector<64x32xf32> to vector<8x8x32xf32>
    %43 = arith.truncf %42 : vector<8x8x32xf32> to vector<8x8x32xbf16>
    %c0_48 = arith.constant 0 : index
    %c0_49 = arith.constant 0 : index
    %c0_50 = arith.constant 0 : index
    %c0_51 = arith.constant 0 : index
    %44 = vector.load %arg5[%c0_48, %c0_49, %c0_50, %c0_51] : memref<1x8x8x32xbf16, #tpu.memory_space<vmem>>, vector<1x8x8x32xbf16>
    %45 = vector.shape_cast %44 : vector<1x8x8x32xbf16> to vector<8x8x32xbf16>
    %46 = vector.shape_cast %43 : vector<8x8x32xbf16> to vector<1x8x8x32xbf16>
    tpu.vector_store %arg5[%c0_48, %c0_49, %c0_50, %c0_51], %46 {strides = array<i32>} : memref<1x8x8x32xbf16, #tpu.memory_space<vmem>>, vector<1x8x8x32xbf16>,
    return
  }
  func.func @transform_0(%arg0: i32, %arg1: i32) -> (i32, i32, i32, i32) {
    %c0_i32 = arith.constant 0 : i32
    %c0_i32_0 = arith.constant 0 : i32
    %c0_i32_1 = arith.constant 0 : i32
    %c0_i32_2 = arith.constant 0 : i32
    return %arg0, %c0_i32, %c0_i32_0, %c0_i32_1 : i32, i32, i32, i32
  }
  func.func @transform_1(%arg0: i32, %arg1: i32) -> (i32, i32, i32) {
    %c0_i32 = arith.constant 0 : i32
    %c0_i32_0 = arith.constant 0 : i32
    %c0_i32_1 = arith.constant 0 : i32
    %c0_i32_2 = arith.constant 0 : i32
    return %c0_i32, %c0_i32_0, %c0_i32_1 : i32, i32, i32
  }
  func.func @transform_2(%arg0: i32, %arg1: i32) -> (i32, i32) {
    %c0_i32 = arith.constant 0 : i32
    %c0_i32_0 = arith.constant 0 : i32
    %c0_i32_1 = arith.constant 0 : i32
    return %c0_i32, %c0_i32_0 : i32, i32
  }
  func.func @transform_3(%arg0: i32, %arg1: i32) -> (i32, i32, i32, i32) {
    %c0_i32 = arith.constant 0 : i32
    %c0_i32_0 = arith.constant 0 : i32
    %c0_i32_1 = arith.constant 0 : i32
    return %arg0, %arg1, %c0_i32, %c0_i32_0 : i32, i32, i32, i32
  }
}

module attributes {stable_mosaic.version = 11 : i64} {
  func.func @_conv3x3_kernel(%arg0: i32, %arg1: i32, %arg2: memref<1x10x10x32xbf16, #tpu.memory_space<vmem>>, %arg3: memref<1x10x10x32xbf16, #tpu.memory_space<vmem>>, %arg4: memref<3x96x128xbf16, #tpu.memory_space<vmem>>, %arg5: memref<3x96x128xbf16, #tpu.memory_space<vmem>>, %arg6: memref<1x128xf32, #tpu.memory_space<vmem>>, %arg7: memref<1x8x8x128xbf16, #tpu.memory_space<vmem>>, %arg8: memref<10x8x96xbf16, #tpu.memory_space<vmem>>, %arg9: memref<10x8x96xbf16, #tpu.memory_space<vmem>>, %arg10: memref<64x128xf32, #tpu.memory_space<vmem>>) attributes {dimension_semantics = [#tpu.dimension_semantics<parallel>, #tpu.dimension_semantics<arbitrary>], iteration_bounds = array<i64: 2, 1>, scalar_prefetch = 0 : i64, scratch_operands = 3 : i64, tpu.core_type = #tpu.core_type<tc>, window_params = [{transform_indices = @transform_0, window_bounds = array<i64: 1, 10, 10, 32>}, {transform_indices = @transform_1, window_bounds = array<i64: 1, 10, 10, 32>}, {pipeline_mode = #tpu.pipeline_mode<synchronous>, transform_indices = @transform_2, window_bounds = array<i64: 3, 96, 128>}, {pipeline_mode = #tpu.pipeline_mode<synchronous>, transform_indices = @transform_3, window_bounds = array<i64: 3, 96, 128>}, {pipeline_mode = #tpu.pipeline_mode<synchronous>, transform_indices = @transform_4, window_bounds = array<i64: 1, 128>}, {transform_indices = @transform_5, window_bounds = array<i64: 1, 8, 8, 128>}]} {
    %c8_i32 = arith.constant 8 : i32
    %0 = arith.muli %arg1, %c8_i32 : i32
    %1 = tpu.assume_multiple %0, 8 : i32
    %c0 = arith.constant 0 : index
    %2 = arith.index_cast %1 : i32 to index
    %c0_0 = arith.constant 0 : index
    %c0_1 = arith.constant 0 : index
    %3 = vector.load %arg2[%c0, %2, %c0_0, %c0_1] : memref<1x10x10x32xbf16, #tpu.memory_space<vmem>>, vector<1x10x8x32xbf16>
    %4 = vector.shape_cast %3 : vector<1x10x8x32xbf16> to vector<10x8x32xbf16>
    %c0_2 = arith.constant 0 : index
    %c0_3 = arith.constant 0 : index
    %c0_4 = arith.constant 0 : index
    %5 = vector.load %arg8[%c0_2, %c0_3, %c0_4] : memref<10x8x96xbf16, #tpu.memory_space<vmem>>, vector<10x8x32xbf16>
    tpu.vector_store %arg8[%c0_2, %c0_3, %c0_4], %4 {strides = array<i32>} : memref<10x8x96xbf16, #tpu.memory_space<vmem>>, vector<10x8x32xbf16>,
    %c0_5 = arith.constant 0 : index
    %6 = arith.index_cast %1 : i32 to index
    %c1 = arith.constant 1 : index
    %c0_6 = arith.constant 0 : index
    %7 = vector.load %arg2[%c0_5, %6, %c1, %c0_6] : memref<1x10x10x32xbf16, #tpu.memory_space<vmem>>, vector<1x10x8x32xbf16>
    %8 = vector.shape_cast %7 : vector<1x10x8x32xbf16> to vector<10x8x32xbf16>
    %c0_7 = arith.constant 0 : index
    %c0_8 = arith.constant 0 : index
    %c32 = arith.constant 32 : index
    %9 = vector.load %arg8[%c0_7, %c0_8, %c32] : memref<10x8x96xbf16, #tpu.memory_space<vmem>>, vector<10x8x32xbf16>
    tpu.vector_store %arg8[%c0_7, %c0_8, %c32], %8 {strides = array<i32>} : memref<10x8x96xbf16, #tpu.memory_space<vmem>>, vector<10x8x32xbf16>,
    %c0_9 = arith.constant 0 : index
    %10 = arith.index_cast %1 : i32 to index
    %c2 = arith.constant 2 : index
    %c0_10 = arith.constant 0 : index
    %11 = vector.load %arg2[%c0_9, %10, %c2, %c0_10] : memref<1x10x10x32xbf16, #tpu.memory_space<vmem>>, vector<1x10x8x32xbf16>
    %12 = vector.shape_cast %11 : vector<1x10x8x32xbf16> to vector<10x8x32xbf16>
    %c0_11 = arith.constant 0 : index
    %c0_12 = arith.constant 0 : index
    %c64 = arith.constant 64 : index
    %13 = vector.load %arg8[%c0_11, %c0_12, %c64] : memref<10x8x96xbf16, #tpu.memory_space<vmem>>, vector<10x8x32xbf16>
    tpu.vector_store %arg8[%c0_11, %c0_12, %c64], %12 {strides = array<i32>} : memref<10x8x96xbf16, #tpu.memory_space<vmem>>, vector<10x8x32xbf16>,
    %c0_13 = arith.constant 0 : index
    %14 = arith.index_cast %1 : i32 to index
    %c0_14 = arith.constant 0 : index
    %c0_15 = arith.constant 0 : index
    %15 = vector.load %arg3[%c0_13, %14, %c0_14, %c0_15] : memref<1x10x10x32xbf16, #tpu.memory_space<vmem>>, vector<1x10x8x32xbf16>
    %16 = vector.shape_cast %15 : vector<1x10x8x32xbf16> to vector<10x8x32xbf16>
    %c0_16 = arith.constant 0 : index
    %c0_17 = arith.constant 0 : index
    %c0_18 = arith.constant 0 : index
    %17 = vector.load %arg9[%c0_16, %c0_17, %c0_18] : memref<10x8x96xbf16, #tpu.memory_space<vmem>>, vector<10x8x32xbf16>
    tpu.vector_store %arg9[%c0_16, %c0_17, %c0_18], %16 {strides = array<i32>} : memref<10x8x96xbf16, #tpu.memory_space<vmem>>, vector<10x8x32xbf16>,
    %c0_19 = arith.constant 0 : index
    %18 = arith.index_cast %1 : i32 to index
    %c1_20 = arith.constant 1 : index
    %c0_21 = arith.constant 0 : index
    %19 = vector.load %arg3[%c0_19, %18, %c1_20, %c0_21] : memref<1x10x10x32xbf16, #tpu.memory_space<vmem>>, vector<1x10x8x32xbf16>
    %20 = vector.shape_cast %19 : vector<1x10x8x32xbf16> to vector<10x8x32xbf16>
    %c0_22 = arith.constant 0 : index
    %c0_23 = arith.constant 0 : index
    %c32_24 = arith.constant 32 : index
    %21 = vector.load %arg9[%c0_22, %c0_23, %c32_24] : memref<10x8x96xbf16, #tpu.memory_space<vmem>>, vector<10x8x32xbf16>
    tpu.vector_store %arg9[%c0_22, %c0_23, %c32_24], %20 {strides = array<i32>} : memref<10x8x96xbf16, #tpu.memory_space<vmem>>, vector<10x8x32xbf16>,
    %c0_25 = arith.constant 0 : index
    %22 = arith.index_cast %1 : i32 to index
    %c2_26 = arith.constant 2 : index
    %c0_27 = arith.constant 0 : index
    %23 = vector.load %arg3[%c0_25, %22, %c2_26, %c0_27] : memref<1x10x10x32xbf16, #tpu.memory_space<vmem>>, vector<1x10x8x32xbf16>
    %24 = vector.shape_cast %23 : vector<1x10x8x32xbf16> to vector<10x8x32xbf16>
    %c0_28 = arith.constant 0 : index
    %c0_29 = arith.constant 0 : index
    %c64_30 = arith.constant 64 : index
    %25 = vector.load %arg9[%c0_28, %c0_29, %c64_30] : memref<10x8x96xbf16, #tpu.memory_space<vmem>>, vector<10x8x32xbf16>
    tpu.vector_store %arg9[%c0_28, %c0_29, %c64_30], %24 {strides = array<i32>} : memref<10x8x96xbf16, #tpu.memory_space<vmem>>, vector<10x8x32xbf16>,
    %c0_31 = arith.constant 0 : index
    %c0_32 = arith.constant 0 : index
    %c0_33 = arith.constant 0 : index
    %26 = vector.load %arg8[%c0_31, %c0_32, %c0_33] : memref<10x8x96xbf16, #tpu.memory_space<vmem>>, vector<8x8x96xbf16>
    %27 = vector.shape_cast %26 : vector<8x8x96xbf16> to vector<64x96xbf16>
    %c0_34 = arith.constant 0 : index
    %c0_35 = arith.constant 0 : index
    %c0_36 = arith.constant 0 : index
    %28 = vector.load %arg4[%c0_34, %c0_35, %c0_36] : memref<3x96x128xbf16, #tpu.memory_space<vmem>>, vector<1x96x128xbf16>
    %29 = vector.shape_cast %28 : vector<1x96x128xbf16> to vector<96x128xbf16>
    %cst = arith.constant dense<0.000000e+00> : vector<64x128xf32>
    %30 = tpu.matmul %27, %29, %cst {dimension_numbers = #tpu.dot_dimension_numbers<[1], [0], [0], [1], [0, 0, 1, 1], [], []>} : vector<64x96xbf16>, vector<96x128xbf16>, vector<64x128xf32> -> vector<64x128xf32>
    %c0_37 = arith.constant 0 : index
    %c0_38 = arith.constant 0 : index
    %31 = vector.load %arg10[%c0_37, %c0_38] : memref<64x128xf32, #tpu.memory_space<vmem>>, vector<64x128xf32>
    tpu.vector_store %arg10[%c0_37, %c0_38], %30 {strides = array<i32>} : memref<64x128xf32, #tpu.memory_space<vmem>>, vector<64x128xf32>,
    %c1_39 = arith.constant 1 : index
    %c0_40 = arith.constant 0 : index
    %c0_41 = arith.constant 0 : index
    %32 = vector.load %arg8[%c1_39, %c0_40, %c0_41] : memref<10x8x96xbf16, #tpu.memory_space<vmem>>, vector<8x8x96xbf16>
    %33 = vector.shape_cast %32 : vector<8x8x96xbf16> to vector<64x96xbf16>
    %c1_42 = arith.constant 1 : index
    %c0_43 = arith.constant 0 : index
    %c0_44 = arith.constant 0 : index
    %34 = vector.load %arg4[%c1_42, %c0_43, %c0_44] : memref<3x96x128xbf16, #tpu.memory_space<vmem>>, vector<1x96x128xbf16>
    %35 = vector.shape_cast %34 : vector<1x96x128xbf16> to vector<96x128xbf16>
    %cst_45 = arith.constant dense<0.000000e+00> : vector<64x128xf32>
    %36 = tpu.matmul %33, %35, %cst_45 {dimension_numbers = #tpu.dot_dimension_numbers<[1], [0], [0], [1], [0, 0, 1, 1], [], []>} : vector<64x96xbf16>, vector<96x128xbf16>, vector<64x128xf32> -> vector<64x128xf32>
    %c0_46 = arith.constant 0 : index
    %c0_47 = arith.constant 0 : index
    %37 = vector.load %arg10[%c0_46, %c0_47] : memref<64x128xf32, #tpu.memory_space<vmem>>, vector<64x128xf32>
    %38 = arith.addf %37, %36 : vector<64x128xf32>
    %c0_48 = arith.constant 0 : index
    %c0_49 = arith.constant 0 : index
    %39 = vector.load %arg10[%c0_48, %c0_49] : memref<64x128xf32, #tpu.memory_space<vmem>>, vector<64x128xf32>
    tpu.vector_store %arg10[%c0_48, %c0_49], %38 {strides = array<i32>} : memref<64x128xf32, #tpu.memory_space<vmem>>, vector<64x128xf32>,
    %c2_50 = arith.constant 2 : index
    %c0_51 = arith.constant 0 : index
    %c0_52 = arith.constant 0 : index
    %40 = vector.load %arg8[%c2_50, %c0_51, %c0_52] : memref<10x8x96xbf16, #tpu.memory_space<vmem>>, vector<8x8x96xbf16>
    %41 = vector.shape_cast %40 : vector<8x8x96xbf16> to vector<64x96xbf16>
    %c2_53 = arith.constant 2 : index
    %c0_54 = arith.constant 0 : index
    %c0_55 = arith.constant 0 : index
    %42 = vector.load %arg4[%c2_53, %c0_54, %c0_55] : memref<3x96x128xbf16, #tpu.memory_space<vmem>>, vector<1x96x128xbf16>
    %43 = vector.shape_cast %42 : vector<1x96x128xbf16> to vector<96x128xbf16>
    %cst_56 = arith.constant dense<0.000000e+00> : vector<64x128xf32>
    %44 = tpu.matmul %41, %43, %cst_56 {dimension_numbers = #tpu.dot_dimension_numbers<[1], [0], [0], [1], [0, 0, 1, 1], [], []>} : vector<64x96xbf16>, vector<96x128xbf16>, vector<64x128xf32> -> vector<64x128xf32>
    %c0_57 = arith.constant 0 : index
    %c0_58 = arith.constant 0 : index
    %45 = vector.load %arg10[%c0_57, %c0_58] : memref<64x128xf32, #tpu.memory_space<vmem>>, vector<64x128xf32>
    %46 = arith.addf %45, %44 : vector<64x128xf32>
    %c0_59 = arith.constant 0 : index
    %c0_60 = arith.constant 0 : index
    %47 = vector.load %arg10[%c0_59, %c0_60] : memref<64x128xf32, #tpu.memory_space<vmem>>, vector<64x128xf32>
    tpu.vector_store %arg10[%c0_59, %c0_60], %46 {strides = array<i32>} : memref<64x128xf32, #tpu.memory_space<vmem>>, vector<64x128xf32>,
    %c0_61 = arith.constant 0 : index
    %c0_62 = arith.constant 0 : index
    %c0_63 = arith.constant 0 : index
    %48 = vector.load %arg9[%c0_61, %c0_62, %c0_63] : memref<10x8x96xbf16, #tpu.memory_space<vmem>>, vector<8x8x96xbf16>
    %49 = vector.shape_cast %48 : vector<8x8x96xbf16> to vector<64x96xbf16>
    %c0_64 = arith.constant 0 : index
    %c0_65 = arith.constant 0 : index
    %c0_66 = arith.constant 0 : index
    %50 = vector.load %arg5[%c0_64, %c0_65, %c0_66] : memref<3x96x128xbf16, #tpu.memory_space<vmem>>, vector<1x96x128xbf16>
    %51 = vector.shape_cast %50 : vector<1x96x128xbf16> to vector<96x128xbf16>
    %cst_67 = arith.constant dense<0.000000e+00> : vector<64x128xf32>
    %52 = tpu.matmul %49, %51, %cst_67 {dimension_numbers = #tpu.dot_dimension_numbers<[1], [0], [0], [1], [0, 0, 1, 1], [], []>} : vector<64x96xbf16>, vector<96x128xbf16>, vector<64x128xf32> -> vector<64x128xf32>
    %c0_68 = arith.constant 0 : index
    %c0_69 = arith.constant 0 : index
    %53 = vector.load %arg10[%c0_68, %c0_69] : memref<64x128xf32, #tpu.memory_space<vmem>>, vector<64x128xf32>
    %54 = arith.addf %53, %52 : vector<64x128xf32>
    %c0_70 = arith.constant 0 : index
    %c0_71 = arith.constant 0 : index
    %55 = vector.load %arg10[%c0_70, %c0_71] : memref<64x128xf32, #tpu.memory_space<vmem>>, vector<64x128xf32>
    tpu.vector_store %arg10[%c0_70, %c0_71], %54 {strides = array<i32>} : memref<64x128xf32, #tpu.memory_space<vmem>>, vector<64x128xf32>,
    %c1_72 = arith.constant 1 : index
    %c0_73 = arith.constant 0 : index
    %c0_74 = arith.constant 0 : index
    %56 = vector.load %arg9[%c1_72, %c0_73, %c0_74] : memref<10x8x96xbf16, #tpu.memory_space<vmem>>, vector<8x8x96xbf16>
    %57 = vector.shape_cast %56 : vector<8x8x96xbf16> to vector<64x96xbf16>
    %c1_75 = arith.constant 1 : index
    %c0_76 = arith.constant 0 : index
    %c0_77 = arith.constant 0 : index
    %58 = vector.load %arg5[%c1_75, %c0_76, %c0_77] : memref<3x96x128xbf16, #tpu.memory_space<vmem>>, vector<1x96x128xbf16>
    %59 = vector.shape_cast %58 : vector<1x96x128xbf16> to vector<96x128xbf16>
    %cst_78 = arith.constant dense<0.000000e+00> : vector<64x128xf32>
    %60 = tpu.matmul %57, %59, %cst_78 {dimension_numbers = #tpu.dot_dimension_numbers<[1], [0], [0], [1], [0, 0, 1, 1], [], []>} : vector<64x96xbf16>, vector<96x128xbf16>, vector<64x128xf32> -> vector<64x128xf32>
    %c0_79 = arith.constant 0 : index
    %c0_80 = arith.constant 0 : index
    %61 = vector.load %arg10[%c0_79, %c0_80] : memref<64x128xf32, #tpu.memory_space<vmem>>, vector<64x128xf32>
    %62 = arith.addf %61, %60 : vector<64x128xf32>
    %c0_81 = arith.constant 0 : index
    %c0_82 = arith.constant 0 : index
    %63 = vector.load %arg10[%c0_81, %c0_82] : memref<64x128xf32, #tpu.memory_space<vmem>>, vector<64x128xf32>
    tpu.vector_store %arg10[%c0_81, %c0_82], %62 {strides = array<i32>} : memref<64x128xf32, #tpu.memory_space<vmem>>, vector<64x128xf32>,
    %c2_83 = arith.constant 2 : index
    %c0_84 = arith.constant 0 : index
    %c0_85 = arith.constant 0 : index
    %64 = vector.load %arg9[%c2_83, %c0_84, %c0_85] : memref<10x8x96xbf16, #tpu.memory_space<vmem>>, vector<8x8x96xbf16>
    %65 = vector.shape_cast %64 : vector<8x8x96xbf16> to vector<64x96xbf16>
    %c2_86 = arith.constant 2 : index
    %c0_87 = arith.constant 0 : index
    %c0_88 = arith.constant 0 : index
    %66 = vector.load %arg5[%c2_86, %c0_87, %c0_88] : memref<3x96x128xbf16, #tpu.memory_space<vmem>>, vector<1x96x128xbf16>
    %67 = vector.shape_cast %66 : vector<1x96x128xbf16> to vector<96x128xbf16>
    %cst_89 = arith.constant dense<0.000000e+00> : vector<64x128xf32>
    %68 = tpu.matmul %65, %67, %cst_89 {dimension_numbers = #tpu.dot_dimension_numbers<[1], [0], [0], [1], [0, 0, 1, 1], [], []>} : vector<64x96xbf16>, vector<96x128xbf16>, vector<64x128xf32> -> vector<64x128xf32>
    %c0_90 = arith.constant 0 : index
    %c0_91 = arith.constant 0 : index
    %69 = vector.load %arg10[%c0_90, %c0_91] : memref<64x128xf32, #tpu.memory_space<vmem>>, vector<64x128xf32>
    %70 = arith.addf %69, %68 : vector<64x128xf32>
    %c0_92 = arith.constant 0 : index
    %c0_93 = arith.constant 0 : index
    %71 = vector.load %arg10[%c0_92, %c0_93] : memref<64x128xf32, #tpu.memory_space<vmem>>, vector<64x128xf32>
    tpu.vector_store %arg10[%c0_92, %c0_93], %70 {strides = array<i32>} : memref<64x128xf32, #tpu.memory_space<vmem>>, vector<64x128xf32>,
    %c0_94 = arith.constant 0 : index
    %c0_95 = arith.constant 0 : index
    %72 = vector.load %arg10[%c0_94, %c0_95] : memref<64x128xf32, #tpu.memory_space<vmem>>, vector<64x128xf32>
    %c0_96 = arith.constant 0 : index
    %c0_97 = arith.constant 0 : index
    %73 = vector.load %arg6[%c0_96, %c0_97] : memref<1x128xf32, #tpu.memory_space<vmem>>, vector<1x128xf32>
    %74 = vector.broadcast %73 : vector<1x128xf32> to vector<64x128xf32>
    %75 = arith.addf %72, %74 : vector<64x128xf32>
    %cst_98 = arith.constant 0.000000e+00 : f32
    %76 = vector.broadcast %cst_98 : f32 to vector<64x128xf32>
    %77 = arith.maximumf %75, %76 : vector<64x128xf32>
    %78 = vector.shape_cast %77 : vector<64x128xf32> to vector<8x8x128xf32>
    %79 = arith.truncf %78 : vector<8x8x128xf32> to vector<8x8x128xbf16>
    %c0_99 = arith.constant 0 : index
    %c0_100 = arith.constant 0 : index
    %c0_101 = arith.constant 0 : index
    %c0_102 = arith.constant 0 : index
    %80 = vector.load %arg7[%c0_99, %c0_100, %c0_101, %c0_102] : memref<1x8x8x128xbf16, #tpu.memory_space<vmem>>, vector<1x8x8x128xbf16>
    %81 = vector.shape_cast %80 : vector<1x8x8x128xbf16> to vector<8x8x128xbf16>
    %82 = vector.shape_cast %79 : vector<8x8x128xbf16> to vector<1x8x8x128xbf16>
    tpu.vector_store %arg7[%c0_99, %c0_100, %c0_101, %c0_102], %82 {strides = array<i32>} : memref<1x8x8x128xbf16, #tpu.memory_space<vmem>>, vector<1x8x8x128xbf16>,
    return
  }
  func.func @transform_0(%arg0: i32, %arg1: i32) -> (i32, i32, i32, i32) {
    %c0_i32 = arith.constant 0 : i32
    %c0_i32_0 = arith.constant 0 : i32
    %c0_i32_1 = arith.constant 0 : i32
    %c0_i32_2 = arith.constant 0 : i32
    return %arg0, %c0_i32, %c0_i32_0, %c0_i32_1 : i32, i32, i32, i32
  }
  func.func @transform_1(%arg0: i32, %arg1: i32) -> (i32, i32, i32, i32) {
    %c0_i32 = arith.constant 0 : i32
    %c0_i32_0 = arith.constant 0 : i32
    %c0_i32_1 = arith.constant 0 : i32
    %c0_i32_2 = arith.constant 0 : i32
    return %arg0, %c0_i32, %c0_i32_0, %c0_i32_1 : i32, i32, i32, i32
  }
  func.func @transform_2(%arg0: i32, %arg1: i32) -> (i32, i32, i32) {
    %c0_i32 = arith.constant 0 : i32
    %c0_i32_0 = arith.constant 0 : i32
    %c0_i32_1 = arith.constant 0 : i32
    %c0_i32_2 = arith.constant 0 : i32
    return %c0_i32, %c0_i32_0, %c0_i32_1 : i32, i32, i32
  }
  func.func @transform_3(%arg0: i32, %arg1: i32) -> (i32, i32, i32) {
    %c0_i32 = arith.constant 0 : i32
    %c0_i32_0 = arith.constant 0 : i32
    %c0_i32_1 = arith.constant 0 : i32
    %c0_i32_2 = arith.constant 0 : i32
    return %c0_i32, %c0_i32_0, %c0_i32_1 : i32, i32, i32
  }
  func.func @transform_4(%arg0: i32, %arg1: i32) -> (i32, i32) {
    %c0_i32 = arith.constant 0 : i32
    %c0_i32_0 = arith.constant 0 : i32
    %c0_i32_1 = arith.constant 0 : i32
    return %c0_i32, %c0_i32_0 : i32, i32
  }
  func.func @transform_5(%arg0: i32, %arg1: i32) -> (i32, i32, i32, i32) {
    %c0_i32 = arith.constant 0 : i32
    %c0_i32_0 = arith.constant 0 : i32
    %c0_i32_1 = arith.constant 0 : i32
    return %arg0, %arg1, %c0_i32, %c0_i32_0 : i32, i32, i32, i32
  }
}

module attributes {stable_mosaic.version = 11 : i64} {
  func.func @_conv3x3_kernel(%arg0: i32, %arg1: i32, %arg2: memref<1x10x10x128xbf16, #tpu.memory_space<vmem>>, %arg3: memref<3x384x128xbf16, #tpu.memory_space<vmem>>, %arg4: memref<1x128xf32, #tpu.memory_space<vmem>>, %arg5: memref<1x8x8x128xbf16, #tpu.memory_space<vmem>>, %arg6: memref<10x8x384xbf16, #tpu.memory_space<vmem>>, %arg7: memref<64x128xf32, #tpu.memory_space<vmem>>) attributes {dimension_semantics = [#tpu.dimension_semantics<parallel>, #tpu.dimension_semantics<arbitrary>], iteration_bounds = array<i64: 2, 1>, scalar_prefetch = 0 : i64, scratch_operands = 2 : i64, tpu.core_type = #tpu.core_type<tc>, window_params = [{transform_indices = @transform_0, window_bounds = array<i64: 1, 10, 10, 128>}, {pipeline_mode = #tpu.pipeline_mode<synchronous>, transform_indices = @transform_1, window_bounds = array<i64: 3, 384, 128>}, {pipeline_mode = #tpu.pipeline_mode<synchronous>, transform_indices = @transform_2, window_bounds = array<i64: 1, 128>}, {transform_indices = @transform_3, window_bounds = array<i64: 1, 8, 8, 128>}]} {
    %c8_i32 = arith.constant 8 : i32
    %0 = arith.muli %arg1, %c8_i32 : i32
    %1 = tpu.assume_multiple %0, 8 : i32
    %c0 = arith.constant 0 : index
    %2 = arith.index_cast %1 : i32 to index
    %c0_0 = arith.constant 0 : index
    %c0_1 = arith.constant 0 : index
    %3 = vector.load %arg2[%c0, %2, %c0_0, %c0_1] : memref<1x10x10x128xbf16, #tpu.memory_space<vmem>>, vector<1x10x8x128xbf16>
    %4 = vector.shape_cast %3 : vector<1x10x8x128xbf16> to vector<10x8x128xbf16>
    %c0_2 = arith.constant 0 : index
    %c0_3 = arith.constant 0 : index
    %c0_4 = arith.constant 0 : index
    %5 = vector.load %arg6[%c0_2, %c0_3, %c0_4] : memref<10x8x384xbf16, #tpu.memory_space<vmem>>, vector<10x8x128xbf16>
    tpu.vector_store %arg6[%c0_2, %c0_3, %c0_4], %4 {strides = array<i32>} : memref<10x8x384xbf16, #tpu.memory_space<vmem>>, vector<10x8x128xbf16>,
    %c0_5 = arith.constant 0 : index
    %6 = arith.index_cast %1 : i32 to index
    %c1 = arith.constant 1 : index
    %c0_6 = arith.constant 0 : index
    %7 = vector.load %arg2[%c0_5, %6, %c1, %c0_6] : memref<1x10x10x128xbf16, #tpu.memory_space<vmem>>, vector<1x10x8x128xbf16>
    %8 = vector.shape_cast %7 : vector<1x10x8x128xbf16> to vector<10x8x128xbf16>
    %c0_7 = arith.constant 0 : index
    %c0_8 = arith.constant 0 : index
    %c128 = arith.constant 128 : index
    %9 = vector.load %arg6[%c0_7, %c0_8, %c128] : memref<10x8x384xbf16, #tpu.memory_space<vmem>>, vector<10x8x128xbf16>
    tpu.vector_store %arg6[%c0_7, %c0_8, %c128], %8 {strides = array<i32>} : memref<10x8x384xbf16, #tpu.memory_space<vmem>>, vector<10x8x128xbf16>,
    %c0_9 = arith.constant 0 : index
    %10 = arith.index_cast %1 : i32 to index
    %c2 = arith.constant 2 : index
    %c0_10 = arith.constant 0 : index
    %11 = vector.load %arg2[%c0_9, %10, %c2, %c0_10] : memref<1x10x10x128xbf16, #tpu.memory_space<vmem>>, vector<1x10x8x128xbf16>
    %12 = vector.shape_cast %11 : vector<1x10x8x128xbf16> to vector<10x8x128xbf16>
    %c0_11 = arith.constant 0 : index
    %c0_12 = arith.constant 0 : index
    %c256 = arith.constant 256 : index
    %13 = vector.load %arg6[%c0_11, %c0_12, %c256] : memref<10x8x384xbf16, #tpu.memory_space<vmem>>, vector<10x8x128xbf16>
    tpu.vector_store %arg6[%c0_11, %c0_12, %c256], %12 {strides = array<i32>} : memref<10x8x384xbf16, #tpu.memory_space<vmem>>, vector<10x8x128xbf16>,
    %c0_13 = arith.constant 0 : index
    %c0_14 = arith.constant 0 : index
    %c0_15 = arith.constant 0 : index
    %14 = vector.load %arg6[%c0_13, %c0_14, %c0_15] : memref<10x8x384xbf16, #tpu.memory_space<vmem>>, vector<8x8x384xbf16>
    %15 = vector.shape_cast %14 : vector<8x8x384xbf16> to vector<64x384xbf16>
    %c0_16 = arith.constant 0 : index
    %c0_17 = arith.constant 0 : index
    %c0_18 = arith.constant 0 : index
    %16 = vector.load %arg3[%c0_16, %c0_17, %c0_18] : memref<3x384x128xbf16, #tpu.memory_space<vmem>>, vector<1x384x128xbf16>
    %17 = vector.shape_cast %16 : vector<1x384x128xbf16> to vector<384x128xbf16>
    %cst = arith.constant dense<0.000000e+00> : vector<64x128xf32>
    %18 = tpu.matmul %15, %17, %cst {dimension_numbers = #tpu.dot_dimension_numbers<[1], [0], [0], [1], [0, 0, 1, 1], [], []>} : vector<64x384xbf16>, vector<384x128xbf16>, vector<64x128xf32> -> vector<64x128xf32>
    %c0_19 = arith.constant 0 : index
    %c0_20 = arith.constant 0 : index
    %19 = vector.load %arg7[%c0_19, %c0_20] : memref<64x128xf32, #tpu.memory_space<vmem>>, vector<64x128xf32>
    tpu.vector_store %arg7[%c0_19, %c0_20], %18 {strides = array<i32>} : memref<64x128xf32, #tpu.memory_space<vmem>>, vector<64x128xf32>,
    %c1_21 = arith.constant 1 : index
    %c0_22 = arith.constant 0 : index
    %c0_23 = arith.constant 0 : index
    %20 = vector.load %arg6[%c1_21, %c0_22, %c0_23] : memref<10x8x384xbf16, #tpu.memory_space<vmem>>, vector<8x8x384xbf16>
    %21 = vector.shape_cast %20 : vector<8x8x384xbf16> to vector<64x384xbf16>
    %c1_24 = arith.constant 1 : index
    %c0_25 = arith.constant 0 : index
    %c0_26 = arith.constant 0 : index
    %22 = vector.load %arg3[%c1_24, %c0_25, %c0_26] : memref<3x384x128xbf16, #tpu.memory_space<vmem>>, vector<1x384x128xbf16>
    %23 = vector.shape_cast %22 : vector<1x384x128xbf16> to vector<384x128xbf16>
    %cst_27 = arith.constant dense<0.000000e+00> : vector<64x128xf32>
    %24 = tpu.matmul %21, %23, %cst_27 {dimension_numbers = #tpu.dot_dimension_numbers<[1], [0], [0], [1], [0, 0, 1, 1], [], []>} : vector<64x384xbf16>, vector<384x128xbf16>, vector<64x128xf32> -> vector<64x128xf32>
    %c0_28 = arith.constant 0 : index
    %c0_29 = arith.constant 0 : index
    %25 = vector.load %arg7[%c0_28, %c0_29] : memref<64x128xf32, #tpu.memory_space<vmem>>, vector<64x128xf32>
    %26 = arith.addf %25, %24 : vector<64x128xf32>
    %c0_30 = arith.constant 0 : index
    %c0_31 = arith.constant 0 : index
    %27 = vector.load %arg7[%c0_30, %c0_31] : memref<64x128xf32, #tpu.memory_space<vmem>>, vector<64x128xf32>
    tpu.vector_store %arg7[%c0_30, %c0_31], %26 {strides = array<i32>} : memref<64x128xf32, #tpu.memory_space<vmem>>, vector<64x128xf32>,
    %c2_32 = arith.constant 2 : index
    %c0_33 = arith.constant 0 : index
    %c0_34 = arith.constant 0 : index
    %28 = vector.load %arg6[%c2_32, %c0_33, %c0_34] : memref<10x8x384xbf16, #tpu.memory_space<vmem>>, vector<8x8x384xbf16>
    %29 = vector.shape_cast %28 : vector<8x8x384xbf16> to vector<64x384xbf16>
    %c2_35 = arith.constant 2 : index
    %c0_36 = arith.constant 0 : index
    %c0_37 = arith.constant 0 : index
    %30 = vector.load %arg3[%c2_35, %c0_36, %c0_37] : memref<3x384x128xbf16, #tpu.memory_space<vmem>>, vector<1x384x128xbf16>
    %31 = vector.shape_cast %30 : vector<1x384x128xbf16> to vector<384x128xbf16>
    %cst_38 = arith.constant dense<0.000000e+00> : vector<64x128xf32>
    %32 = tpu.matmul %29, %31, %cst_38 {dimension_numbers = #tpu.dot_dimension_numbers<[1], [0], [0], [1], [0, 0, 1, 1], [], []>} : vector<64x384xbf16>, vector<384x128xbf16>, vector<64x128xf32> -> vector<64x128xf32>
    %c0_39 = arith.constant 0 : index
    %c0_40 = arith.constant 0 : index
    %33 = vector.load %arg7[%c0_39, %c0_40] : memref<64x128xf32, #tpu.memory_space<vmem>>, vector<64x128xf32>
    %34 = arith.addf %33, %32 : vector<64x128xf32>
    %c0_41 = arith.constant 0 : index
    %c0_42 = arith.constant 0 : index
    %35 = vector.load %arg7[%c0_41, %c0_42] : memref<64x128xf32, #tpu.memory_space<vmem>>, vector<64x128xf32>
    tpu.vector_store %arg7[%c0_41, %c0_42], %34 {strides = array<i32>} : memref<64x128xf32, #tpu.memory_space<vmem>>, vector<64x128xf32>,
    %c0_43 = arith.constant 0 : index
    %c0_44 = arith.constant 0 : index
    %36 = vector.load %arg7[%c0_43, %c0_44] : memref<64x128xf32, #tpu.memory_space<vmem>>, vector<64x128xf32>
    %c0_45 = arith.constant 0 : index
    %c0_46 = arith.constant 0 : index
    %37 = vector.load %arg4[%c0_45, %c0_46] : memref<1x128xf32, #tpu.memory_space<vmem>>, vector<1x128xf32>
    %38 = vector.broadcast %37 : vector<1x128xf32> to vector<64x128xf32>
    %39 = arith.addf %36, %38 : vector<64x128xf32>
    %cst_47 = arith.constant 0.000000e+00 : f32
    %40 = vector.broadcast %cst_47 : f32 to vector<64x128xf32>
    %41 = arith.maximumf %39, %40 : vector<64x128xf32>
    %42 = vector.shape_cast %41 : vector<64x128xf32> to vector<8x8x128xf32>
    %43 = arith.truncf %42 : vector<8x8x128xf32> to vector<8x8x128xbf16>
    %c0_48 = arith.constant 0 : index
    %c0_49 = arith.constant 0 : index
    %c0_50 = arith.constant 0 : index
    %c0_51 = arith.constant 0 : index
    %44 = vector.load %arg5[%c0_48, %c0_49, %c0_50, %c0_51] : memref<1x8x8x128xbf16, #tpu.memory_space<vmem>>, vector<1x8x8x128xbf16>
    %45 = vector.shape_cast %44 : vector<1x8x8x128xbf16> to vector<8x8x128xbf16>
    %46 = vector.shape_cast %43 : vector<8x8x128xbf16> to vector<1x8x8x128xbf16>
    tpu.vector_store %arg5[%c0_48, %c0_49, %c0_50, %c0_51], %46 {strides = array<i32>} : memref<1x8x8x128xbf16, #tpu.memory_space<vmem>>, vector<1x8x8x128xbf16>,
    return
  }
  func.func @transform_0(%arg0: i32, %arg1: i32) -> (i32, i32, i32, i32) {
    %c0_i32 = arith.constant 0 : i32
    %c0_i32_0 = arith.constant 0 : i32
    %c0_i32_1 = arith.constant 0 : i32
    %c0_i32_2 = arith.constant 0 : i32
    return %arg0, %c0_i32, %c0_i32_0, %c0_i32_1 : i32, i32, i32, i32
  }
  func.func @transform_1(%arg0: i32, %arg1: i32) -> (i32, i32, i32) {
    %c0_i32 = arith.constant 0 : i32
    %c0_i32_0 = arith.constant 0 : i32
    %c0_i32_1 = arith.constant 0 : i32
    %c0_i32_2 = arith.constant 0 : i32
    return %c0_i32, %c0_i32_0, %c0_i32_1 : i32, i32, i32
  }
  func.func @transform_2(%arg0: i32, %arg1: i32) -> (i32, i32) {
    %c0_i32 = arith.constant 0 : i32
    %c0_i32_0 = arith.constant 0 : i32
    %c0_i32_1 = arith.constant 0 : i32
    return %c0_i32, %c0_i32_0 : i32, i32
  }
  func.func @transform_3(%arg0: i32, %arg1: i32) -> (i32, i32, i32, i32) {
    %c0_i32 = arith.constant 0 : i32
    %c0_i32_0 = arith.constant 0 : i32
    %c0_i32_1 = arith.constant 0 : i32
    return %arg0, %arg1, %c0_i32, %c0_i32_0 : i32, i32, i32, i32
  }
}

module attributes {stable_mosaic.version = 11 : i64} {
  func.func @_fc_logsoftmax_kernel(%arg0: i32, %arg1: memref<2x7680xbf16, #tpu.memory_space<vmem>>, %arg2: memref<8x7680xbf16, #tpu.memory_space<vmem>>, %arg3: memref<1x8xf32, #tpu.memory_space<vmem>>, %arg4: memref<2x8xf32, #tpu.memory_space<vmem>>) attributes {dimension_semantics = [#tpu.dimension_semantics<arbitrary>], iteration_bounds = array<i64: 1>, scalar_prefetch = 0 : i64, scratch_operands = 0 : i64, tpu.core_type = #tpu.core_type<tc>, window_params = [{transform_indices = @transform_0, window_bounds = array<i64: 2, 7680>}, {transform_indices = @transform_1, window_bounds = array<i64: 8, 7680>}, {pipeline_mode = #tpu.pipeline_mode<synchronous>, transform_indices = @transform_2, window_bounds = array<i64: 1, 8>}, {pipeline_mode = #tpu.pipeline_mode<synchronous>, transform_indices = @transform_3, window_bounds = array<i64: 2, 8>}]} {
    %c0 = arith.constant 0 : index
    %c0_0 = arith.constant 0 : index
    %0 = vector.load %arg1[%c0, %c0_0] : memref<2x7680xbf16, #tpu.memory_space<vmem>>, vector<2x7680xbf16>
    %c0_1 = arith.constant 0 : index
    %c0_2 = arith.constant 0 : index
    %1 = vector.load %arg2[%c0_1, %c0_2] : memref<8x7680xbf16, #tpu.memory_space<vmem>>, vector<8x7680xbf16>
    %cst = arith.constant dense<0.000000e+00> : vector<2x8xf32>
    %2 = tpu.matmul %0, %1, %cst {dimension_numbers = #tpu.dot_dimension_numbers<[1], [1], [0], [0], [0, 0, 1, 0], [], []>} : vector<2x7680xbf16>, vector<8x7680xbf16>, vector<2x8xf32> -> vector<2x8xf32>
    %c0_i32 = arith.constant 0 : i32
    %3 = arith.cmpi eq, %arg0, %c0_i32 : i32
    %4 = arith.extui %3 : i1 to i32
    %c0_i32_3 = arith.constant 0 : i32
    %5 = arith.cmpi ne, %4, %c0_i32_3 : i32
    scf.if %5 {
      %c0_8 = arith.constant 0 : index
      %c0_9 = arith.constant 0 : index
      %12 = vector.load %arg4[%c0_8, %c0_9] : memref<2x8xf32, #tpu.memory_space<vmem>>, vector<2x8xf32>
      tpu.vector_store %arg4[%c0_8, %c0_9], %2 {strides = array<i32>} : memref<2x8xf32, #tpu.memory_space<vmem>>, vector<2x8xf32>,
    } else {
    }
    %c0_i32_4 = arith.constant 0 : i32
    %6 = arith.cmpi sgt, %arg0, %c0_i32_4 : i32
    %7 = arith.extui %6 : i1 to i32
    %c0_i32_5 = arith.constant 0 : i32
    %8 = arith.cmpi ne, %7, %c0_i32_5 : i32
    scf.if %8 {
      %c0_8 = arith.constant 0 : index
      %c0_9 = arith.constant 0 : index
      %12 = vector.load %arg4[%c0_8, %c0_9] : memref<2x8xf32, #tpu.memory_space<vmem>>, vector<2x8xf32>
      %13 = arith.addf %12, %2 : vector<2x8xf32>
      %c0_10 = arith.constant 0 : index
      %c0_11 = arith.constant 0 : index
      %14 = vector.load %arg4[%c0_10, %c0_11] : memref<2x8xf32, #tpu.memory_space<vmem>>, vector<2x8xf32>
      tpu.vector_store %arg4[%c0_10, %c0_11], %13 {strides = array<i32>} : memref<2x8xf32, #tpu.memory_space<vmem>>, vector<2x8xf32>,
    } else {
    }
    %c0_i32_6 = arith.constant 0 : i32
    %9 = arith.cmpi eq, %arg0, %c0_i32_6 : i32
    %10 = arith.extui %9 : i1 to i32
    %c0_i32_7 = arith.constant 0 : i32
    %11 = arith.cmpi ne, %10, %c0_i32_7 : i32
    scf.if %11 {
      %c0_8 = arith.constant 0 : index
      %c0_9 = arith.constant 0 : index
      %12 = vector.load %arg4[%c0_8, %c0_9] : memref<2x8xf32, #tpu.memory_space<vmem>>, vector<2x8xf32>
      %c0_10 = arith.constant 0 : index
      %c0_11 = arith.constant 0 : index
      %13 = vector.load %arg3[%c0_10, %c0_11] : memref<1x8xf32, #tpu.memory_space<vmem>>, vector<1x8xf32>
      %14 = vector.broadcast %13 : vector<1x8xf32> to vector<2x8xf32>
      %15 = arith.addf %12, %14 : vector<2x8xf32>
      %cst_12 = arith.constant dense<0xFF800000> : vector<2xf32>
      %16 = vector.multi_reduction <maximumf>, %15, %cst_12 [1] : vector<2x8xf32> to vector<2xf32>
      %17 = vector.shape_cast %16 : vector<2xf32> to vector<2x1xf32>
      %18 = vector.broadcast %17 : vector<2x1xf32> to vector<2x8xf32>
      %19 = arith.subf %15, %18 : vector<2x8xf32>
      %20 = math.exp %19 : vector<2x8xf32>
      %cst_13 = arith.constant dense<0.000000e+00> : vector<2xf32>
      %21 = vector.multi_reduction <add>, %20, %cst_13 [1] : vector<2x8xf32> to vector<2xf32>
      %22 = vector.shape_cast %21 : vector<2xf32> to vector<2x1xf32>
      %23 = math.log %22 : vector<2x1xf32>
      %24 = arith.addf %17, %23 : vector<2x1xf32>
      %25 = vector.broadcast %24 : vector<2x1xf32> to vector<2x8xf32>
      %26 = arith.subf %15, %25 : vector<2x8xf32>
      %c0_14 = arith.constant 0 : index
      %c0_15 = arith.constant 0 : index
      %27 = vector.load %arg4[%c0_14, %c0_15] : memref<2x8xf32, #tpu.memory_space<vmem>>, vector<2x8xf32>
      tpu.vector_store %arg4[%c0_14, %c0_15], %26 {strides = array<i32>} : memref<2x8xf32, #tpu.memory_space<vmem>>, vector<2x8xf32>,
    } else {
    }
    return
  }
  func.func @transform_0(%arg0: i32) -> (i32, i32) {
    %c0_i32 = arith.constant 0 : i32
    %c0_i32_0 = arith.constant 0 : i32
    return %c0_i32, %arg0 : i32, i32
  }
  func.func @transform_1(%arg0: i32) -> (i32, i32) {
    %c0_i32 = arith.constant 0 : i32
    %c0_i32_0 = arith.constant 0 : i32
    return %c0_i32, %arg0 : i32, i32
  }
  func.func @transform_2(%arg0: i32) -> (i32, i32) {
    %c0_i32 = arith.constant 0 : i32
    %c0_i32_0 = arith.constant 0 : i32
    %c0_i32_1 = arith.constant 0 : i32
    return %c0_i32, %c0_i32_0 : i32, i32
  }
  func.func @transform_3(%arg0: i32) -> (i32, i32) {
    %c0_i32 = arith.constant 0 : i32
    %c0_i32_0 = arith.constant 0 : i32
    %c0_i32_1 = arith.constant 0 : i32
    return %c0_i32, %c0_i32_0 : i32, i32
  }
}

</mosaic_0001>

<bundles_post_ra>
// kernel: residual_net_forward.9
= control target key start
LH: loop header
LB: loop body
LE: loop exit
PB: predicated region body
PF: predicated region fallthrough
CT: control target
= control target key end

     0   :  { %s1492_s12 = smov 0   ;;  %s1494_s13 = smov 0   ;;  %s1798_s0 = inlined_call_operand.vmem [shape: bf16[2,10,10,32], index: 0, kind: input, shape index: {}]   ;;  %s1799_s1 = inlined_call_operand.vmem [shape: bf16[3,96,32], index: 1, kind: input, shape index: {}]   ;;  %s1800_s2 = inlined_call_operand.vmem [shape: f32[1,32], index: 2, kind: input, shape index: {}]   ;;  %s1801_s3 = inlined_call_operand.vmem [shape: bf16[2,8,8,32], index: 3, kind: output, shape index: {}]  }
   0x1   :  { %s1496_s14 = smov 0  }
   0x2 LB: > { %s25_s15 = sadd.s32 1, %s1464_s13  ;;  %p1203_p0 = scmp.ge.s32.totalorder %s1468_s14, 1  ;;  %s1468_s14 = sphi %s1496_s14, %s13_s14   ;;  %s1464_s13 = sphi %s1494_s13, %s1807_s13   ;;  %s1460_s12 = sphi %s1492_s12, %s1806_s12  }
   0x3   : > { %p27_p1 = scmp.ge.s32.totalorder %s25_s15, 2  ;;  %p151_p2 = scmp.lt.s32.totalorder %s1468_s14, 3 }
   0x5   : > { %s1809_s15 = smov (%p27_p1, %s25_s15), 0  ;;  %p152_p3 = pnand %p1203_p0, %p151_p2 }
   0x6   : > { %p179_p4 = scmp.lt.s32.totalorder (!%p152_p3), %s1460_s12, 1  ;;  %s1470_s5 = smov (!%p152_p3), 64  }
   0x7   : > { %155 = sbr.rel (%p152_p3) target bundleno = 410 (0x19a), region = 32 }
   0xc   : > { %vm464_vm0 = vcmask 1042432   ;;  %v1416_v0 = vld [vmem:[%s1799_s1 + $0x28] sm:$0xff]   ;;  %s1811_s12 = smov (!%p179_p4, %s1460_s12), 1  ;;  %vm465_vm1 = vcmask 1046532   ;;  %v1417_v1 = vld [vmem:[%s1799_s1 + $0x58] sm:$0xff]   ;;  %v1418_v2 = vld [vmem:[%s1799_s1 + $0x20] sm:$0xff]  }
   0xd   : > { %1317 = vmatprep.subr.bf16.mxu0 %v1416_v0  ;;  %s1389_s20 = smul.u32 80, %s1811_s12  ;;  %vm1522_vm2 = vmor %vm464_vm0, %vm465_vm1  ;;  %1337 = vmatprep.subr.bf16.mxu1 %v1417_v1  ;;  %v1419_v4 = vld [vmem:[%s1799_s1 + $0x50] sm:$0xff]   ;;  %vm240_vm3 = vsmask.f32 3328  ;;  %vm241_vm4 = vsmask.f32 7440 }
   0xe   : > { %1318 = vmatpush3.bf16.msra.mxu0 %v1416_v0  ;;  %1338 = vmatpush3.bf16.msra.mxu1 %v1417_v1  ;;  %v1420_v12 = vld [vmem:[%s1799_s1 + $0x18] sm:$0xff]   ;;  %v1421_v16 = vld [vmem:[%s1799_s1 + $0x48] sm:$0xff]   ;;  %v1422_v37 = vld [vmem:[%s1799_s1 + $0x10] sm:$0xff]   ;;  %vm209_vm6 = vcmask 257024   ;;  %vm413_vm7 = vcmask 519424   ;;  %vm537_vm8 = vcmask 781824  }
   0xf   : > { %s1532_s27 = scalar_lea.vmem %s1798_s0, %s1389_s20  ;;  %1319 = vmatprep.subr.bf16.mxu0 %v1418_v2  ;;  %1339 = vmatprep.subr.bf16.mxu1 %v1419_v4  ;;  %v1423_v58 = vld [vmem:[%s1799_s1 + $0x40] sm:$0xff]   ;;  %vm1580_vm5 = vmor %vm240_vm3, %vm241_vm4  ;;  %v1424_v1 = vld [vmem:[%s1799_s1 + $0x8] sm:$0xff]   ;;  %s1471_s20 = smov 32   ;;  %vm624_vm9 = vcmask 785408   ;;  %vm702_vm10 = vcmask 261120  }
  0x10   : > { %v426_v5 = vld [vmem:[%s1532_s27 + $0x8] sm:$0xe]  ;;  %v427_v6 = vld [vmem:[%s1532_s27 + $0xc] sm:$0x1]  ;;  %v424_v7 = vld [vmem:[%s1532_s27] sm:$0xe] }
  0x11   : > { %v1208_v8 = vrot.slane %v426_v5, 9  ;;  %v473_v9 = vrot.slane %v427_v6, 5  ;;  %v425_v10 = vld [vmem:[%s1532_s27 + $0x4] sm:$0x1]  ;;  %v1207_v11 = vrot.slane %v424_v7, 9  ;;  %s1286_s10 = sshll.u32 %s1811_s12, 5 }
  0x12   : > { %1320 = vmatpush3.bf16.msra.mxu0 %v1418_v2  ;;  %v469_v13 = vrot.slane %v425_v10, 5  ;;  %v430_v14 = vld [vmem:[%s1532_s27 + $0x18] sm:$0xe]  ;;  %v431_v15 = vld [vmem:[%s1532_s27 + $0x1c] sm:$0x1]  ;;  %1340 = vmatpush3.bf16.msra.mxu1 %v1419_v4  ;;  %s1769_s17 = scalar_lea.vmem %s1801_s3, %s1286_s10 }
  0x13   : > { %v474_v17 = vsel %vm1522_vm2, %v1208_v8, %v473_v9  ;;  %v1210_v18 = vrot.slane %v430_v14, 9  ;;  %v481_v19 = vrot.slane %v431_v15, 5  ;;  %v428_v20 = vld [vmem:[%s1532_s27 + $0x10] sm:$0xe]  ;;  %v429_v21 = vld [vmem:[%s1532_s27 + $0x14] sm:$0x1]  ;;  %1321 = vmatprep.subr.bf16.mxu0 %v1420_v12  ;;  %1341 = vmatprep.subr.bf16.mxu1 %v1421_v16 }
  0x14   : > { %509 = vrot.lane.b32.xlu1 %v474_v17, %s1470_s5  ;;  %v470_v22 = vsel %vm1522_vm2, %v1207_v11, %v469_v13  ;;  %v1209_v23 = vrot.slane %v428_v20, 9  ;;  %v477_v24 = vrot.slane %v429_v21, 5  ;;  %v432_v25 = vld [vmem:[%s1532_s27 + $0x20] sm:$0xe]  ;;  %v433_v26 = vld [vmem:[%s1532_s27 + $0x24] sm:$0x1] }
  0x15   : > { %507 = vrot.lane.b32.xlu0 %v470_v22, %s1470_s5  ;;  %v482_v27 = vsel %vm1522_vm2, %v1210_v18, %v481_v19  ;;  %v1211_v28 = vrot.slane %v432_v25, 9  ;;  %v485_v29 = vrot.slane %v433_v26, 5  ;;  %v220_v30 = vld [vmem:[%s1532_s27] sm:$0xf]  ;;  %v221_v31 = vld [vmem:[%s1532_s27 + $0x4] sm:$0x1] }
  0x16   : > { %1322 = vmatpush3.bf16.msra.mxu0 %v1420_v12  ;;  %v478_v32 = vsel %vm1522_vm2, %v1209_v23, %v477_v24  ;;  %v244_v33 = vshrl.u32 %v220_v30, 16  ;;  %v247_v34 = vshll.u32 %v220_v30, 16  ;;  %v253_v35 = vshll.u32 %v221_v31, 16  ;;  %v224_v36 = vld [vmem:[%s1532_s27 + $0x10] sm:$0xf]  ;;  %1342 = vmatpush3.bf16.msra.mxu1 %v1421_v16  ;;  %v1425_v13 = vld [vmem:[%s1799_s1 + $0x38] sm:$0xff]  }
  0x17   : > { %v486_v38 = vsel %vm1522_vm2, %v1211_v28, %v485_v29  ;;  %v225_v39 = vld [vmem:[%s1532_s27 + $0x14] sm:$0x1]  ;;  %v272_v40 = vshrl.u32 %v224_v36, 16  ;;  %v275_v41 = vshll.u32 %v224_v36, 16  ;;  %v222_v42 = vld [vmem:[%s1532_s27 + $0x8] sm:$0xf]  ;;  %1323 = vmatprep.subr.bf16.mxu0 %v1422_v37  ;;  %1343 = vmatprep.subr.bf16.mxu1 %v1423_v58 }
  0x18   : > { %513 = vrot.lane.b32.xlu1 %v482_v27, %s1470_s5  ;;  %v246_v43 = vrot.slane %v244_v33, 4  ;;  %v249_v44 = vrot.slane %v247_v34, 5  ;;  %v255_v45 = vrot.slane %v253_v35, 5  ;;  %v281_v46 = vshll.u32 %v225_v39, 16  ;;  %v223_v47 = vld [vmem:[%s1532_s27 + $0xc] sm:$0x1] }
  0x19   : > { %511 = vrot.lane.b32.xlu0 %v478_v32, %s1470_s5  ;;  %v274_v48 = vrot.slane %v272_v40, 4  ;;  %v277_v49 = vrot.slane %v275_v41, 5  ;;  %v258_v50 = vshrl.u32 %v222_v42, 16  ;;  %v261_v51 = vshll.u32 %v222_v42, 16  ;;  %v226_v52 = vld [vmem:[%s1532_s27 + $0x18] sm:$0xf] }
  0x1a   : > { %1324 = vmatpush3.bf16.msra.mxu0 %v1422_v37  ;;  %v250_v53 = vor.u32 %v249_v44, %v246_v43  ;;  %v283_v54 = vrot.slane %v281_v46, 5  ;;  %v267_v55 = vshll.u32 %v223_v47, 16  ;;  %v227_v56 = vld [vmem:[%s1532_s27 + $0x1c] sm:$0x1]  ;;  %v286_v57 = vshrl.u32 %v226_v52, 16  ;;  %1344 = vmatpush3.bf16.msra.mxu1 %v1423_v58  ;;  %v1426_v19 = vld [vmem:[%s1799_s1] sm:$0xff]  }
  0x1b   : > { %v278_v60 = vor.u32 %v277_v49, %v274_v48  ;;  %v260_v61 = vrot.slane %v258_v50, 4  ;;  %v263_v62 = vrot.slane %v261_v51, 5  ;;  %v289_v63 = vshll.u32 %v226_v52, 16  ;;  %v228_v0 = vld [vmem:[%s1532_s27 + $0x20] sm:$0xf]  ;;  %1325 = vmatprep.subr.bf16.mxu0 %v1424_v1  ;;  %1345 = vmatprep.subr.bf16.mxu1 %v1425_v13  ;;  %v1427_v36 = vld [vmem:[%s1799_s1 + $0x30] sm:$0xff]  }
  0x1c   : > { %515 = vrot.lane.b32.xlu1 %v486_v38, %s1470_s5  ;;  %v251_v2 = vrot.slane %v250_v53, 4  ;;  %v269_v4 = vrot.slane %v267_v55, 5  ;;  %v288_v5 = vrot.slane %v286_v57, 4  ;;  %v295_v6 = vshll.u32 %v227_v56, 16  ;;  %v229_v7 = vld [vmem:[%s1532_s27 + $0x24] sm:$0x1] }
  0x1d   : > { %v279_v8 = vrot.slane %v278_v60, 4  ;;  %v264_v9 = vor.u32 %v263_v62, %v260_v61  ;;  %v291_v10 = vrot.slane %v289_v63, 5  ;;  %v300_v11 = vshrl.u32 %v228_v0, 16  ;;  %v232_v12 = vld [vmem:[%s1532_s27 + $0x30] sm:$0xf]  ;;  %v1617_v42 = vld [vmem:[%s1799_s1 + $0x88] sm:$0xff]  }
  0x1e   : > { %v256_v14 = vsel %vm1580_vm5, %v251_v2, %v255_v45  ;;  %v297_v15 = vrot.slane %v295_v6, 5  ;;  %v303_v16 = vshll.u32 %v228_v0, 16  ;;  %v309_v17 = vshll.u32 %v229_v7, 16  ;;  %v233_v18 = vld [vmem:[%s1532_s27 + $0x34] sm:$0x1]  ;;  %1326 = vmatpush3.bf16.msra.mxu0 %v1424_v1  ;;  %1346 = vmatpush3.bf16.msra.mxu1 %v1425_v13 }
  0x1f   : > { %383 = vrot.lane.b32.xlu0 %v256_v14, %s1471_s20  ;;  %v284_v20 = vsel %vm1580_vm5, %v279_v8, %v283_v54  ;;  %v265_v21 = vrot.slane %v264_v9, 4  ;;  %v292_v22 = vor.u32 %v291_v10, %v288_v5  ;;  %v302_v23 = vrot.slane %v300_v11, 4  ;;  %v230_v24 = vld [vmem:[%s1532_s27 + $0x28] sm:$0xf]  ;;  %v231_v25 = vld [vmem:[%s1532_s27 + $0x2c] sm:$0x1]  ;;  %1327 = vmatprep.subr.bf16.mxu0 %v1426_v19 }
  0x20   : > { %387 = vrot.lane.b32.xlu1 %v284_v20, %s1471_s20  ;;  %v305_v26 = vrot.slane %v303_v16, 5  ;;  %v311_v27 = vrot.slane %v309_v17, 5  ;;  %v328_v28 = vshrl.u32 %v232_v12, 16  ;;  %v331_v29 = vshll.u32 %v232_v12, 16  ;;  %v434_v30 = vld [vmem:[%s1532_s27 + $0x28] sm:$0xe]  ;;  %1347 = vmatprep.subr.bf16.mxu1 %v1427_v36 }
  0x21   : > { %v270_v31 = vsel %vm1580_vm5, %v265_v21, %v269_v4  ;;  %v293_v32 = vrot.slane %v292_v22, 4  ;;  %v337_v33 = vshll.u32 %v233_v18, 16  ;;  %v314_v34 = vshrl.u32 %v230_v24, 16  ;;  %v435_v35 = vld [vmem:[%s1532_s27 + $0x2c] sm:$0x1] }
  0x22   : > { %v306_v37 = vor.u32 %v305_v26, %v302_v23  ;;  %v330_v38 = vrot.slane %v328_v28, 4  ;;  %v333_v39 = vrot.slane %v331_v29, 5  ;;  %v317_v40 = vshll.u32 %v230_v24, 16  ;;  %v234_v41 = vld [vmem:[%s1532_s27 + $0x38] sm:$0xf]  ;;  %1328 = vmatpush3.bf16.msra.mxu0 %v1426_v19  ;;  %1348 = vmatpush3.bf16.msra.mxu1 %v1427_v36 }
  0x23   : > { %385 = vrot.lane.b32.xlu0 %v270_v31, %s1471_s20  ;;  %v298_v43 = vsel %vm1580_vm5, %v293_v32, %v297_v15  ;;  %v339_v44 = vrot.slane %v337_v33, 5  ;;  %v316_v45 = vrot.slane %v314_v34, 4  ;;  %v323_v46 = vshll.u32 %v231_v25, 16  ;;  %v235_v47 = vld [vmem:[%s1532_s27 + $0x3c] sm:$0x1]  ;;  %1357 = vmatprep.subr.bf16.mxu0 %v1617_v42 }
  0x24   : > { %389 = vrot.lane.b32.xlu1 %v298_v43, %s1471_s20  ;;  %v307_v48 = vrot.slane %v306_v37, 4  ;;  %v334_v49 = vor.u32 %v333_v39, %v330_v38  ;;  %v319_v50 = vrot.slane %v317_v40, 5  ;;  %v1212_v51 = vrot.slane %v434_v30, 9  ;;  %v438_v56 = vld [vmem:[%s1532_s27 + $0x38] sm:$0xe]  ;;  %1377 = vmatprep.subr.bf16.mxu1 %v1617_v42 }
  0x25   : > { %v325_v52 = vrot.slane %v323_v46, 5  ;;  %v489_v53 = vrot.slane %v435_v35, 5  ;;  %v342_v54 = vshrl.u32 %v234_v41, 16  ;;  %v345_v55 = vshll.u32 %v234_v41, 16  ;;  %v439_v62 = vld [vmem:[%s1532_s27 + $0x3c] sm:$0x1] }
  0x26   : > { %v312_v57 = vsel %vm1580_vm5, %v307_v48, %v311_v27  ;;  %v335_v58 = vrot.slane %v334_v49, 4  ;;  %v320_v60 = vor.u32 %v319_v50, %v316_v45  ;;  %v351_v61 = vshll.u32 %v235_v47, 16  ;;  %v436_v1 = vld [vmem:[%s1532_s27 + $0x30] sm:$0xe]  ;;  %v236_v2 = vld [vmem:[%s1532_s27 + $0x40] sm:$0xf] }
  0x27   : > { %391 = vrot.lane.b32.xlu0 %v312_v57, %s1471_s20  ;;  %v344_v63 = vrot.slane %v342_v54, 4  ;;  %v347_v0 = vrot.slane %v345_v55, 5  ;;  %v1214_v6 = vrot.slane %v438_v56, 9  ;;  %v437_v7 = vld [vmem:[%s1532_s27 + $0x34] sm:$0x1]  ;;  %v497_v11 = vrot.slane %v439_v62, 5 }
  0x28   : > { %v340_v4 = vsel %vm1580_vm5, %v335_v58, %v339_v44  ;;  %v321_v5 = vrot.slane %v320_v60, 4  ;;  %v237_v8 = vld [vmem:[%s1532_s27 + $0x44] sm:$0x1]  ;;  %v353_v10 = vrot.slane %v351_v61, 5  ;;  %v356_v12 = vshrl.u32 %v236_v2, 16 }
  0x29   : > { %395 = vrot.lane.b32.xlu1 %v340_v4, %s1471_s20  ;;  %v348_v9 = vor.u32 %v347_v0, %v344_v63  ;;  %v440_v13 = vld [vmem:[%s1532_s27 + $0x40] sm:$0xe]  ;;  %v490_v15 = vsel %vm1522_vm2, %v1212_v51, %v489_v53  ;;  %v359_v16 = vshll.u32 %v236_v2, 16  ;;  %v365_v17 = vshll.u32 %v237_v8, 16  ;;  %v441_v18 = vld [vmem:[%s1532_s27 + $0x44] sm:$0x1] }
  0x2a   : > { %v326_v14 = vsel %vm1580_vm5, %v321_v5, %v325_v52  ;;  %v238_v19 = vld [vmem:[%s1532_s27 + $0x48] sm:$0xf]  ;;  %v1213_v21 = vrot.slane %v436_v1, 9  ;;  %v358_v22 = vrot.slane %v356_v12, 4  ;;  %v239_v23 = vld [vmem:[%s1532_s27 + $0x4c] sm:$0x1]  ;;  %v498_v34 = vsel %vm1522_vm2, %v1214_v6, %v497_v11 }
  0x2b   : > { %393 = vrot.lane.b32.xlu0 %v326_v14, %s1471_s20  ;;  %v349_v20 = vrot.slane %v348_v9, 4  ;;  %v493_v24 = vrot.slane %v437_v7, 5  ;;  %v361_v25 = vrot.slane %v359_v16, 5  ;;  %v1215_v26 = vrot.slane %v440_v13, 9  ;;  %v442_v28 = vld [vmem:[%s1532_s27 + $0x48] sm:$0xe] }
  0x2c   : > { %v370_v27 = vshrl.u32 %v238_v19, 16  ;;  %v367_v30 = vrot.slane %v365_v17, 5  ;;  %v501_v31 = vrot.slane %v441_v18, 5  ;;  %v373_v32 = vshll.u32 %v238_v19, 16  ;;  %v443_v33 = vld [vmem:[%s1532_s27 + $0x4c] sm:$0x1] }
  0x2d   : > { %517 = vrot.lane.b32.xlu1 %v490_v15, %s1470_s5  ;;  %v354_v29 = vsel %vm1580_vm5, %v349_v20, %v353_v10  ;;  %v362_v35 = vor.u32 %v361_v25, %v358_v22  ;;  %v379_v37 = vshll.u32 %v239_v23, 16  ;;  %v199_v38 = vld [vmem:[%s1532_s27] sm:$0xf]  ;;  %v1216_v40 = vrot.slane %v442_v28, 9  ;;  %v201_v41 = vld [vmem:[%s1532_s27 + $0x10] sm:$0xf] }
  0x2e   : > { %v372_v36 = vrot.slane %v370_v27, 4  ;;  %v375_v39 = vrot.slane %v373_v32, 5  ;;  %210 = vst.msk [vmem:[#allocation2] sm:$0xf] %vm209_vm6, %v199_v38  ;;  %v200_v43 = vld [vmem:[%s1532_s27 + $0x8] sm:$0xf]  ;;  %v494_v44 = vsel %vm1522_vm2, %v1213_v21, %v493_v24  ;;  %v502_v49 = vsel %vm1522_vm2, %v1215_v26, %v501_v31 }
  0x2f   : > { %397 = vrot.lane.b32.xlu0 %v354_v29, %s1471_s20  ;;  %v363_v45 = vrot.slane %v362_v35, 4  ;;  %v505_v46 = vrot.slane %v443_v33, 5  ;;  %212 = vst.msk [vmem:[#allocation2 + $0x8] sm:$0xf] %vm209_vm6, %v201_v41  ;;  %211 = vst.msk [vmem:[#allocation2 + $0x4] sm:$0xf] %vm209_vm6, %v200_v43 }
  0x30   : > { %v376_v47 = vor.u32 %v375_v39, %v372_v36  ;;  %v202_v48 = vld [vmem:[%s1532_s27 + $0x18] sm:$0xf]  ;;  %v203_v50 = vld [vmem:[%s1532_s27 + $0x20] sm:$0xf]  ;;  %v381_v52 = vrot.slane %v379_v37, 5  ;;  %v1438_v19 = vld [vmem:[%s1799_s1 + $0x70] sm:$0xff]  }
  0x31   : > { %521 = vrot.lane.b32.xlu1 %v498_v34, %s1470_s5  ;;  %213 = vst.msk [vmem:[#allocation2 + $0xc] sm:$0xf] %vm209_vm6, %v202_v48  ;;  %214 = vst.msk [vmem:[#allocation2 + $0x10] sm:$0xf] %vm209_vm6, %v203_v50  ;;  %v368_v53 = vsel %vm1580_vm5, %v363_v45, %v367_v30  ;;  %v205_v54 = vld [vmem:[%s1532_s27 + $0x30] sm:$0xf]  ;;  %v506_v56 = vsel %vm1522_vm2, %v1216_v40, %v505_v46 }
  0x32   : > { %v377_v51 = vrot.slane %v376_v47, 4  ;;  %v204_v55 = vld [vmem:[%s1532_s27 + $0x28] sm:$0xf]  ;;  %216 = vst.msk [vmem:[#allocation2 + $0x18] sm:$0xf] %vm209_vm6, %v205_v54  ;;  %v1433_v9 = vld [vmem:[%s1799_s1 + $0x80] sm:$0xff]  }
  0x33   : > { %519 = vrot.lane.b32.xlu0 %v494_v44, %s1470_s5  ;;  %215 = vst.msk [vmem:[#allocation2 + $0x14] sm:$0xf] %vm209_vm6, %v204_v55  ;;  %v206_v57 = vld [vmem:[%s1532_s27 + $0x38] sm:$0xf]  ;;  %v207_v58 = vld [vmem:[%s1532_s27 + $0x40] sm:$0xf] }
  0x34   : > { %217 = vst.msk [vmem:[#allocation2 + $0x1c] sm:$0xf] %vm209_vm6, %v206_v57  ;;  %v382_v60 = vsel %vm1580_vm5, %v377_v51, %v381_v52  ;;  %218 = vst.msk [vmem:[#allocation2 + $0x20] sm:$0xf] %vm209_vm6, %v207_v58  ;;  %v208_v61 = vld [vmem:[%s1532_s27 + $0x48] sm:$0xf] }
  0x35   : > { %523 = vrot.lane.b32.xlu1 %v502_v49, %s1470_s5  ;;  %219 = vst.msk [vmem:[#allocation2 + $0x24] sm:$0xf] %vm209_vm6, %v208_v61  ;;  %v1435_v17 = vld [vmem:[%s1799_s1 + $0x78] sm:$0xff]   ;;  %v1443_v28 = vld [vmem:[%s1799_s1 + $0x60] sm:$0xff]  }
  0x37   : > { %399 = vrot.lane.b32.xlu0 %v368_v53, %s1471_s20 }
  0x39   : > { %525 = vrot.lane.b32.xlu1 %v506_v56, %s1470_s5 }
  0x3b   : > { %401 = vrot.lane.b32.xlu0 %v382_v60, %s1471_s20 }
  0x86   : > { %v510_v3 = vpop.permute.xlu1 %509 }
  0x87   : > { %v508_v62 = vpop.permute.xlu0 %507 }
  0x8a   : > { %v514_v63 = vpop.permute.xlu1 %513 }
  0x8b   : > { %v512_v0 = vpop.permute.xlu0 %511 }
  0x8e   : > { %v516_v1 = vpop.permute.xlu1 %515 }
  0x91   : > { %v384_v2 = vpop.permute.xlu0 %383 }
  0x92   : > { %414 = vst.msk [vmem:[#allocation2] sm:$0xf] %vm413_vm7, %v384_v2  ;;  %v388_v59 = vpop.permute.xlu1 %387 }
  0x93   : > { %538 = vst.msk [vmem:[#allocation2] sm:$0xf] %vm537_vm8, %v508_v62 }
  0x94   : > { %416 = vst.msk [vmem:[#allocation2 + $0x8] sm:$0xf] %vm413_vm7, %v388_v59 }
  0x95   : > { %540 = vst.msk [vmem:[#allocation2 + $0x8] sm:$0xf] %vm537_vm8, %v512_v0  ;;  %v386_v4 = vpop.permute.xlu0 %385 }
  0x96   : > { %415 = vst.msk [vmem:[#allocation2 + $0x4] sm:$0xf] %vm413_vm7, %v386_v4  ;;  %v390_v5 = vpop.permute.xlu1 %389 }
  0x97   : > { %539 = vst.msk [vmem:[#allocation2 + $0x4] sm:$0xf] %vm537_vm8, %v510_v3 }
  0x98   : > { %417 = vst.msk [vmem:[#allocation2 + $0xc] sm:$0xf] %vm413_vm7, %v390_v5 }
  0x99   : > { %541 = vst.msk [vmem:[#allocation2 + $0xc] sm:$0xf] %vm537_vm8, %v514_v63  ;;  %v392_v6 = vpop.permute.xlu0 %391 }
  0x9a   : > { %418 = vst.msk [vmem:[#allocation2 + $0x10] sm:$0xf] %vm413_vm7, %v392_v6 }
  0x9b   : > { %542 = vst.msk [vmem:[#allocation2 + $0x10] sm:$0xf] %vm537_vm8, %v516_v1  ;;  %v396_v7 = vpop.permute.xlu1 %395 }
  0x9c   : > { %420 = vst.msk [vmem:[#allocation2 + $0x18] sm:$0xf] %vm413_vm7, %v396_v7 }
  0x9d   : > { %v394_v8 = vpop.permute.xlu0 %393 }
  0x9e   : > { %419 = vst.msk [vmem:[#allocation2 + $0x14] sm:$0xf] %vm413_vm7, %v394_v8  ;;  %v1428_v10 = vld [vmem:[#allocation2] sm:$0xff]  }
  0x9f   : > { %v518_v11 = vpop.permute.xlu1 %517  ;;  %v1429_v12 = vld [vmem:[#allocation2 + $0x4] sm:$0xff]   ;;  %1329 = vmatprep.mubr.msk.bf16.mxu0 %vm624_vm9, %v1428_v10 }
  0xa0   : > { %v1431_v13 = vld [vmem:[#allocation2 + $0x8] sm:$0xff]   ;;  %543 = vst.msk [vmem:[#allocation2 + $0x14] sm:$0xf] %vm537_vm8, %v518_v11  ;;  %1349 = vmatprep.mubr.msk.bf16.mxu1 %vm624_vm9, %v1429_v12 }
  0xa1   : > { %v398_v14 = vpop.permute.xlu0 %397  ;;  %1330 = vmatmul.mubr.msk.bf16.vlgmr.msra.gmra.mxu0 %vm624_vm9, %v1431_v13  ;;  %v1439_v27 = vld [vmem:[#allocation2 + $0x8] sm:$0xff]  }
  0xa2   : > { %421 = vst.msk [vmem:[#allocation2 + $0x1c] sm:$0xf] %vm413_vm7, %v398_v14  ;;  %v1432_v15 = vld [vmem:[#allocation2 + $0xc] sm:$0xff]   ;;  %1358 = vmatpush3.bf16.msra.mxu0 %v1617_v42 }
  0xa3   : > { %v522_v16 = vpop.permute.xlu1 %521  ;;  %1359 = vmatprep.subr.bf16.mxu0 %v1433_v9  ;;  %1350 = vmatmul.mubr.msk.bf16.vlgmr.msra.gmra.mxu1 %vm624_vm9, %v1432_v15 }
  0xa4   : > { %545 = vst.msk [vmem:[#allocation2 + $0x1c] sm:$0xf] %vm537_vm8, %v522_v16  ;;  %1383 = vmatpush3.bf16.msra.mxu1 %v1617_v42  ;;  %v1440_v42 = vld [vmem:[%s1799_s1 + $0x68] sm:$0xff]   ;;  %v1283_v16 = vld [vmem:[%s1800_s2] ss:$0 sm:$0xff] }
  0xa5   : > { %v520_v18 = vpop.permute.xlu0 %519  ;;  %1378 = vmatprep.subr.bf16.mxu1 %v1433_v9 }
  0xa6   : > { %544 = vst.msk [vmem:[#allocation2 + $0x18] sm:$0xf] %vm537_vm8, %v520_v18  ;;  %1360 = vmatpush3.bf16.msra.mxu0 %v1433_v9 }
  0xa7   : > { %v524_v20 = vpop.permute.xlu1 %523  ;;  %v1434_v21 = vld [vmem:[#allocation2 + $0x10] sm:$0xff]   ;;  %1361 = vmatprep.subr.bf16.mxu0 %v1435_v17 }
  0xa8   : > { %1384 = vmatpush3.bf16.msra.mxu1 %v1433_v9  ;;  %1333 = vmatprep.mubr.msk.bf16.mxu0 %vm624_vm9, %v1434_v21  ;;  %v1444_v31 = vld [vmem:[#allocation2 + $0x10] sm:$0xff]  }
  0xa9   : > { %v400_v22 = vpop.permute.xlu0 %399  ;;  %1379 = vmatprep.subr.bf16.mxu1 %v1435_v17 }
  0xaa   : > { %422 = vst.msk [vmem:[#allocation2 + $0x20] sm:$0xf] %vm413_vm7, %v400_v22  ;;  %1362 = vmatpush3.bf16.msra.mxu0 %v1435_v17 }
  0xab   : > { %546 = vst.msk [vmem:[#allocation2 + $0x20] sm:$0xf] %vm537_vm8, %v524_v20  ;;  %1363 = vmatprep.subr.bf16.mxu0 %v1438_v19  ;;  %v526_v23 = vpop.permute.xlu1 %525 }
  0xac   : > { %1385 = vmatpush3.bf16.msra.mxu1 %v1435_v17 }
  0xad   : > { %v402_v24 = vpop.permute.xlu0 %401  ;;  %v1436_v25 = vld [vmem:[#allocation2 + $0x18] sm:$0xff]   ;;  %1380 = vmatprep.subr.bf16.mxu1 %v1438_v19 }
  0xae   : > { %423 = vst.msk [vmem:[#allocation2 + $0x24] sm:$0xf] %vm413_vm7, %v402_v24  ;;  %v1437_v26 = vld [vmem:[#allocation2 + $0x14] sm:$0xff]   ;;  %1364 = vmatpush3.bf16.msra.mxu0 %v1438_v19 }
  0xaf   : > { %547 = vst.msk [vmem:[#allocation2 + $0x24] sm:$0xf] %vm537_vm8, %v526_v23  ;;  %1334 = vmatmul.mubr.msk.bf16.gmra.mxu0 %vm624_vm9, %v1436_v25  ;;  %1365 = vmatprep.subr.bf16.mxu0 %v1440_v42  ;;  %v1442_v30 = vld [vmem:[#allocation2 + $0x18] sm:$0xff]  }
  0xb0   : > { %1353 = vmatprep.mubr.msk.bf16.mxu1 %vm624_vm9, %v1437_v26  ;;  %1369 = vmatprep.mubr.msk.bf16.mxu0 %vm624_vm9, %v1439_v27 }
  0xb1   : > { %1386 = vmatpush3.bf16.msra.mxu1 %v1438_v19 }
  0xb2   : > { %v1441_v29 = vld [vmem:[#allocation2 + $0x1c] sm:$0xff]   ;;  %1381 = vmatprep.subr.bf16.mxu1 %v1440_v42  ;;  %1366 = vmatpush3.bf16.msra.mxu0 %v1440_v42 }
  0xb3   : > { %1367 = vmatprep.subr.bf16.mxu0 %v1443_v28  ;;  %1354 = vmatmul.mubr.msk.bf16.gmra.mxu1 %vm624_vm9, %v1441_v29 }
  0xb4   : > { %1373 = vmatprep.mubr.msk.bf16.mxu1 %vm624_vm9, %v1442_v30 }
  0xb5   : > { %1387 = vmatpush3.bf16.msra.mxu1 %v1440_v42 }
  0xb6   : > { %1382 = vmatprep.subr.bf16.mxu1 %v1443_v28  ;;  %1368 = vmatpush3.bf16.msra.mxu0 %v1443_v28  ;;  %v1445_v32 = vld [vmem:[#allocation2 + $0x20] sm:$0xff]  }
  0xb9   : > { %1388 = vmatpush3.bf16.msra.mxu1 %v1443_v28  ;;  %1370 = vmatmul.mubr.msk.bf16.vlgmr.msra.gmra.mxu0 %vm624_vm9, %v1444_v31 }
  0xbc   : > { %1374 = vmatmul.mubr.msk.bf16.vlgmr.msra.gmra.mxu1 %vm624_vm9, %v1445_v32 }
 0x161   : > { %v1331_v33 = vpop.f32.mrf.mxu0 }
 0x162   : > { %705 = vst.msk [vmem:[#allocation3 + $0x10] sm:$0xff] %vm702_vm10, %v1331_v33 }
 0x163   : > { %v671_v34 = vpop.f32.mrf.mxu0  ;;  %v1351_v35 = vpop.f32.mrf.mxu1 }
 0x164   : > { %703 = vst.msk [vmem:[#allocation3] sm:$0xff] %vm702_vm10, %v671_v34 }
 0x165   : > { %v1332_v36 = vpop.f32.mrf.mxu0  ;;  %v835_v37 = vpop.f32.mrf.mxu1 }
 0x166   : > { %706 = vst.msk [vmem:[#allocation3 + $0x18] sm:$0xff] %vm702_vm10, %v1332_v36 }
 0x167   : > { %v674_v38 = vpop.f32.mrf.mxu0  ;;  %v1352_v43 = vpop.f32.mrf.mxu1 }
 0x168   : > { %704 = vst.msk [vmem:[#allocation3 + $0x8] sm:$0xff] %vm702_vm10, %v674_v38 }
 0x169   : > { %v868_v39 = vld [vmem:[#allocation3 + $0x10] sm:$0xff]  ;;  %v838_v47 = vpop.f32.mrf.mxu1 }
 0x16a   : > { %v876_v40 = vadd.f32 %v1351_v35, %v868_v39 }
 0x16b   : > { %v866_v41 = vld [vmem:[#allocation3] sm:$0xff] }
 0x16c   : > { %884 = vst.msk [vmem:[#allocation3 + $0x10] sm:$0xff] %vm702_vm10, %v876_v40  ;;  %v874_v44 = vadd.f32 %v866_v41, %v835_v37 }
 0x16d   : > { %v869_v45 = vld [vmem:[#allocation3 + $0x18] sm:$0xff] }
 0x16e   : > { %882 = vst.msk [vmem:[#allocation3] sm:$0xff] %vm702_vm10, %v874_v44  ;;  %v877_v46 = vadd.f32 %v1352_v43, %v869_v45 }
 0x16f   : > { %v867_v48 = vld [vmem:[#allocation3 + $0x8] sm:$0xff]  ;;  %v1335_v49 = vpop.f32.mrf.mxu0 }
 0x170   : > { %885 = vst.msk [vmem:[#allocation3 + $0x18] sm:$0xff] %vm702_vm10, %v877_v46  ;;  %v875_v50 = vadd.f32 %v867_v48, %v838_v47  ;;  %709 = vst.msk [vmem:[#allocation3 + $0x30] sm:$0xff] %vm702_vm10, %v1335_v49 }
 0x171   : > { %v687_v51 = vpop.f32.mrf.mxu0 }
 0x172   : > { %883 = vst.msk [vmem:[#allocation3 + $0x8] sm:$0xff] %vm702_vm10, %v875_v50  ;;  %707 = vst.msk [vmem:[#allocation3 + $0x20] sm:$0xff] %vm702_vm10, %v687_v51 }
 0x173   : > { %v1336_v52 = vpop.f32.mrf.mxu0  ;;  %v1355_v53 = vpop.f32.mrf.mxu1  ;;  %v1047_v3 = vld [vmem:[#allocation3 + $0x10] sm:$0xff] }
 0x174   : > { %710 = vst.msk [vmem:[#allocation3 + $0x38] sm:$0xff] %vm702_vm10, %v1336_v52 }
 0x175   : > { %v690_v54 = vpop.f32.mrf.mxu0  ;;  %v851_v55 = vpop.f32.mrf.mxu1  ;;  %v1045_v59 = vld [vmem:[#allocation3] sm:$0xff] }
 0x176   : > { %708 = vst.msk [vmem:[#allocation3 + $0x28] sm:$0xff] %vm702_vm10, %v690_v54 }
 0x177   : > { %v872_v56 = vld [vmem:[#allocation3 + $0x30] sm:$0xff]  ;;  %v1356_v58 = vpop.f32.mrf.mxu1  ;;  %v1048_v9 = vld [vmem:[#allocation3 + $0x18] sm:$0xff] }
 0x178   : > { %v880_v57 = vadd.f32 %v1355_v53, %v872_v56 }
 0x179   : > { %v870_v60 = vld [vmem:[#allocation3 + $0x20] sm:$0xff]  ;;  %v1371_v61 = vpop.f32.mrf.mxu0  ;;  %v854_v63 = vpop.f32.mrf.mxu1  ;;  %v1046_v14 = vld [vmem:[#allocation3 + $0x8] sm:$0xff] }
 0x17a   : > { %888 = vst.msk [vmem:[#allocation3 + $0x30] sm:$0xff] %vm702_vm10, %v880_v57  ;;  %v878_v62 = vadd.f32 %v870_v60, %v851_v55  ;;  %v1055_v0 = vadd.f32 %v1371_v61, %v1047_v3 }
 0x17b   : > { %v873_v1 = vld [vmem:[#allocation3 + $0x38] sm:$0xff]  ;;  %v1014_v2 = vpop.f32.mrf.mxu0 }
 0x17c   : > { %886 = vst.msk [vmem:[#allocation3 + $0x20] sm:$0xff] %vm702_vm10, %v878_v62  ;;  %v881_v4 = vadd.f32 %v1356_v58, %v873_v1  ;;  %1063 = vst.msk [vmem:[#allocation3 + $0x10] sm:$0xff] %vm702_vm10, %v1055_v0  ;;  %v1375_v5 = vpop.f32.mrf.mxu1  ;;  %v1053_v6 = vadd.f32 %v1045_v59, %v1014_v2 }
 0x17d   : > { %v871_v7 = vld [vmem:[#allocation3 + $0x28] sm:$0xff]  ;;  %v1372_v8 = vpop.f32.mrf.mxu0 }
 0x17e   : > { %889 = vst.msk [vmem:[#allocation3 + $0x38] sm:$0xff] %vm702_vm10, %v881_v4  ;;  %v879_v10 = vadd.f32 %v871_v7, %v854_v63  ;;  %1061 = vst.msk [vmem:[#allocation3] sm:$0xff] %vm702_vm10, %v1053_v6  ;;  %v1056_v11 = vadd.f32 %v1372_v8, %v1048_v9  ;;  %v1030_v12 = vpop.f32.mrf.mxu1 }
 0x17f   : > { %v1017_v13 = vpop.f32.mrf.mxu0 }
 0x180   : > { %887 = vst.msk [vmem:[#allocation3 + $0x28] sm:$0xff] %vm702_vm10, %v879_v10  ;;  %1064 = vst.msk [vmem:[#allocation3 + $0x18] sm:$0xff] %vm702_vm10, %v1056_v11  ;;  %v1054_v15 = vadd.f32 %v1046_v14, %v1017_v13  ;;  %v1376_v21 = vpop.f32.mrf.mxu1 }
 0x181   : > { %v1051_v17 = vld [vmem:[#allocation3 + $0x30] sm:$0xff] }
 0x182   : > { %v1059_v18 = vadd.f32 %v1375_v5, %v1051_v17  ;;  %1062 = vst.msk [vmem:[#allocation3 + $0x8] sm:$0xff] %vm702_vm10, %v1054_v15  ;;  %v1033_v29 = vpop.f32.mrf.mxu1 }
 0x183   : > { %v1071_v19 = vld [vmem:[#allocation3 + $0x10] sm:$0xff]  ;;  %v1049_v20 = vld [vmem:[#allocation3 + $0x20] sm:$0xff] }
 0x184   : > { %v1086_v22 = vadd.f32 %v1283_v16, %v1071_v19  ;;  %1067 = vst.msk [vmem:[#allocation3 + $0x30] sm:$0xff] %vm702_vm10, %v1059_v18  ;;  %v1057_v42 = vadd.f32 %v1049_v20, %v1030_v12 }
 0x185   : > { %v1069_v23 = vld [vmem:[#allocation3] sm:$0xff]  ;;  %v1052_v24 = vld [vmem:[#allocation3 + $0x38] sm:$0xff] }
 0x186   : > { %v1094_v25 = vmax.f32 %v1086_v22, 0.0  ;;  %v1084_v26 = vadd.f32 %v1283_v16, %v1069_v23  ;;  %1065 = vst.msk [vmem:[#allocation3 + $0x20] sm:$0xff] %vm702_vm10, %v1057_v42  ;;  %v1060_v27 = vadd.f32 %v1376_v21, %v1052_v24 }
 0x187   : > { %v1072_v28 = vld [vmem:[#allocation3 + $0x18] sm:$0xff]  ;;  %v1050_v30 = vld [vmem:[#allocation3 + $0x28] sm:$0xff] }
 0x188   : > { %v1102_v31 = vpack.c.bf16 %v1094_v25, %v1094_v25  ;;  %v1092_v32 = vmax.f32 %v1084_v26, 0.0  ;;  %v1087_v33 = vadd.f32 %v1283_v16, %v1072_v28  ;;  %1068 = vst.msk [vmem:[#allocation3 + $0x38] sm:$0xff] %vm702_vm10, %v1060_v27  ;;  %v1058_v34 = vadd.f32 %v1050_v30, %v1033_v29 }
 0x189   : > { %v1070_v35 = vld [vmem:[#allocation3 + $0x8] sm:$0xff] }
 0x18a   : > { %1110 = vst.msk [vmem:[%s1769_s17 + $0x8] sm:$0xf] %vm209_vm6, %v1102_v31  ;;  %v1100_v36 = vpack.c.bf16 %v1092_v32, %v1092_v32  ;;  %v1095_v37 = vmax.f32 %v1087_v33, 0.0  ;;  %v1085_v38 = vadd.f32 %v1283_v16, %v1070_v35 }
 0x18b   : > { %1066 = vst.msk [vmem:[#allocation3 + $0x28] sm:$0xff] %vm702_vm10, %v1058_v34  ;;  %v1075_v39 = vld [vmem:[#allocation3 + $0x30] sm:$0xff] }
 0x18c   : > { %v1090_v40 = vadd.f32 %v1283_v16, %v1075_v39  ;;  %1108 = vst.msk [vmem:[%s1769_s17] sm:$0xf] %vm209_vm6, %v1100_v36  ;;  %v1103_v41 = vpack.c.bf16 %v1095_v37, %v1095_v37  ;;  %v1093_v43 = vmax.f32 %v1085_v38, 0.0 }
 0x18d   : > { %v1073_v44 = vld [vmem:[#allocation3 + $0x20] sm:$0xff] }
 0x18e   : > { %v1098_v45 = vmax.f32 %v1090_v40, 0.0  ;;  %v1088_v46 = vadd.f32 %v1283_v16, %v1073_v44  ;;  %1111 = vst.msk [vmem:[%s1769_s17 + $0xc] sm:$0xf] %vm209_vm6, %v1103_v41  ;;  %v1101_v47 = vpack.c.bf16 %v1093_v43, %v1093_v43 }
 0x18f   : > { %v1076_v48 = vld [vmem:[#allocation3 + $0x38] sm:$0xff] }
 0x190   : > { %v1106_v49 = vpack.c.bf16 %v1098_v45, %v1098_v45  ;;  %v1096_v50 = vmax.f32 %v1088_v46, 0.0  ;;  %v1091_v51 = vadd.f32 %v1283_v16, %v1076_v48  ;;  %1109 = vst.msk [vmem:[%s1769_s17 + $0x4] sm:$0xf] %vm209_vm6, %v1101_v47 }
 0x192   : > { %v1074_v52 = vld [vmem:[#allocation3 + $0x28] sm:$0xff]  ;;  %1114 = vst.msk [vmem:[%s1769_s17 + $0x18] sm:$0xf] %vm209_vm6, %v1106_v49  ;;  %v1104_v53 = vpack.c.bf16 %v1096_v50, %v1096_v50  ;;  %v1099_v54 = vmax.f32 %v1091_v51, 0.0 }
 0x193   : > { %v1089_v55 = vadd.f32 %v1283_v16, %v1074_v52 }
 0x194   : > { %1112 = vst.msk [vmem:[%s1769_s17 + $0x10] sm:$0xf] %vm209_vm6, %v1104_v53  ;;  %v1107_v56 = vpack.c.bf16 %v1099_v54, %v1099_v54 }
 0x195   : > { %v1097_v57 = vmax.f32 %v1089_v55, 0.0 }
 0x196   : > { %1115 = vst.msk [vmem:[%s1769_s17 + $0x1c] sm:$0xf] %vm209_vm6, %v1107_v56 }
 0x197   : > { %v1105_v58 = vpack.c.bf16 %v1097_v57, %v1097_v57 }
 0x199   : > { %1113 = vst.msk [vmem:[%s1769_s17 + $0x14] sm:$0xf] %vm209_vm6, %v1105_v58 }
 0x19a PF: > { %s13_s14 = sadd.s32 1, %s1468_s14   ;;  %s1806_s12 = smov %s1464_s13 }
 0x19b   : > { %p10_p5 = scmp.ge.s32.totalorder %s13_s14, 4   ;;  %s1807_s13 = smov %s1809_s15 }
 0x19d   :  { %12 = sbr.rel (!%p10_p5) target bundleno = 2 (0x2), region = 67 }

// kernel: residual_net_forward.8
= control target key start
LH: loop header
LB: loop body
LE: loop exit
PB: predicated region body
PF: predicated region fallthrough
CT: control target
= control target key end

     0   :  { %s1358_s12 = smov 0   ;;  %s1360_s13 = smov 0   ;;  %s1640_s0 = inlined_call_operand.vmem [shape: bf16[2,10,10,16], index: 0, kind: input, shape index: {}]   ;;  %s1641_s1 = inlined_call_operand.vmem [shape: bf16[3,48,32], index: 1, kind: input, shape index: {}]   ;;  %s1642_s2 = inlined_call_operand.vmem [shape: f32[1,32], index: 2, kind: input, shape index: {}]   ;;  %s1643_s3 = inlined_call_operand.vmem [shape: bf16[2,8,8,32], index: 3, kind: output, shape index: {}]  }
   0x1   :  { %s1362_s14 = smov 0  }
   0x2 LB: > { %s25_s15 = sadd.s32 1, %s1330_s13  ;;  %p1132_p0 = scmp.ge.s32.totalorder %s1334_s14, 1  ;;  %s1334_s14 = sphi %s1362_s14, %s13_s14   ;;  %s1330_s13 = sphi %s1360_s13, %s1649_s13   ;;  %s1326_s12 = sphi %s1358_s12, %s1648_s12  }
   0x3   : > { %p27_p1 = scmp.ge.s32.totalorder %s25_s15, 2  ;;  %p151_p2 = scmp.lt.s32.totalorder %s1334_s14, 3 }
   0x5   : > { %s1651_s15 = smov (%p27_p1, %s25_s15), 0  ;;  %p152_p3 = pnand %p1132_p0, %p151_p2 }
   0x6   : > { %p179_p4 = scmp.lt.s32.totalorder (!%p152_p3), %s1326_s12, 1  ;;  %s1336_s20 = smov (!%p152_p3), 32  }
   0x7   : > { %155 = sbr.rel (%p152_p3) target bundleno = 411 (0x19b), region = 32  ;;  %s1337_s27 = smov (!%p152_p3), 16  }
   0xc   : > { %vm464_vm0 = vcmask 1042432   ;;  %vm465_vm1 = vcmask 1046532   ;;  %s1653_s12 = smov (!%p179_p4, %s1326_s12), 1  ;;  %vm240_vm3 = vsmask.f32 3328  ;;  %v1291_v26 = vld [vmem:[%s1641_s1 + $0x10] sm:$0xff]  }
   0xd   : > { %s1264_s16 = smul.u32 80, %s1653_s12  ;;  %vm1379_vm2 = vmor %vm464_vm0, %vm465_vm1  ;;  %vm241_vm4 = vsmask.f32 7440  ;;  %1216 = vmatprep.subr.bf16.mxu0 %v1291_v26  ;;  %v1292_v47 = vld [vmem:[%s1641_s1 + $0x8] sm:$0xff]   ;;  %vm209_vm6 = vcmask 125952   ;;  %vm413_vm7 = vcmask 257152  }
   0xe   : > { %1217 = vmatpush3.bf16.msra.mxu0 %v1291_v26  ;;  %vm1424_vm5 = vmor %vm240_vm3, %vm241_vm4  ;;  %vm537_vm8 = vcmask 388352   ;;  %vm600_vm9 = vcmask 392192   ;;  %vm678_vm10 = vcmask 261120   ;;  %vm1036_vm11 = vcmask 257024  }
   0xf   : > { %s1386_s19 = scalar_lea.vmem %s1640_s0, %s1264_s16  ;;  %1218 = vmatprep.subr.bf16.mxu0 %v1292_v47 }
  0x10   : > { %v426_v1 = vld [vmem:[%s1386_s19 + $0x8] sm:$0xe]  ;;  %v427_v2 = vld [vmem:[%s1386_s19 + $0xc] sm:$0x1]  ;;  %v424_v3 = vld [vmem:[%s1386_s19] sm:$0xe] }
  0x11   : > { %v1137_v4 = vrot.slane %v426_v1, 9  ;;  %v473_v5 = vrot.slane %v427_v2, 5  ;;  %v425_v6 = vld [vmem:[%s1386_s19 + $0x4] sm:$0x1]  ;;  %v1136_v7 = vrot.slane %v424_v3, 9 }
  0x12   : > { %v469_v8 = vrot.slane %v425_v6, 5  ;;  %v430_v9 = vld [vmem:[%s1386_s19 + $0x18] sm:$0xe]  ;;  %v431_v10 = vld [vmem:[%s1386_s19 + $0x1c] sm:$0x1]  ;;  %1219 = vmatpush3.bf16.msra.mxu0 %v1292_v47  ;;  %v1293_v6 = vld [vmem:[%s1641_s1] sm:$0xff]  }
  0x13   : > { %v474_v11 = vsel %vm1379_vm2, %v1137_v4, %v473_v5  ;;  %v1139_v12 = vrot.slane %v430_v9, 9  ;;  %v481_v13 = vrot.slane %v431_v10, 5  ;;  %v428_v14 = vld [vmem:[%s1386_s19 + $0x10] sm:$0xe]  ;;  %v429_v15 = vld [vmem:[%s1386_s19 + $0x14] sm:$0x1]  ;;  %1220 = vmatprep.subr.bf16.mxu0 %v1293_v6 }
  0x14   : > { %509 = vrot.lane.b32.xlu1 %v474_v11, %s1336_s20  ;;  %v470_v16 = vsel %vm1379_vm2, %v1136_v7, %v469_v8  ;;  %v1138_v17 = vrot.slane %v428_v14, 9  ;;  %v477_v18 = vrot.slane %v429_v15, 5  ;;  %v224_v19 = vld [vmem:[%s1386_s19 + $0x10] sm:$0xf]  ;;  %v225_v20 = vld [vmem:[%s1386_s19 + $0x14] sm:$0x1] }
  0x15   : > { %507 = vrot.lane.b32.xlu0 %v470_v16, %s1336_s20  ;;  %v482_v21 = vsel %vm1379_vm2, %v1139_v12, %v481_v13  ;;  %v272_v22 = vshrl.u32 %v224_v19, 16  ;;  %v275_v23 = vshll.u32 %v224_v19, 16  ;;  %v281_v24 = vshll.u32 %v225_v20, 16  ;;  %v220_v25 = vld [vmem:[%s1386_s19] sm:$0xf] }
  0x16   : > { %v478_v27 = vsel %vm1379_vm2, %v1138_v17, %v477_v18  ;;  %v221_v28 = vld [vmem:[%s1386_s19 + $0x4] sm:$0x1]  ;;  %v244_v29 = vshrl.u32 %v220_v25, 16  ;;  %v247_v30 = vshll.u32 %v220_v25, 16  ;;  %v226_v31 = vld [vmem:[%s1386_s19 + $0x18] sm:$0xf]  ;;  %1221 = vmatpush3.bf16.msra.mxu0 %v1293_v6 }
  0x17   : > { %v274_v32 = vrot.slane %v272_v22, 4  ;;  %v277_v33 = vrot.slane %v275_v23, 5  ;;  %v283_v34 = vrot.slane %v281_v24, 5  ;;  %v253_v35 = vshll.u32 %v221_v28, 16  ;;  %v227_v36 = vld [vmem:[%s1386_s19 + $0x1c] sm:$0x1] }
  0x18   : > { %513 = vrot.lane.b32.xlu1 %v482_v21, %s1336_s20  ;;  %v246_v37 = vrot.slane %v244_v29, 4  ;;  %v249_v38 = vrot.slane %v247_v30, 5  ;;  %v286_v39 = vshrl.u32 %v226_v31, 16  ;;  %v289_v40 = vshll.u32 %v226_v31, 16  ;;  %v222_v41 = vld [vmem:[%s1386_s19 + $0x8] sm:$0xf] }
  0x19   : > { %511 = vrot.lane.b32.xlu0 %v478_v27, %s1336_s20  ;;  %v278_v42 = vor.u32 %v277_v33, %v274_v32  ;;  %v255_v43 = vrot.slane %v253_v35, 5  ;;  %v295_v44 = vshll.u32 %v227_v36, 16  ;;  %v223_v45 = vld [vmem:[%s1386_s19 + $0xc] sm:$0x1]  ;;  %v258_v46 = vshrl.u32 %v222_v41, 16 }
  0x1a   : > { %v250_v49 = vor.u32 %v249_v38, %v246_v37  ;;  %v288_v50 = vrot.slane %v286_v39, 4  ;;  %v291_v51 = vrot.slane %v289_v40, 5  ;;  %v261_v52 = vshll.u32 %v222_v41, 16  ;;  %v230_v53 = vld [vmem:[%s1386_s19 + $0x28] sm:$0xf]  ;;  %v1298_v38 = vld [vmem:[%s1641_s1 + $0x20] sm:$0xff]  }
  0x1b   : > { %v279_v54 = vrot.slane %v278_v42, 4  ;;  %v297_v55 = vrot.slane %v295_v44, 5  ;;  %v260_v56 = vrot.slane %v258_v46, 4  ;;  %v267_v57 = vshll.u32 %v223_v45, 16  ;;  %v231_v58 = vld [vmem:[%s1386_s19 + $0x2c] sm:$0x1] }
  0x1c   : > { %v251_v59 = vrot.slane %v250_v49, 4  ;;  %v292_v60 = vor.u32 %v291_v51, %v288_v50  ;;  %v263_v61 = vrot.slane %v261_v52, 5  ;;  %v314_v62 = vshrl.u32 %v230_v53, 16  ;;  %v228_v63 = vld [vmem:[%s1386_s19 + $0x20] sm:$0xf]  ;;  %v1294_v23 = vld [vmem:[%s1641_s1 + $0x28] sm:$0xff]  }
  0x1d   : > { %v284_v1 = vsel %vm1424_vm5, %v279_v54, %v283_v34  ;;  %v269_v2 = vrot.slane %v267_v57, 5  ;;  %v317_v3 = vshll.u32 %v230_v53, 16  ;;  %v323_v4 = vshll.u32 %v231_v58, 16  ;;  %v229_v5 = vld [vmem:[%s1386_s19 + $0x24] sm:$0x1]  ;;  %1230 = vmatprep.subr.bf16.mxu1 %v1294_v23  ;;  %v1299_v58 = vld [vmem:[%s1641_s1 + $0x18] sm:$0xff]  }
  0x1e   : > { %387 = vrot.lane.b32.xlu1 %v284_v1, %s1337_s27  ;;  %v256_v7 = vsel %vm1424_vm5, %v251_v59, %v255_v43  ;;  %v293_v8 = vrot.slane %v292_v60, 4  ;;  %v264_v9 = vor.u32 %v263_v61, %v260_v56  ;;  %v316_v10 = vrot.slane %v314_v62, 4  ;;  %v234_v11 = vld [vmem:[%s1386_s19 + $0x38] sm:$0xf]  ;;  %v235_v12 = vld [vmem:[%s1386_s19 + $0x3c] sm:$0x1]  ;;  %1231 = vmatpush3.bf16.msra.mxu1 %v1294_v23 }
  0x1f   : > { %383 = vrot.lane.b32.xlu0 %v256_v7, %s1337_s27  ;;  %v319_v13 = vrot.slane %v317_v3, 5  ;;  %v325_v14 = vrot.slane %v323_v4, 5  ;;  %v300_v15 = vshrl.u32 %v228_v63, 16  ;;  %v303_v16 = vshll.u32 %v228_v63, 16  ;;  %v232_v17 = vld [vmem:[%s1386_s19 + $0x30] sm:$0xf]  ;;  %1232 = vmatprep.subr.bf16.mxu1 %v1298_v38 }
  0x20   : > { %v298_v18 = vsel %vm1424_vm5, %v293_v8, %v297_v55  ;;  %v265_v19 = vrot.slane %v264_v9, 4  ;;  %v309_v20 = vshll.u32 %v229_v5, 16  ;;  %v342_v21 = vshrl.u32 %v234_v11, 16  ;;  %v233_v22 = vld [vmem:[%s1386_s19 + $0x34] sm:$0x1] }
  0x21   : > { %v320_v24 = vor.u32 %v319_v13, %v316_v10  ;;  %v302_v25 = vrot.slane %v300_v15, 4  ;;  %v305_v26 = vrot.slane %v303_v16, 5  ;;  %v345_v27 = vshll.u32 %v234_v11, 16  ;;  %v434_v28 = vld [vmem:[%s1386_s19 + $0x28] sm:$0xe] }
  0x22   : > { %389 = vrot.lane.b32.xlu1 %v298_v18, %s1337_s27  ;;  %v270_v29 = vsel %vm1424_vm5, %v265_v19, %v269_v2  ;;  %v311_v30 = vrot.slane %v309_v20, 5  ;;  %v344_v31 = vrot.slane %v342_v21, 4  ;;  %v351_v32 = vshll.u32 %v235_v12, 16  ;;  %v435_v37 = vld [vmem:[%s1386_s19 + $0x2c] sm:$0x1]  ;;  %1233 = vmatpush3.bf16.msra.mxu1 %v1298_v38 }
  0x23   : > { %385 = vrot.lane.b32.xlu0 %v270_v29, %s1337_s27  ;;  %v321_v33 = vrot.slane %v320_v24, 4  ;;  %v306_v34 = vor.u32 %v305_v26, %v302_v25  ;;  %v347_v35 = vrot.slane %v345_v27, 5  ;;  %v328_v36 = vshrl.u32 %v232_v17, 16  ;;  %v432_v43 = vld [vmem:[%s1386_s19 + $0x20] sm:$0xe]  ;;  %1234 = vmatprep.subr.bf16.mxu1 %v1299_v58 }
  0x24   : > { %v353_v39 = vrot.slane %v351_v32, 5  ;;  %v331_v40 = vshll.u32 %v232_v17, 16  ;;  %v337_v41 = vshll.u32 %v233_v22, 16  ;;  %v1141_v42 = vrot.slane %v434_v28, 9  ;;  %v433_v51 = vld [vmem:[%s1386_s19 + $0x24] sm:$0x1] }
  0x25   : > { %v326_v44 = vsel %vm1424_vm5, %v321_v33, %v325_v14  ;;  %v307_v45 = vrot.slane %v306_v34, 4  ;;  %v348_v46 = vor.u32 %v347_v35, %v344_v31  ;;  %v330_v47 = vrot.slane %v328_v36, 4  ;;  %v438_v52 = vld [vmem:[%s1386_s19 + $0x38] sm:$0xe]  ;;  %v439_v57 = vld [vmem:[%s1386_s19 + $0x3c] sm:$0x1] }
  0x26   : > { %393 = vrot.lane.b32.xlu1 %v326_v44, %s1337_s27  ;;  %v333_v49 = vrot.slane %v331_v40, 5  ;;  %v339_v50 = vrot.slane %v337_v41, 5  ;;  %v489_v55 = vrot.slane %v435_v37, 5  ;;  %v1140_v56 = vrot.slane %v432_v43, 9  ;;  %v1473_v60 = vld [vmem:[%s1386_s19 + $0x30] sm:$0xe]  ;;  %1235 = vmatpush3.bf16.msra.mxu1 %v1299_v58 }
  0x27   : > { %v312_v53 = vsel %vm1424_vm5, %v307_v45, %v311_v30  ;;  %v349_v54 = vrot.slane %v348_v46, 4  ;;  %v236_v61 = vld [vmem:[%s1386_s19 + $0x40] sm:$0xf]  ;;  %v237_v62 = vld [vmem:[%s1386_s19 + $0x44] sm:$0x1]  ;;  %v485_v1 = vrot.slane %v433_v51, 5 }
  0x28   : > { %391 = vrot.lane.b32.xlu0 %v312_v53, %s1337_s27  ;;  %v334_v59 = vor.u32 %v333_v49, %v330_v47  ;;  %v1143_v2 = vrot.slane %v438_v52, 9  ;;  %v437_v3 = vld [vmem:[%s1386_s19 + $0x34] sm:$0x1]  ;;  %v356_v4 = vshrl.u32 %v236_v61, 16  ;;  %v359_v6 = vshll.u32 %v236_v61, 16  ;;  %v1491_v17 = vld [vmem:[%s1641_s1 + $0x40] sm:$0xff]  }
  0x29   : > { %v354_v63 = vsel %vm1424_vm5, %v349_v54, %v353_v39  ;;  %v440_v7 = vld [vmem:[%s1386_s19 + $0x40] sm:$0xe]  ;;  %v238_v8 = vld [vmem:[%s1386_s19 + $0x48] sm:$0xf]  ;;  %v490_v9 = vsel %vm1379_vm2, %v1141_v42, %v489_v55  ;;  %v497_v10 = vrot.slane %v439_v57, 5  ;;  %v365_v12 = vshll.u32 %v237_v62, 16  ;;  %1244 = vmatprep.subr.bf16.mxu0 %v1491_v17  ;;  %1258 = vmatprep.subr.bf16.mxu1 %v1491_v17 }
  0x2a   : > { %397 = vrot.lane.b32.xlu1 %v354_v63, %s1337_s27  ;;  %v335_v5 = vrot.slane %v334_v59, 4  ;;  %v358_v11 = vrot.slane %v356_v4, 4  ;;  %v441_v13 = vld [vmem:[%s1386_s19 + $0x44] sm:$0x1]  ;;  %v361_v15 = vrot.slane %v359_v6, 5  ;;  %v370_v16 = vshrl.u32 %v238_v8, 16 }
  0x2b   : > { %v1142_v18 = vrot.slane %v1473_v60, 9  ;;  %v493_v19 = vrot.slane %v437_v3, 5  ;;  %v1144_v20 = vrot.slane %v440_v7, 9  ;;  %v239_v21 = vld [vmem:[%s1386_s19 + $0x4c] sm:$0x1]  ;;  %v373_v22 = vshll.u32 %v238_v8, 16 }
  0x2c   : > { %v340_v14 = vsel %vm1424_vm5, %v335_v5, %v339_v50  ;;  %v486_v23 = vsel %vm1379_vm2, %v1140_v56, %v485_v1  ;;  %v362_v24 = vor.u32 %v361_v15, %v358_v11  ;;  %v501_v25 = vrot.slane %v441_v13, 5  ;;  %v442_v27 = vld [vmem:[%s1386_s19 + $0x48] sm:$0xe]  ;;  %v443_v28 = vld [vmem:[%s1386_s19 + $0x4c] sm:$0x1]  ;;  %v1305_v5 = vld [vmem:[%s1641_s1 + $0x38] sm:$0xff]  }
  0x2d   : > { %395 = vrot.lane.b32.xlu0 %v340_v14, %s1337_s27  ;;  %v372_v26 = vrot.slane %v370_v16, 4  ;;  %v201_v29 = vld [vmem:[%s1386_s19 + $0x10] sm:$0xf]  ;;  %v199_v30 = vld [vmem:[%s1386_s19] sm:$0xf]  ;;  %v498_v31 = vsel %vm1379_vm2, %v1143_v2, %v497_v10  ;;  %v367_v32 = vrot.slane %v365_v12, 5  ;;  %v494_v43 = vsel %vm1379_vm2, %v1142_v18, %v493_v19 }
  0x2e   : > { %517 = vrot.lane.b32.xlu1 %v490_v9, %s1336_s20  ;;  %v375_v33 = vrot.slane %v373_v22, 5  ;;  %212 = vst.msk [vmem:[#allocation2 + $0x8] sm:$0xf] %vm209_vm6, %v201_v29  ;;  %210 = vst.msk [vmem:[#allocation2] sm:$0xf] %vm209_vm6, %v199_v30  ;;  %v363_v36 = vrot.slane %v362_v24, 4  ;;  %v502_v46 = vsel %vm1379_vm2, %v1144_v20, %v501_v25 }
  0x2f   : > { %v202_v34 = vld [vmem:[%s1386_s19 + $0x18] sm:$0xf]  ;;  %v200_v35 = vld [vmem:[%s1386_s19 + $0x8] sm:$0xf]  ;;  %v379_v37 = vshll.u32 %v239_v21, 16  ;;  %v1145_v47 = vrot.slane %v442_v27, 9 }
  0x30   : > { %213 = vst.msk [vmem:[#allocation2 + $0xc] sm:$0xf] %vm209_vm6, %v202_v34  ;;  %211 = vst.msk [vmem:[#allocation2 + $0x4] sm:$0xf] %vm209_vm6, %v200_v35  ;;  %v204_v38 = vld [vmem:[%s1386_s19 + $0x28] sm:$0xf]  ;;  %v376_v44 = vor.u32 %v375_v33, %v372_v26  ;;  %v368_v50 = vsel %vm1424_vm5, %v363_v36, %v367_v32 }
  0x31   : > { %v203_v39 = vld [vmem:[%s1386_s19 + $0x20] sm:$0xf]  ;;  %515 = vrot.lane.b32.xlu0 %v486_v23, %s1336_s20  ;;  %215 = vst.msk [vmem:[#allocation2 + $0x14] sm:$0xf] %vm209_vm6, %v204_v38  ;;  %v206_v40 = vld [vmem:[%s1386_s19 + $0x38] sm:$0xf] }
  0x32   : > { %214 = vst.msk [vmem:[#allocation2 + $0x10] sm:$0xf] %vm209_vm6, %v203_v39  ;;  %v205_v41 = vld [vmem:[%s1386_s19 + $0x30] sm:$0xf]  ;;  %v207_v42 = vld [vmem:[%s1386_s19 + $0x40] sm:$0xf]  ;;  %521 = vrot.lane.b32.xlu1 %v498_v31, %s1336_s20 }
  0x33   : > { %217 = vst.msk [vmem:[#allocation2 + $0x1c] sm:$0xf] %vm209_vm6, %v206_v40  ;;  %216 = vst.msk [vmem:[#allocation2 + $0x18] sm:$0xf] %vm209_vm6, %v205_v41  ;;  %v208_v45 = vld [vmem:[%s1386_s19 + $0x48] sm:$0xf] }
  0x34   : > { %218 = vst.msk [vmem:[#allocation2 + $0x20] sm:$0xf] %vm209_vm6, %v207_v42  ;;  %v505_v49 = vrot.slane %v443_v28, 5  ;;  %219 = vst.msk [vmem:[#allocation2 + $0x24] sm:$0xf] %vm209_vm6, %v208_v45  ;;  %v377_v51 = vrot.slane %v376_v44, 4 }
  0x35   : > { %519 = vrot.lane.b32.xlu0 %v494_v43, %s1336_s20  ;;  %v381_v52 = vrot.slane %v379_v37, 5  ;;  %v1307_v8 = vld [vmem:[%s1641_s1 + $0x30] sm:$0xff]   ;;  %s1194_s19 = sshll.u32 %s1653_s12, 5 }
  0x36   : > { %523 = vrot.lane.b32.xlu1 %v502_v46, %s1336_s20  ;;  %v506_v53 = vsel %vm1379_vm2, %v1145_v47, %v505_v49  ;;  %s1610_s22 = scalar_lea.vmem %s1643_s3, %s1194_s19 }
  0x37   : > { %v382_v54 = vsel %vm1424_vm5, %v377_v51, %v381_v52 }
  0x39   : > { %399 = vrot.lane.b32.xlu0 %v368_v50, %s1337_s27 }
  0x3a   : > { %525 = vrot.lane.b32.xlu1 %v506_v53, %s1336_s20 }
  0x3d   : > { %401 = vrot.lane.b32.xlu0 %v382_v54, %s1337_s27 }
  0x86   : > { %v510_v55 = vpop.permute.xlu1 %509 }
  0x87   : > { %v508_v56 = vpop.permute.xlu0 %507 }
  0x8a   : > { %v514_v57 = vpop.permute.xlu1 %513 }
  0x8b   : > { %v512_v58 = vpop.permute.xlu0 %511 }
  0x90   : > { %v388_v59 = vpop.permute.xlu1 %387 }
  0x91   : > { %416 = vst.msk [vmem:[#allocation2 + $0x8] sm:$0xf] %vm413_vm7, %v388_v59  ;;  %v384_v0 = vpop.permute.xlu0 %383 }
  0x92   : > { %540 = vst.msk [vmem:[#allocation2 + $0x8] sm:$0xf] %vm537_vm8, %v512_v58 }
  0x93   : > { %414 = vst.msk [vmem:[#allocation2] sm:$0xf] %vm413_vm7, %v384_v0 }
  0x94   : > { %538 = vst.msk [vmem:[#allocation2] sm:$0xf] %vm537_vm8, %v508_v56  ;;  %v390_v48 = vpop.permute.xlu1 %389 }
  0x95   : > { %417 = vst.msk [vmem:[#allocation2 + $0xc] sm:$0xf] %vm413_vm7, %v390_v48  ;;  %v386_v60 = vpop.permute.xlu0 %385 }
  0x96   : > { %541 = vst.msk [vmem:[#allocation2 + $0xc] sm:$0xf] %vm537_vm8, %v514_v57 }
  0x97   : > { %415 = vst.msk [vmem:[#allocation2 + $0x4] sm:$0xf] %vm413_vm7, %v386_v60 }
  0x98   : > { %539 = vst.msk [vmem:[#allocation2 + $0x4] sm:$0xf] %vm537_vm8, %v510_v55  ;;  %v394_v61 = vpop.permute.xlu1 %393 }
  0x99   : > { %419 = vst.msk [vmem:[#allocation2 + $0x14] sm:$0xf] %vm413_vm7, %v394_v61 }
  0x9a   : > { %v392_v62 = vpop.permute.xlu0 %391 }
  0x9b   : > { %418 = vst.msk [vmem:[#allocation2 + $0x10] sm:$0xf] %vm413_vm7, %v392_v62 }
  0x9c   : > { %v398_v63 = vpop.permute.xlu1 %397 }
  0x9d   : > { %421 = vst.msk [vmem:[#allocation2 + $0x1c] sm:$0xf] %vm413_vm7, %v398_v63  ;;  %v1297_v1 = vld [vmem:[#allocation2 + $0x8] sm:$0xff]  }
  0x9e   : > { %v1306_v20 = vld [vmem:[#allocation2 + $0x8] sm:$0xff]  }
  0x9f   : > { %v1295_v2 = vld [vmem:[#allocation2] sm:$0xff]   ;;  %v396_v3 = vpop.permute.xlu0 %395 }
  0xa0   : > { %v1296_v4 = vld [vmem:[#allocation2 + $0x4] sm:$0xff]   ;;  %420 = vst.msk [vmem:[#allocation2 + $0x18] sm:$0xf] %vm413_vm7, %v396_v3  ;;  %v518_v6 = vpop.permute.xlu1 %517  ;;  %1222 = vmatprep.mubr.msk.bf16.mxu0 %vm600_vm9, %v1295_v2 }
  0xa1   : > { %543 = vst.msk [vmem:[#allocation2 + $0x14] sm:$0xf] %vm537_vm8, %v518_v6  ;;  %1236 = vmatprep.mubr.msk.bf16.mxu1 %vm600_vm9, %v1296_v4  ;;  %1223 = vmatmul.mubr.msk.bf16.vlgmr.msra.gmra.mxu0 %vm600_vm9, %v1297_v1 }
  0xa2   : > { %1245 = vmatpush3.bf16.msra.mxu0 %v1491_v17 }
  0xa3   : > { %v516_v7 = vpop.permute.xlu0 %515  ;;  %1246 = vmatprep.subr.bf16.mxu0 %v1305_v5 }
  0xa4   : > { %542 = vst.msk [vmem:[#allocation2 + $0x10] sm:$0xf] %vm537_vm8, %v516_v7  ;;  %v522_v9 = vpop.permute.xlu1 %521 }
  0xa5   : > { %545 = vst.msk [vmem:[#allocation2 + $0x1c] sm:$0xf] %vm537_vm8, %v522_v9 }
  0xa6   : > { %1247 = vmatpush3.bf16.msra.mxu0 %v1305_v5 }
  0xa7   : > { %v520_v10 = vpop.permute.xlu0 %519  ;;  %1248 = vmatprep.subr.bf16.mxu0 %v1307_v8 }
  0xa8   : > { %544 = vst.msk [vmem:[#allocation2 + $0x18] sm:$0xf] %vm537_vm8, %v520_v10  ;;  %v524_v11 = vpop.permute.xlu1 %523 }
  0xaa   : > { %1249 = vmatpush3.bf16.msra.mxu0 %v1307_v8 }
  0xab   : > { %v400_v12 = vpop.permute.xlu0 %399  ;;  %v1300_v13 = vld [vmem:[#allocation2 + $0x10] sm:$0xff]  }
  0xac   : > { %422 = vst.msk [vmem:[#allocation2 + $0x20] sm:$0xf] %vm413_vm7, %v400_v12  ;;  %v1301_v14 = vld [vmem:[#allocation2 + $0xc] sm:$0xff]   ;;  %1226 = vmatprep.mubr.msk.bf16.mxu0 %vm600_vm9, %v1300_v13  ;;  %v526_v15 = vpop.permute.xlu1 %525 }
  0xad   : > { %546 = vst.msk [vmem:[#allocation2 + $0x20] sm:$0xf] %vm537_vm8, %v524_v11  ;;  %1237 = vmatmul.mubr.msk.bf16.vlgmr.msra.gmra.mxu1 %vm600_vm9, %v1301_v14 }
  0xae   : > { %1261 = vmatpush3.bf16.msra.mxu1 %v1491_v17  ;;  %v1310_v17 = vld [vmem:[#allocation2 + $0x10] sm:$0xff]  }
  0xaf   : > { %v402_v16 = vpop.permute.xlu0 %401  ;;  %v1303_v18 = vld [vmem:[#allocation2 + $0x18] sm:$0xff]   ;;  %1259 = vmatprep.subr.bf16.mxu1 %v1305_v5 }
  0xb0   : > { %423 = vst.msk [vmem:[#allocation2 + $0x24] sm:$0xf] %vm413_vm7, %v402_v16  ;;  %v1304_v19 = vld [vmem:[#allocation2 + $0x14] sm:$0xff]   ;;  %1227 = vmatmul.mubr.msk.bf16.gmra.mxu0 %vm600_vm9, %v1303_v18 }
  0xb1   : > { %547 = vst.msk [vmem:[#allocation2 + $0x24] sm:$0xf] %vm537_vm8, %v526_v15  ;;  %1240 = vmatprep.mubr.msk.bf16.mxu1 %vm600_vm9, %v1304_v19  ;;  %1250 = vmatprep.mubr.msk.bf16.mxu0 %vm600_vm9, %v1306_v20  ;;  %v1309_v22 = vld [vmem:[#allocation2 + $0x18] sm:$0xff]  }
  0xb2   : > { %1262 = vmatpush3.bf16.msra.mxu1 %v1305_v5  ;;  %v1191_v5 = vld [vmem:[%s1642_s2] ss:$0 sm:$0xff] }
  0xb3   : > { %1260 = vmatprep.subr.bf16.mxu1 %v1307_v8 }
  0xb4   : > { %v1308_v21 = vld [vmem:[#allocation2 + $0x1c] sm:$0xff]  }
  0xb5   : > { %1241 = vmatmul.mubr.msk.bf16.gmra.mxu1 %vm600_vm9, %v1308_v21 }
  0xb6   : > { %1254 = vmatprep.mubr.msk.bf16.mxu1 %vm600_vm9, %v1309_v22  ;;  %1263 = vmatpush3.bf16.msra.mxu1 %v1307_v8 }
  0xb8   : > { %1251 = vmatmul.mubr.msk.bf16.vlgmr.msra.gmra.mxu0 %vm600_vm9, %v1310_v17  ;;  %v1311_v23 = vld [vmem:[#allocation2 + $0x20] sm:$0xff]  }
  0xbd   : > { %1255 = vmatmul.mubr.msk.bf16.vlgmr.msra.gmra.mxu1 %vm600_vm9, %v1311_v23 }
 0x161   : > { %v1224_v24 = vpop.f32.mrf.mxu0 }
 0x162   : > { %681 = vst.msk [vmem:[#allocation3 + $0x10] sm:$0xff] %vm678_vm10, %v1224_v24 }
 0x163   : > { %v647_v25 = vpop.f32.mrf.mxu0 }
 0x164   : > { %679 = vst.msk [vmem:[#allocation3] sm:$0xff] %vm678_vm10, %v647_v25 }
 0x165   : > { %v1225_v26 = vpop.f32.mrf.mxu0 }
 0x166   : > { %682 = vst.msk [vmem:[#allocation3 + $0x18] sm:$0xff] %vm678_vm10, %v1225_v26 }
 0x167   : > { %v650_v27 = vpop.f32.mrf.mxu0 }
 0x168   : > { %680 = vst.msk [vmem:[#allocation3 + $0x8] sm:$0xff] %vm678_vm10, %v650_v27 }
 0x169   : > { %v820_v29 = vld [vmem:[#allocation3 + $0x10] sm:$0xff] }
 0x16b   : > { %v818_v32 = vld [vmem:[#allocation3] sm:$0xff] }
 0x16d   : > { %v1238_v28 = vpop.f32.mrf.mxu1  ;;  %v821_v36 = vld [vmem:[#allocation3 + $0x18] sm:$0xff] }
 0x16e   : > { %v828_v30 = vadd.f32 %v1238_v28, %v820_v29 }
 0x16f   : > { %v787_v31 = vpop.f32.mrf.mxu1  ;;  %v819_v40 = vld [vmem:[#allocation3 + $0x8] sm:$0xff] }
 0x170   : > { %836 = vst.msk [vmem:[#allocation3 + $0x10] sm:$0xff] %vm678_vm10, %v828_v30  ;;  %v826_v33 = vadd.f32 %v818_v32, %v787_v31  ;;  %v1228_v34 = vpop.f32.mrf.mxu0 }
 0x171   : > { %685 = vst.msk [vmem:[#allocation3 + $0x30] sm:$0xff] %vm678_vm10, %v1228_v34  ;;  %v1239_v35 = vpop.f32.mrf.mxu1 }
 0x172   : > { %834 = vst.msk [vmem:[#allocation3] sm:$0xff] %vm678_vm10, %v826_v33  ;;  %v829_v37 = vadd.f32 %v1239_v35, %v821_v36  ;;  %v663_v38 = vpop.f32.mrf.mxu0 }
 0x173   : > { %683 = vst.msk [vmem:[#allocation3 + $0x20] sm:$0xff] %vm678_vm10, %v663_v38  ;;  %v790_v39 = vpop.f32.mrf.mxu1 }
 0x174   : > { %837 = vst.msk [vmem:[#allocation3 + $0x18] sm:$0xff] %vm678_vm10, %v829_v37  ;;  %v827_v41 = vadd.f32 %v819_v40, %v790_v39  ;;  %v1229_v42 = vpop.f32.mrf.mxu0 }
 0x175   : > { %686 = vst.msk [vmem:[#allocation3 + $0x38] sm:$0xff] %vm678_vm10, %v1229_v42  ;;  %v1242_v43 = vpop.f32.mrf.mxu1 }
 0x176   : > { %835 = vst.msk [vmem:[#allocation3 + $0x8] sm:$0xff] %vm678_vm10, %v827_v41  ;;  %v666_v44 = vpop.f32.mrf.mxu0 }
 0x177   : > { %684 = vst.msk [vmem:[#allocation3 + $0x28] sm:$0xff] %vm678_vm10, %v666_v44  ;;  %v803_v45 = vpop.f32.mrf.mxu1  ;;  %v975_v49 = vld [vmem:[#allocation3 + $0x10] sm:$0xff] }
 0x178   : > { %v824_v46 = vld [vmem:[#allocation3 + $0x30] sm:$0xff]  ;;  %v1252_v47 = vpop.f32.mrf.mxu0 }
 0x179   : > { %v832_v50 = vadd.f32 %v1242_v43, %v824_v46  ;;  %v983_v51 = vadd.f32 %v1252_v47, %v975_v49  ;;  %v1243_v52 = vpop.f32.mrf.mxu1  ;;  %v973_v55 = vld [vmem:[#allocation3] sm:$0xff] }
 0x17a   : > { %v822_v53 = vld [vmem:[#allocation3 + $0x20] sm:$0xff]  ;;  %v942_v54 = vpop.f32.mrf.mxu0 }
 0x17b   : > { %840 = vst.msk [vmem:[#allocation3 + $0x30] sm:$0xff] %vm678_vm10, %v832_v50  ;;  %v830_v56 = vadd.f32 %v822_v53, %v803_v45  ;;  %991 = vst.msk [vmem:[#allocation3 + $0x10] sm:$0xff] %vm678_vm10, %v983_v51  ;;  %v981_v57 = vadd.f32 %v973_v55, %v942_v54  ;;  %v806_v58 = vpop.f32.mrf.mxu1  ;;  %v976_v48 = vld [vmem:[#allocation3 + $0x18] sm:$0xff] }
 0x17c   : > { %v825_v59 = vld [vmem:[#allocation3 + $0x38] sm:$0xff]  ;;  %v1253_v0 = vpop.f32.mrf.mxu0 }
 0x17d   : > { %838 = vst.msk [vmem:[#allocation3 + $0x20] sm:$0xff] %vm678_vm10, %v830_v56  ;;  %v833_v60 = vadd.f32 %v1243_v52, %v825_v59  ;;  %989 = vst.msk [vmem:[#allocation3] sm:$0xff] %vm678_vm10, %v981_v57  ;;  %v984_v61 = vadd.f32 %v1253_v0, %v976_v48  ;;  %v1256_v62 = vpop.f32.mrf.mxu1  ;;  %v974_v2 = vld [vmem:[#allocation3 + $0x8] sm:$0xff] }
 0x17e   : > { %v823_v63 = vld [vmem:[#allocation3 + $0x28] sm:$0xff]  ;;  %v945_v1 = vpop.f32.mrf.mxu0 }
 0x17f   : > { %841 = vst.msk [vmem:[#allocation3 + $0x38] sm:$0xff] %vm678_vm10, %v833_v60  ;;  %v831_v3 = vadd.f32 %v823_v63, %v806_v58  ;;  %992 = vst.msk [vmem:[#allocation3 + $0x18] sm:$0xff] %vm678_vm10, %v984_v61  ;;  %v982_v4 = vadd.f32 %v974_v2, %v945_v1  ;;  %v958_v6 = vpop.f32.mrf.mxu1 }
 0x181   : > { %839 = vst.msk [vmem:[#allocation3 + $0x28] sm:$0xff] %vm678_vm10, %v831_v3  ;;  %990 = vst.msk [vmem:[#allocation3 + $0x8] sm:$0xff] %vm678_vm10, %v982_v4  ;;  %v1257_v13 = vpop.f32.mrf.mxu1 }
 0x182   : > { %v999_v7 = vld [vmem:[#allocation3 + $0x10] sm:$0xff] }
 0x183   : > { %v979_v8 = vld [vmem:[#allocation3 + $0x30] sm:$0xff]  ;;  %v1014_v9 = vadd.f32 %v1191_v5, %v999_v7  ;;  %v961_v24 = vpop.f32.mrf.mxu1 }
 0x184   : > { %v987_v10 = vadd.f32 %v1256_v62, %v979_v8  ;;  %v997_v11 = vld [vmem:[#allocation3] sm:$0xff] }
 0x185   : > { %v977_v12 = vld [vmem:[#allocation3 + $0x20] sm:$0xff]  ;;  %v1022_v14 = vmax.f32 %v1014_v9, 0.0  ;;  %v1012_v15 = vadd.f32 %v1191_v5, %v997_v11 }
 0x186   : > { %995 = vst.msk [vmem:[#allocation3 + $0x30] sm:$0xff] %vm678_vm10, %v987_v10  ;;  %v985_v16 = vadd.f32 %v977_v12, %v958_v6  ;;  %v1000_v18 = vld [vmem:[#allocation3 + $0x18] sm:$0xff] }
 0x187   : > { %v980_v19 = vld [vmem:[#allocation3 + $0x38] sm:$0xff]  ;;  %v1030_v20 = vpack.c.bf16 %v1022_v14, %v1022_v14  ;;  %v1020_v21 = vmax.f32 %v1012_v15, 0.0  ;;  %v1015_v22 = vadd.f32 %v1191_v5, %v1000_v18 }
 0x188   : > { %993 = vst.msk [vmem:[#allocation3 + $0x20] sm:$0xff] %vm678_vm10, %v985_v16  ;;  %v988_v17 = vadd.f32 %v1257_v13, %v980_v19  ;;  %v998_v23 = vld [vmem:[#allocation3 + $0x8] sm:$0xff] }
 0x189   : > { %v978_v25 = vld [vmem:[#allocation3 + $0x28] sm:$0xff]  ;;  %1039 = vst.msk [vmem:[%s1610_s22 + $0x8] sm:$0xf] %vm1036_vm11, %v1030_v20  ;;  %v1028_v26 = vpack.c.bf16 %v1020_v21, %v1020_v21  ;;  %v1023_v27 = vmax.f32 %v1015_v22, 0.0  ;;  %v1013_v28 = vadd.f32 %v1191_v5, %v998_v23 }
 0x18a   : > { %996 = vst.msk [vmem:[#allocation3 + $0x38] sm:$0xff] %vm678_vm10, %v988_v17  ;;  %v986_v29 = vadd.f32 %v978_v25, %v961_v24 }
 0x18b   : > { %1037 = vst.msk [vmem:[%s1610_s22] sm:$0xf] %vm1036_vm11, %v1028_v26  ;;  %v1031_v30 = vpack.c.bf16 %v1023_v27, %v1023_v27  ;;  %v1021_v31 = vmax.f32 %v1013_v28, 0.0 }
 0x18c   : > { %994 = vst.msk [vmem:[#allocation3 + $0x28] sm:$0xff] %vm678_vm10, %v986_v29 }
 0x18d   : > { %v1003_v32 = vld [vmem:[#allocation3 + $0x30] sm:$0xff]  ;;  %1040 = vst.msk [vmem:[%s1610_s22 + $0xc] sm:$0xf] %vm1036_vm11, %v1031_v30  ;;  %v1029_v34 = vpack.c.bf16 %v1021_v31, %v1021_v31 }
 0x18e   : > { %v1018_v33 = vadd.f32 %v1191_v5, %v1003_v32 }
 0x18f   : > { %v1001_v35 = vld [vmem:[#allocation3 + $0x20] sm:$0xff]  ;;  %1038 = vst.msk [vmem:[%s1610_s22 + $0x4] sm:$0xf] %vm1036_vm11, %v1029_v34 }
 0x190   : > { %v1026_v36 = vmax.f32 %v1018_v33, 0.0  ;;  %v1016_v37 = vadd.f32 %v1191_v5, %v1001_v35 }
 0x191   : > { %v1004_v38 = vld [vmem:[#allocation3 + $0x38] sm:$0xff] }
 0x192   : > { %v1034_v39 = vpack.c.bf16 %v1026_v36, %v1026_v36  ;;  %v1024_v40 = vmax.f32 %v1016_v37, 0.0  ;;  %v1019_v41 = vadd.f32 %v1191_v5, %v1004_v38 }
 0x193   : > { %v1002_v42 = vld [vmem:[#allocation3 + $0x28] sm:$0xff] }
 0x194   : > { %1043 = vst.msk [vmem:[%s1610_s22 + $0x18] sm:$0xf] %vm1036_vm11, %v1034_v39  ;;  %v1032_v43 = vpack.c.bf16 %v1024_v40, %v1024_v40  ;;  %v1027_v44 = vmax.f32 %v1019_v41, 0.0  ;;  %v1017_v45 = vadd.f32 %v1191_v5, %v1002_v42 }
 0x196   : > { %1041 = vst.msk [vmem:[%s1610_s22 + $0x10] sm:$0xf] %vm1036_vm11, %v1032_v43  ;;  %v1035_v46 = vpack.c.bf16 %v1027_v44, %v1027_v44  ;;  %v1025_v47 = vmax.f32 %v1017_v45, 0.0 }
 0x198   : > { %1044 = vst.msk [vmem:[%s1610_s22 + $0x1c] sm:$0xf] %vm1036_vm11, %v1035_v46  ;;  %v1033_v49 = vpack.c.bf16 %v1025_v47, %v1025_v47 }
 0x19a   : > { %1042 = vst.msk [vmem:[%s1610_s22 + $0x14] sm:$0xf] %vm1036_vm11, %v1033_v49 }
 0x19b PF: > { %s13_s14 = sadd.s32 1, %s1334_s14   ;;  %s1648_s12 = smov %s1330_s13 }
 0x19c   : > { %p10_p5 = scmp.ge.s32.totalorder %s13_s14, 4   ;;  %s1649_s13 = smov %s1651_s15 }
 0x19e   :  { %12 = sbr.rel (!%p10_p5) target bundleno = 2 (0x2), region = 67 }

// kernel: residual_net_forward.10
= control target key start
LH: loop header
LB: loop body
LE: loop exit
PB: predicated region body
PF: predicated region fallthrough
CT: control target
= control target key end

     0   :  { %s2674_s18 = smov 0   ;;  %s2676_s19 = smov 0   ;;  %s3200_s0 = inlined_call_operand.vmem [shape: bf16[2,10,10,32], index: 0, kind: input, shape index: {}]   ;;  %s3201_s1 = inlined_call_operand.vmem [shape: bf16[2,10,10,32], index: 1, kind: input, shape index: {}]   ;;  %s3202_s2 = inlined_call_operand.vmem [shape: bf16[3,96,128], index: 2, kind: input, shape index: {}]   ;;  %s3203_s3 = inlined_call_operand.vmem [shape: bf16[3,96,128], index: 3, kind: input, shape index: {}]   ;;  %s3204_s4 = inlined_call_operand.vmem [shape: f32[1,128], index: 4, kind: input, shape index: {}]   ;;  %s3205_s5 = inlined_call_operand.vmem [shape: bf16[2,8,8,128], index: 5, kind: output, shape index: {}]  }
   0x1   :  { %s2678_s20 = smov 0  }
   0x2 LB: > { %s27_s21 = sadd.s32 1, %s2636_s19  ;;  %p2167_p0 = scmp.ge.s32.totalorder %s2640_s20, 1  ;;  %s2640_s20 = sphi %s2678_s20, %s15_s20   ;;  %s2636_s19 = sphi %s2676_s19, %s3211_s19   ;;  %s2632_s18 = sphi %s2674_s18, %s3210_s18  }
   0x3   : > { %p29_p1 = scmp.ge.s32.totalorder %s27_s21, 2  ;;  %p211_p2 = scmp.lt.s32.totalorder %s2640_s20, 3 }
   0x5   : > { %s3213_s21 = smov (%p29_p1, %s27_s21), 0  ;;  %p212_p3 = pnand %p2167_p0, %p211_p2 }
   0x6   : > { %p248_p4 = scmp.lt.s32.totalorder (!%p212_p3), %s2632_s18, 1  ;;  %s2642_s13 = smov (!%p212_p3), 64  }
   0x7   : > { %215 = sbr.rel (%p212_p3) target bundleno = 438 (0x1b6), region = 40  ;;  %s2643_s29 = smov (!%p212_p3), 32  }
   0xc   : > { %vm538_vm0 = vcmask 1042432   ;;  %v2558_v0 = vld [vmem:[%s3202_s2 + $0x28] sm:$0xff]   ;;  %s3215_s18 = smov (!%p248_p4, %s2632_s18), 1  ;;  %vm539_vm1 = vcmask 1046532   ;;  %v2559_v1 = vld [vmem:[%s3202_s2 + $0x58] sm:$0xff]   ;;  %v2560_v2 = vld [vmem:[%s3202_s2 + $0x20] sm:$0xff]  }
   0xd   : > { %2411 = vmatprep.subr.bf16.mxu0 %v2558_v0  ;;  %s2531_s26 = smul.u32 80, %s3215_s18  ;;  %vm2704_vm2 = vmor %vm538_vm0, %vm539_vm1  ;;  %2431 = vmatprep.subr.bf16.mxu1 %v2559_v1  ;;  %v2561_v4 = vld [vmem:[%s3202_s2 + $0x50] sm:$0xff]   ;;  %vm314_vm3 = vsmask.f32 3328  ;;  %vm315_vm4 = vsmask.f32 7440 }
   0xe   : > { %2412 = vmatpush3.bf16.msra.mxu0 %v2558_v0  ;;  %2432 = vmatpush3.bf16.msra.mxu1 %v2559_v1  ;;  %v2562_v12 = vld [vmem:[%s3202_s2 + $0x18] sm:$0xff]   ;;  %v2563_v16 = vld [vmem:[%s3202_s2 + $0x48] sm:$0xff]   ;;  %v2564_v37 = vld [vmem:[%s3202_s2 + $0x10] sm:$0xff]   ;;  %vm283_vm6 = vcmask 257024   ;;  %vm487_vm7 = vcmask 519424   ;;  %vm611_vm8 = vcmask 781824  }
   0xf   : > { %s2716_s8 = scalar_lea.vmem %s3200_s0, %s2531_s26  ;;  %2413 = vmatprep.subr.bf16.mxu0 %v2560_v2  ;;  %2433 = vmatprep.subr.bf16.mxu1 %v2561_v4  ;;  %v2565_v58 = vld [vmem:[%s3202_s2 + $0x40] sm:$0xff]   ;;  %vm2764_vm5 = vmor %vm314_vm3, %vm315_vm4  ;;  %v2566_v1 = vld [vmem:[%s3202_s2 + $0x8] sm:$0xff]   ;;  %s2824_s12 = scalar_lea.vmem %s3201_s1, %s2531_s26  ;;  %vm1040_vm9 = vcmask 785408  }
  0x10   : > { %v500_v5 = vld [vmem:[%s2716_s8 + $0x8] sm:$0xe]  ;;  %v501_v6 = vld [vmem:[%s2716_s8 + $0xc] sm:$0x1]  ;;  %v498_v7 = vld [vmem:[%s2716_s8] sm:$0xe] }
  0x11   : > { %v2173_v8 = vrot.slane %v500_v5, 9  ;;  %v547_v9 = vrot.slane %v501_v6, 5  ;;  %v499_v10 = vld [vmem:[%s2716_s8 + $0x4] sm:$0x1]  ;;  %v2172_v11 = vrot.slane %v498_v7, 9  ;;  %s2327_s17 = sshll.u32 %s3215_s18, 5 }
  0x12   : > { %2414 = vmatpush3.bf16.msra.mxu0 %v2560_v2  ;;  %v543_v13 = vrot.slane %v499_v10, 5  ;;  %v504_v14 = vld [vmem:[%s2716_s8 + $0x18] sm:$0xe]  ;;  %v505_v15 = vld [vmem:[%s2716_s8 + $0x1c] sm:$0x1]  ;;  %2434 = vmatpush3.bf16.msra.mxu1 %v2561_v4  ;;  %s266_s24 = scalar_lea.vmem %s3205_s5, %s2327_s17 }
  0x13   : > { %v548_v17 = vsel %vm2704_vm2, %v2173_v8, %v547_v9  ;;  %v2175_v18 = vrot.slane %v504_v14, 9  ;;  %v555_v19 = vrot.slane %v505_v15, 5  ;;  %v502_v20 = vld [vmem:[%s2716_s8 + $0x10] sm:$0xe]  ;;  %v503_v21 = vld [vmem:[%s2716_s8 + $0x14] sm:$0x1]  ;;  %2415 = vmatprep.subr.bf16.mxu0 %v2562_v12  ;;  %2435 = vmatprep.subr.bf16.mxu1 %v2563_v16 }
  0x14   : > { %583 = vrot.lane.b32.xlu1 %v548_v17, %s2642_s13  ;;  %v544_v22 = vsel %vm2704_vm2, %v2172_v11, %v543_v13  ;;  %v2174_v23 = vrot.slane %v502_v20, 9  ;;  %v551_v24 = vrot.slane %v503_v21, 5  ;;  %v506_v25 = vld [vmem:[%s2716_s8 + $0x20] sm:$0xe]  ;;  %v507_v26 = vld [vmem:[%s2716_s8 + $0x24] sm:$0x1] }
  0x15   : > { %581 = vrot.lane.b32.xlu0 %v544_v22, %s2642_s13  ;;  %v556_v27 = vsel %vm2704_vm2, %v2175_v18, %v555_v19  ;;  %v2176_v28 = vrot.slane %v506_v25, 9  ;;  %v559_v29 = vrot.slane %v507_v26, 5  ;;  %v294_v30 = vld [vmem:[%s2716_s8] sm:$0xf]  ;;  %v295_v31 = vld [vmem:[%s2716_s8 + $0x4] sm:$0x1] }
  0x16   : > { %2416 = vmatpush3.bf16.msra.mxu0 %v2562_v12  ;;  %v552_v32 = vsel %vm2704_vm2, %v2174_v23, %v551_v24  ;;  %v318_v33 = vshrl.u32 %v294_v30, 16  ;;  %v321_v34 = vshll.u32 %v294_v30, 16  ;;  %v327_v35 = vshll.u32 %v295_v31, 16  ;;  %v298_v36 = vld [vmem:[%s2716_s8 + $0x10] sm:$0xf]  ;;  %2436 = vmatpush3.bf16.msra.mxu1 %v2563_v16  ;;  %v2567_v13 = vld [vmem:[%s3202_s2 + $0x38] sm:$0xff]  }
  0x17   : > { %v560_v38 = vsel %vm2704_vm2, %v2176_v28, %v559_v29  ;;  %v299_v39 = vld [vmem:[%s2716_s8 + $0x14] sm:$0x1]  ;;  %v346_v40 = vshrl.u32 %v298_v36, 16  ;;  %v349_v41 = vshll.u32 %v298_v36, 16  ;;  %v296_v42 = vld [vmem:[%s2716_s8 + $0x8] sm:$0xf]  ;;  %2417 = vmatprep.subr.bf16.mxu0 %v2564_v37  ;;  %2437 = vmatprep.subr.bf16.mxu1 %v2565_v58 }
  0x18   : > { %587 = vrot.lane.b32.xlu1 %v556_v27, %s2642_s13  ;;  %v320_v43 = vrot.slane %v318_v33, 4  ;;  %v323_v44 = vrot.slane %v321_v34, 5  ;;  %v329_v45 = vrot.slane %v327_v35, 5  ;;  %v355_v46 = vshll.u32 %v299_v39, 16  ;;  %v297_v47 = vld [vmem:[%s2716_s8 + $0xc] sm:$0x1] }
  0x19   : > { %585 = vrot.lane.b32.xlu0 %v552_v32, %s2642_s13  ;;  %v348_v48 = vrot.slane %v346_v40, 4  ;;  %v351_v49 = vrot.slane %v349_v41, 5  ;;  %v332_v50 = vshrl.u32 %v296_v42, 16  ;;  %v335_v51 = vshll.u32 %v296_v42, 16  ;;  %v300_v52 = vld [vmem:[%s2716_s8 + $0x18] sm:$0xf] }
  0x1a   : > { %2418 = vmatpush3.bf16.msra.mxu0 %v2564_v37  ;;  %v324_v53 = vor.u32 %v323_v44, %v320_v43  ;;  %v357_v54 = vrot.slane %v355_v46, 5  ;;  %v341_v55 = vshll.u32 %v297_v47, 16  ;;  %v301_v56 = vld [vmem:[%s2716_s8 + $0x1c] sm:$0x1]  ;;  %v360_v57 = vshrl.u32 %v300_v52, 16  ;;  %2438 = vmatpush3.bf16.msra.mxu1 %v2565_v58  ;;  %v2568_v19 = vld [vmem:[%s3202_s2] sm:$0xff]  }
  0x1b   : > { %v352_v60 = vor.u32 %v351_v49, %v348_v48  ;;  %v334_v61 = vrot.slane %v332_v50, 4  ;;  %v337_v62 = vrot.slane %v335_v51, 5  ;;  %v363_v63 = vshll.u32 %v300_v52, 16  ;;  %v302_v0 = vld [vmem:[%s2716_s8 + $0x20] sm:$0xf]  ;;  %2419 = vmatprep.subr.bf16.mxu0 %v2566_v1  ;;  %2439 = vmatprep.subr.bf16.mxu1 %v2567_v13  ;;  %v2569_v36 = vld [vmem:[%s3202_s2 + $0x30] sm:$0xff]  }
  0x1c   : > { %589 = vrot.lane.b32.xlu1 %v560_v38, %s2642_s13  ;;  %v325_v2 = vrot.slane %v324_v53, 4  ;;  %v343_v4 = vrot.slane %v341_v55, 5  ;;  %v362_v5 = vrot.slane %v360_v57, 4  ;;  %v369_v6 = vshll.u32 %v301_v56, 16  ;;  %v303_v7 = vld [vmem:[%s2716_s8 + $0x24] sm:$0x1] }
  0x1d   : > { %v353_v8 = vrot.slane %v352_v60, 4  ;;  %v338_v9 = vor.u32 %v337_v62, %v334_v61  ;;  %v365_v10 = vrot.slane %v363_v63, 5  ;;  %v374_v11 = vshrl.u32 %v302_v0, 16  ;;  %v306_v12 = vld [vmem:[%s2716_s8 + $0x30] sm:$0xf]  ;;  %v2801_v42 = vld [vmem:[%s3202_s2 + $0x88] sm:$0xff]  }
  0x1e   : > { %v330_v14 = vsel %vm2764_vm5, %v325_v2, %v329_v45  ;;  %v371_v15 = vrot.slane %v369_v6, 5  ;;  %v377_v16 = vshll.u32 %v302_v0, 16  ;;  %v383_v17 = vshll.u32 %v303_v7, 16  ;;  %v307_v18 = vld [vmem:[%s2716_s8 + $0x34] sm:$0x1]  ;;  %2420 = vmatpush3.bf16.msra.mxu0 %v2566_v1  ;;  %2440 = vmatpush3.bf16.msra.mxu1 %v2567_v13 }
  0x1f   : > { %457 = vrot.lane.b32.xlu0 %v330_v14, %s2643_s29  ;;  %v358_v20 = vsel %vm2764_vm5, %v353_v8, %v357_v54  ;;  %v339_v21 = vrot.slane %v338_v9, 4  ;;  %v366_v22 = vor.u32 %v365_v10, %v362_v5  ;;  %v376_v23 = vrot.slane %v374_v11, 4  ;;  %v304_v24 = vld [vmem:[%s2716_s8 + $0x28] sm:$0xf]  ;;  %v305_v25 = vld [vmem:[%s2716_s8 + $0x2c] sm:$0x1]  ;;  %2421 = vmatprep.subr.bf16.mxu0 %v2568_v19 }
  0x20   : > { %461 = vrot.lane.b32.xlu1 %v358_v20, %s2643_s29  ;;  %v379_v26 = vrot.slane %v377_v16, 5  ;;  %v385_v27 = vrot.slane %v383_v17, 5  ;;  %v402_v28 = vshrl.u32 %v306_v12, 16  ;;  %v405_v29 = vshll.u32 %v306_v12, 16  ;;  %v508_v30 = vld [vmem:[%s2716_s8 + $0x28] sm:$0xe]  ;;  %2441 = vmatprep.subr.bf16.mxu1 %v2569_v36 }
  0x21   : > { %v344_v31 = vsel %vm2764_vm5, %v339_v21, %v343_v4  ;;  %v367_v32 = vrot.slane %v366_v22, 4  ;;  %v411_v33 = vshll.u32 %v307_v18, 16  ;;  %v388_v34 = vshrl.u32 %v304_v24, 16  ;;  %v509_v35 = vld [vmem:[%s2716_s8 + $0x2c] sm:$0x1] }
  0x22   : > { %v380_v37 = vor.u32 %v379_v26, %v376_v23  ;;  %v404_v38 = vrot.slane %v402_v28, 4  ;;  %v407_v39 = vrot.slane %v405_v29, 5  ;;  %v391_v40 = vshll.u32 %v304_v24, 16  ;;  %v308_v41 = vld [vmem:[%s2716_s8 + $0x38] sm:$0xf]  ;;  %2422 = vmatpush3.bf16.msra.mxu0 %v2568_v19  ;;  %2442 = vmatpush3.bf16.msra.mxu1 %v2569_v36 }
  0x23   : > { %459 = vrot.lane.b32.xlu0 %v344_v31, %s2643_s29  ;;  %v372_v43 = vsel %vm2764_vm5, %v367_v32, %v371_v15  ;;  %v413_v44 = vrot.slane %v411_v33, 5  ;;  %v390_v45 = vrot.slane %v388_v34, 4  ;;  %v397_v46 = vshll.u32 %v305_v25, 16  ;;  %v309_v47 = vld [vmem:[%s2716_s8 + $0x3c] sm:$0x1]  ;;  %2451 = vmatprep.subr.bf16.mxu0 %v2801_v42  ;;  %v2847_v33 = vld [vmem:[%s3203_s3 + $0x28] sm:$0xff]  }
  0x24   : > { %463 = vrot.lane.b32.xlu1 %v372_v43, %s2643_s29  ;;  %v381_v48 = vrot.slane %v380_v37, 4  ;;  %v408_v49 = vor.u32 %v407_v39, %v404_v38  ;;  %v393_v50 = vrot.slane %v391_v40, 5  ;;  %v2177_v51 = vrot.slane %v508_v30, 9  ;;  %v512_v52 = vld [vmem:[%s2716_s8 + $0x38] sm:$0xe]  ;;  %2471 = vmatprep.subr.bf16.mxu1 %v2847_v33 }
  0x25   : > { %v399_v53 = vrot.slane %v397_v46, 5  ;;  %v563_v54 = vrot.slane %v509_v35, 5  ;;  %v416_v55 = vshrl.u32 %v308_v41, 16  ;;  %v419_v56 = vshll.u32 %v308_v41, 16  ;;  %v513_v57 = vld [vmem:[%s2716_s8 + $0x3c] sm:$0x1] }
  0x26   : > { %v386_v58 = vsel %vm2764_vm5, %v381_v48, %v385_v27  ;;  %v409_v60 = vrot.slane %v408_v49, 4  ;;  %v394_v61 = vor.u32 %v393_v50, %v390_v45  ;;  %v425_v62 = vshll.u32 %v309_v47, 16  ;;  %v510_v63 = vld [vmem:[%s2716_s8 + $0x30] sm:$0xe]  ;;  %v511_v0 = vld [vmem:[%s2716_s8 + $0x34] sm:$0x1] }
  0x27   : > { %465 = vrot.lane.b32.xlu0 %v386_v58, %s2643_s29  ;;  %v564_v1 = vsel %vm2704_vm2, %v2177_v51, %v563_v54  ;;  %v418_v2 = vrot.slane %v416_v55, 4  ;;  %v421_v4 = vrot.slane %v419_v56, 5  ;;  %v2179_v5 = vrot.slane %v512_v52, 9  ;;  %v514_v6 = vld [vmem:[%s2716_s8 + $0x40] sm:$0xe] }
  0x28   : > { %v414_v7 = vsel %vm2764_vm5, %v409_v60, %v413_v44  ;;  %v395_v8 = vrot.slane %v394_v61, 4  ;;  %v427_v9 = vrot.slane %v425_v62, 5  ;;  %v571_v10 = vrot.slane %v513_v57, 5  ;;  %v515_v11 = vld [vmem:[%s2716_s8 + $0x44] sm:$0x1] }
  0x29   : > { %469 = vrot.lane.b32.xlu1 %v414_v7, %s2643_s29  ;;  %v422_v12 = vor.u32 %v421_v4, %v418_v2  ;;  %v2178_v13 = vrot.slane %v510_v63, 9  ;;  %v567_v14 = vrot.slane %v511_v0, 5  ;;  %v2180_v15 = vrot.slane %v514_v6, 9  ;;  %v310_v16 = vld [vmem:[%s2716_s8 + $0x40] sm:$0xf] }
  0x2a   : > { %v400_v17 = vsel %vm2764_vm5, %v395_v8, %v399_v53  ;;  %v572_v18 = vsel %vm2704_vm2, %v2179_v5, %v571_v10  ;;  %v575_v19 = vrot.slane %v515_v11, 5  ;;  %v311_v20 = vld [vmem:[%s2716_s8 + $0x44] sm:$0x1]  ;;  %v430_v21 = vshrl.u32 %v310_v16, 16  ;;  %v646_v22 = vld [vmem:[%s2824_s12 + $0x8] sm:$0xf] }
  0x2b   : > { %467 = vrot.lane.b32.xlu0 %v400_v17, %s2643_s29  ;;  %v423_v23 = vrot.slane %v422_v12, 4  ;;  %v568_v24 = vsel %vm2704_vm2, %v2178_v13, %v567_v14  ;;  %v433_v25 = vshll.u32 %v310_v16, 16  ;;  %v439_v26 = vshll.u32 %v311_v20, 16  ;;  %v647_v27 = vld [vmem:[%s2824_s12 + $0xc] sm:$0x1] }
  0x2c   : > { %v576_v28 = vsel %vm2704_vm2, %v2180_v15, %v575_v19  ;;  %v432_v29 = vrot.slane %v430_v21, 4  ;;  %v679_v30 = vshrl.u32 %v646_v22, 16  ;;  %v682_v31 = vshll.u32 %v646_v22, 16  ;;  %v644_v32 = vld [vmem:[%s2824_s12] sm:$0xf] }
  0x2d   : > { %591 = vrot.lane.b32.xlu1 %v564_v1, %s2642_s13  ;;  %v428_v34 = vsel %vm2764_vm5, %v423_v23, %v427_v9  ;;  %v435_v35 = vrot.slane %v433_v25, 5  ;;  %v441_v36 = vrot.slane %v439_v26, 5  ;;  %v688_v37 = vshll.u32 %v647_v27, 16  ;;  %v645_v38 = vld [vmem:[%s2824_s12 + $0x4] sm:$0x1] }
  0x2e   : > { %v681_v39 = vrot.slane %v679_v30, 4  ;;  %v684_v40 = vrot.slane %v682_v31, 5  ;;  %v665_v41 = vshrl.u32 %v644_v32, 16  ;;  %v668_v43 = vshll.u32 %v644_v32, 16  ;;  %v650_v44 = vld [vmem:[%s2824_s12 + $0x18] sm:$0xf] }
  0x2f   : > { %471 = vrot.lane.b32.xlu0 %v428_v34, %s2643_s29  ;;  %v436_v45 = vor.u32 %v435_v35, %v432_v29  ;;  %v690_v46 = vrot.slane %v688_v37, 5  ;;  %v674_v47 = vshll.u32 %v645_v38, 16  ;;  %v651_v48 = vld [vmem:[%s2824_s12 + $0x1c] sm:$0x1]  ;;  %v707_v49 = vshrl.u32 %v650_v44, 16 }
  0x30   : > { %v685_v50 = vor.u32 %v684_v40, %v681_v39  ;;  %v667_v51 = vrot.slane %v665_v41, 4  ;;  %v670_v52 = vrot.slane %v668_v43, 5  ;;  %v710_v53 = vshll.u32 %v650_v44, 16  ;;  %v648_v54 = vld [vmem:[%s2824_s12 + $0x10] sm:$0xf] }
  0x31   : > { %595 = vrot.lane.b32.xlu1 %v572_v18, %s2642_s13  ;;  %v437_v55 = vrot.slane %v436_v45, 4  ;;  %v676_v56 = vrot.slane %v674_v47, 5  ;;  %v709_v57 = vrot.slane %v707_v49, 4  ;;  %v716_v58 = vshll.u32 %v651_v48, 16  ;;  %v649_v60 = vld [vmem:[%s2824_s12 + $0x14] sm:$0x1] }
  0x32   : > { %v686_v61 = vrot.slane %v685_v50, 4  ;;  %v671_v62 = vor.u32 %v670_v52, %v667_v51  ;;  %v712_v63 = vrot.slane %v710_v53, 5  ;;  %v693_v0 = vshrl.u32 %v648_v54, 16  ;;  %v846_v4 = vld [vmem:[%s2824_s12 + $0x8] sm:$0xe] }
  0x33   : > { %593 = vrot.lane.b32.xlu0 %v568_v24, %s2642_s13  ;;  %v696_v1 = vshll.u32 %v648_v54, 16  ;;  %v702_v2 = vshll.u32 %v649_v60, 16  ;;  %v847_v5 = vld [vmem:[%s2824_s12 + $0xc] sm:$0x1]  ;;  %v442_v6 = vsel %vm2764_vm5, %v437_v55, %v441_v36  ;;  %v844_v10 = vld [vmem:[%s2824_s12] sm:$0xe] }
  0x34   : > { %v672_v7 = vrot.slane %v671_v62, 4  ;;  %v713_v8 = vor.u32 %v712_v63, %v709_v57  ;;  %v695_v9 = vrot.slane %v693_v0, 4  ;;  %v845_v11 = vld [vmem:[%s2824_s12 + $0x4] sm:$0x1]  ;;  %v718_v12 = vrot.slane %v716_v58, 5 }
  0x35   : > { %597 = vrot.lane.b32.xlu1 %v576_v28, %s2642_s13  ;;  %v698_v13 = vrot.slane %v696_v1, 5  ;;  %v2869_v14 = vld [vmem:[%s2824_s12 + $0x18] sm:$0xe]  ;;  %v691_v15 = vsel %vm2764_vm5, %v686_v61, %v690_v46  ;;  %v704_v17 = vrot.slane %v702_v2, 5  ;;  %v2183_v18 = vrot.slane %v846_v4, 9 }
  0x36   : > { %v714_v16 = vrot.slane %v713_v8, 4  ;;  %v2874_v19 = vld [vmem:[%s2824_s12 + $0x1c] sm:$0x1]  ;;  %v890_v21 = vrot.slane %v847_v5, 5  ;;  %v2182_v22 = vrot.slane %v844_v10, 9  ;;  %v886_v23 = vrot.slane %v845_v11, 5 }
  0x37   : > { %473 = vrot.lane.b32.xlu0 %v442_v6, %s2643_s29  ;;  %v699_v20 = vor.u32 %v698_v13, %v695_v9  ;;  %v848_v24 = vld [vmem:[%s2824_s12 + $0x10] sm:$0xe]  ;;  %v677_v25 = vsel %vm2764_vm5, %v672_v7, %v676_v56  ;;  %v2185_v26 = vrot.slane %v2869_v14, 9  ;;  %v898_v27 = vrot.slane %v2874_v19, 5  ;;  %v849_v28 = vld [vmem:[%s2824_s12 + $0x14] sm:$0x1] }
  0x38   : > { %v516_v29 = vld [vmem:[%s2716_s8 + $0x48] sm:$0xe]  ;;  %v2184_v31 = vrot.slane %v848_v24, 9  ;;  %v517_v32 = vld [vmem:[%s2716_s8 + $0x4c] sm:$0x1]  ;;  %v719_v35 = vsel %vm2764_vm5, %v714_v16, %v718_v12  ;;  %v891_v40 = vsel %vm2704_vm2, %v2183_v18, %v890_v21  ;;  %v887_v41 = vsel %vm2704_vm2, %v2182_v22, %v886_v23 }
  0x39   : > { %806 = vrot.lane.b32.xlu1 %v691_v15, %s2643_s29  ;;  %v700_v30 = vrot.slane %v699_v20, 4  ;;  %v312_v34 = vld [vmem:[%s2716_s8 + $0x48] sm:$0xf]  ;;  %v313_v36 = vld [vmem:[%s2716_s8 + $0x4c] sm:$0x1]  ;;  %v894_v43 = vrot.slane %v849_v28, 5  ;;  %v899_v14 = vsel %vm2704_vm2, %v2185_v26, %v898_v27 }
  0x3a   : > { %v444_v37 = vshrl.u32 %v312_v34, 16  ;;  %v447_v38 = vshll.u32 %v312_v34, 16  ;;  %v654_v39 = vld [vmem:[%s2824_s12 + $0x28] sm:$0xf]  ;;  %v655_v44 = vld [vmem:[%s2824_s12 + $0x2c] sm:$0x1] }
  0x3b   : > { %804 = vrot.lane.b32.xlu0 %v677_v25, %s2643_s29  ;;  %v735_v45 = vshrl.u32 %v654_v39, 16  ;;  %v652_v46 = vld [vmem:[%s2824_s12 + $0x20] sm:$0xf]  ;;  %v705_v47 = vsel %vm2764_vm5, %v700_v30, %v704_v17  ;;  %v738_v50 = vshll.u32 %v654_v39, 16  ;;  %v653_v51 = vld [vmem:[%s2824_s12 + $0x24] sm:$0x1]  ;;  %v895_v15 = vsel %vm2704_vm2, %v2184_v31, %v894_v43 }
  0x3c   : > { %v446_v48 = vrot.slane %v444_v37, 4  ;;  %v449_v49 = vrot.slane %v447_v38, 5  ;;  %v2181_v52 = vrot.slane %v516_v29, 9  ;;  %v721_v54 = vshrl.u32 %v652_v46, 16  ;;  %v658_v56 = vld [vmem:[%s2824_s12 + $0x38] sm:$0xf] }
  0x3d   : > { %810 = vrot.lane.b32.xlu1 %v719_v35, %s2643_s29  ;;  %v737_v53 = vrot.slane %v735_v45, 4  ;;  %v724_v55 = vshll.u32 %v652_v46, 16  ;;  %v579_v57 = vrot.slane %v517_v32, 5  ;;  %v453_v58 = vshll.u32 %v313_v36, 16  ;;  %v659_v62 = vld [vmem:[%s2824_s12 + $0x3c] sm:$0x1] }
  0x3e   : > { %v740_v60 = vrot.slane %v738_v50, 5  ;;  %v744_v61 = vshll.u32 %v655_v44, 16  ;;  %v723_v63 = vrot.slane %v721_v54, 4  ;;  %v763_v1 = vshrl.u32 %v658_v56, 16  ;;  %v656_v4 = vld [vmem:[%s2824_s12 + $0x30] sm:$0xf] }
  0x3f   : > { %808 = vrot.lane.b32.xlu0 %v705_v47, %s2643_s29  ;;  %v726_v0 = vrot.slane %v724_v55, 5  ;;  %v766_v2 = vshll.u32 %v658_v56, 16  ;;  %v450_v5 = vor.u32 %v449_v49, %v446_v48  ;;  %v730_v7 = vshll.u32 %v653_v51, 16  ;;  %v657_v9 = vld [vmem:[%s2824_s12 + $0x34] sm:$0x1] }
  0x40   : > { %v741_v6 = vor.u32 %v740_v60, %v737_v53  ;;  %v772_v8 = vshll.u32 %v659_v62, 16  ;;  %v765_v11 = vrot.slane %v763_v1, 4  ;;  %v749_v13 = vshrl.u32 %v656_v4, 16  ;;  %v2913_v18 = vld [vmem:[%s2824_s12 + $0x28] sm:$0xe] }
  0x41   : > { %926 = vrot.lane.b32.xlu1 %v891_v40, %s2642_s13  ;;  %v727_v10 = vor.u32 %v726_v0, %v723_v63  ;;  %v768_v12 = vrot.slane %v766_v2, 5  ;;  %v455_v16 = vrot.slane %v453_v58, 5  ;;  %v752_v17 = vshll.u32 %v656_v4, 16  ;;  %v2919_v23 = vld [vmem:[%s2824_s12 + $0x2c] sm:$0x1] }
  0x42   : > { %v580_v19 = vsel %vm2704_vm2, %v2181_v52, %v579_v57  ;;  %v751_v21 = vrot.slane %v749_v13, 4  ;;  %v758_v22 = vshll.u32 %v657_v9, 16  ;;  %v2922_v24 = vld [vmem:[%s2824_s12 + $0x20] sm:$0xe]  ;;  %v451_v25 = vrot.slane %v450_v5, 4 }
  0x43   : > { %924 = vrot.lane.b32.xlu0 %v887_v41, %s2642_s13  ;;  %v769_v20 = vor.u32 %v768_v12, %v765_v11  ;;  %v746_v26 = vrot.slane %v744_v61, 5  ;;  %v732_v27 = vrot.slane %v730_v7, 5  ;;  %v754_v28 = vrot.slane %v752_v17, 5  ;;  %v2925_v29 = vld [vmem:[%s2824_s12 + $0x24] sm:$0x1] }
  0x44   : > { %v742_v30 = vrot.slane %v741_v6, 4  ;;  %v728_v31 = vrot.slane %v727_v10, 4  ;;  %v774_v32 = vrot.slane %v772_v8, 5  ;;  %v2187_v34 = vrot.slane %v2913_v18, 9  ;;  %v2930_v35 = vld [vmem:[%s2824_s12 + $0x38] sm:$0xe] }
  0x45   : > { %930 = vrot.lane.b32.xlu1 %v899_v14, %s2642_s13  ;;  %v770_v36 = vrot.slane %v769_v20, 4  ;;  %v2932_v37 = vrot.slane %v758_v22, 5  ;;  %v906_v38 = vrot.slane %v2919_v23, 5  ;;  %v2186_v39 = vrot.slane %v2922_v24, 9  ;;  %v2937_v40 = vld [vmem:[%s2824_s12 + $0x3c] sm:$0x1] }
  0x46   : > { %v755_v41 = vor.u32 %v754_v28, %v751_v21  ;;  %v902_v43 = vrot.slane %v2925_v29, 5  ;;  %v2189_v44 = vrot.slane %v2930_v35, 9  ;;  %v2943_v45 = vld [vmem:[%s2824_s12 + $0x30] sm:$0xe]  ;;  %v660_v46 = vld [vmem:[%s2824_s12 + $0x40] sm:$0xf]  ;;  %v456_v47 = vsel %vm2764_vm5, %v451_v25, %v455_v16 }
  0x47   : > { %928 = vrot.lane.b32.xlu0 %v895_v15, %s2642_s13  ;;  %v914_v48 = vrot.slane %v2937_v40, 5  ;;  %v2950_v49 = vld [vmem:[%s2824_s12 + $0x34] sm:$0x1]  ;;  %v661_v50 = vld [vmem:[%s2824_s12 + $0x44] sm:$0x1]  ;;  %v777_v51 = vshrl.u32 %v660_v46, 16  ;;  %v747_v56 = vsel %vm2764_vm5, %v742_v30, %v746_v26  ;;  %v733_v57 = vsel %vm2764_vm5, %v728_v31, %v732_v27 }
  0x48   : > { %v780_v52 = vshll.u32 %v660_v46, 16  ;;  %v786_v53 = vshll.u32 %v661_v50, 16  ;;  %v2955_v54 = vld [vmem:[%s2824_s12 + $0x40] sm:$0xe]  ;;  %v2958_v55 = vld [vmem:[%s2824_s12 + $0x44] sm:$0x1]  ;;  %v775_v13 = vsel %vm2764_vm5, %v770_v36, %v774_v32  ;;  %v907_v27 = vsel %vm2704_vm2, %v2187_v34, %v906_v38 }
  0x49   : > { %599 = vrot.lane.b32.xlu1 %v580_v19, %s2642_s13  ;;  %v2188_v58 = vrot.slane %v2943_v45, 9  ;;  %v779_v60 = vrot.slane %v777_v51, 4  ;;  %v662_v61 = vld [vmem:[%s2824_s12 + $0x48] sm:$0xf]  ;;  %v663_v62 = vld [vmem:[%s2824_s12 + $0x4c] sm:$0x1]  ;;  %v903_v32 = vsel %vm2704_vm2, %v2186_v39, %v902_v43  ;;  %v915_v34 = vsel %vm2704_vm2, %v2189_v44, %v914_v48 }
  0x4a   : > { %v756_v63 = vrot.slane %v755_v41, 4  ;;  %v910_v0 = vrot.slane %v2950_v49, 5  ;;  %v782_v1 = vrot.slane %v780_v52, 5  ;;  %v791_v2 = vshrl.u32 %v662_v61, 16  ;;  %v862_v4 = vld [vmem:[%s2824_s12 + $0x48] sm:$0xe] }
  0x4b   : > { %475 = vrot.lane.b32.xlu0 %v456_v47, %s2643_s29  ;;  %v788_v5 = vrot.slane %v786_v53, 5  ;;  %v2190_v6 = vrot.slane %v2955_v54, 9  ;;  %v794_v7 = vshll.u32 %v662_v61, 16  ;;  %v800_v8 = vshll.u32 %v663_v62, 16  ;;  %v863_v9 = vld [vmem:[%s2824_s12 + $0x4c] sm:$0x1] }
  0x4c   : > { %v918_v10 = vrot.slane %v2958_v55, 5  ;;  %v793_v11 = vrot.slane %v791_v2, 4  ;;  %v273_v12 = vld [vmem:[%s2716_s8] sm:$0xf]  ;;  %v783_v14 = vor.u32 %v782_v1, %v779_v60  ;;  %v2191_v16 = vrot.slane %v862_v4, 9 }
  0x4d   : > { %814 = vrot.lane.b32.xlu1 %v747_v56, %s2643_s29  ;;  %v796_v15 = vrot.slane %v794_v7, 5  ;;  %284 = vst.msk [vmem:[#allocation2] sm:$0xf] %vm283_vm6, %v273_v12  ;;  %v275_v17 = vld [vmem:[%s2716_s8 + $0x10] sm:$0xf]  ;;  %v802_v20 = vrot.slane %v800_v8, 5  ;;  %v761_v22 = vsel %vm2764_vm5, %v756_v63, %v2932_v37  ;;  %v911_v36 = vsel %vm2704_vm2, %v2188_v58, %v910_v0 }
  0x4e   : > { %v274_v19 = vld [vmem:[%s2716_s8 + $0x8] sm:$0xf]  ;;  %v922_v21 = vrot.slane %v863_v9, 5  ;;  %286 = vst.msk [vmem:[#allocation2 + $0x8] sm:$0xf] %vm283_vm6, %v275_v17  ;;  %v784_v28 = vrot.slane %v783_v14, 4  ;;  %v919_v35 = vsel %vm2704_vm2, %v2190_v6, %v918_v10 }
  0x4f   : > { %812 = vrot.lane.b32.xlu0 %v733_v57, %s2643_s29  ;;  %285 = vst.msk [vmem:[#allocation2 + $0x4] sm:$0xf] %vm283_vm6, %v274_v19  ;;  %v797_v23 = vor.u32 %v796_v15, %v793_v11  ;;  %v276_v25 = vld [vmem:[%s2716_s8 + $0x18] sm:$0xf]  ;;  %v277_v26 = vld [vmem:[%s2716_s8 + $0x20] sm:$0xf] }
  0x50   : > { %287 = vst.msk [vmem:[#allocation2 + $0xc] sm:$0xf] %vm283_vm6, %v276_v25  ;;  %288 = vst.msk [vmem:[#allocation2 + $0x10] sm:$0xf] %vm283_vm6, %v277_v26  ;;  %v279_v30 = vld [vmem:[%s2716_s8 + $0x30] sm:$0xf]  ;;  %v789_v41 = vsel %vm2764_vm5, %v784_v28, %v788_v5  ;;  %v923_v43 = vsel %vm2704_vm2, %v2191_v16, %v922_v21 }
  0x51   : > { %818 = vrot.lane.b32.xlu1 %v775_v13, %s2643_s29  ;;  %v798_v29 = vrot.slane %v797_v23, 4  ;;  %v278_v31 = vld [vmem:[%s2716_s8 + $0x28] sm:$0xf]  ;;  %290 = vst.msk [vmem:[#allocation2 + $0x18] sm:$0xf] %vm283_vm6, %v279_v30  ;;  %v2575_v63 = vld [vmem:[%s3202_s2 + $0x80] sm:$0xff]  }
  0x52   : > { %289 = vst.msk [vmem:[#allocation2 + $0x14] sm:$0xf] %vm283_vm6, %v278_v31  ;;  %v280_v18 = vld [vmem:[%s2716_s8 + $0x38] sm:$0xf]  ;;  %v281_v24 = vld [vmem:[%s2716_s8 + $0x40] sm:$0xf] }
  0x53   : > { %816 = vrot.lane.b32.xlu0 %v761_v22, %s2643_s29  ;;  %291 = vst.msk [vmem:[#allocation2 + $0x1c] sm:$0xf] %vm283_vm6, %v280_v18  ;;  %292 = vst.msk [vmem:[#allocation2 + $0x20] sm:$0xf] %vm283_vm6, %v281_v24  ;;  %v625_v37 = vld [vmem:[%s2824_s12 + $0x8] sm:$0xf]  ;;  %v803_v45 = vsel %vm2764_vm5, %v798_v29, %v802_v20 }
  0x54   : > { %v624_v38 = vld [vmem:[%s2824_s12] sm:$0xf]  ;;  %635 = vst.msk [vmem:[#allocation3 + $0x4] sm:$0xf] %vm283_vm6, %v625_v37  ;;  %v627_v39 = vld [vmem:[%s2824_s12 + $0x18] sm:$0xf] }
  0x55   : > { %934 = vrot.lane.b32.xlu1 %v907_v27, %s2642_s13  ;;  %634 = vst.msk [vmem:[#allocation3] sm:$0xf] %vm283_vm6, %v624_v38  ;;  %v626_v40 = vld [vmem:[%s2824_s12 + $0x10] sm:$0xf]  ;;  %637 = vst.msk [vmem:[#allocation3 + $0xc] sm:$0xf] %vm283_vm6, %v627_v39 }
  0x56   : > { %636 = vst.msk [vmem:[#allocation3 + $0x8] sm:$0xf] %vm283_vm6, %v626_v40  ;;  %v282_v44 = vld [vmem:[%s2716_s8 + $0x48] sm:$0xf]  ;;  %v628_v47 = vld [vmem:[%s2824_s12 + $0x20] sm:$0xf] }
  0x57   : > { %932 = vrot.lane.b32.xlu0 %v903_v32, %s2642_s13  ;;  %293 = vst.msk [vmem:[#allocation2 + $0x24] sm:$0xf] %vm283_vm6, %v282_v44  ;;  %v629_v46 = vld [vmem:[%s2824_s12 + $0x28] sm:$0xf]  ;;  %638 = vst.msk [vmem:[#allocation3 + $0x10] sm:$0xf] %vm283_vm6, %v628_v47 }
  0x58   : > { %639 = vst.msk [vmem:[#allocation3 + $0x14] sm:$0xf] %vm283_vm6, %v629_v46  ;;  %v631_v3 = vld [vmem:[%s2824_s12 + $0x38] sm:$0xf]  ;;  %v630_v48 = vld [vmem:[%s2824_s12 + $0x30] sm:$0xf] }
  0x59   : > { %938 = vrot.lane.b32.xlu1 %v915_v34, %s2642_s13  ;;  %641 = vst.msk [vmem:[#allocation3 + $0x1c] sm:$0xf] %vm283_vm6, %v631_v3  ;;  %640 = vst.msk [vmem:[#allocation3 + $0x18] sm:$0xf] %vm283_vm6, %v630_v48  ;;  %v632_v59 = vld [vmem:[%s2824_s12 + $0x40] sm:$0xf] }
  0x5a   : > { %642 = vst.msk [vmem:[#allocation3 + $0x20] sm:$0xf] %vm283_vm6, %v632_v59  ;;  %v633_v49 = vld [vmem:[%s2824_s12 + $0x48] sm:$0xf]  ;;  %v2582_v6 = vld [vmem:[%s3203_s3 + $0x20] sm:$0xff]   ;;  %v2577_v9 = vld [vmem:[%s3202_s2 + $0x78] sm:$0xff]  }
  0x5b   : > { %936 = vrot.lane.b32.xlu0 %v911_v36, %s2642_s13  ;;  %643 = vst.msk [vmem:[#allocation3 + $0x24] sm:$0xf] %vm283_vm6, %v633_v49  ;;  %v2585_v11 = vld [vmem:[%s3203_s3 + $0x18] sm:$0xff]   ;;  %v2588_v15 = vld [vmem:[%s3203_s3 + $0x10] sm:$0xff]   ;;  %v2590_v17 = vld [vmem:[%s3203_s3 + $0x8] sm:$0xff]  }
  0x5c   : > { %v2587_v25 = vld [vmem:[%s3202_s2 + $0x60] sm:$0xff]   ;;  %v2591_v30 = vld [vmem:[%s3203_s3 + $0x58] sm:$0xff]   ;;  %v2595_v34 = vld [vmem:[%s3203_s3 + $0x50] sm:$0xff]  }
  0x5d   : > { %940 = vrot.lane.b32.xlu1 %v919_v35, %s2642_s13  ;;  %v2593_v27 = vld [vmem:[%s3203_s3] sm:$0xff]   ;;  %v2599_v24 = vld [vmem:[%s3203_s3 + $0x88] sm:$0xff]   ;;  %v2602_v3 = vld [vmem:[%s3203_s3 + $0x38] sm:$0xff]  }
  0x5e   : > { %v2597_v35 = vld [vmem:[%s3203_s3 + $0x48] sm:$0xff]   ;;  %v2603_v44 = vld [vmem:[%s3203_s3 + $0x80] sm:$0xff]   ;;  %v2605_v59 = vld [vmem:[%s3203_s3 + $0x78] sm:$0xff]  }
  0x5f   : > { %820 = vrot.lane.b32.xlu0 %v789_v41, %s2643_s29  ;;  %v2598_v41 = vld [vmem:[%s3203_s3 + $0x40] sm:$0xff]  }
  0x61   : > { %942 = vrot.lane.b32.xlu1 %v923_v43, %s2642_s13 }
  0x63   : > { %822 = vrot.lane.b32.xlu0 %v803_v45, %s2643_s29 }
  0x86   : > { %v584_v50 = vpop.permute.xlu1 %583 }
  0x87   : > { %v582_v51 = vpop.permute.xlu0 %581 }
  0x8a   : > { %v588_v52 = vpop.permute.xlu1 %587 }
  0x8b   : > { %v586_v53 = vpop.permute.xlu0 %585 }
  0x8e   : > { %v590_v54 = vpop.permute.xlu1 %589 }
  0x91   : > { %v458_v55 = vpop.permute.xlu0 %457 }
  0x92   : > { %488 = vst.msk [vmem:[#allocation2] sm:$0xf] %vm487_vm7, %v458_v55  ;;  %v462_v56 = vpop.permute.xlu1 %461 }
  0x93   : > { %612 = vst.msk [vmem:[#allocation2] sm:$0xf] %vm611_vm8, %v582_v51 }
  0x94   : > { %490 = vst.msk [vmem:[#allocation2 + $0x8] sm:$0xf] %vm487_vm7, %v462_v56 }
  0x95   : > { %614 = vst.msk [vmem:[#allocation2 + $0x8] sm:$0xf] %vm611_vm8, %v586_v53  ;;  %v460_v57 = vpop.permute.xlu0 %459 }
  0x96   : > { %489 = vst.msk [vmem:[#allocation2 + $0x4] sm:$0xf] %vm487_vm7, %v460_v57  ;;  %v464_v58 = vpop.permute.xlu1 %463  ;;  %v2611_v57 = vld [vmem:[%s3203_s3 + $0x68] sm:$0xff]  }
  0x97   : > { %613 = vst.msk [vmem:[#allocation2 + $0x4] sm:$0xf] %vm611_vm8, %v584_v50 }
  0x98   : > { %491 = vst.msk [vmem:[#allocation2 + $0xc] sm:$0xf] %vm487_vm7, %v464_v58 }
  0x99   : > { %615 = vst.msk [vmem:[#allocation2 + $0xc] sm:$0xf] %vm611_vm8, %v588_v52  ;;  %v466_v60 = vpop.permute.xlu0 %465  ;;  %v2604_v52 = vld [vmem:[%s3203_s3 + $0x30] sm:$0xff]  }
  0x9a   : > { %492 = vst.msk [vmem:[#allocation2 + $0x10] sm:$0xf] %vm487_vm7, %v466_v60  ;;  %v2613_v60 = vld [vmem:[%s3203_s3 + $0x60] sm:$0xff]  }
  0x9b   : > { %616 = vst.msk [vmem:[#allocation2 + $0x10] sm:$0xf] %vm611_vm8, %v590_v54  ;;  %v470_v61 = vpop.permute.xlu1 %469  ;;  %v2608_v54 = vld [vmem:[%s3203_s3 + $0x70] sm:$0xff]  }
  0x9c   : > { %494 = vst.msk [vmem:[#allocation2 + $0x18] sm:$0xf] %vm487_vm7, %v470_v61 }
  0x9d   : > { %v468_v62 = vpop.permute.xlu0 %467 }
  0x9e   : > { %493 = vst.msk [vmem:[#allocation2 + $0x14] sm:$0xf] %vm487_vm7, %v468_v62  ;;  %v2570_v0 = vld [vmem:[#allocation2] sm:$0xff]  }
  0x9f   : > { %v592_v1 = vpop.permute.xlu1 %591  ;;  %v2571_v2 = vld [vmem:[#allocation2 + $0x4] sm:$0xff]   ;;  %2423 = vmatprep.mubr.msk.bf16.mxu0 %vm1040_vm9, %v2570_v0 }
  0xa0   : > { %v2573_v4 = vld [vmem:[#allocation2 + $0x8] sm:$0xff]   ;;  %617 = vst.msk [vmem:[#allocation2 + $0x14] sm:$0xf] %vm611_vm8, %v592_v1  ;;  %2443 = vmatprep.mubr.msk.bf16.mxu1 %vm1040_vm9, %v2571_v2 }
  0xa1   : > { %v472_v5 = vpop.permute.xlu0 %471  ;;  %2424 = vmatmul.mubr.msk.bf16.vlgmr.msra.gmra.mxu0 %vm1040_vm9, %v2573_v4  ;;  %v2583_v22 = vld [vmem:[#allocation2 + $0x8] sm:$0xff]  }
  0xa2   : > { %495 = vst.msk [vmem:[#allocation2 + $0x1c] sm:$0xf] %vm487_vm7, %v472_v5  ;;  %v2574_v7 = vld [vmem:[#allocation2 + $0xc] sm:$0xff]   ;;  %2452 = vmatpush3.bf16.msra.mxu0 %v2801_v42 }
  0xa3   : > { %v596_v8 = vpop.permute.xlu1 %595  ;;  %2453 = vmatprep.subr.bf16.mxu0 %v2575_v63  ;;  %2444 = vmatmul.mubr.msk.bf16.vlgmr.msra.gmra.mxu1 %vm1040_vm9, %v2574_v7  ;;  %v2581_v42 = vld [vmem:[%s3202_s2 + $0x70] sm:$0xff]  }
  0xa4   : > { %619 = vst.msk [vmem:[#allocation2 + $0x1c] sm:$0xf] %vm611_vm8, %v596_v8  ;;  %2472 = vmatpush3.bf16.msra.mxu1 %v2847_v33  ;;  %v2584_v33 = vld [vmem:[%s3202_s2 + $0x68] sm:$0xff]  }
  0xa5   : > { %v594_v10 = vpop.permute.xlu0 %593  ;;  %2473 = vmatprep.subr.bf16.mxu1 %v2582_v6 }
  0xa6   : > { %618 = vst.msk [vmem:[#allocation2 + $0x18] sm:$0xf] %vm611_vm8, %v594_v10  ;;  %2454 = vmatpush3.bf16.msra.mxu0 %v2575_v63 }
  0xa7   : > { %v598_v12 = vpop.permute.xlu1 %597  ;;  %v2576_v13 = vld [vmem:[#allocation2 + $0x10] sm:$0xff]   ;;  %2455 = vmatprep.subr.bf16.mxu0 %v2577_v9 }
  0xa8   : > { %2427 = vmatprep.mubr.msk.bf16.mxu0 %vm1040_vm9, %v2576_v13  ;;  %2474 = vmatpush3.bf16.msra.mxu1 %v2582_v6  ;;  %v2589_v18 = vld [vmem:[#allocation2 + $0x10] sm:$0xff]  }
  0xa9   : > { %v474_v14 = vpop.permute.xlu0 %473  ;;  %2475 = vmatprep.subr.bf16.mxu1 %v2585_v11 }
  0xaa   : > { %496 = vst.msk [vmem:[#allocation2 + $0x20] sm:$0xf] %vm487_vm7, %v474_v14  ;;  %2456 = vmatpush3.bf16.msra.mxu0 %v2577_v9 }
  0xab   : > { %620 = vst.msk [vmem:[#allocation2 + $0x20] sm:$0xf] %vm611_vm8, %v598_v12  ;;  %v807_v16 = vpop.permute.xlu1 %806  ;;  %2457 = vmatprep.subr.bf16.mxu0 %v2581_v42 }
  0xac   : > { %835 = vst.msk [vmem:[#allocation3 + $0x4] sm:$0xf] %vm487_vm7, %v807_v16  ;;  %2476 = vmatpush3.bf16.msra.mxu1 %v2585_v11 }
  0xad   : > { %v805_v19 = vpop.permute.xlu0 %804  ;;  %v2579_v20 = vld [vmem:[#allocation2 + $0x18] sm:$0xff]   ;;  %2477 = vmatprep.subr.bf16.mxu1 %v2588_v15 }
  0xae   : > { %834 = vst.msk [vmem:[#allocation3] sm:$0xf] %vm487_vm7, %v805_v19  ;;  %v2580_v21 = vld [vmem:[#allocation2 + $0x14] sm:$0xff]   ;;  %2458 = vmatpush3.bf16.msra.mxu0 %v2581_v42 }
  0xaf   : > { %2428 = vmatmul.mubr.msk.bf16.gmra.mxu0 %vm1040_vm9, %v2579_v20  ;;  %v811_v23 = vpop.permute.xlu1 %810  ;;  %2459 = vmatprep.subr.bf16.mxu0 %v2584_v33  ;;  %v2592_v36 = vld [vmem:[#allocation2 + $0x18] sm:$0xff]  }
  0xb0   : > { %2447 = vmatprep.mubr.msk.bf16.mxu1 %vm1040_vm9, %v2580_v21  ;;  %837 = vst.msk [vmem:[#allocation3 + $0xc] sm:$0xf] %vm487_vm7, %v811_v23  ;;  %2463 = vmatprep.mubr.msk.bf16.mxu0 %vm1040_vm9, %v2583_v22 }
  0xb1   : > { %v809_v26 = vpop.permute.xlu0 %808  ;;  %2478 = vmatpush3.bf16.msra.mxu1 %v2588_v15 }
  0xb2   : > { %836 = vst.msk [vmem:[#allocation3 + $0x8] sm:$0xf] %vm487_vm7, %v809_v26  ;;  %v2586_v28 = vld [vmem:[#allocation2 + $0x1c] sm:$0xff]   ;;  %2460 = vmatpush3.bf16.msra.mxu0 %v2584_v33  ;;  %2479 = vmatprep.subr.bf16.mxu1 %v2590_v17 }
  0xb3   : > { %v927_v29 = vpop.permute.xlu1 %926  ;;  %2461 = vmatprep.subr.bf16.mxu0 %v2587_v25  ;;  %2448 = vmatmul.mubr.msk.bf16.gmra.mxu1 %vm1040_vm9, %v2586_v28 }
  0xb4   : > { %955 = vst.msk [vmem:[#allocation3 + $0x4] sm:$0xf] %vm611_vm8, %v927_v29 }
  0xb5   : > { %v925_v31 = vpop.permute.xlu0 %924  ;;  %2480 = vmatpush3.bf16.msra.mxu1 %v2590_v17 }
  0xb6   : > { %954 = vst.msk [vmem:[#allocation3] sm:$0xf] %vm611_vm8, %v925_v31  ;;  %2462 = vmatpush3.bf16.msra.mxu0 %v2587_v25  ;;  %2481 = vmatprep.subr.bf16.mxu1 %v2593_v27 }
  0xb7   : > { %v931_v32 = vpop.permute.xlu1 %930  ;;  %2491 = vmatprep.subr.bf16.mxu0 %v2591_v30 }
  0xb8   : > { %957 = vst.msk [vmem:[#allocation3 + $0xc] sm:$0xf] %vm611_vm8, %v931_v32 }
  0xb9   : > { %v929_v37 = vpop.permute.xlu0 %928  ;;  %2464 = vmatmul.mubr.msk.bf16.vlgmr.msra.gmra.mxu0 %vm1040_vm9, %v2589_v18  ;;  %2482 = vmatpush3.bf16.msra.mxu1 %v2593_v27 }
  0xba   : > { %956 = vst.msk [vmem:[#allocation3 + $0x8] sm:$0xf] %vm611_vm8, %v929_v37  ;;  %2467 = vmatprep.mubr.msk.bf16.mxu0 %vm1040_vm9, %v2592_v36  ;;  %2492 = vmatpush3.bf16.msra.mxu0 %v2591_v30 }
  0xbb   : > { %v600_v38 = vpop.permute.xlu1 %599  ;;  %2493 = vmatprep.subr.bf16.mxu0 %v2595_v34  ;;  %2511 = vmatprep.subr.bf16.mxu1 %v2599_v24 }
  0xbd   : > { %v476_v39 = vpop.permute.xlu0 %475  ;;  %v2594_v40 = vld [vmem:[#allocation3] sm:$0xff]  }
  0xbe   : > { %497 = vst.msk [vmem:[#allocation2 + $0x24] sm:$0xf] %vm487_vm7, %v476_v39  ;;  %2494 = vmatpush3.bf16.msra.mxu0 %v2595_v34  ;;  %2483 = vmatprep.mubr.msk.bf16.mxu1 %vm1040_vm9, %v2594_v40 }
  0xbf   : > { %621 = vst.msk [vmem:[#allocation2 + $0x24] sm:$0xf] %vm611_vm8, %v600_v38  ;;  %v815_v43 = vpop.permute.xlu1 %814  ;;  %2495 = vmatprep.subr.bf16.mxu0 %v2597_v35 }
  0xc0   : > { %839 = vst.msk [vmem:[#allocation3 + $0x14] sm:$0xf] %vm487_vm7, %v815_v43 }
  0xc1   : > { %v813_v45 = vpop.permute.xlu0 %812  ;;  %v2596_v46 = vld [vmem:[#allocation3 + $0x8] sm:$0xff]  }
  0xc2   : > { %838 = vst.msk [vmem:[#allocation3 + $0x10] sm:$0xf] %vm487_vm7, %v813_v45  ;;  %2496 = vmatpush3.bf16.msra.mxu0 %v2597_v35  ;;  %2484 = vmatmul.mubr.msk.bf16.vlgmr.msra.gmra.mxu1 %vm1040_vm9, %v2596_v46  ;;  %v2601_v51 = vld [vmem:[#allocation3 + $0x4] sm:$0xff]  }
  0xc3   : > { %v819_v47 = vpop.permute.xlu1 %818  ;;  %2497 = vmatprep.subr.bf16.mxu0 %v2598_v41  ;;  %2512 = vmatpush3.bf16.msra.mxu1 %v2599_v24  ;;  %v2612_v5 = vld [vmem:[#allocation3 + $0x8] sm:$0xff]  }
  0xc4   : > { %841 = vst.msk [vmem:[#allocation3 + $0x1c] sm:$0xf] %vm487_vm7, %v819_v47  ;;  %2513 = vmatprep.subr.bf16.mxu1 %v2603_v44 }
  0xc5   : > { %v817_v48 = vpop.permute.xlu0 %816 }
  0xc6   : > { %840 = vst.msk [vmem:[#allocation3 + $0x18] sm:$0xf] %vm487_vm7, %v817_v48  ;;  %v2600_v49 = vld [vmem:[#allocation2 + $0x20] sm:$0xff]   ;;  %2498 = vmatpush3.bf16.msra.mxu0 %v2598_v41 }
  0xc7   : > { %v935_v50 = vpop.permute.xlu1 %934  ;;  %2499 = vmatprep.subr.bf16.mxu0 %v2602_v3  ;;  %2468 = vmatmul.mubr.msk.bf16.gmra.mxu0 %vm1040_vm9, %v2600_v49 }
  0xc8   : > { %959 = vst.msk [vmem:[#allocation3 + $0x14] sm:$0xf] %vm611_vm8, %v935_v50  ;;  %2514 = vmatpush3.bf16.msra.mxu1 %v2603_v44  ;;  %2503 = vmatprep.mubr.msk.bf16.mxu0 %vm1040_vm9, %v2601_v51 }
  0xc9   : > { %v933_v53 = vpop.permute.xlu0 %932  ;;  %2515 = vmatprep.subr.bf16.mxu1 %v2605_v59 }
  0xca   : > { %958 = vst.msk [vmem:[#allocation3 + $0x10] sm:$0xf] %vm611_vm8, %v933_v53  ;;  %2500 = vmatpush3.bf16.msra.mxu0 %v2602_v3 }
  0xcb   : > { %v939_v55 = vpop.permute.xlu1 %938  ;;  %2501 = vmatprep.subr.bf16.mxu0 %v2604_v52 }
  0xcc   : > { %961 = vst.msk [vmem:[#allocation3 + $0x1c] sm:$0xf] %vm611_vm8, %v939_v55  ;;  %2516 = vmatpush3.bf16.msra.mxu1 %v2605_v59 }
  0xcd   : > { %v937_v56 = vpop.permute.xlu0 %936  ;;  %2517 = vmatprep.subr.bf16.mxu1 %v2608_v54 }
  0xce   : > { %960 = vst.msk [vmem:[#allocation3 + $0x18] sm:$0xf] %vm611_vm8, %v937_v56  ;;  %2502 = vmatpush3.bf16.msra.mxu0 %v2604_v52 }
  0xcf   : > { %v941_v58 = vpop.permute.xlu1 %940 }
  0xd0   : > { %2518 = vmatpush3.bf16.msra.mxu1 %v2608_v54 }
  0xd1   : > { %v821_v61 = vpop.permute.xlu0 %820  ;;  %v2606_v62 = vld [vmem:[#allocation3 + $0x10] sm:$0xff]   ;;  %2519 = vmatprep.subr.bf16.mxu1 %v2611_v57 }
  0xd2   : > { %842 = vst.msk [vmem:[#allocation3 + $0x20] sm:$0xf] %vm487_vm7, %v821_v61  ;;  %v2607_v63 = vld [vmem:[#allocation3 + $0xc] sm:$0xff]   ;;  %2487 = vmatprep.mubr.msk.bf16.mxu1 %vm1040_vm9, %v2606_v62 }
  0xd3   : > { %962 = vst.msk [vmem:[#allocation3 + $0x20] sm:$0xf] %vm611_vm8, %v941_v58  ;;  %2504 = vmatmul.mubr.msk.bf16.vlgmr.msra.gmra.mxu0 %vm1040_vm9, %v2607_v63  ;;  %v943_v0 = vpop.permute.xlu1 %942  ;;  %v2615_v7 = vld [vmem:[#allocation3 + $0x10] sm:$0xff]  }
  0xd4   : > { %2520 = vmatpush3.bf16.msra.mxu1 %v2611_v57 }
  0xd5   : > { %v823_v1 = vpop.permute.xlu0 %822  ;;  %v2609_v2 = vld [vmem:[#allocation3 + $0x18] sm:$0xff]   ;;  %2521 = vmatprep.subr.bf16.mxu1 %v2613_v60 }
  0xd6   : > { %843 = vst.msk [vmem:[#allocation3 + $0x24] sm:$0xf] %vm487_vm7, %v823_v1  ;;  %v2610_v4 = vld [vmem:[#allocation3 + $0x14] sm:$0xff]   ;;  %2488 = vmatmul.mubr.msk.bf16.gmra.mxu1 %vm1040_vm9, %v2609_v2 }
  0xd7   : > { %963 = vst.msk [vmem:[#allocation3 + $0x24] sm:$0xf] %vm611_vm8, %v943_v0  ;;  %2507 = vmatprep.mubr.msk.bf16.mxu0 %vm1040_vm9, %v2610_v4  ;;  %2523 = vmatprep.mubr.msk.bf16.mxu1 %vm1040_vm9, %v2612_v5  ;;  %v2616_v8 = vld [vmem:[#allocation3 + $0x18] sm:$0xff]  }
  0xd8   : > { %2522 = vmatpush3.bf16.msra.mxu1 %v2613_v60  ;;  %v2324_v0 = vld [vmem:[%s3204_s4] ss:$0 sm:$0xff] }
  0xda   : > { %v2614_v6 = vld [vmem:[#allocation3 + $0x1c] sm:$0xff]  }
  0xdb   : > { %2508 = vmatmul.mubr.msk.bf16.gmra.mxu0 %vm1040_vm9, %v2614_v6 }
  0xde   : > { %2524 = vmatmul.mubr.msk.bf16.vlgmr.msra.gmra.mxu1 %vm1040_vm9, %v2615_v7  ;;  %v2617_v9 = vld [vmem:[#allocation3 + $0x20] sm:$0xff]  }
  0xdf   : > { %2527 = vmatprep.mubr.msk.bf16.mxu1 %vm1040_vm9, %v2616_v8 }
  0xe6   : > { %2528 = vmatmul.mubr.msk.bf16.gmra.mxu1 %vm1040_vm9, %v2617_v9 }
 0x161   : > { %v2425_v10 = vpop.f32.mrf.mxu0 }
 0x163   : > { %v1087_v42 = vpop.f32.mrf.mxu0  ;;  %v2445_v12 = vpop.f32.mrf.mxu1 }
 0x164   : > { %v1291_v40 = vadd.f32 %v2445_v12, %v2425_v10 }
 0x165   : > { %v2426_v11 = vpop.f32.mrf.mxu0  ;;  %v1250_v33 = vpop.f32.mrf.mxu1 }
 0x166   : > { %v1289_v44 = vadd.f32 %v1250_v33, %v1087_v42 }
 0x167   : > { %v1090_v13 = vpop.f32.mrf.mxu0  ;;  %v2446_v17 = vpop.f32.mrf.mxu1 }
 0x168   : > { %v1292_v3 = vadd.f32 %v2446_v17, %v2426_v11 }
 0x169   : > { %v1253_v20 = vpop.f32.mrf.mxu1 }
 0x16a   : > { %v1290_v51 = vadd.f32 %v1253_v20, %v1090_v13 }
 0x16f   : > { %v2429_v14 = vpop.f32.mrf.mxu0 }
 0x171   : > { %v1103_v15 = vpop.f32.mrf.mxu0 }
 0x173   : > { %v2430_v16 = vpop.f32.mrf.mxu0  ;;  %v2449_v22 = vpop.f32.mrf.mxu1 }
 0x174   : > { %v1295_v55 = vadd.f32 %v2449_v22, %v2429_v14 }
 0x175   : > { %v1106_v19 = vpop.f32.mrf.mxu0  ;;  %v1266_v25 = vpop.f32.mrf.mxu1 }
 0x176   : > { %v1293_v62 = vadd.f32 %v1266_v25, %v1103_v15 }
 0x177   : > { %v2450_v27 = vpop.f32.mrf.mxu1 }
 0x178   : > { %v1296_v7 = vadd.f32 %v2450_v27, %v2430_v16 }
 0x179   : > { %v2465_v21 = vpop.f32.mrf.mxu0  ;;  %v1269_v29 = vpop.f32.mrf.mxu1 }
 0x17a   : > { %v1470_v45 = vadd.f32 %v2465_v21, %v1291_v40  ;;  %v1294_v13 = vadd.f32 %v1269_v29, %v1106_v19 }
 0x17b   : > { %v1429_v23 = vpop.f32.mrf.mxu0 }
 0x17c   : > { %v1468_v48 = vadd.f32 %v1429_v23, %v1289_v44 }
 0x17d   : > { %v2466_v26 = vpop.f32.mrf.mxu0 }
 0x17e   : > { %v1471_v52 = vadd.f32 %v2466_v26, %v1292_v3 }
 0x17f   : > { %v1432_v28 = vpop.f32.mrf.mxu0 }
 0x180   : > { %v1469_v57 = vadd.f32 %v1432_v28, %v1290_v51 }
 0x182   : > { %v2485_v31 = vpop.f32.mrf.mxu1 }
 0x183   : > { %v1647_v59 = vadd.f32 %v2485_v31, %v1470_v45 }
 0x184   : > { %v1606_v18 = vpop.f32.mrf.mxu1 }
 0x185   : > { %v1645_v53 = vadd.f32 %v1606_v18, %v1468_v48 }
 0x186   : > { %v2486_v24 = vpop.f32.mrf.mxu1 }
 0x187   : > { %v2469_v30 = vpop.f32.mrf.mxu0  ;;  %v1648_v58 = vadd.f32 %v2486_v24, %v1471_v52 }
 0x188   : > { %v1609_v38 = vpop.f32.mrf.mxu1  ;;  %v1474_v2 = vadd.f32 %v2469_v30, %v1295_v55 }
 0x189   : > { %v1445_v32 = vpop.f32.mrf.mxu0  ;;  %v1646_v4 = vadd.f32 %v1609_v38, %v1469_v57 }
 0x18a   : > { %v1472_v8 = vadd.f32 %v1445_v32, %v1293_v62 }
 0x18b   : > { %v2470_v34 = vpop.f32.mrf.mxu0 }
 0x18c   : > { %v1475_v14 = vadd.f32 %v2470_v34, %v1296_v7 }
 0x18d   : > { %v1448_v36 = vpop.f32.mrf.mxu0 }
 0x18e   : > { %v1473_v25 = vadd.f32 %v1448_v36, %v1294_v13 }
 0x193   : > { %v2505_v37 = vpop.f32.mrf.mxu0 }
 0x194   : > { %v1826_v54 = vadd.f32 %v2505_v37, %v1647_v59 }
 0x195   : > { %v1785_v35 = vpop.f32.mrf.mxu0 }
 0x196   : > { %v2489_v39 = vpop.f32.mrf.mxu1  ;;  %v1824_v60 = vadd.f32 %v1785_v35, %v1645_v53 }
 0x197   : > { %v2506_v41 = vpop.f32.mrf.mxu0  ;;  %v1651_v10 = vadd.f32 %v2489_v39, %v1474_v2 }
 0x198   : > { %v1622_v43 = vpop.f32.mrf.mxu1  ;;  %v1827_v5 = vadd.f32 %v2506_v41, %v1648_v58 }
 0x199   : > { %v1788_v46 = vpop.f32.mrf.mxu0  ;;  %v1649_v33 = vadd.f32 %v1622_v43, %v1472_v8 }
 0x19a   : > { %v2490_v47 = vpop.f32.mrf.mxu1  ;;  %v1825_v42 = vadd.f32 %v1788_v46, %v1646_v4 }
 0x19b   : > { %v2509_v49 = vpop.f32.mrf.mxu0  ;;  %v1652_v26 = vadd.f32 %v2490_v47, %v1475_v14 }
 0x19c   : > { %v1625_v50 = vpop.f32.mrf.mxu1  ;;  %v1830_v20 = vadd.f32 %v2509_v49, %v1651_v10 }
 0x19d   : > { %v1801_v63 = vpop.f32.mrf.mxu0  ;;  %v1650_v18 = vadd.f32 %v1625_v50, %v1473_v25 }
 0x19e   : > { %v2525_v56 = vpop.f32.mrf.mxu1  ;;  %v1828_v28 = vadd.f32 %v1801_v63, %v1649_v33 }
 0x19f   : > { %v2005_v61 = vadd.f32 %v2525_v56, %v1826_v54  ;;  %v2510_v15 = vpop.f32.mrf.mxu0 }
 0x1a0   : > { %v1964_v1 = vpop.f32.mrf.mxu1  ;;  %v1831_v24 = vadd.f32 %v2510_v15, %v1652_v26 }
 0x1a1   : > { %v2003_v6 = vadd.f32 %v1964_v1, %v1824_v60  ;;  %v2036_v11 = vadd.f32 %v2324_v0, %v2005_v61  ;;  %v1804_v19 = vpop.f32.mrf.mxu0 }
 0x1a2   : > { %v2526_v9 = vpop.f32.mrf.mxu1  ;;  %v1829_v39 = vadd.f32 %v1804_v19, %v1650_v18 }
 0x1a3   : > { %v2006_v12 = vadd.f32 %v2526_v9, %v1827_v5  ;;  %v2034_v21 = vadd.f32 %v2324_v0, %v2003_v6  ;;  %v2044_v27 = vmax.f32 %v2036_v11, 0.0 }
 0x1a4   : > { %v1967_v17 = vpop.f32.mrf.mxu1 }
 0x1a5   : > { %v2037_v22 = vadd.f32 %v2324_v0, %v2006_v12  ;;  %v2004_v23 = vadd.f32 %v1967_v17, %v1825_v42  ;;  %v2042_v34 = vmax.f32 %v2034_v21, 0.0 }
 0x1a6   : > { %v2529_v16 = vpop.f32.mrf.mxu1 }
 0x1a7   : > { %v2045_v30 = vmax.f32 %v2037_v22, 0.0  ;;  %v2035_v31 = vadd.f32 %v2324_v0, %v2004_v23  ;;  %v2009_v32 = vadd.f32 %v2529_v16, %v1830_v20 }
 0x1a8   : > { %v1980_v29 = vpop.f32.mrf.mxu1 }
 0x1a9   : > { %v2336_v37 = vpack.c.bf16 %v2045_v30, %v2044_v27  ;;  %v2043_v38 = vmax.f32 %v2035_v31, 0.0  ;;  %v2007_v35 = vadd.f32 %v1980_v29, %v1828_v28  ;;  %v2040_v41 = vadd.f32 %v2324_v0, %v2009_v32 }
 0x1aa   : > { %v2530_v36 = vpop.f32.mrf.mxu1 }
 0x1ab   : > { %2348 = vst [vmem:[%s266_s24 + $0x8] sm:$0xff] %v2336_v37   ;;  %v2331_v40 = vpack.c.bf16 %v2043_v38, %v2042_v34  ;;  %v2010_v43 = vadd.f32 %v2530_v36, %v1831_v24  ;;  %v2038_v45 = vadd.f32 %v2324_v0, %v2007_v35  ;;  %v2048_v3 = vmax.f32 %v2040_v41, 0.0 }
 0x1ac   : > { %v1983_v44 = vpop.f32.mrf.mxu1 }
 0x1ad   : > { %2332 = vst [vmem:[%s266_s24] sm:$0xff] %v2331_v40   ;;  %v2041_v46 = vadd.f32 %v2324_v0, %v2010_v43  ;;  %v2008_v47 = vadd.f32 %v1983_v44, %v1829_v39  ;;  %v2046_v49 = vmax.f32 %v2038_v45, 0.0 }
 0x1af   : > { %v2049_v48 = vmax.f32 %v2041_v46, 0.0  ;;  %v2039_v59 = vadd.f32 %v2324_v0, %v2008_v47 }
 0x1b1   : > { %v2346_v50 = vpack.c.bf16 %v2049_v48, %v2048_v3  ;;  %v2047_v51 = vmax.f32 %v2039_v59, 0.0 }
 0x1b3   : > { %2350 = vst [vmem:[%s266_s24 + $0x18] sm:$0xff] %v2346_v50   ;;  %v2341_v52 = vpack.c.bf16 %v2047_v51, %v2046_v49 }
 0x1b5   : > { %2349 = vst [vmem:[%s266_s24 + $0x10] sm:$0xff] %v2341_v52  }
 0x1b6 PF: > { %s15_s20 = sadd.s32 1, %s2640_s20   ;;  %s3210_s18 = smov %s2636_s19 }
 0x1b7   : > { %p12_p5 = scmp.ge.s32.totalorder %s15_s20, 4   ;;  %s3211_s19 = smov %s3213_s21 }
 0x1b9   :  { %14 = sbr.rel (!%p12_p5) target bundleno = 2 (0x2), region = 83 }

// kernel: residual_net_forward.7
= control target key start
LH: loop header
LB: loop body
LE: loop exit
PB: predicated region body
PF: predicated region fallthrough
CT: control target
= control target key end

     0   :  { %s4536_s12 = smov 0   ;;  %s4538_s13 = smov 0   ;;  %s5626_s0 = inlined_call_operand.vmem [shape: bf16[2,18,18,8], index: 0, kind: input, shape index: {}]   ;;  %s5627_s1 = inlined_call_operand.vmem [shape: bf16[3,24,16], index: 1, kind: input, shape index: {}]   ;;  %s5628_s2 = inlined_call_operand.vmem [shape: f32[1,16], index: 2, kind: input, shape index: {}]   ;;  %s5629_s3 = inlined_call_operand.vmem [shape: bf16[2,8,8,16], index: 3, kind: output, shape index: {}]  }
   0x1   :  { %s4540_s14 = smov 0  }
   0x2 LB: > { %s25_s15 = sadd.s32 1, %s4507_s13  ;;  %p3974_p0 = scmp.ge.s32.totalorder %s4511_s14, 1  ;;  %s4511_s14 = sphi %s4540_s14, %s13_s14   ;;  %s4507_s13 = sphi %s4538_s13, %s5635_s13   ;;  %s4503_s12 = sphi %s4536_s12, %s5634_s12  }
   0x3   : > { %p27_p1 = scmp.ge.s32.totalorder %s25_s15, 2  ;;  %p151_p2 = scmp.lt.s32.totalorder %s4511_s14, 3 }
   0x5   : > { %s5637_s15 = smov (%p27_p1, %s25_s15), 0  ;;  %p152_p3 = pnand %p3974_p0, %p151_p2 }
   0x6   : > { %p179_p4 = scmp.lt.s32.totalorder (!%p152_p3), %s4503_s12, 1  ;;  %s4513_s20 = smov (!%p152_p3), 16  }
   0x7   : > { %155 = sbr.rel (%p152_p3) target bundleno = 723 (0x2d3), region = 32  ;;  %s4514_s21 = smov (!%p152_p3), 8  }
   0xc   : > { %s5639_s12 = smov (!%p179_p4, %s4503_s12), 1  ;;  %vm1014_vm0 = vcmask 1042432   ;;  %vm1015_vm1 = vcmask 1046532   ;;  %vm326_vm3 = vsmask.f32 3328  ;;  %vm235_vm6 = vcmask 60416  }
   0xd   : > { %s4406_s16 = smul.u32 216, %s5639_s12  ;;  %vm4562_vm2 = vmor %vm1014_vm0, %vm1015_vm1  ;;  %vm327_vm4 = vsmask.f32 7440  ;;  %vm1461_vm7 = vcmask 1043456   ;;  %vm869_vm8 = vcmask 126016   ;;  %vm1251_vm9 = vcmask 191616  }
   0xe   : > { %vm4592_vm5 = vmor %vm326_vm3, %vm327_vm4  ;;  %vm1412_vm10 = vcmask 195584   ;;  %vm1626_vm11 = vcmask 130048   ;;  %vm3030_vm12 = vcmask 123904   ;;  %vm3799_vm13 = vcmask 1041409   ;;  %s4171_s9 = sshll.u32 %s5639_s12, 5 }
   0xf   : > { %s4560_s19 = scalar_lea.vmem %s5626_s0, %s4406_s16  ;;  %vm3801_vm14 = vcmask 1042434   ;;  %vm3803_vm15 = vcmask 1043459   ;;  %vm3805_vm0 = vcmask 1044484   ;;  %vm3807_vm1 = vcmask 1045509   ;;  %s5304_s12 = scalar_lea.vmem %s5629_s3, %s4171_s9 }
  0x10   : > { %v930_v1 = vld [vmem:[%s4560_s19 + $0x60] sm:$0xe]  ;;  %v931_v2 = vld [vmem:[%s4560_s19 + $0x64] sm:$0xf]  ;;  %v932_v3 = vld [vmem:[%s4560_s19 + $0x68] sm:$0x1] }
  0x11   : > { %v3986_v4 = vrot.slane %v930_v1, 9  ;;  %v1075_v5 = vrot.slane %v931_v2, 5  ;;  %v1078_v6 = vrot.slane %v932_v3, 5  ;;  %v933_v7 = vld [vmem:[%s4560_s19 + $0x6c] sm:$0xe]  ;;  %vm3811_vm3 = vcmask 1047559  }
  0x12   : > { %v934_v8 = vld [vmem:[%s4560_s19 + $0x70] sm:$0xf]  ;;  %v3987_v9 = vrot.slane %v933_v7, 9  ;;  %v935_v10 = vld [vmem:[%s4560_s19 + $0x74] sm:$0x1]  ;;  %vm3878_vm4 = vcmask 125952  }
  0x13   : > { %v1076_v11 = vsel %vm4562_vm2, %v3986_v4, %v1075_v5  ;;  %v1077_v12 = vrot.slane %v1075_v5, 4  ;;  %v1082_v13 = vrot.slane %v934_v8, 5  ;;  %v1085_v14 = vrot.slane %v935_v10, 5  ;;  %v296_v15 = vld [vmem:[%s4560_s19 + $0x60] sm:$0xf] }
  0x14   : > { %1175 = vrot.lane.b32.xlu0 %v1076_v11, %s4513_s20  ;;  %v297_v16 = vld [vmem:[%s4560_s19 + $0x64] sm:$0xf]  ;;  %v522_v17 = vshrl.u32 %v296_v15, 16  ;;  %v525_v18 = vshll.u32 %v296_v15, 16  ;;  %v299_v19 = vld [vmem:[%s4560_s19 + $0x6c] sm:$0xf] }
  0x15   : > { %v1079_v20 = vsel %vm4562_vm2, %v1077_v12, %v1078_v6  ;;  %v1083_v21 = vsel %vm4562_vm2, %v3987_v9, %v1082_v13  ;;  %v1084_v22 = vrot.slane %v1082_v13, 4  ;;  %v531_v23 = vshll.u32 %v297_v16, 16  ;;  %v300_v24 = vld [vmem:[%s4560_s19 + $0x70] sm:$0xf]  ;;  %v298_v25 = vld [vmem:[%s4560_s19 + $0x68] sm:$0x1] }
  0x16   : > { %1177 = vrot.lane.b32.xlu1 %v1079_v20, %s4513_s20  ;;  %v524_v26 = vrot.slane %v522_v17, 4  ;;  %v527_v27 = vrot.slane %v525_v18, 5  ;;  %v535_v28 = vshrl.u32 %v297_v16, 16  ;;  %v546_v29 = vshrl.u32 %v299_v19, 16  ;;  %v301_v30 = vld [vmem:[%s4560_s19 + $0x74] sm:$0x1] }
  0x17   : > { %v1086_v31 = vsel %vm4562_vm2, %v1084_v22, %v1085_v14  ;;  %v533_v32 = vrot.slane %v531_v23, 5  ;;  %v549_v33 = vshll.u32 %v299_v19, 16  ;;  %v555_v34 = vshll.u32 %v300_v24, 16  ;;  %v303_v35 = vld [vmem:[%s4560_s19 + $0x7c] sm:$0xf] }
  0x18   : > { %1179 = vrot.lane.b32.xlu0 %v1083_v21, %s4513_s20  ;;  %v528_v36 = vor.u32 %v527_v27, %v524_v26  ;;  %v548_v37 = vrot.slane %v546_v29, 4  ;;  %v559_v38 = vshrl.u32 %v300_v24, 16  ;;  %v537_v39 = vrot.slane %v535_v28, 4  ;;  %v304_v45 = vld [vmem:[%s4560_s19 + $0x80] sm:$0x1] }
  0x19   : > { %v551_v41 = vrot.slane %v549_v33, 5  ;;  %v557_v42 = vrot.slane %v555_v34, 5  ;;  %v541_v43 = vshll.u32 %v298_v25, 16  ;;  %v565_v44 = vshll.u32 %v301_v30, 16  ;;  %v302_v50 = vld [vmem:[%s4560_s19 + $0x78] sm:$0xf] }
  0x1a   : > { %1181 = vrot.lane.b32.xlu1 %v1086_v31, %s4513_s20  ;;  %v529_v46 = vrot.slane %v528_v36, 4  ;;  %v538_v47 = vor.u32 %v537_v39, %v533_v32  ;;  %v561_v48 = vrot.slane %v559_v38, 4  ;;  %v579_v49 = vshll.u32 %v303_v35, 16  ;;  %v306_v55 = vld [vmem:[%s4560_s19 + $0x88] sm:$0xf] }
  0x1b   : > { %v552_v51 = vor.u32 %v551_v41, %v548_v37  ;;  %v543_v52 = vrot.slane %v541_v43, 5  ;;  %v567_v53 = vrot.slane %v565_v44, 5  ;;  %v583_v54 = vshrl.u32 %v303_v35, 16  ;;  %v307_v1 = vld [vmem:[%s4560_s19 + $0x8c] sm:$0x1] }
  0x1c   : > { %v534_v56 = vsel %vm4592_vm5, %v529_v46, %v533_v32  ;;  %v539_v57 = vrot.slane %v538_v47, 4  ;;  %v562_v58 = vor.u32 %v561_v48, %v557_v42  ;;  %v581_v59 = vrot.slane %v579_v49, 5  ;;  %v305_v6 = vld [vmem:[%s4560_s19 + $0x84] sm:$0xf]  ;;  %v937_v11 = vld [vmem:[%s4560_s19 + $0x7c] sm:$0xf] }
  0x1d   : > { %793 = vrot.lane.b32.xlu0 %v534_v56, %s4514_s21  ;;  %v553_v60 = vrot.slane %v552_v51, 4  ;;  %v585_v61 = vrot.slane %v583_v54, 4  ;;  %v589_v62 = vshll.u32 %v304_v45, 16  ;;  %v570_v63 = vshrl.u32 %v302_v50, 16  ;;  %v273_v23 = vld [vmem:[%s4560_s19 + $0x4] sm:$0xf] }
  0x1e   : > { %v544_v2 = vsel %vm4592_vm5, %v539_v57, %v543_v52  ;;  %v563_v3 = vrot.slane %v562_v58, 4  ;;  %v573_v4 = vshll.u32 %v302_v50, 16  ;;  %v603_v5 = vshll.u32 %v306_v55, 16  ;;  %v938_v26 = vld [vmem:[%s4560_s19 + $0x80] sm:$0x1] }
  0x1f   : > { %v558_v7 = vsel %vm4592_vm5, %v553_v60, %v557_v42  ;;  %v586_v8 = vor.u32 %v585_v61, %v581_v59  ;;  %v591_v9 = vrot.slane %v589_v62, 5  ;;  %v572_v10 = vrot.slane %v570_v63, 4  ;;  %v936_v30 = vld [vmem:[%s4560_s19 + $0x78] sm:$0xe]  ;;  %v274_v31 = vld [vmem:[%s4560_s19 + $0x8] sm:$0x1] }
  0x20   : > { %797 = vrot.lane.b32.xlu1 %v558_v7, %s4514_s21  ;;  %v568_v12 = vsel %vm4592_vm5, %v563_v3, %v567_v53  ;;  %v575_v13 = vrot.slane %v573_v4, 5  ;;  %v605_v14 = vrot.slane %v603_v5, 5  ;;  %v607_v15 = vshrl.u32 %v306_v55, 16  ;;  %v272_v36 = vld [vmem:[%s4560_s19] sm:$0xf] }
  0x21   : > { %795 = vrot.lane.b32.xlu0 %v544_v2, %s4514_s21  ;;  %v587_v16 = vrot.slane %v586_v8, 4  ;;  %v613_v17 = vshll.u32 %v307_v1, 16  ;;  %v594_v18 = vshrl.u32 %v305_v6, 16  ;;  %v597_v19 = vshll.u32 %v305_v6, 16  ;;  %v276_v46 = vld [vmem:[%s4560_s19 + $0x10] sm:$0xf] }
  0x22   : > { %v576_v20 = vor.u32 %v575_v13, %v572_v10  ;;  %v609_v21 = vrot.slane %v607_v15, 4  ;;  %v1089_v22 = vrot.slane %v937_v11, 5  ;;  %v339_v34 = vshll.u32 %v273_v23, 16  ;;  %v275_v53 = vld [vmem:[%s4560_s19 + $0xc] sm:$0xf] }
  0x23   : > { %v596_v24 = vrot.slane %v594_v18, 4  ;;  %v599_v25 = vrot.slane %v597_v19, 5  ;;  %v592_v27 = vsel %vm4592_vm5, %v587_v16, %v591_v9  ;;  %v615_v32 = vrot.slane %v613_v17, 5  ;;  %v940_v56 = vld [vmem:[%s4560_s19 + $0x88] sm:$0xf] }
  0x24   : > { %799 = vrot.lane.b32.xlu1 %v568_v12, %s4514_s21  ;;  %v577_v28 = vrot.slane %v576_v20, 4  ;;  %v610_v29 = vor.u32 %v609_v21, %v605_v14  ;;  %v343_v35 = vshrl.u32 %v273_v23, 16  ;;  %v1091_v39 = vrot.slane %v1089_v22, 4  ;;  %v277_v63 = vld [vmem:[%s4560_s19 + $0x14] sm:$0x1] }
  0x25   : > { %v600_v33 = vor.u32 %v599_v25, %v596_v24  ;;  %v1092_v41 = vrot.slane %v938_v26, 5  ;;  %v3988_v43 = vrot.slane %v936_v30, 9  ;;  %v341_v44 = vrot.slane %v339_v34, 5  ;;  %v939_v5 = vld [vmem:[%s4560_s19 + $0x84] sm:$0xe] }
  0x26   : > { %v582_v37 = vsel %vm4592_vm5, %v577_v28, %v581_v59  ;;  %v611_v38 = vrot.slane %v610_v29, 4  ;;  %v345_v45 = vrot.slane %v343_v35, 4  ;;  %v349_v47 = vshll.u32 %v274_v31, 16  ;;  %v941_v9 = vld [vmem:[%s4560_s19 + $0x8c] sm:$0x1] }
  0x27   : > { %801 = vrot.lane.b32.xlu0 %v582_v37, %s4514_s21  ;;  %v601_v42 = vrot.slane %v600_v33, 4  ;;  %v330_v48 = vshrl.u32 %v272_v36, 16  ;;  %v333_v49 = vshll.u32 %v272_v36, 16  ;;  %v363_v57 = vshll.u32 %v276_v46, 16  ;;  %v907_v16 = vld [vmem:[%s4560_s19 + $0x4] sm:$0xf] }
  0x28   : > { %803 = vrot.lane.b32.xlu1 %v592_v27, %s4514_s21  ;;  %v616_v50 = vsel %vm4592_vm5, %v611_v38, %v615_v32  ;;  %v346_v52 = vor.u32 %v345_v45, %v341_v44  ;;  %v1093_v58 = vsel %vm4562_vm2, %v1091_v39, %v1092_v41  ;;  %v1090_v59 = vsel %vm4562_vm2, %v3988_v43, %v1089_v22  ;;  %v308_v21 = vld [vmem:[%s4560_s19 + $0x90] sm:$0xf]  ;;  %v908_v22 = vld [vmem:[%s4560_s19 + $0x8] sm:$0x1]  ;;  %v309_v23 = vld [vmem:[%s4560_s19 + $0x94] sm:$0xf] }
  0x29   : > { %v606_v51 = vsel %vm4592_vm5, %v601_v42, %v605_v14  ;;  %v332_v54 = vrot.slane %v330_v48, 4  ;;  %v335_v55 = vrot.slane %v333_v49, 5  ;;  %v367_v60 = vshrl.u32 %v276_v46, 16  ;;  %v906_v28 = vld [vmem:[%s4560_s19] sm:$0xe] }
  0x2a   : > { %v351_v61 = vrot.slane %v349_v47, 5  ;;  %v365_v1 = vrot.slane %v363_v57, 5  ;;  %v354_v2 = vshrl.u32 %v275_v53, 16  ;;  %v347_v3 = vrot.slane %v346_v52, 4  ;;  %v910_v30 = vld [vmem:[%s4560_s19 + $0x10] sm:$0xf] }
  0x2b   : > { %805 = vrot.lane.b32.xlu0 %v606_v51, %s4514_s21  ;;  %v336_v62 = vor.u32 %v335_v55, %v332_v54  ;;  %v1096_v4 = vrot.slane %v940_v56, 5  ;;  %v369_v6 = vrot.slane %v367_v60, 4  ;;  %v357_v7 = vshll.u32 %v275_v53, 16  ;;  %v311_v36 = vld [vmem:[%s4560_s19 + $0x9c] sm:$0xf] }
  0x2c   : > { %807 = vrot.lane.b32.xlu1 %v616_v50, %s4514_s21  ;;  %v356_v10 = vrot.slane %v354_v2, 4  ;;  %v373_v12 = vshll.u32 %v277_v63, 16  ;;  %v3989_v15 = vrot.slane %v939_v5, 9  ;;  %v352_v17 = vsel %vm4592_vm5, %v347_v3, %v351_v61  ;;  %v312_v39 = vld [vmem:[%s4560_s19 + $0xa0] sm:$0xf] }
  0x2d   : > { %v337_v8 = vrot.slane %v336_v62, 4  ;;  %v370_v11 = vor.u32 %v369_v6, %v365_v1  ;;  %v359_v13 = vrot.slane %v357_v7, 5  ;;  %v1098_v18 = vrot.slane %v1096_v4, 4  ;;  %v909_v46 = vld [vmem:[%s4560_s19 + $0xc] sm:$0xe] }
  0x2e   : > { %v1099_v19 = vrot.slane %v941_v9, 5  ;;  %v375_v25 = vrot.slane %v373_v12, 5  ;;  %v1019_v27 = vrot.slane %v907_v16, 5  ;;  %v1097_v29 = vsel %vm4562_vm2, %v3989_v15, %v1096_v4  ;;  %v310_v47 = vld [vmem:[%s4560_s19 + $0x98] sm:$0x1] }
  0x2f   : > { %1183 = vrot.lane.b32.xlu0 %v1090_v59, %s4513_s20  ;;  %v342_v14 = vsel %vm4592_vm5, %v337_v8, %v341_v44  ;;  %v360_v20 = vor.u32 %v359_v13, %v356_v10  ;;  %v371_v24 = vrot.slane %v370_v11, 4  ;;  %v618_v31 = vshrl.u32 %v308_v21, 16  ;;  %v911_v44 = vld [vmem:[%s4560_s19 + $0x14] sm:$0x1]  ;;  %v313_v62 = vld [vmem:[%s4560_s19 + $0xa4] sm:$0x1] }
  0x30   : > { %1185 = vrot.lane.b32.xlu1 %v1093_v58, %s4513_s20  ;;  %v621_v32 = vshll.u32 %v308_v21, 16  ;;  %v1100_v33 = vsel %vm4562_vm2, %v1098_v18, %v1099_v19  ;;  %v627_v34 = vshll.u32 %v309_v23, 16  ;;  %v631_v35 = vshrl.u32 %v309_v23, 16  ;;  %v278_v6 = vld [vmem:[%s4560_s19 + $0x18] sm:$0xf] }
  0x31   : > { %v361_v26 = vrot.slane %v360_v20, 4  ;;  %v1022_v37 = vrot.slane %v908_v22, 5  ;;  %v3978_v38 = vrot.slane %v906_v28, 9  ;;  %v376_v41 = vsel %vm4592_vm5, %v371_v24, %v375_v25  ;;  %v279_v7 = vld [vmem:[%s4560_s19 + $0x1c] sm:$0xf] }
  0x32   : > { %v1021_v43 = vrot.slane %v1019_v27, 4  ;;  %v1026_v45 = vrot.slane %v910_v30, 5  ;;  %v620_v48 = vrot.slane %v618_v31, 4  ;;  %v623_v49 = vrot.slane %v621_v32, 5  ;;  %v944_v22 = vld [vmem:[%s4560_s19 + $0x98] sm:$0x1] }
  0x33   : > { %761 = vrot.lane.b32.xlu0 %v342_v14, %s4514_s21  ;;  %v366_v42 = vsel %vm4592_vm5, %v361_v26, %v365_v1  ;;  %v642_v50 = vshrl.u32 %v311_v36, 16  ;;  %v645_v51 = vshll.u32 %v311_v36, 16  ;;  %v629_v52 = vrot.slane %v627_v34, 5  ;;  %v943_v14 = vld [vmem:[%s4560_s19 + $0x94] sm:$0xf] }
  0x34   : > { %763 = vrot.lane.b32.xlu1 %v352_v17, %s4514_s21  ;;  %v633_v53 = vrot.slane %v631_v35, 4  ;;  %v651_v54 = vshll.u32 %v312_v39, 16  ;;  %v655_v55 = vshrl.u32 %v312_v39, 16  ;;  %v1028_v56 = vrot.slane %v1026_v45, 4  ;;  %v282_v24 = vld [vmem:[%s4560_s19 + $0x28] sm:$0xf] }
  0x35   : > { %v1029_v57 = vrot.slane %v911_v44, 5  ;;  %v3979_v58 = vrot.slane %v909_v46, 9  ;;  %v637_v59 = vshll.u32 %v310_v47, 16  ;;  %v1020_v60 = vsel %vm4562_vm2, %v3978_v38, %v1019_v27  ;;  %v942_v32 = vld [vmem:[%s4560_s19 + $0x90] sm:$0xe] }
  0x36   : > { %v624_v61 = vor.u32 %v623_v49, %v620_v48  ;;  %v644_v63 = vrot.slane %v642_v50, 4  ;;  %v647_v1 = vrot.slane %v645_v51, 5  ;;  %v1023_v2 = vsel %vm4562_vm2, %v1021_v43, %v1022_v37  ;;  %v280_v35 = vld [vmem:[%s4560_s19 + $0x20] sm:$0x1] }
  0x37   : > { %1187 = vrot.lane.b32.xlu0 %v1097_v29, %s4513_s20  ;;  %v634_v3 = vor.u32 %v633_v53, %v629_v52  ;;  %v653_v4 = vrot.slane %v651_v54, 5  ;;  %v657_v5 = vrot.slane %v655_v55, 4  ;;  %v1030_v8 = vsel %vm4562_vm2, %v1028_v56, %v1029_v57  ;;  %v281_v29 = vld [vmem:[%s4560_s19 + $0x24] sm:$0xf]  ;;  %v946_v49 = vld [vmem:[%s4560_s19 + $0xa0] sm:$0xf] }
  0x38   : > { %1189 = vrot.lane.b32.xlu1 %v1100_v33, %s4513_s20  ;;  %v1027_v9 = vsel %vm4562_vm2, %v3979_v58, %v1026_v45  ;;  %v639_v10 = vrot.slane %v637_v59, 5  ;;  %v661_v11 = vshll.u32 %v313_v62, 16  ;;  %v625_v12 = vrot.slane %v624_v61, 4  ;;  %v283_v56 = vld [vmem:[%s4560_s19 + $0x2c] sm:$0x1] }
  0x39   : > { %v648_v13 = vor.u32 %v647_v1, %v644_v63  ;;  %v378_v15 = vshrl.u32 %v278_v6, 16  ;;  %v381_v16 = vshll.u32 %v278_v6, 16  ;;  %v635_v17 = vrot.slane %v634_v3, 4  ;;  %v945_v61 = vld [vmem:[%s4560_s19 + $0x9c] sm:$0xe] }
  0x3a   : > { %v658_v18 = vor.u32 %v657_v5, %v653_v4  ;;  %v387_v19 = vshll.u32 %v279_v7, 16  ;;  %v391_v20 = vshrl.u32 %v279_v7, 16  ;;  %v663_v21 = vrot.slane %v661_v11, 5  ;;  %v947_v62 = vld [vmem:[%s4560_s19 + $0xa4] sm:$0x1] }
  0x3b   : > { %765 = vrot.lane.b32.xlu0 %v366_v42, %s4514_s21  ;;  %v1103_v23 = vrot.slane %v943_v14, 5  ;;  %v630_v25 = vsel %vm4592_vm5, %v625_v12, %v629_v52  ;;  %v649_v26 = vrot.slane %v648_v13, 4  ;;  %v380_v27 = vrot.slane %v378_v15, 4  ;;  %v913_v5 = vld [vmem:[%s4560_s19 + $0x1c] sm:$0xf] }
  0x3c   : > { %767 = vrot.lane.b32.xlu1 %v376_v41, %s4514_s21  ;;  %v383_v28 = vrot.slane %v381_v16, 5  ;;  %v640_v30 = vsel %vm4592_vm5, %v635_v17, %v639_v10  ;;  %v659_v31 = vrot.slane %v658_v18, 4  ;;  %v389_v33 = vrot.slane %v387_v19, 5  ;;  %v914_v10 = vld [vmem:[%s4560_s19 + $0x20] sm:$0x1] }
  0x3d   : > { %v393_v34 = vrot.slane %v391_v20, 4  ;;  %v411_v36 = vshll.u32 %v282_v24, 16  ;;  %v415_v37 = vshrl.u32 %v282_v24, 16  ;;  %v402_v38 = vshrl.u32 %v281_v29, 16  ;;  %v315_v11 = vld [vmem:[%s4560_s19 + $0xac] sm:$0xf] }
  0x3e   : > { %v405_v39 = vshll.u32 %v281_v29, 16  ;;  %v654_v41 = vsel %vm4592_vm5, %v649_v26, %v653_v4  ;;  %v1106_v42 = vrot.slane %v944_v22, 5  ;;  %v3990_v43 = vrot.slane %v942_v32, 9  ;;  %v912_v16 = vld [vmem:[%s4560_s19 + $0x18] sm:$0xe] }
  0x3f   : > { %1143 = vrot.lane.b32.xlu0 %v1020_v60, %s4513_s20  ;;  %v384_v44 = vor.u32 %v383_v28, %v380_v27  ;;  %v664_v45 = vsel %vm4592_vm5, %v659_v31, %v663_v21  ;;  %v1105_v46 = vrot.slane %v1103_v23, 4  ;;  %v394_v47 = vor.u32 %v393_v34, %v389_v33  ;;  %v916_v18 = vld [vmem:[%s4560_s19 + $0x28] sm:$0xf]  ;;  %v317_v24 = vld [vmem:[%s4560_s19 + $0xb4] sm:$0xf] }
  0x40   : > { %1145 = vrot.lane.b32.xlu1 %v1023_v2, %s4513_s20  ;;  %v397_v48 = vshll.u32 %v280_v35, 16  ;;  %v4706_v50 = vrot.slane %v411_v36, 5  ;;  %v417_v51 = vrot.slane %v415_v37, 4  ;;  %v404_v52 = vrot.slane %v402_v38, 4  ;;  %v917_v28 = vld [vmem:[%s4560_s19 + $0x2c] sm:$0x1] }
  0x41   : > { %v407_v53 = vrot.slane %v405_v39, 5  ;;  %v1104_v54 = vsel %vm4562_vm2, %v3990_v43, %v1103_v23  ;;  %v385_v55 = vrot.slane %v384_v44, 4  ;;  %v1107_v57 = vsel %vm4562_vm2, %v1105_v46, %v1106_v42  ;;  %v318_v29 = vld [vmem:[%s4560_s19 + $0xb8] sm:$0xf]  ;;  %v915_v34 = vld [vmem:[%s4560_s19 + $0x24] sm:$0xe] }
  0x42   : > { %v395_v58 = vrot.slane %v394_v47, 4  ;;  %v399_v59 = vrot.slane %v397_v48, 5  ;;  %v1110_v60 = vrot.slane %v946_v49, 5  ;;  %v418_v63 = vor.u32 %v417_v51, %v4706_v50  ;;  %v316_v35 = vld [vmem:[%s4560_s19 + $0xb0] sm:$0x1] }
  0x43   : > { %1147 = vrot.lane.b32.xlu0 %v1027_v9, %s4513_s20  ;;  %v421_v1 = vshll.u32 %v283_v56, 16  ;;  %v408_v2 = vor.u32 %v407_v53, %v404_v52  ;;  %v390_v3 = vsel %vm4592_vm5, %v385_v55, %v389_v33  ;;  %v3991_v4 = vrot.slane %v945_v61, 9  ;;  %v314_v9 = vld [vmem:[%s4560_s19 + $0xa8] sm:$0xf]  ;;  %v216_v46 = vld [vmem:[%s4560_s19 + $0x64] sm:$0xf] }
  0x44   : > { %1149 = vrot.lane.b32.xlu1 %v1030_v8, %s4513_s20  ;;  %v400_v6 = vsel %vm4592_vm5, %v395_v58, %v399_v59  ;;  %v1112_v7 = vrot.slane %v1110_v60, 4  ;;  %v1113_v8 = vrot.slane %v947_v62, 5  ;;  %v419_v12 = vrot.slane %v418_v63, 4  ;;  %253 = vst.msk [vmem:[#allocation2 + $0x44] sm:$0xf] %vm235_vm6, %v216_v46 }
  0x45   : > { %v423_v13 = vrot.slane %v421_v1, 5  ;;  %v409_v14 = vrot.slane %v408_v2, 4  ;;  %v1033_v15 = vrot.slane %v913_v5, 5  ;;  %v1111_v17 = vsel %vm4562_vm2, %v3991_v4, %v1110_v60  ;;  %v319_v53 = vld [vmem:[%s4560_s19 + $0xbc] sm:$0x1] }
  0x46   : > { %v666_v19 = vshrl.u32 %v314_v9, 16  ;;  %v669_v20 = vshll.u32 %v314_v9, 16  ;;  %v1114_v21 = vsel %vm4562_vm2, %v1112_v7, %v1113_v8  ;;  %v675_v22 = vshll.u32 %v315_v11, 16  ;;  %v284_v60 = vld [vmem:[%s4560_s19 + $0x30] sm:$0xf] }
  0x47   : > { %809 = vrot.lane.b32.xlu0 %v630_v25, %s4514_s21  ;;  %v679_v23 = vshrl.u32 %v315_v11, 16  ;;  %v215_v25 = vld [vmem:[%s4560_s19 + $0x60] sm:$0xf]  ;;  %v1036_v26 = vrot.slane %v914_v10, 5  ;;  %v3980_v27 = vrot.slane %v912_v16, 9  ;;  %v414_v31 = vsel %vm4592_vm5, %v409_v14, %v4706_v50 }
  0x48   : > { %811 = vrot.lane.b32.xlu1 %v640_v30, %s4514_s21  ;;  %252 = vst.msk [vmem:[#allocation2 + $0x40] sm:$0xf] %vm235_vm6, %v215_v25  ;;  %v424_v30 = vsel %vm4592_vm5, %v419_v12, %v423_v13  ;;  %v1035_v32 = vrot.slane %v1033_v15, 4  ;;  %v1040_v33 = vrot.slane %v916_v18, 5  ;;  %v668_v36 = vrot.slane %v666_v19, 4 }
  0x49   : > { %v671_v37 = vrot.slane %v669_v20, 5  ;;  %v690_v38 = vshrl.u32 %v317_v24, 16  ;;  %v693_v39 = vshll.u32 %v317_v24, 16  ;;  %v4750_v42 = vrot.slane %v675_v22, 5  ;;  %v218_v61 = vld [vmem:[%s4560_s19 + $0x70] sm:$0xf] }
  0x4a   : > { %v681_v43 = vrot.slane %v679_v23, 4  ;;  %v699_v44 = vshll.u32 %v318_v29, 16  ;;  %v1042_v47 = vrot.slane %v1040_v33, 4  ;;  %v1043_v48 = vrot.slane %v917_v28, 5  ;;  %v4768_v62 = vld [vmem:[%s4560_s19 + $0xac] sm:$0xf] }
  0x4b   : > { %813 = vrot.lane.b32.xlu0 %v654_v41, %s4514_s21  ;;  %v217_v41 = vld [vmem:[%s4560_s19 + $0x6c] sm:$0xf]  ;;  %v3981_v49 = vrot.slane %v915_v34, 9  ;;  %v685_v50 = vshll.u32 %v316_v35, 16  ;;  %v1034_v51 = vsel %vm4562_vm2, %v3980_v27, %v1033_v15  ;;  %v672_v52 = vor.u32 %v671_v37, %v668_v36  ;;  %v285_v63 = vld [vmem:[%s4560_s19 + $0x34] sm:$0xf] }
  0x4c   : > { %815 = vrot.lane.b32.xlu1 %v664_v45, %s4514_s21  ;;  %v703_v45 = vshrl.u32 %v318_v29, 16  ;;  %254 = vst.msk [vmem:[#allocation2 + $0x48] sm:$0xf] %vm235_vm6, %v217_v41  ;;  %v695_v55 = vrot.slane %v693_v39, 5  ;;  %v1037_v56 = vsel %vm4562_vm2, %v1035_v32, %v1036_v26  ;;  %v4763_v58 = vrot.slane %v699_v44, 5 }
  0x4d   : > { %255 = vst.msk [vmem:[#allocation2 + $0x4c] sm:$0xf] %vm235_vm6, %v218_v61  ;;  %v220_v1 = vld [vmem:[%s4560_s19 + $0x7c] sm:$0xf]  ;;  %v219_v2 = vld [vmem:[%s4560_s19 + $0x78] sm:$0xf]  ;;  %v1041_v4 = vsel %vm4562_vm2, %v3981_v49, %v1040_v33 }
  0x4e   : > { %v705_v59 = vrot.slane %v703_v45, 4  ;;  %v687_v5 = vrot.slane %v685_v50, 5  ;;  %257 = vst.msk [vmem:[#allocation2 + $0x54] sm:$0xf] %vm235_vm6, %v220_v1  ;;  %256 = vst.msk [vmem:[#allocation2 + $0x50] sm:$0xf] %vm235_vm6, %v219_v2 }
  0x4f   : > { %1191 = vrot.lane.b32.xlu0 %v1104_v54, %s4513_s20  ;;  %v692_v54 = vrot.slane %v690_v38, 4  ;;  %v222_v7 = vld [vmem:[%s4560_s19 + $0x88] sm:$0xf]  ;;  %v221_v8 = vld [vmem:[%s4560_s19 + $0x84] sm:$0xf]  ;;  %v673_v9 = vrot.slane %v672_v52, 4 }
  0x50   : > { %1193 = vrot.lane.b32.xlu1 %v1107_v57, %s4513_s20  ;;  %v682_v57 = vor.u32 %v681_v43, %v4750_v42  ;;  %v426_v11 = vshrl.u32 %v284_v60, 16  ;;  %v429_v12 = vshll.u32 %v284_v60, 16  ;;  %259 = vst.msk [vmem:[#allocation2 + $0x5c] sm:$0xf] %vm235_vm6, %v222_v7  ;;  %258 = vst.msk [vmem:[#allocation2 + $0x58] sm:$0xf] %vm235_vm6, %v221_v8  ;;  %v706_v15 = vor.u32 %v705_v59, %v4763_v58 }
  0x51   : > { %v696_v10 = vor.u32 %v695_v55, %v692_v54  ;;  %v200_v13 = vld [vmem:[%s4560_s19 + $0x4] sm:$0xf]  ;;  %v435_v16 = vshll.u32 %v285_v63, 16  ;;  %v199_v18 = vld [vmem:[%s4560_s19] sm:$0xf]  ;;  %v1117_v22 = vrot.slane %v4768_v62, 5  ;;  %v678_v25 = vsel %vm4592_vm5, %v673_v9, %v4750_v42 }
  0x52   : > { %v683_v14 = vrot.slane %v682_v57, 4  ;;  %237 = vst.msk [vmem:[#allocation2 + $0x4] sm:$0xf] %vm235_vm6, %v200_v13  ;;  %v4791_v19 = vld [vmem:[%s4560_s19 + $0xb0] sm:$0x1]  ;;  %v428_v27 = vrot.slane %v426_v11, 4 }
  0x53   : > { %769 = vrot.lane.b32.xlu0 %v390_v3, %s4514_s21  ;;  %v1044_v3 = vsel %vm4562_vm2, %v1042_v47, %v1043_v48  ;;  %236 = vst.msk [vmem:[#allocation2] sm:$0xf] %vm235_vm6, %v199_v18  ;;  %v202_v20 = vld [vmem:[%s4560_s19 + $0x10] sm:$0xf]  ;;  %v288_v23 = vld [vmem:[%s4560_s19 + $0x40] sm:$0xf] }
  0x54   : > { %771 = vrot.lane.b32.xlu1 %v400_v6, %s4514_s21  ;;  %v709_v6 = vshll.u32 %v319_v53, 16  ;;  %239 = vst.msk [vmem:[#allocation2 + $0xc] sm:$0xf] %vm235_vm6, %v202_v20  ;;  %v201_v24 = vld [vmem:[%s4560_s19 + $0xc] sm:$0xf]  ;;  %v697_v26 = vrot.slane %v696_v10, 4 }
  0x55   : > { %v431_v28 = vrot.slane %v429_v12, 5  ;;  %v287_v29 = vld [vmem:[%s4560_s19 + $0x3c] sm:$0xf]  ;;  %238 = vst.msk [vmem:[#allocation2 + $0x8] sm:$0xf] %vm235_vm6, %v201_v24  ;;  %v4809_v33 = vrot.slane %v435_v16, 5 }
  0x56   : > { %v948_v32 = vld [vmem:[%s4560_s19 + $0xa8] sm:$0xe]  ;;  %v286_v35 = vld [vmem:[%s4560_s19 + $0x38] sm:$0x1]  ;;  %v459_v36 = vshll.u32 %v288_v23, 16  ;;  %v463_v37 = vshrl.u32 %v288_v23, 16  ;;  %v702_v43 = vsel %vm4592_vm5, %v697_v26, %v4763_v58 }
  0x57   : > { %1195 = vrot.lane.b32.xlu0 %v1111_v17, %s4513_s20  ;;  %v439_v17 = vshrl.u32 %v285_v63, 16  ;;  %v4434_v38 = vld [vmem:[%s5627_s1 + $0x8] ss:$0 sps:$4 sm:$0xff]   ;;  %v1120_v39 = vrot.slane %v4791_v19, 5  ;;  %v450_v41 = vshrl.u32 %v287_v29, 16  ;;  %v453_v42 = vshll.u32 %v287_v29, 16 }
  0x58   : > { %1197 = vrot.lane.b32.xlu1 %v1114_v21, %s4513_s20  ;;  %v711_v21 = vrot.slane %v709_v6, 5  ;;  %v1119_v44 = vrot.slane %v1117_v22, 4  ;;  %v3992_v45 = vrot.slane %v948_v32, 9  ;;  %v432_v46 = vor.u32 %v431_v28, %v428_v27  ;;  %v4435_v47 = vld [vmem:[%s5627_s1] sm:$0xff]   ;;  %v224_v52 = vld [vmem:[%s4560_s19 + $0x94] sm:$0xf]  ;;  %4403 = vmatprep.subr.msk.bf16.mxu1 %vm1461_vm7, %v4434_v38 }
  0x59   : > { %v441_v34 = vrot.slane %v439_v17, 4  ;;  %v445_v50 = vshll.u32 %v286_v35, 16  ;;  %v4831_v53 = vrot.slane %v459_v36, 5  ;;  %v465_v54 = vrot.slane %v463_v37, 4  ;;  %4402 = vmatprep.subr.msk.bf16.mxu0 %vm1461_vm7, %v4434_v38  ;;  %261 = vst.msk [vmem:[#allocation2 + $0x64] sm:$0xf] %vm235_vm6, %v224_v52 }
  0x5a   : > { %v1463_v55 = vsel %vm1461_vm7, %v4434_v38, 0  ;;  %v951_v57 = vld [vmem:[%s4560_s19 + $0xb4] sm:$0xe]  ;;  %v452_v58 = vrot.slane %v450_v41, 4  ;;  %v455_v59 = vrot.slane %v453_v42, 5  ;;  %v1118_v62 = vsel %vm4562_vm2, %v3992_v45, %v1117_v22 }
  0x5b   : > { %773 = vrot.lane.b32.xlu0 %v414_v31, %s4514_s21  ;;  %v707_v31 = vrot.slane %v706_v15, 4  ;;  %v442_v49 = vor.u32 %v441_v34, %v4809_v33  ;;  %4400 = vmatpush3.bf16.msra.mxu1 %v1463_v55  ;;  %v226_v60 = vld [vmem:[%s4560_s19 + $0xa0] sm:$0xf]  ;;  %v225_v61 = vld [vmem:[%s4560_s19 + $0x9c] sm:$0xf]  ;;  %v433_v63 = vrot.slane %v432_v46, 4  ;;  %v466_v10 = vor.u32 %v465_v54, %v4831_v53 }
  0x5c   : > { %775 = vrot.lane.b32.xlu1 %v424_v30, %s4514_s21  ;;  %v688_v30 = vsel %vm4592_vm5, %v683_v14, %v687_v5  ;;  %v289_v1 = vld [vmem:[%s4560_s19 + $0x44] sm:$0x1]  ;;  %4399 = vmatprep.subr.bf16.mxu1 %v4435_v47  ;;  %263 = vst.msk [vmem:[#allocation2 + $0x6c] sm:$0xf] %vm235_vm6, %v226_v60  ;;  %262 = vst.msk [vmem:[#allocation2 + $0x68] sm:$0xf] %vm235_vm6, %v225_v61  ;;  %v456_v12 = vor.u32 %v455_v59, %v452_v58 }
  0x5d   : > { %v712_v48 = vsel %vm4592_vm5, %v707_v31, %v711_v21  ;;  %v204_v2 = vld [vmem:[%s4560_s19 + $0x1c] sm:$0xf]  ;;  %v447_v5 = vrot.slane %v445_v50, 5  ;;  %4291 = vmatpush3.bf16.msra.mxu0 %v1463_v55  ;;  %v203_v7 = vld [vmem:[%s4560_s19 + $0x18] sm:$0xf]  ;;  %v469_v11 = vshll.u32 %v289_v1, 16  ;;  %v438_v14 = vsel %vm4592_vm5, %v433_v63, %v4809_v33 }
  0x5e   : > { %241 = vst.msk [vmem:[#allocation2 + $0x14] sm:$0xf] %vm235_vm6, %v204_v2  ;;  %v953_v8 = vld [vmem:[%s4560_s19 + $0xbc] sm:$0x1]  ;;  %4292 = vmatprep.subr.bf16.mxu0 %v4435_v47  ;;  %240 = vst.msk [vmem:[#allocation2 + $0x10] sm:$0xf] %vm235_vm6, %v203_v7 }
  0x5f   : > { %1151 = vrot.lane.b32.xlu0 %v1034_v51, %s4513_s20  ;;  %v4828_v51 = vld [vmem:[%s4560_s19 + $0xb8] sm:$0xf]  ;;  %v206_v9 = vld [vmem:[%s4560_s19 + $0x28] sm:$0xf]  ;;  %4401 = vmatpush3.bf16.msra.mxu1 %v4435_v47  ;;  %v205_v13 = vld [vmem:[%s4560_s19 + $0x24] sm:$0xf] }
  0x60   : > { %1153 = vrot.lane.b32.xlu1 %v1037_v56, %s4513_s20  ;;  %v223_v56 = vld [vmem:[%s4560_s19 + $0x90] sm:$0xf]  ;;  %v1124_v6 = vrot.slane %v4828_v51, 5  ;;  %243 = vst.msk [vmem:[#allocation2 + $0x1c] sm:$0xf] %vm235_vm6, %v206_v9  ;;  %v3993_v15 = vrot.slane %v951_v57, 9 }
  0x61   : > { %260 = vst.msk [vmem:[#allocation2 + $0x60] sm:$0xf] %vm235_vm6, %v223_v56  ;;  %v4867_v16 = vld [vmem:[%s4560_s19 + $0x34] sm:$0xf]  ;;  %242 = vst.msk [vmem:[#allocation2 + $0x18] sm:$0xf] %vm235_vm6, %v205_v13  ;;  %4293 = vmatpush3.bf16.msra.mxu0 %v4435_v47 }
  0x62   : > { %v1126_v18 = vrot.slane %v1124_v6, 4  ;;  %v1127_v19 = vrot.slane %v953_v8, 5  ;;  %v4873_v20 = vld [vmem:[%s4560_s19 + $0x38] sm:$0x1]  ;;  %v290_v21 = vld [vmem:[%s4560_s19 + $0x48] sm:$0xf]  ;;  %v1125_v31 = vsel %vm4562_vm2, %v3993_v15, %v1124_v6 }
  0x63   : > { %1155 = vrot.lane.b32.xlu0 %v1041_v4, %s4513_s20  ;;  %v443_v4 = vrot.slane %v442_v49, 4  ;;  %v918_v22 = vld [vmem:[%s4560_s19 + $0x30] sm:$0xe]  ;;  %v4878_v23 = vld [vmem:[%s4560_s19 + $0x40] sm:$0xf]  ;;  %v471_v26 = vrot.slane %v469_v11, 5 }
  0x64   : > { %1157 = vrot.lane.b32.xlu1 %v1044_v3, %s4513_s20  ;;  %v1121_v3 = vsel %vm4562_vm2, %v1119_v44, %v1120_v39  ;;  %v291_v24 = vld [vmem:[%s4560_s19 + $0x4c] sm:$0xf]  ;;  %v457_v27 = vrot.slane %v456_v12, 4  ;;  %v1047_v28 = vrot.slane %v4867_v16, 5  ;;  %v4884_v29 = vld [vmem:[%s4560_s19 + $0x54] sm:$0xf]  ;;  %v1128_v37 = vsel %vm4562_vm2, %v1126_v18, %v1127_v19 }
  0x65   : > { %v448_v17 = vsel %vm4592_vm5, %v443_v4, %v447_v5  ;;  %v474_v32 = vshrl.u32 %v290_v21, 16  ;;  %v477_v33 = vshll.u32 %v290_v21, 16  ;;  %v294_v34 = vld [vmem:[%s4560_s19 + $0x58] sm:$0xf]  ;;  %v227_v35 = vld [vmem:[%s4560_s19 + $0xa8] sm:$0xf] }
  0x66   : > { %v230_v36 = vld [vmem:[%s4560_s19 + $0xb8] sm:$0xf]  ;;  %v483_v38 = vshll.u32 %v291_v24, 16  ;;  %v487_v39 = vshrl.u32 %v291_v24, 16  ;;  %264 = vst.msk [vmem:[#allocation2 + $0x70] sm:$0xf] %vm235_vm6, %v227_v35  ;;  %v462_v50 = vsel %vm4592_vm5, %v457_v27, %v4831_v53 }
  0x67   : > { %817 = vrot.lane.b32.xlu0 %v678_v25, %s4514_s21  ;;  %v467_v25 = vrot.slane %v466_v10, 4  ;;  %267 = vst.msk [vmem:[#allocation2 + $0x7c] sm:$0xf] %vm235_vm6, %v230_v36  ;;  %v229_v41 = vld [vmem:[%s4560_s19 + $0xb4] sm:$0xf]  ;;  %v3982_v44 = vrot.slane %v918_v22, 9 }
  0x68   : > { %819 = vrot.lane.b32.xlu1 %v688_v30, %s4514_s21  ;;  %v228_v30 = vld [vmem:[%s4560_s19 + $0xac] sm:$0xf]  ;;  %v208_v42 = vld [vmem:[%s4560_s19 + $0x34] sm:$0xf]  ;;  %v923_v45 = vld [vmem:[%s4560_s19 + $0x44] sm:$0x1] }
  0x69   : > { %265 = vst.msk [vmem:[#allocation2 + $0x74] sm:$0xf] %vm235_vm6, %v228_v30  ;;  %v921_v46 = vld [vmem:[%s4560_s19 + $0x3c] sm:$0xe]  ;;  %266 = vst.msk [vmem:[#allocation2 + $0x78] sm:$0xf] %vm235_vm6, %v229_v41  ;;  %v472_v49 = vsel %vm4592_vm5, %v467_v25, %v471_v26  ;;  %v1048_v5 = vsel %vm4562_vm2, %v3982_v44, %v1047_v28 }
  0x6a   : > { %245 = vst.msk [vmem:[#allocation2 + $0x24] sm:$0xf] %vm235_vm6, %v208_v42  ;;  %v207_v47 = vld [vmem:[%s4560_s19 + $0x30] sm:$0xf]  ;;  %v1049_v51 = vrot.slane %v1047_v28, 4  ;;  %v1054_v52 = vrot.slane %v4878_v23, 5 }
  0x6b   : > { %821 = vrot.lane.b32.xlu0 %v702_v43, %s4514_s21  ;;  %v1050_v43 = vrot.slane %v4873_v20, 5  ;;  %244 = vst.msk [vmem:[#allocation2 + $0x20] sm:$0xf] %vm235_vm6, %v207_v47  ;;  %v210_v54 = vld [vmem:[%s4560_s19 + $0x40] sm:$0xf]  ;;  %v476_v56 = vrot.slane %v474_v32, 4 }
  0x6c   : > { %823 = vrot.lane.b32.xlu1 %v712_v48, %s4514_s21  ;;  %v4909_v48 = vld [vmem:[%s5627_s1 + $0x14] ss:$0 sps:$4 sm:$0xff]   ;;  %v209_v55 = vld [vmem:[%s4560_s19 + $0x3c] sm:$0xf]  ;;  %v479_v57 = vrot.slane %v477_v33, 5  ;;  %v498_v58 = vshrl.u32 %v4884_v29, 16 }
  0x6d   : > { %v501_v59 = vshll.u32 %v4884_v29, 16  ;;  %4404 = vmatprep.subr.msk.bf16.mxu1 %vm1461_vm7, %v4909_v48  ;;  %247 = vst.msk [vmem:[#allocation2 + $0x2c] sm:$0xf] %vm235_vm6, %v210_v54  ;;  %246 = vst.msk [vmem:[#allocation2 + $0x28] sm:$0xf] %vm235_vm6, %v209_v55  ;;  %v485_v61 = vrot.slane %v483_v38, 5  ;;  %v1051_v9 = vsel %vm4562_vm2, %v1049_v51, %v1050_v43 }
  0x6e   : > { %v4450_v53 = vld [vmem:[%s5627_s1 + $0x20] ss:$0 sps:$4 sm:$0xff]   ;;  %v292_v60 = vld [vmem:[%s4560_s19 + $0x50] sm:$0x1]  ;;  %v507_v63 = vshll.u32 %v294_v34, 16  ;;  %v511_v1 = vshrl.u32 %v294_v34, 16  ;;  %v480_v10 = vor.u32 %v479_v57, %v476_v56 }
  0x6f   : > { %1199 = vrot.lane.b32.xlu0 %v1118_v62, %s4513_s20  ;;  %v489_v62 = vrot.slane %v487_v39, 4  ;;  %4405 = vmatprep.subr.msk.bf16.mxu0 %vm1461_vm7, %v4450_v53  ;;  %v4934_v2 = vsel %vm1461_vm7, %v4450_v53, 0  ;;  %v211_v4 = vld [vmem:[%s4560_s19 + $0x48] sm:$0xf]  ;;  %v1056_v6 = vrot.slane %v1054_v52, 4  ;;  %v1057_v7 = vrot.slane %v923_v45, 5 }
  0x70   : > { %1201 = vrot.lane.b32.xlu1 %v1121_v3, %s4513_s20  ;;  %v212_v3 = vld [vmem:[%s4560_s19 + $0x4c] sm:$0xf]  ;;  %v3983_v8 = vrot.slane %v921_v46, 9  ;;  %248 = vst.msk [vmem:[#allocation2 + $0x30] sm:$0xf] %vm235_vm6, %v211_v4  ;;  %v500_v12 = vrot.slane %v498_v58, 4 }
  0x71   : > { %249 = vst.msk [vmem:[#allocation2 + $0x34] sm:$0xf] %vm235_vm6, %v212_v3  ;;  %v295_v11 = vld [vmem:[%s4560_s19 + $0x5c] sm:$0x1]  ;;  %v503_v13 = vrot.slane %v501_v59, 5  ;;  %v493_v15 = vshll.u32 %v292_v60, 16  ;;  %v1058_v25 = vsel %vm4562_vm2, %v1056_v6, %v1057_v7 }
  0x72   : > { %v509_v16 = vrot.slane %v507_v63, 5  ;;  %v214_v18 = vld [vmem:[%s4560_s19 + $0x58] sm:$0xf]  ;;  %v213_v19 = vld [vmem:[%s4560_s19 + $0x54] sm:$0xf]  ;;  %v517_v20 = vshll.u32 %v295_v11, 16  ;;  %v1055_v21 = vsel %vm4562_vm2, %v3983_v8, %v1054_v52 }
  0x73   : > { %777 = vrot.lane.b32.xlu0 %v438_v14, %s4514_s21  ;;  %v490_v14 = vor.u32 %v489_v62, %v485_v61  ;;  %251 = vst.msk [vmem:[#allocation2 + $0x3c] sm:$0xf] %vm235_vm6, %v214_v18  ;;  %250 = vst.msk [vmem:[#allocation2 + $0x38] sm:$0xf] %vm235_vm6, %v213_v19  ;;  %v481_v22 = vrot.slane %v480_v10, 4  ;;  %v504_v23 = vor.u32 %v503_v13, %v500_v12  ;;  %v495_v27 = vrot.slane %v493_v15, 5 }
  0x74   : > { %779 = vrot.lane.b32.xlu1 %v448_v17, %s4514_s21  ;;  %v513_v17 = vrot.slane %v511_v1, 4  ;;  %v925_v24 = vld [vmem:[%s4560_s19 + $0x4c] sm:$0xf]  ;;  %v320_v29 = vld [vmem:[%s4560_s19 + $0xc0] sm:$0xf]  ;;  %v1834_v40 = vsel %vm1461_vm7, %v4909_v48, 0 }
  0x75   : > { %v491_v26 = vrot.slane %v490_v14, 4  ;;  %v321_v30 = vld [vmem:[%s4560_s19 + $0xc4] sm:$0xf]  ;;  %v926_v32 = vld [vmem:[%s4560_s19 + $0x50] sm:$0x1]  ;;  %v1061_v33 = vrot.slane %v925_v24, 5  ;;  %v486_v34 = vsel %vm4592_vm5, %v481_v22, %v485_v61 }
  0x76   : > { %v514_v28 = vor.u32 %v513_v17, %v509_v16  ;;  %v505_v35 = vrot.slane %v504_v23, 4  ;;  %v924_v36 = vld [vmem:[%s4560_s19 + $0x48] sm:$0xe]  ;;  %v717_v38 = vshll.u32 %v320_v29, 16  ;;  %v928_v42 = vld [vmem:[%s4560_s19 + $0x58] sm:$0xf] }
  0x77   : > { %1203 = vrot.lane.b32.xlu0 %v1125_v31, %s4513_s20  ;;  %v519_v31 = vrot.slane %v517_v20, 5  ;;  %v496_v39 = vsel %vm4592_vm5, %v491_v26, %v495_v27  ;;  %v723_v43 = vshll.u32 %v321_v30, 16  ;;  %v727_v44 = vshrl.u32 %v321_v30, 16  ;;  %v323_v57 = vld [vmem:[%s4560_s19 + $0xcc] sm:$0xf] }
  0x78   : > { %1205 = vrot.lane.b32.xlu1 %v1128_v37, %s4513_s20  ;;  %v714_v37 = vshrl.u32 %v320_v29, 16  ;;  %v515_v41 = vrot.slane %v514_v28, 4  ;;  %v1063_v46 = vrot.slane %v1061_v33, 4  ;;  %v1064_v47 = vrot.slane %v926_v32, 5  ;;  %v927_v59 = vld [vmem:[%s4560_s19 + $0x54] sm:$0xe] }
  0x79   : > { %v510_v52 = vsel %vm4592_vm5, %v505_v35, %v509_v16  ;;  %v1068_v54 = vrot.slane %v928_v42, 5  ;;  %v719_v56 = vrot.slane %v717_v38, 5  ;;  %v725_v53 = vrot.slane %v723_v43, 5  ;;  %v322_v62 = vld [vmem:[%s4560_s19 + $0xc8] sm:$0x1] }
  0x7a   : > { %v716_v55 = vrot.slane %v714_v37, 4  ;;  %v520_v58 = vsel %vm4592_vm5, %v515_v41, %v519_v31  ;;  %v729_v60 = vrot.slane %v727_v44, 4  ;;  %v324_v63 = vld [vmem:[%s4560_s19 + $0xd0] sm:$0xf]  ;;  %v1065_v1 = vsel %vm4562_vm2, %v1063_v46, %v1064_v47  ;;  %v955_v13 = vld [vmem:[%s4560_s19 + $0xc4] sm:$0xf] }
  0x7b   : > { %781 = vrot.lane.b32.xlu0 %v462_v50, %s4514_s21  ;;  %v929_v50 = vld [vmem:[%s4560_s19 + $0x5c] sm:$0x1]  ;;  %v738_v4 = vshrl.u32 %v323_v57, 16  ;;  %v1070_v8 = vrot.slane %v1068_v54, 4  ;;  %v733_v12 = vshll.u32 %v322_v62, 16  ;;  %v747_v14 = vshll.u32 %v324_v63, 16 }
  0x7c   : > { %783 = vrot.lane.b32.xlu1 %v472_v49, %s4514_s21  ;;  %v3984_v49 = vrot.slane %v924_v36, 9  ;;  %v1071_v3 = vrot.slane %v929_v50, 5  ;;  %v720_v10 = vor.u32 %v719_v56, %v716_v55  ;;  %v730_v11 = vor.u32 %v729_v60, %v725_v53  ;;  %v956_v22 = vld [vmem:[%s4560_s19 + $0xc8] sm:$0x1]  ;;  %v954_v26 = vld [vmem:[%s4560_s19 + $0xc0] sm:$0xe] }
  0x7d   : > { %v751_v15 = vshrl.u32 %v324_v63, 16  ;;  %v740_v17 = vrot.slane %v738_v4, 4  ;;  %v1131_v23 = vrot.slane %v955_v13, 5  ;;  %v749_v27 = vrot.slane %v747_v14, 5  ;;  %v325_v30 = vld [vmem:[%s4560_s19 + $0xd4] sm:$0x1] }
  0x7e   : > { %v1062_v7 = vsel %vm4562_vm2, %v3984_v49, %v1061_v33  ;;  %v1072_v19 = vsel %vm4562_vm2, %v1070_v8, %v1071_v3  ;;  %v731_v24 = vrot.slane %v730_v11, 4  ;;  %v3994_v35 = vrot.slane %v954_v26, 9  ;;  %v958_v42 = vld [vmem:[%s4560_s19 + $0xd0] sm:$0xf]  ;;  %v233_v26 = vld [vmem:[%s4560_s19 + $0xcc] sm:$0xf] }
  0x7f   : > { %1159 = vrot.lane.b32.xlu0 %v1048_v5, %s4513_s20  ;;  %v741_v5 = vshll.u32 %v323_v57, 16  ;;  %v753_v28 = vrot.slane %v751_v15, 4  ;;  %v1133_v37 = vrot.slane %v1131_v23, 4  ;;  %v1138_v50 = vrot.slane %v958_v42, 5  ;;  %v4451_v62 = vld [vmem:[%s5627_s1 + $0xc] sm:$0xff]  }
  0x80   : > { %1161 = vrot.lane.b32.xlu1 %v1051_v9, %s4513_s20  ;;  %v3985_v9 = vrot.slane %v927_v59, 9  ;;  %v1132_v44 = vsel %vm4562_vm2, %v3994_v35, %v1131_v23  ;;  %270 = vst.msk [vmem:[#allocation2 + $0x88] sm:$0xf] %vm235_vm6, %v233_v26 }
  0x81   : > { %v743_v18 = vrot.slane %v741_v5, 5  ;;  %v754_v38 = vor.u32 %v753_v28, %v749_v27 }
  0x82   : > { %v1069_v20 = vsel %vm4562_vm2, %v3985_v9, %v1068_v54  ;;  %v959_v54 = vld [vmem:[%s4560_s19 + $0xd4] sm:$0x1] }
  0x83   : > { %1163 = vrot.lane.b32.xlu0 %v1055_v21, %s4513_s20  ;;  %v721_v21 = vrot.slane %v720_v10, 4  ;;  %v744_v32 = vor.u32 %v743_v18, %v740_v17  ;;  %v755_v47 = vrot.slane %v754_v38, 4  ;;  %v1141_v60 = vrot.slane %v959_v54, 5 }
  0x84   : > { %1165 = vrot.lane.b32.xlu1 %v1058_v25, %s4513_s20  ;;  %v735_v25 = vrot.slane %v733_v12, 5 }
  0x85   : > { %v726_v33 = vsel %vm4592_vm5, %v721_v21, %v725_v53  ;;  %v745_v43 = vrot.slane %v744_v32, 4  ;;  %v1140_v53 = vrot.slane %v1138_v50, 4 }
  0x86   : > { %v1176_v45 = vpop.permute.xlu0 %1175  ;;  %v736_v36 = vsel %vm4592_vm5, %v731_v24, %v735_v25  ;;  %v234_v25 = vld [vmem:[%s4560_s19 + $0xd0] sm:$0xf] }
  0x87   : > { %785 = vrot.lane.b32.xlu0 %v486_v34, %s4514_s21  ;;  %v1134_v34 = vrot.slane %v956_v22, 5  ;;  %v750_v56 = vsel %vm4592_vm5, %v745_v43, %v749_v27  ;;  %v1142_v4 = vsel %vm4562_vm2, %v1140_v53, %v1141_v60  ;;  %v4458_v22 = vld [vmem:[%s5627_s1 + $0x18] sm:$0xff]   ;;  %271 = vst.msk [vmem:[#allocation2 + $0x8c] sm:$0xf] %vm235_vm6, %v234_v25 }
  0x88   : > { %787 = vrot.lane.b32.xlu1 %v496_v39, %s4514_s21  ;;  %v1178_v51 = vpop.permute.xlu1 %1177  ;;  %v757_v39 = vshll.u32 %v325_v30, 16 }
  0x89   : > { %v1135_v46 = vsel %vm4562_vm2, %v1133_v37, %v1134_v34 }
  0x8a   : > { %v1180_v61 = vpop.permute.xlu0 %1179  ;;  %v759_v49 = vrot.slane %v757_v39, 5 }
  0x8b   : > { %789 = vrot.lane.b32.xlu0 %v510_v52, %s4514_s21 }
  0x8c   : > { %791 = vrot.lane.b32.xlu1 %v520_v58, %s4514_s21  ;;  %v1182_v6 = vpop.permute.xlu1 %1181  ;;  %v760_v59 = vsel %vm4592_vm5, %v755_v47, %v759_v49 }
  0x8f   : > { %v794_v16 = vpop.permute.xlu0 %793  ;;  %1167 = vrot.lane.b32.xlu0 %v1062_v7, %s4513_s20  ;;  %v231_v7 = vld [vmem:[%s4560_s19 + $0xc0] sm:$0xf] }
  0x90   : > { %886 = vst.msk [vmem:[#allocation2 + $0x40] sm:$0xf] %vm869_vm8, %v794_v16  ;;  %1169 = vrot.lane.b32.xlu1 %v1065_v1, %s4513_s20 }
  0x91   : > { %1268 = vst.msk [vmem:[#allocation2 + $0x40] sm:$0xf] %vm1251_vm9, %v1176_v45 }
  0x92   : > { %v798_v29 = vpop.permute.xlu1 %797  ;;  %268 = vst.msk [vmem:[#allocation2 + $0x80] sm:$0xf] %vm235_vm6, %v231_v7 }
  0x93   : > { %888 = vst.msk [vmem:[#allocation2 + $0x48] sm:$0xf] %vm869_vm8, %v798_v29  ;;  %v796_v31 = vpop.permute.xlu0 %795  ;;  %1171 = vrot.lane.b32.xlu0 %v1069_v20, %s4513_s20 }
  0x94   : > { %1270 = vst.msk [vmem:[#allocation2 + $0x48] sm:$0xf] %vm1251_vm9, %v1180_v61  ;;  %1173 = vrot.lane.b32.xlu1 %v1072_v19, %s4513_s20 }
  0x95   : > { %887 = vst.msk [vmem:[#allocation2 + $0x44] sm:$0xf] %vm869_vm8, %v796_v31 }
  0x96   : > { %1269 = vst.msk [vmem:[#allocation2 + $0x44] sm:$0xf] %vm1251_vm9, %v1178_v51  ;;  %v800_v41 = vpop.permute.xlu1 %799  ;;  %v957_v51 = vld [vmem:[%s4560_s19 + $0xcc] sm:$0xe] }
  0x97   : > { %889 = vst.msk [vmem:[#allocation2 + $0x4c] sm:$0xf] %vm869_vm8, %v800_v41  ;;  %825 = vrot.lane.b32.xlu0 %v726_v33, %s4514_s21  ;;  %v3995_v57 = vrot.slane %v957_v51, 9 }
  0x98   : > { %1271 = vst.msk [vmem:[#allocation2 + $0x4c] sm:$0xf] %vm1251_vm9, %v1182_v6  ;;  %827 = vrot.lane.b32.xlu1 %v736_v36, %s4514_s21  ;;  %v232_v6 = vld [vmem:[%s4560_s19 + $0xc4] sm:$0xf] }
  0x99   : > { %v802_v45 = vpop.permute.xlu0 %801  ;;  %v1139_v1 = vsel %vm4562_vm2, %v3995_v57, %v1138_v50  ;;  %269 = vst.msk [vmem:[#allocation2 + $0x84] sm:$0xf] %vm235_vm6, %v232_v6  ;;  %vm3809_vm2 = vcmask 1046534  }
  0x9a   : > { %v804_v52 = vpop.permute.xlu1 %803  ;;  %890 = vst.msk [vmem:[#allocation2 + $0x50] sm:$0xf] %vm869_vm8, %v802_v45 }
  0x9b   : > { %891 = vst.msk [vmem:[#allocation2 + $0x54] sm:$0xf] %vm869_vm8, %v804_v52  ;;  %1207 = vrot.lane.b32.xlu0 %v1132_v44, %s4513_s20 }
  0x9c   : > { %1209 = vrot.lane.b32.xlu1 %v1135_v46, %s4513_s20 }
  0x9d   : > { %v4436_v55 = vld [vmem:[#allocation2 + $0x40] sm:$0xff]   ;;  %v806_v58 = vpop.permute.xlu0 %805 }
  0x9e   : > { %v808_v61 = vpop.permute.xlu1 %807  ;;  %892 = vst.msk [vmem:[#allocation2 + $0x58] sm:$0xf] %vm869_vm8, %v806_v58  ;;  %4310 = vmatprep.mubr.msk.bf16.mxu1 %vm1412_vm10, %v4436_v55 }
  0x9f   : > { %893 = vst.msk [vmem:[#allocation2 + $0x5c] sm:$0xf] %vm869_vm8, %v808_v61  ;;  %v4437_v63 = vld [vmem:[#allocation2 + $0x48] sm:$0xff]   ;;  %829 = vrot.lane.b32.xlu0 %v750_v56, %s4514_s21 }
  0xa0   : > { %831 = vrot.lane.b32.xlu1 %v760_v59, %s4514_s21  ;;  %4311 = vmatmul.mubr.msk.bf16.vlgmr.msra.gmra.mxu1 %vm1412_vm10, %v4437_v63 }
  0xa1   : > { %v1184_v3 = vpop.permute.xlu0 %1183  ;;  %4327 = vmatpush3.bf16.msra.mxu1 %v1834_v40 }
  0xa2   : > { %v1186_v5 = vpop.permute.xlu1 %1185  ;;  %1272 = vst.msk [vmem:[#allocation2 + $0x50] sm:$0xf] %vm1251_vm9, %v1184_v3  ;;  %4328 = vmatprep.subr.bf16.mxu1 %v4451_v62 }
  0xa3   : > { %1273 = vst.msk [vmem:[#allocation2 + $0x54] sm:$0xf] %vm1251_vm9, %v1186_v5  ;;  %1211 = vrot.lane.b32.xlu0 %v1139_v1, %s4513_s20 }
  0xa4   : > { %1213 = vrot.lane.b32.xlu1 %v1142_v4, %s4513_s20 }
  0xa5   : > { %v762_v48 = vpop.permute.xlu0 %761  ;;  %4329 = vmatpush3.bf16.msra.mxu1 %v4451_v62 }
  0xa6   : > { %v764_v8 = vpop.permute.xlu1 %763  ;;  %870 = vst.msk [vmem:[#allocation2] sm:$0xf] %vm869_vm8, %v762_v48 }
  0xa7   : > { %871 = vst.msk [vmem:[#allocation2 + $0x4] sm:$0xf] %vm869_vm8, %v764_v8 }
  0xa9   : > { %v1188_v0 = vpop.permute.xlu0 %1187 }
  0xaa   : > { %v1190_v9 = vpop.permute.xlu1 %1189  ;;  %1274 = vst.msk [vmem:[#allocation2 + $0x58] sm:$0xf] %vm1251_vm9, %v1188_v0  ;;  %v4438_v10 = vld [vmem:[#allocation2 + $0x50] sm:$0xff]  }
  0xab   : > { %1275 = vst.msk [vmem:[#allocation2 + $0x5c] sm:$0xf] %vm1251_vm9, %v1190_v9  ;;  %4314 = vmatprep.mubr.msk.bf16.mxu1 %vm1412_vm10, %v4438_v10 }
  0xad   : > { %v766_v11 = vpop.permute.xlu0 %765 }
  0xae   : > { %v768_v12 = vpop.permute.xlu1 %767  ;;  %872 = vst.msk [vmem:[#allocation2 + $0x8] sm:$0xf] %vm869_vm8, %v766_v11 }
  0xaf   : > { %873 = vst.msk [vmem:[#allocation2 + $0xc] sm:$0xf] %vm869_vm8, %v768_v12 }
  0xb1   : > { %v1144_v13 = vpop.permute.xlu0 %1143 }
  0xb2   : > { %v1146_v14 = vpop.permute.xlu1 %1145  ;;  %1252 = vst.msk [vmem:[#allocation2] sm:$0xf] %vm1251_vm9, %v1144_v13  ;;  %v4439_v15 = vld [vmem:[#allocation2 + $0x58] sm:$0xff]  }
  0xb3   : > { %1253 = vst.msk [vmem:[#allocation2 + $0x4] sm:$0xf] %vm1251_vm9, %v1146_v14  ;;  %4315 = vmatmul.mubr.msk.bf16.gmra.mxu1 %vm1412_vm10, %v4439_v15 }
  0xb5   : > { %v1148_v16 = vpop.permute.xlu0 %1147 }
  0xb6   : > { %v1150_v17 = vpop.permute.xlu1 %1149  ;;  %1254 = vst.msk [vmem:[#allocation2 + $0x8] sm:$0xf] %vm1251_vm9, %v1148_v16 }
  0xb7   : > { %1255 = vst.msk [vmem:[#allocation2 + $0xc] sm:$0xf] %vm1251_vm9, %v1150_v17 }
  0xb9   : > { %v810_v18 = vpop.permute.xlu0 %809 }
  0xba   : > { %v812_v19 = vpop.permute.xlu1 %811  ;;  %894 = vst.msk [vmem:[#allocation2 + $0x60] sm:$0xf] %vm869_vm8, %v810_v18  ;;  %v4440_v20 = vld [vmem:[#allocation2] sm:$0xff]  }
  0xbb   : > { %895 = vst.msk [vmem:[#allocation2 + $0x64] sm:$0xf] %vm869_vm8, %v812_v19  ;;  %4294 = vmatprep.mubr.msk.bf16.mxu0 %vm1412_vm10, %v4440_v20 }
  0xbd   : > { %v814_v21 = vpop.permute.xlu0 %813 }
  0xbe   : > { %v816_v23 = vpop.permute.xlu1 %815  ;;  %896 = vst.msk [vmem:[#allocation2 + $0x68] sm:$0xf] %vm869_vm8, %v814_v21  ;;  %v4441_v24 = vld [vmem:[#allocation2 + $0x8] sm:$0xff]  }
  0xbf   : > { %897 = vst.msk [vmem:[#allocation2 + $0x6c] sm:$0xf] %vm869_vm8, %v816_v23  ;;  %4295 = vmatmul.mubr.msk.bf16.vlgmr.msra.gmra.mxu0 %vm1412_vm10, %v4441_v24  ;;  %v4449_v60 = vld [vmem:[#allocation2 + $0x8] sm:$0xff]   ;;  %v4464_v23 = vld [vmem:[#allocation2 + $0x40] sm:$0xff]  }
  0xc0   : > { %4363 = vmatpush3.bf16.msra.mxu0 %v4934_v2  ;;  %v4465_v24 = vld [vmem:[#allocation2 + $0x48] sm:$0xff]  }
  0xc1   : > { %v1192_v27 = vpop.permute.xlu0 %1191  ;;  %4364 = vmatprep.subr.bf16.mxu0 %v4458_v22 }
  0xc2   : > { %v1194_v28 = vpop.permute.xlu1 %1193  ;;  %1276 = vst.msk [vmem:[#allocation2 + $0x60] sm:$0xf] %vm1251_vm9, %v1192_v27 }
  0xc3   : > { %1277 = vst.msk [vmem:[#allocation2 + $0x64] sm:$0xf] %vm1251_vm9, %v1194_v28 }
  0xc4   : > { %4365 = vmatpush3.bf16.msra.mxu0 %v4458_v22 }
  0xc5   : > { %v770_v29 = vpop.permute.xlu0 %769 }
  0xc6   : > { %v772_v30 = vpop.permute.xlu1 %771  ;;  %874 = vst.msk [vmem:[#allocation2 + $0x10] sm:$0xf] %vm869_vm8, %v770_v29  ;;  %v4468_v29 = vld [vmem:[#allocation2 + $0x50] sm:$0xff]  }
  0xc7   : > { %875 = vst.msk [vmem:[#allocation2 + $0x14] sm:$0xf] %vm869_vm8, %v772_v30  ;;  %v4469_v30 = vld [vmem:[#allocation2 + $0x58] sm:$0xff]  }
  0xc9   : > { %v1196_v31 = vpop.permute.xlu0 %1195 }
  0xca   : > { %v1198_v32 = vpop.permute.xlu1 %1197  ;;  %1278 = vst.msk [vmem:[#allocation2 + $0x68] sm:$0xf] %vm1251_vm9, %v1196_v31  ;;  %v4442_v2 = vld [vmem:[#allocation2 + $0x60] sm:$0xff]  }
  0xcb   : > { %1279 = vst.msk [vmem:[#allocation2 + $0x6c] sm:$0xf] %vm1251_vm9, %v1198_v32  ;;  %4318 = vmatprep.mubr.msk.bf16.mxu1 %vm1412_vm10, %v4442_v2  ;;  %v4472_v2 = vld [vmem:[#allocation2 + $0x60] sm:$0xff]  }
  0xcd   : > { %v774_v33 = vpop.permute.xlu0 %773 }
  0xce   : > { %v776_v34 = vpop.permute.xlu1 %775  ;;  %876 = vst.msk [vmem:[#allocation2 + $0x18] sm:$0xf] %vm869_vm8, %v774_v33 }
  0xcf   : > { %877 = vst.msk [vmem:[#allocation2 + $0x1c] sm:$0xf] %vm869_vm8, %v776_v34 }
  0xd1   : > { %v1152_v35 = vpop.permute.xlu0 %1151 }
  0xd2   : > { %v1154_v36 = vpop.permute.xlu1 %1153  ;;  %1256 = vst.msk [vmem:[#allocation2 + $0x10] sm:$0xf] %vm1251_vm9, %v1152_v35  ;;  %v4443_v37 = vld [vmem:[#allocation2 + $0x68] sm:$0xff]   ;;  %v4475_v35 = vld [vmem:[#allocation2 + $0x40] sm:$0xff]  }
  0xd3   : > { %1257 = vst.msk [vmem:[#allocation2 + $0x14] sm:$0xf] %vm1251_vm9, %v1154_v36  ;;  %4319 = vmatmul.mubr.msk.bf16.gmra.mxu1 %vm1412_vm10, %v4443_v37  ;;  %v4473_v33 = vld [vmem:[#allocation2 + $0x68] sm:$0xff]  }
  0xd5   : > { %v1156_v38 = vpop.permute.xlu0 %1155 }
  0xd6   : > { %v1158_v39 = vpop.permute.xlu1 %1157  ;;  %1258 = vst.msk [vmem:[#allocation2 + $0x18] sm:$0xf] %vm1251_vm9, %v1156_v38  ;;  %v4478_v38 = vld [vmem:[#allocation2 + $0x48] sm:$0xff]  }
  0xd7   : > { %1259 = vst.msk [vmem:[#allocation2 + $0x1c] sm:$0xf] %vm1251_vm9, %v1158_v39  ;;  %v4479_v39 = vld [vmem:[#allocation2 + $0x50] sm:$0xff]  }
  0xd9   : > { %v818_v41 = vpop.permute.xlu0 %817 }
  0xda   : > { %v820_v42 = vpop.permute.xlu1 %819  ;;  %898 = vst.msk [vmem:[#allocation2 + $0x70] sm:$0xf] %vm869_vm8, %v818_v41  ;;  %v4444_v43 = vld [vmem:[#allocation2 + $0x10] sm:$0xff]  }
  0xdb   : > { %899 = vst.msk [vmem:[#allocation2 + $0x74] sm:$0xf] %vm869_vm8, %v820_v42  ;;  %4298 = vmatprep.mubr.msk.bf16.mxu0 %vm1412_vm10, %v4444_v43  ;;  %v4453_v63 = vld [vmem:[#allocation2 + $0x10] sm:$0xff]   ;;  %v4481_v42 = vld [vmem:[#allocation2 + $0x58] sm:$0xff]   ;;  %v4482_v43 = vld [vmem:[#allocation2 + $0x60] sm:$0xff]  }
  0xdc   : > { %v4463_v20 = vld [vmem:[#allocation2 + $0x10] sm:$0xff]  }
  0xdd   : > { %v822_v44 = vpop.permute.xlu0 %821 }
  0xde   : > { %v824_v45 = vpop.permute.xlu1 %823  ;;  %900 = vst.msk [vmem:[#allocation2 + $0x78] sm:$0xf] %vm869_vm8, %v822_v44  ;;  %v4445_v46 = vld [vmem:[#allocation2 + $0x18] sm:$0xff]   ;;  %v4483_v44 = vld [vmem:[#allocation2 + $0x68] sm:$0xff]  }
  0xdf   : > { %901 = vst.msk [vmem:[#allocation2 + $0x7c] sm:$0xf] %vm869_vm8, %v824_v45  ;;  %4299 = vmatmul.mubr.msk.bf16.gmra.mxu0 %vm1412_vm10, %v4445_v46  ;;  %v4454_v4 = vld [vmem:[#allocation2 + $0x18] sm:$0xff]  }
  0xe0   : > { %v4466_v26 = vld [vmem:[#allocation2 + $0x18] sm:$0xff]  }
  0xe1   : > { %v1200_v47 = vpop.permute.xlu0 %1199 }
  0xe2   : > { %v1202_v49 = vpop.permute.xlu1 %1201  ;;  %1280 = vst.msk [vmem:[#allocation2 + $0x70] sm:$0xf] %vm1251_vm9, %v1200_v47 }
  0xe3   : > { %1281 = vst.msk [vmem:[#allocation2 + $0x74] sm:$0xf] %vm1251_vm9, %v1202_v49 }
  0xe5   : > { %v778_v50 = vpop.permute.xlu0 %777 }
  0xe6   : > { %v780_v51 = vpop.permute.xlu1 %779  ;;  %878 = vst.msk [vmem:[#allocation2 + $0x20] sm:$0xf] %vm869_vm8, %v778_v50 }
  0xe7   : > { %879 = vst.msk [vmem:[#allocation2 + $0x24] sm:$0xf] %vm869_vm8, %v780_v51 }
  0xe9   : > { %v1204_v52 = vpop.permute.xlu0 %1203 }
  0xea   : > { %v1206_v54 = vpop.permute.xlu1 %1205  ;;  %1282 = vst.msk [vmem:[#allocation2 + $0x78] sm:$0xf] %vm1251_vm9, %v1204_v52  ;;  %v4446_v55 = vld [vmem:[#allocation2 + $0x70] sm:$0xff]  }
  0xeb   : > { %1283 = vst.msk [vmem:[#allocation2 + $0x7c] sm:$0xf] %vm1251_vm9, %v1206_v54  ;;  %4322 = vmatprep.mubr.msk.bf16.mxu1 %vm1412_vm10, %v4446_v55  ;;  %v4476_v36 = vld [vmem:[#allocation2 + $0x70] sm:$0xff]  }
  0xec   : > { %v4484_v45 = vld [vmem:[#allocation2 + $0x70] sm:$0xff]  }
  0xed   : > { %v782_v56 = vpop.permute.xlu0 %781 }
  0xee   : > { %v784_v57 = vpop.permute.xlu1 %783  ;;  %880 = vst.msk [vmem:[#allocation2 + $0x28] sm:$0xf] %vm869_vm8, %v782_v56 }
  0xef   : > { %881 = vst.msk [vmem:[#allocation2 + $0x2c] sm:$0xf] %vm869_vm8, %v784_v57 }
  0xf1   : > { %v1160_v58 = vpop.permute.xlu0 %1159 }
  0xf2   : > { %v1162_v59 = vpop.permute.xlu1 %1161  ;;  %1260 = vst.msk [vmem:[#allocation2 + $0x20] sm:$0xf] %vm1251_vm9, %v1160_v58  ;;  %v4448_v53 = vld [vmem:[#allocation2 + $0x78] sm:$0xff]  }
  0xf3   : > { %1261 = vst.msk [vmem:[#allocation2 + $0x24] sm:$0xf] %vm1251_vm9, %v1162_v59  ;;  %4323 = vmatmul.mubr.msk.bf16.gmra.mxu1 %vm1412_vm10, %v4448_v53  ;;  %v4477_v37 = vld [vmem:[#allocation2 + $0x78] sm:$0xff]  }
  0xf4   : > { %4330 = vmatprep.mubr.msk.bf16.mxu1 %vm1412_vm10, %v4449_v60  ;;  %v4485_v46 = vld [vmem:[#allocation2 + $0x78] sm:$0xff]  }
  0xf5   : > { %v1164_v61 = vpop.permute.xlu0 %1163 }
  0xf6   : > { %v1166_v62 = vpop.permute.xlu1 %1165  ;;  %1262 = vst.msk [vmem:[#allocation2 + $0x28] sm:$0xf] %vm1251_vm9, %v1164_v61 }
  0xf7   : > { %1263 = vst.msk [vmem:[#allocation2 + $0x2c] sm:$0xf] %vm1251_vm9, %v1166_v62 }
  0xf9   : > { %v786_v40 = vpop.permute.xlu0 %785 }
  0xfa   : > { %v788_v1 = vpop.permute.xlu1 %787  ;;  %882 = vst.msk [vmem:[#allocation2 + $0x30] sm:$0xf] %vm869_vm8, %v786_v40  ;;  %v4452_v3 = vld [vmem:[#allocation2 + $0x20] sm:$0xff]  }
  0xfb   : > { %883 = vst.msk [vmem:[#allocation2 + $0x34] sm:$0xf] %vm869_vm8, %v788_v1  ;;  %4302 = vmatprep.mubr.msk.bf16.mxu0 %vm1412_vm10, %v4452_v3  ;;  %4331 = vmatmul.mubr.msk.bf16.vlgmr.msra.gmra.mxu1 %vm1412_vm10, %v4453_v63  ;;  %v4456_v0 = vld [vmem:[#allocation2 + $0x20] sm:$0xff]  }
  0xfc   : > { %4334 = vmatprep.mubr.msk.bf16.mxu1 %vm1412_vm10, %v4454_v4  ;;  %v4467_v28 = vld [vmem:[#allocation2 + $0x20] sm:$0xff]  }
  0xfd   : > { %v790_v5 = vpop.permute.xlu0 %789 }
  0xfe   : > { %v792_v48 = vpop.permute.xlu1 %791  ;;  %884 = vst.msk [vmem:[#allocation2 + $0x38] sm:$0xf] %vm869_vm8, %v790_v5  ;;  %v4455_v6 = vld [vmem:[#allocation2 + $0x28] sm:$0xff]  }
  0xff   : > { %885 = vst.msk [vmem:[#allocation2 + $0x3c] sm:$0xf] %vm869_vm8, %v792_v48  ;;  %4303 = vmatmul.mubr.msk.bf16.gmra.mxu0 %vm1412_vm10, %v4455_v6  ;;  %v4457_v9 = vld [vmem:[#allocation2 + $0x28] sm:$0xff]  }
 0x100   : > { %v4470_v31 = vld [vmem:[#allocation2 + $0x28] sm:$0xff]  }
 0x101   : > { %v1168_v7 = vpop.permute.xlu0 %1167 }
 0x102   : > { %v1170_v8 = vpop.permute.xlu1 %1169  ;;  %1264 = vst.msk [vmem:[#allocation2 + $0x30] sm:$0xf] %vm1251_vm9, %v1168_v7 }
 0x103   : > { %1265 = vst.msk [vmem:[#allocation2 + $0x34] sm:$0xf] %vm1251_vm9, %v1170_v8  ;;  %4335 = vmatmul.mubr.msk.bf16.gmra.mxu1 %vm1412_vm10, %v4456_v0 }
 0x104   : > { %4338 = vmatprep.mubr.msk.bf16.mxu1 %vm1412_vm10, %v4457_v9 }
 0x105   : > { %v1172_v10 = vpop.permute.xlu0 %1171 }
 0x106   : > { %v1174_v11 = vpop.permute.xlu1 %1173  ;;  %1266 = vst.msk [vmem:[#allocation2 + $0x38] sm:$0xf] %vm1251_vm9, %v1172_v10 }
 0x107   : > { %1267 = vst.msk [vmem:[#allocation2 + $0x3c] sm:$0xf] %vm1251_vm9, %v1174_v11 }
 0x109   : > { %v826_v12 = vpop.permute.xlu0 %825 }
 0x10a   : > { %v4459_v13 = vld [vmem:[#allocation2 + $0x30] sm:$0xff]   ;;  %v828_v14 = vpop.permute.xlu1 %827  ;;  %902 = vst.msk [vmem:[#allocation2 + $0x80] sm:$0xf] %vm869_vm8, %v826_v12 }
 0x10b   : > { %v4460_v15 = vld [vmem:[#allocation2 + $0x30] sm:$0xff]   ;;  %903 = vst.msk [vmem:[#allocation2 + $0x84] sm:$0xf] %vm869_vm8, %v828_v14  ;;  %4306 = vmatprep.mubr.msk.bf16.mxu0 %vm1412_vm10, %v4459_v13 }
 0x10c   : > { %4339 = vmatmul.mubr.msk.bf16.gmra.mxu1 %vm1412_vm10, %v4460_v15  ;;  %v4471_v32 = vld [vmem:[#allocation2 + $0x30] sm:$0xff]  }
 0x10d   : > { %v1208_v16 = vpop.permute.xlu0 %1207 }
 0x10e   : > { %v4461_v17 = vld [vmem:[#allocation2 + $0x38] sm:$0xff]   ;;  %v1210_v18 = vpop.permute.xlu1 %1209  ;;  %1284 = vst.msk [vmem:[#allocation2 + $0x80] sm:$0xf] %vm1251_vm9, %v1208_v16 }
 0x10f   : > { %v4462_v19 = vld [vmem:[#allocation2 + $0x38] sm:$0xff]   ;;  %1285 = vst.msk [vmem:[#allocation2 + $0x84] sm:$0xf] %vm1251_vm9, %v1210_v18  ;;  %4307 = vmatmul.mubr.msk.bf16.gmra.mxu0 %vm1412_vm10, %v4461_v17 }
 0x110   : > { %4342 = vmatprep.mubr.msk.bf16.mxu1 %vm1412_vm10, %v4462_v19  ;;  %4366 = vmatprep.mubr.msk.bf16.mxu0 %vm1412_vm10, %v4463_v20  ;;  %v4474_v34 = vld [vmem:[#allocation2 + $0x38] sm:$0xff]  }
 0x111   : > { %v830_v21 = vpop.permute.xlu0 %829 }
 0x112   : > { %v832_v22 = vpop.permute.xlu1 %831  ;;  %904 = vst.msk [vmem:[#allocation2 + $0x88] sm:$0xf] %vm869_vm8, %v830_v21 }
 0x113   : > { %905 = vst.msk [vmem:[#allocation2 + $0x8c] sm:$0xf] %vm869_vm8, %v832_v22 }
 0x114   : > { %4343 = vmatmul.mubr.msk.bf16.gmra.mxu1 %vm1412_vm10, %v4464_v23 }
 0x115   : > { %v1212_v25 = vpop.permute.xlu0 %1211  ;;  %4346 = vmatprep.mubr.msk.bf16.mxu1 %vm1412_vm10, %v4465_v24 }
 0x116   : > { %v1214_v27 = vpop.permute.xlu1 %1213  ;;  %1286 = vst.msk [vmem:[#allocation2 + $0x88] sm:$0xf] %vm1251_vm9, %v1212_v25  ;;  %v4480_v41 = vld [vmem:[#allocation2 + $0x80] sm:$0xff]  }
 0x117   : > { %1287 = vst.msk [vmem:[#allocation2 + $0x8c] sm:$0xf] %vm1251_vm9, %v1214_v27  ;;  %4367 = vmatmul.mubr.msk.bf16.vlgmr.msra.gmra.mxu0 %vm1412_vm10, %v4466_v26  ;;  %v4486_v47 = vld [vmem:[#allocation2 + $0x80] sm:$0xff]  }
 0x118   : > { %4370 = vmatprep.mubr.msk.bf16.mxu0 %vm1412_vm10, %v4467_v28 }
 0x11c   : > { %4347 = vmatmul.mubr.msk.bf16.gmra.mxu1 %vm1412_vm10, %v4468_v29 }
 0x11d   : > { %4350 = vmatprep.mubr.msk.bf16.mxu1 %vm1412_vm10, %v4469_v30 }
 0x11e   : > { %v4487_v49 = vld [vmem:[#allocation2 + $0x88] sm:$0xff]  }
 0x11f   : > { %4371 = vmatmul.mubr.msk.bf16.gmra.mxu0 %vm1412_vm10, %v4470_v31 }
 0x120   : > { %4374 = vmatprep.mubr.msk.bf16.mxu0 %vm1412_vm10, %v4471_v32 }
 0x124   : > { %4351 = vmatmul.mubr.msk.bf16.gmra.mxu1 %vm1412_vm10, %v4472_v2 }
 0x125   : > { %4354 = vmatprep.mubr.msk.bf16.mxu1 %vm1412_vm10, %v4473_v33 }
 0x127   : > { %4375 = vmatmul.mubr.msk.bf16.gmra.mxu0 %vm1412_vm10, %v4474_v34 }
 0x128   : > { %4378 = vmatprep.mubr.msk.bf16.mxu0 %vm1412_vm10, %v4475_v35 }
 0x12c   : > { %4355 = vmatmul.mubr.msk.bf16.gmra.mxu1 %vm1412_vm10, %v4476_v36 }
 0x12d   : > { %4358 = vmatprep.mubr.msk.bf16.mxu1 %vm1412_vm10, %v4477_v37 }
 0x12f   : > { %4379 = vmatmul.mubr.msk.bf16.gmra.mxu0 %vm1412_vm10, %v4478_v38 }
 0x130   : > { %4382 = vmatprep.mubr.msk.bf16.mxu0 %vm1412_vm10, %v4479_v39 }
 0x134   : > { %4359 = vmatmul.mubr.msk.bf16.gmra.mxu1 %vm1412_vm10, %v4480_v41 }
 0x137   : > { %4383 = vmatmul.mubr.msk.bf16.gmra.mxu0 %vm1412_vm10, %v4481_v42 }
 0x138   : > { %4386 = vmatprep.mubr.msk.bf16.mxu0 %vm1412_vm10, %v4482_v43 }
 0x13f   : > { %4387 = vmatmul.mubr.msk.bf16.gmra.mxu0 %vm1412_vm10, %v4483_v44 }
 0x140   : > { %4390 = vmatprep.mubr.msk.bf16.mxu0 %vm1412_vm10, %v4484_v45 }
 0x147   : > { %4391 = vmatmul.mubr.msk.bf16.gmra.mxu0 %vm1412_vm10, %v4485_v46 }
 0x148   : > { %4394 = vmatprep.mubr.msk.bf16.mxu0 %vm1412_vm10, %v4486_v47 }
 0x14f   : > { %4395 = vmatmul.mubr.msk.bf16.gmra.mxu0 %vm1412_vm10, %v4487_v49 }
 0x160   : > { %v4312_v50 = vpop.f32.mrf.mxu1 }
 0x161   : > { %1645 = vst.msk [vmem:[#allocation3 + $0x90] sm:$0xff] %vm1626_vm11, %v4312_v50 }
 0x162   : > { %v1563_v51 = vpop.f32.mrf.mxu1 }
 0x163   : > { %1643 = vst.msk [vmem:[#allocation3 + $0x80] sm:$0xff] %vm1626_vm11, %v1563_v51 }
 0x164   : > { %v4313_v52 = vpop.f32.mrf.mxu1 }
 0x165   : > { %1646 = vst.msk [vmem:[#allocation3 + $0x98] sm:$0xff] %vm1626_vm11, %v4313_v52 }
 0x166   : > { %v1566_v54 = vpop.f32.mrf.mxu1 }
 0x167   : > { %1644 = vst.msk [vmem:[#allocation3 + $0x88] sm:$0xff] %vm1626_vm11, %v1566_v54 }
 0x173   : > { %v4316_v55 = vpop.f32.mrf.mxu1 }
 0x174   : > { %1649 = vst.msk [vmem:[#allocation3 + $0xb0] sm:$0xff] %vm1626_vm11, %v4316_v55 }
 0x175   : > { %v1579_v56 = vpop.f32.mrf.mxu1 }
 0x176   : > { %1647 = vst.msk [vmem:[#allocation3 + $0xa0] sm:$0xff] %vm1626_vm11, %v1579_v56 }
 0x177   : > { %v4317_v57 = vpop.f32.mrf.mxu1 }
 0x178   : > { %1650 = vst.msk [vmem:[#allocation3 + $0xb8] sm:$0xff] %vm1626_vm11, %v4317_v57 }
 0x179   : > { %v1582_v58 = vpop.f32.mrf.mxu1 }
 0x17a   : > { %1648 = vst.msk [vmem:[#allocation3 + $0xa8] sm:$0xff] %vm1626_vm11, %v1582_v58 }
 0x17f   : > { %v4296_v59 = vpop.f32.mrf.mxu0 }
 0x180   : > { %1629 = vst.msk [vmem:[#allocation3 + $0x10] sm:$0xff] %vm1626_vm11, %v4296_v59 }
 0x181   : > { %v1499_v53 = vpop.f32.mrf.mxu0 }
 0x182   : > { %1627 = vst.msk [vmem:[#allocation3] sm:$0xff] %vm1626_vm11, %v1499_v53 }
 0x183   : > { %v4297_v60 = vpop.f32.mrf.mxu0 }
 0x184   : > { %1630 = vst.msk [vmem:[#allocation3 + $0x18] sm:$0xff] %vm1626_vm11, %v4297_v60 }
 0x185   : > { %v1502_v61 = vpop.f32.mrf.mxu0 }
 0x186   : > { %1628 = vst.msk [vmem:[#allocation3 + $0x8] sm:$0xff] %vm1626_vm11, %v1502_v61 }
 0x187   : > { %v1999_v10 = vld [vmem:[#allocation3 + $0x10] sm:$0xff] }
 0x189   : > { %v1997_v13 = vld [vmem:[#allocation3] sm:$0xff] }
 0x18b   : > { %v2000_v17 = vld [vmem:[#allocation3 + $0x18] sm:$0xff] }
 0x18d   : > { %v1998_v21 = vld [vmem:[#allocation3 + $0x8] sm:$0xff] }
 0x193   : > { %v4320_v62 = vpop.f32.mrf.mxu1 }
 0x194   : > { %1653 = vst.msk [vmem:[#allocation3 + $0xd0] sm:$0xff] %vm1626_vm11, %v4320_v62 }
 0x195   : > { %v1595_v63 = vpop.f32.mrf.mxu1 }
 0x196   : > { %1651 = vst.msk [vmem:[#allocation3 + $0xc0] sm:$0xff] %vm1626_vm11, %v1595_v63 }
 0x197   : > { %v4321_v40 = vpop.f32.mrf.mxu1 }
 0x198   : > { %1654 = vst.msk [vmem:[#allocation3 + $0xd8] sm:$0xff] %vm1626_vm11, %v4321_v40 }
 0x199   : > { %v1598_v1 = vpop.f32.mrf.mxu1 }
 0x19a   : > { %1652 = vst.msk [vmem:[#allocation3 + $0xc8] sm:$0xff] %vm1626_vm11, %v1598_v1 }
 0x19f   : > { %v4300_v3 = vpop.f32.mrf.mxu0 }
 0x1a0   : > { %1633 = vst.msk [vmem:[#allocation3 + $0x30] sm:$0xff] %vm1626_vm11, %v4300_v3 }
 0x1a1   : > { %v1515_v4 = vpop.f32.mrf.mxu0 }
 0x1a2   : > { %1631 = vst.msk [vmem:[#allocation3 + $0x20] sm:$0xff] %vm1626_vm11, %v1515_v4 }
 0x1a3   : > { %v4301_v5 = vpop.f32.mrf.mxu0 }
 0x1a4   : > { %1634 = vst.msk [vmem:[#allocation3 + $0x38] sm:$0xff] %vm1626_vm11, %v4301_v5 }
 0x1a5   : > { %v1518_v48 = vpop.f32.mrf.mxu0 }
 0x1a6   : > { %1632 = vst.msk [vmem:[#allocation3 + $0x28] sm:$0xff] %vm1626_vm11, %v1518_v48 }
 0x1a7   : > { %v2003_v25 = vld [vmem:[#allocation3 + $0x30] sm:$0xff] }
 0x1a9   : > { %v2001_v29 = vld [vmem:[#allocation3 + $0x20] sm:$0xff] }
 0x1ab   : > { %v2004_v32 = vld [vmem:[#allocation3 + $0x38] sm:$0xff] }
 0x1ad   : > { %v2002_v34 = vld [vmem:[#allocation3 + $0x28] sm:$0xff] }
 0x1b3   : > { %v4324_v6 = vpop.f32.mrf.mxu1 }
 0x1b4   : > { %1657 = vst.msk [vmem:[#allocation3 + $0xf0] sm:$0xff] %vm1626_vm11, %v4324_v6 }
 0x1b5   : > { %v1611_v7 = vpop.f32.mrf.mxu1 }
 0x1b6   : > { %1655 = vst.msk [vmem:[#allocation3 + $0xe0] sm:$0xff] %vm1626_vm11, %v1611_v7 }
 0x1b7   : > { %v4325_v8 = vpop.f32.mrf.mxu1 }
 0x1b8   : > { %1658 = vst.msk [vmem:[#allocation3 + $0xf8] sm:$0xff] %vm1626_vm11, %v4325_v8 }
 0x1b9   : > { %v1614_v0 = vpop.f32.mrf.mxu1 }
 0x1ba   : > { %1656 = vst.msk [vmem:[#allocation3 + $0xe8] sm:$0xff] %vm1626_vm11, %v1614_v0  ;;  %v2015_v0 = vld [vmem:[#allocation3 + $0x90] sm:$0xff] }
 0x1bb   : > { %v4332_v9 = vpop.f32.mrf.mxu1 }
 0x1bc   : > { %v2031_v11 = vadd.f32 %v4332_v9, %v1999_v10 }
 0x1bd   : > { %v1870_v12 = vpop.f32.mrf.mxu1 }
 0x1be   : > { %2063 = vst.msk [vmem:[#allocation3 + $0x10] sm:$0xff] %vm1626_vm11, %v2031_v11  ;;  %v2029_v14 = vadd.f32 %v1997_v13, %v1870_v12 }
 0x1bf   : > { %v4304_v15 = vpop.f32.mrf.mxu0  ;;  %v4333_v16 = vpop.f32.mrf.mxu1 }
 0x1c0   : > { %2061 = vst.msk [vmem:[#allocation3] sm:$0xff] %vm1626_vm11, %v2029_v14  ;;  %1637 = vst.msk [vmem:[#allocation3 + $0x50] sm:$0xff] %vm1626_vm11, %v4304_v15  ;;  %v2032_v18 = vadd.f32 %v4333_v16, %v2000_v17  ;;  %v2013_v16 = vld [vmem:[#allocation3 + $0x80] sm:$0xff] }
 0x1c1   : > { %v1531_v19 = vpop.f32.mrf.mxu0  ;;  %v1873_v20 = vpop.f32.mrf.mxu1 }
 0x1c2   : > { %2064 = vst.msk [vmem:[#allocation3 + $0x18] sm:$0xff] %vm1626_vm11, %v2032_v18  ;;  %1635 = vst.msk [vmem:[#allocation3 + $0x40] sm:$0xff] %vm1626_vm11, %v1531_v19  ;;  %v2030_v22 = vadd.f32 %v1998_v21, %v1873_v20  ;;  %v5215_v18 = vld [vmem:[%s5628_s2] ss:$0 sm:$0xff]  ;;  %v4515_v19 = vmov 1983009808   ;;  %v2698_v21 = vlaneseq }
 0x1c3   : > { %v4305_v23 = vpop.f32.mrf.mxu0  ;;  %v4336_v24 = vpop.f32.mrf.mxu1  ;;  %v2696_v20 = vunpack.c.l.s4 %v4515_v19 }
 0x1c4   : > { %2062 = vst.msk [vmem:[#allocation3 + $0x8] sm:$0xff] %vm1626_vm11, %v2030_v22  ;;  %1638 = vst.msk [vmem:[#allocation3 + $0x58] sm:$0xff] %vm1626_vm11, %v4305_v23  ;;  %v2035_v26 = vadd.f32 %v4336_v24, %v2003_v25 }
 0x1c5   : > { %v1534_v27 = vpop.f32.mrf.mxu0  ;;  %v1886_v28 = vpop.f32.mrf.mxu1  ;;  %v2433_v59 = vld [vmem:[#allocation3 + $0x10] sm:$0xff] }
 0x1c6   : > { %2067 = vst.msk [vmem:[#allocation3 + $0x30] sm:$0xff] %vm1626_vm11, %v2035_v26  ;;  %1636 = vst.msk [vmem:[#allocation3 + $0x48] sm:$0xff] %vm1626_vm11, %v1534_v27  ;;  %v2033_v30 = vadd.f32 %v2001_v29, %v1886_v28  ;;  %v2016_v26 = vld [vmem:[#allocation3 + $0x98] sm:$0xff] }
 0x1c7   : > { %v4337_v31 = vpop.f32.mrf.mxu1  ;;  %v2007_v37 = vld [vmem:[#allocation3 + $0x50] sm:$0xff]  ;;  %v2431_v40 = vld [vmem:[#allocation3] sm:$0xff] }
 0x1c8   : > { %2065 = vst.msk [vmem:[#allocation3 + $0x20] sm:$0xff] %vm1626_vm11, %v2033_v30  ;;  %v2036_v2 = vadd.f32 %v4337_v31, %v2004_v32 }
 0x1c9   : > { %v1889_v33 = vpop.f32.mrf.mxu1  ;;  %v2005_v41 = vld [vmem:[#allocation3 + $0x40] sm:$0xff]  ;;  %v2434_v6 = vld [vmem:[#allocation3 + $0x18] sm:$0xff] }
 0x1ca   : > { %2068 = vst.msk [vmem:[#allocation3 + $0x38] sm:$0xff] %vm1626_vm11, %v2036_v2  ;;  %v2034_v35 = vadd.f32 %v2002_v34, %v1889_v33  ;;  %v2014_v33 = vld [vmem:[#allocation3 + $0x88] sm:$0xff] }
 0x1cb   : > { %v2008_v45 = vld [vmem:[#allocation3 + $0x58] sm:$0xff]  ;;  %v2432_v13 = vld [vmem:[#allocation3 + $0x8] sm:$0xff] }
 0x1cc   : > { %2066 = vst.msk [vmem:[#allocation3 + $0x28] sm:$0xff] %vm1626_vm11, %v2034_v35  ;;  %v4340_v36 = vpop.f32.mrf.mxu1 }
 0x1cd   : > { %v2039_v38 = vadd.f32 %v4340_v36, %v2007_v37  ;;  %v2006_v50 = vld [vmem:[#allocation3 + $0x48] sm:$0xff]  ;;  %v2437_v24 = vld [vmem:[#allocation3 + $0x30] sm:$0xff]  ;;  %v2697_v36 = vunpack.c.0.s8 %v2696_v20  ;;  %v2699_v37 = vshrl.u32 %v2698_v21, 7 }
 0x1ce   : > { %v1902_v39 = vpop.f32.mrf.mxu1 }
 0x1cf   : > { %2071 = vst.msk [vmem:[#allocation3 + $0x50] sm:$0xff] %vm1626_vm11, %v2039_v38  ;;  %v2037_v42 = vadd.f32 %v2005_v41, %v1902_v39  ;;  %v4308_v43 = vpop.f32.mrf.mxu0  ;;  %v2435_v31 = vld [vmem:[#allocation3 + $0x20] sm:$0xff] }
 0x1d0   : > { %1641 = vst.msk [vmem:[#allocation3 + $0x70] sm:$0xff] %vm1626_vm11, %v4308_v43  ;;  %v4341_v44 = vpop.f32.mrf.mxu1 }
 0x1d1   : > { %2069 = vst.msk [vmem:[#allocation3 + $0x40] sm:$0xff] %vm1626_vm11, %v2037_v42  ;;  %v2040_v46 = vadd.f32 %v4341_v44, %v2008_v45  ;;  %v1547_v47 = vpop.f32.mrf.mxu0  ;;  %v2438_v41 = vld [vmem:[#allocation3 + $0x38] sm:$0xff]  ;;  %v2019_v45 = vld [vmem:[#allocation3 + $0xb0] sm:$0xff] }
 0x1d2   : > { %1639 = vst.msk [vmem:[#allocation3 + $0x60] sm:$0xff] %vm1626_vm11, %v1547_v47  ;;  %v1905_v49 = vpop.f32.mrf.mxu1 }
 0x1d3   : > { %2072 = vst.msk [vmem:[#allocation3 + $0x58] sm:$0xff] %vm1626_vm11, %v2040_v46  ;;  %v2038_v51 = vadd.f32 %v2006_v50, %v1905_v49  ;;  %v4309_v52 = vpop.f32.mrf.mxu0 }
 0x1d4   : > { %1642 = vst.msk [vmem:[#allocation3 + $0x78] sm:$0xff] %vm1626_vm11, %v4309_v52  ;;  %v4344_v54 = vpop.f32.mrf.mxu1 }
 0x1d5   : > { %2070 = vst.msk [vmem:[#allocation3 + $0x48] sm:$0xff] %vm1626_vm11, %v2038_v51  ;;  %v1550_v55 = vpop.f32.mrf.mxu0  ;;  %v2436_v51 = vld [vmem:[#allocation3 + $0x28] sm:$0xff] }
 0x1d6   : > { %1640 = vst.msk [vmem:[#allocation3 + $0x68] sm:$0xff] %vm1626_vm11, %v1550_v55  ;;  %v1918_v56 = vpop.f32.mrf.mxu1 }
 0x1d7   : > { %v2011_v57 = vld [vmem:[#allocation3 + $0x70] sm:$0xff]  ;;  %v4368_v58 = vpop.f32.mrf.mxu0 }
 0x1d8   : > { %v2043_v53 = vadd.f32 %v4344_v54, %v2011_v57  ;;  %v4345_v60 = vpop.f32.mrf.mxu1  ;;  %v2465_v61 = vadd.f32 %v4368_v58, %v2433_v59  ;;  %v5230_v59 = vsub.s32 %v2697_v36, %v2699_v37 }
 0x1d9   : > { %v2009_v62 = vld [vmem:[#allocation3 + $0x60] sm:$0xff]  ;;  %v2304_v63 = vpop.f32.mrf.mxu0 }
 0x1da   : > { %2075 = vst.msk [vmem:[#allocation3 + $0x70] sm:$0xff] %vm1626_vm11, %v2043_v53  ;;  %v2041_v1 = vadd.f32 %v2009_v62, %v1918_v56  ;;  %2497 = vst.msk [vmem:[#allocation3 + $0x10] sm:$0xff] %vm1626_vm11, %v2465_v61  ;;  %v1921_v3 = vpop.f32.mrf.mxu1  ;;  %v2463_v4 = vadd.f32 %v2431_v40, %v2304_v63  ;;  %v2017_v56 = vld [vmem:[#allocation3 + $0xa0] sm:$0xff]  ;;  %v2441_v62 = vld [vmem:[#allocation3 + $0x50] sm:$0xff] }
 0x1db   : > { %v2012_v5 = vld [vmem:[#allocation3 + $0x78] sm:$0xff]  ;;  %v4369_v48 = vpop.f32.mrf.mxu0 }
 0x1dc   : > { %2073 = vst.msk [vmem:[#allocation3 + $0x60] sm:$0xff] %vm1626_vm11, %v2041_v1  ;;  %v2044_v7 = vadd.f32 %v4345_v60, %v2012_v5  ;;  %2495 = vst.msk [vmem:[#allocation3] sm:$0xff] %vm1626_vm11, %v2463_v4  ;;  %v4348_v8 = vpop.f32.mrf.mxu1  ;;  %v2466_v9 = vadd.f32 %v4369_v48, %v2434_v6  ;;  %v2020_v4 = vld [vmem:[#allocation3 + $0xb8] sm:$0xff] }
 0x1dd   : > { %v2010_v10 = vld [vmem:[#allocation3 + $0x68] sm:$0xff]  ;;  %v2047_v11 = vadd.f32 %v4348_v8, %v2015_v0  ;;  %v2307_v12 = vpop.f32.mrf.mxu0  ;;  %v2439_v0 = vld [vmem:[#allocation3 + $0x40] sm:$0xff]  ;;  %v2442_v21 = vld [vmem:[#allocation3 + $0x58] sm:$0xff] }
 0x1de   : > { %2076 = vst.msk [vmem:[#allocation3 + $0x78] sm:$0xff] %vm1626_vm11, %v2044_v7  ;;  %v2042_v14 = vadd.f32 %v2010_v10, %v1921_v3  ;;  %2498 = vst.msk [vmem:[#allocation3 + $0x18] sm:$0xff] %vm1626_vm11, %v2466_v9  ;;  %v1934_v15 = vpop.f32.mrf.mxu1  ;;  %v2464_v17 = vadd.f32 %v2432_v13, %v2307_v12  ;;  %v2018_v12 = vld [vmem:[#allocation3 + $0xa8] sm:$0xff] }
 0x1df   : > { %2079 = vst.msk [vmem:[#allocation3 + $0x90] sm:$0xff] %vm1626_vm11, %v2047_v11  ;;  %v2045_v22 = vadd.f32 %v2013_v16, %v1934_v15  ;;  %v4372_v23 = vpop.f32.mrf.mxu0 }
 0x1e0   : > { %2074 = vst.msk [vmem:[#allocation3 + $0x68] sm:$0xff] %vm1626_vm11, %v2042_v14  ;;  %2496 = vst.msk [vmem:[#allocation3 + $0x8] sm:$0xff] %vm1626_vm11, %v2464_v17  ;;  %v4349_v25 = vpop.f32.mrf.mxu1  ;;  %v2469_v27 = vadd.f32 %v4372_v23, %v2437_v24 }
 0x1e1   : > { %v2529_v28 = vld [vmem:[#allocation3 + $0x10] sm:$0xff]  ;;  %2077 = vst.msk [vmem:[#allocation3 + $0x80] sm:$0xff] %vm1626_vm11, %v2045_v22  ;;  %v2048_v29 = vadd.f32 %v4349_v25, %v2016_v26  ;;  %v2320_v30 = vpop.f32.mrf.mxu0 }
 0x1e2   : > { %v2568_v32 = vadd.f32 %v5215_v18, %v2529_v28  ;;  %2501 = vst.msk [vmem:[#allocation3 + $0x30] sm:$0xff] %vm1626_vm11, %v2469_v27  ;;  %v1937_v2 = vpop.f32.mrf.mxu1  ;;  %v2467_v34 = vadd.f32 %v2435_v31, %v2320_v30 }
 0x1e3   : > { %v2527_v35 = vld [vmem:[#allocation3] sm:$0xff]  ;;  %2080 = vst.msk [vmem:[#allocation3 + $0x98] sm:$0xff] %vm1626_vm11, %v2048_v29  ;;  %v2046_v38 = vadd.f32 %v2014_v33, %v1937_v2  ;;  %v4373_v39 = vpop.f32.mrf.mxu0 }
 0x1e4   : > { %v2600_v42 = vmax.f32 %v2568_v32, 0.0  ;;  %v2566_v43 = vadd.f32 %v5215_v18, %v2527_v35  ;;  %2499 = vst.msk [vmem:[#allocation3 + $0x20] sm:$0xff] %vm1626_vm11, %v2467_v34  ;;  %v4352_v44 = vpop.f32.mrf.mxu1  ;;  %v2470_v46 = vadd.f32 %v4373_v39, %v2438_v41 }
 0x1e5   : > { %v2530_v47 = vld [vmem:[#allocation3 + $0x18] sm:$0xff]  ;;  %2078 = vst.msk [vmem:[#allocation3 + $0x88] sm:$0xff] %vm1626_vm11, %v2046_v38  ;;  %v2051_v49 = vadd.f32 %v4352_v44, %v2019_v45  ;;  %v2323_v50 = vpop.f32.mrf.mxu0 }
 0x1e6   : > { %v2598_v52 = vmax.f32 %v2566_v43, 0.0  ;;  %v2569_v54 = vadd.f32 %v5215_v18, %v2530_v47  ;;  %2502 = vst.msk [vmem:[#allocation3 + $0x38] sm:$0xff] %vm1626_vm11, %v2470_v46  ;;  %v1950_v55 = vpop.f32.mrf.mxu1  ;;  %v2468_v57 = vadd.f32 %v2436_v51, %v2323_v50  ;;  %v2631_v58 = vsel %vm1626_vm11, %v2600_v42, -inf }
 0x1e7   : > { %v2528_v53 = vld [vmem:[#allocation3 + $0x8] sm:$0xff]  ;;  %2083 = vst.msk [vmem:[#allocation3 + $0xb0] sm:$0xff] %vm1626_vm11, %v2051_v49  ;;  %v2049_v60 = vadd.f32 %v2017_v56, %v1950_v55  ;;  %v4376_v61 = vpop.f32.mrf.mxu0 }
 0x1e8   : > { %v2630_v63 = vsel %vm1626_vm11, %v2598_v52, -inf  ;;  %v2601_v40 = vmax.f32 %v2569_v54, 0.0  ;;  %v2567_v1 = vadd.f32 %v5215_v18, %v2528_v53  ;;  %2500 = vst.msk [vmem:[#allocation3 + $0x28] sm:$0xff] %vm1626_vm11, %v2468_v57  ;;  %v4353_v3 = vpop.f32.mrf.mxu1  ;;  %v2473_v5 = vadd.f32 %v4376_v61, %v2441_v62 }
 0x1e9   : > { %v2632_v48 = vmax.f32 %v2630_v63, %v2631_v58  ;;  %v2533_v6 = vld [vmem:[#allocation3 + $0x30] sm:$0xff]  ;;  %2081 = vst.msk [vmem:[#allocation3 + $0xa0] sm:$0xff] %vm1626_vm11, %v2049_v60  ;;  %v2052_v7 = vadd.f32 %v4353_v3, %v2020_v4  ;;  %v2336_v8 = vpop.f32.mrf.mxu0 }
 0x1ea   : > { %v2599_v9 = vmax.f32 %v2567_v1, 0.0  ;;  %v2572_v10 = vadd.f32 %v5215_v18, %v2533_v6  ;;  %2505 = vst.msk [vmem:[#allocation3 + $0x50] sm:$0xff] %vm1626_vm11, %v2473_v5  ;;  %v1953_v11 = vpop.f32.mrf.mxu1  ;;  %v2471_v13 = vadd.f32 %v2439_v0, %v2336_v8  ;;  %v2634_v16 = vsel %vm1626_vm11, %v2601_v40, -inf }
 0x1eb   : > { %v2694_v14 = vcombine.high %v2632_v48, %v2632_v48  ;;  %v2701_v15 = vrot.slane %v2632_v48, %v5230_v59  ;;  %v2531_v17 = vld [vmem:[#allocation3 + $0x20] sm:$0xff]  ;;  %2084 = vst.msk [vmem:[#allocation3 + $0xb8] sm:$0xff] %vm1626_vm11, %v2052_v7  ;;  %v2050_v19 = vadd.f32 %v2018_v12, %v1953_v11  ;;  %v4377_v20 = vpop.f32.mrf.mxu0 }
 0x1ec   : > { %v2633_v22 = vsel %vm1626_vm11, %v2599_v9, -inf  ;;  %v2604_v23 = vmax.f32 %v2572_v10, 0.0  ;;  %v2570_v24 = vadd.f32 %v5215_v18, %v2531_v17  ;;  %2503 = vst.msk [vmem:[#allocation3 + $0x40] sm:$0xff] %vm1626_vm11, %v2471_v13  ;;  %v2474_v25 = vadd.f32 %v4377_v20, %v2442_v21 }
 0x1ed   : > { %v2708_v26 = vrot.slane %v2694_v14, %v5230_v59  ;;  %v2709_v27 = vcombine.high %v2701_v15, %v2701_v15  ;;  %v3031_v28 = vsel %vm3030_vm12, %v2701_v15, -inf  ;;  %v2635_v29 = vmax.f32 %v2633_v22, %v2634_v16  ;;  %2082 = vst.msk [vmem:[#allocation3 + $0xa8] sm:$0xff] %vm1626_vm11, %v2050_v19  ;;  %v5248_v30 = vpop.f32.mrf.mxu0  ;;  %v2534_v33 = vld [vmem:[#allocation3 + $0x38] sm:$0xff] }
 0x1ee   : > { %v3032_v31 = vrot.slane %v3031_v28, 4  ;;  %v5251_v32 = vsel %vm1626_vm11, %v2604_v23, -inf  ;;  %v2602_v2 = vmax.f32 %v2570_v24, 0.0  ;;  %2506 = vst.msk [vmem:[#allocation3 + $0x58] sm:$0xff] %vm1626_vm11, %v2474_v25  ;;  %v5265_v47 = vadd.f32 %v5215_v18, %v2534_v33 }
 0x1ef   : > { %v2710_v34 = vcombine.high %v2708_v26, %v2708_v26  ;;  %v3038_v35 = vsel %vm3030_vm12, %v2709_v27, -inf  ;;  %v3045_v36 = vsel %vm3030_vm12, %v2708_v26, -inf  ;;  %v2711_v37 = vcombine.high %v2635_v29, %v2635_v29  ;;  %v5256_v38 = vpop.f32.mrf.mxu0 }
 0x1f0   : > { %v3033_v39 = vmax.f32 %v3031_v28, %v3032_v31  ;;  %v3039_v41 = vrot.slane %v3038_v35, 4  ;;  %v3046_v42 = vrot.slane %v3045_v36, 4  ;;  %v2718_v43 = vrot.slane %v2635_v29, %v5230_v59 }
 0x1f1   : > { %v3052_v44 = vsel %vm3030_vm12, %v2710_v34, -inf  ;;  %v2725_v45 = vrot.slane %v2711_v37, %v5230_v59  ;;  %v5262_v46 = vsel %vm1626_vm11, %v2602_v2, -inf  ;;  %v5267_v54 = vpop.f32.mrf.mxu0 }
 0x1f2   : > { %v3034_v49 = vrot.slane %v3033_v39, 2  ;;  %v3040_v50 = vmax.f32 %v3038_v35, %v3039_v41  ;;  %v3047_v51 = vmax.f32 %v3045_v36, %v3046_v42  ;;  %v3053_v52 = vrot.slane %v3052_v44, 4 }
 0x1f3   : > { %v2726_v55 = vcombine.high %v2718_v43, %v2718_v43  ;;  %v2727_v56 = vcombine.high %v2725_v45, %v2725_v45  ;;  %v3059_v57 = vsel %vm3030_vm12, %v2718_v43, -inf  ;;  %v3073_v58 = vsel %vm3030_vm12, %v2725_v45, -inf  ;;  %v5273_v7 = vpop.f32.mrf.mxu0 }
 0x1f4   : > { %v3035_v53 = vmax.f32 %v3033_v39, %v3034_v49  ;;  %v3041_v60 = vrot.slane %v3040_v50, 2  ;;  %v3048_v61 = vrot.slane %v3047_v51, 2  ;;  %v3054_v62 = vmax.f32 %v3052_v44, %v3053_v52 }
 0x1f5   : > { %v3060_v63 = vrot.slane %v3059_v57, 4  ;;  %v3066_v40 = vsel %vm3030_vm12, %v2726_v55, -inf  ;;  %v3074_v1 = vrot.slane %v3073_v58, 4  ;;  %v3080_v3 = vsel %vm3030_vm12, %v2727_v56, -inf  ;;  %v5275_v24 = vpop.f32.mrf.mxu0 }
 0x1f6   : > { %v3036_v4 = vrot.slane %v3035_v53, 1  ;;  %v3042_v5 = vmax.f32 %v3040_v50, %v3041_v60  ;;  %v3049_v48 = vmax.f32 %v3047_v51, %v3048_v61  ;;  %v3055_v6 = vrot.slane %v3054_v62, 2 }
 0x1f7   : > { %v3061_v8 = vmax.f32 %v3059_v57, %v3060_v63  ;;  %v3067_v0 = vrot.slane %v3066_v40, 4  ;;  %v3075_v9 = vmax.f32 %v3073_v58, %v3074_v1  ;;  %v3081_v10 = vrot.slane %v3080_v3, 4  ;;  %v5279_v44 = vpop.f32.mrf.mxu0 }
 0x1f8   : > { %v3037_v11 = vmax.f32 %v3035_v53, %v3036_v4  ;;  %v3043_v12 = vrot.slane %v3042_v5, 1  ;;  %v3050_v13 = vrot.slane %v3049_v48, 1  ;;  %v3056_v14 = vmax.f32 %v3054_v62, %v3055_v6 }
 0x1f9   : > { %v3062_v15 = vrot.slane %v3061_v8, 2  ;;  %v3068_v16 = vmax.f32 %v3066_v40, %v3067_v0  ;;  %v3076_v17 = vrot.slane %v3075_v9, 2  ;;  %v3082_v19 = vmax.f32 %v3080_v3, %v3081_v10  ;;  %v5286_v40 = vpop.f32.mrf.mxu0 }
 0x1fa   : > { %v3044_v20 = vmax.f32 %v3042_v5, %v3043_v12  ;;  %v3051_v21 = vmax.f32 %v3049_v48, %v3050_v13  ;;  %v3057_v22 = vrot.slane %v3056_v14, 1  ;;  %v4172_v23 = vpack.c.bf16 %v3037_v11, %v3037_v11  ;;  %v2532_v13 = vld [vmem:[#allocation3 + $0x28] sm:$0xff] }
 0x1fb   : > { %v3063_v25 = vmax.f32 %v3061_v8, %v3062_v15  ;;  %v3069_v26 = vrot.slane %v3068_v16, 2  ;;  %v3077_v27 = vmax.f32 %v3075_v9, %v3076_v17  ;;  %v3083_v28 = vrot.slane %v3082_v19, 2 }
 0x1fc   : > { %v3058_v29 = vmax.f32 %v3056_v14, %v3057_v22  ;;  %v4173_v31 = vpack.c.bf16 %v3044_v20, %v3044_v20  ;;  %v4174_v2 = vpack.c.bf16 %v3051_v21, %v3051_v21  ;;  %v3735_v33 = vunpack.c.l.b16 %v4172_v23  ;;  %v2537_v14 = vld [vmem:[#allocation3 + $0x50] sm:$0xff]  ;;  %v5295_v20 = vpop.f32.mrf.mxu0 }
 0x1fd   : > { %v3064_v34 = vrot.slane %v3063_v25, 1  ;;  %v3070_v35 = vmax.f32 %v3068_v16, %v3069_v26  ;;  %v3078_v36 = vrot.slane %v3077_v27, 1  ;;  %v3084_v37 = vmax.f32 %v3082_v19, %v3083_v28  ;;  %v4356_v26 = vpop.f32.mrf.mxu1 }
 0x1fe   : > { %v4175_v39 = vpack.c.bf16 %v3058_v29, %v3058_v29  ;;  %v3736_v41 = vunpack.c.l.b16 %v4173_v31  ;;  %v3737_v42 = vunpack.c.l.b16 %v4174_v2  ;;  %v2638_v43 = vmax.f32 %v5262_v46, %v5251_v32  ;;  %v2535_v2 = vld [vmem:[#allocation3 + $0x40] sm:$0xff] }
 0x1ff   : > { %v3065_v45 = vmax.f32 %v3063_v25, %v3064_v34  ;;  %v3071_v49 = vrot.slane %v3070_v35, 1  ;;  %v3079_v50 = vmax.f32 %v3077_v27, %v3078_v36  ;;  %v3085_v51 = vrot.slane %v3084_v37, 1 }
 0x200   : > { %v3738_v52 = vunpack.c.l.b16 %v4175_v39  ;;  %v3800_v55 = vsel %vm3799_vm13, %v3736_v41, %v3735_v33  ;;  %v2728_v56 = vcombine.high %v2638_v43, %v2638_v43  ;;  %v2735_v57 = vrot.slane %v2638_v43, %v5230_v59 }
 0x201   : > { %v3802_v58 = vsel %vm3801_vm14, %v3737_v42, %v3800_v55  ;;  %v3072_v53 = vmax.f32 %v3070_v35, %v3071_v49  ;;  %v3086_v60 = vmax.f32 %v3084_v37, %v3085_v51  ;;  %v4176_v61 = vpack.c.bf16 %v3065_v45, %v3065_v45  ;;  %v5308_v42 = vpop.f32.mrf.mxu0  ;;  %v2023_v51 = vld [vmem:[#allocation3 + $0xd0] sm:$0xff] }
 0x202   : > { %v4178_v62 = vpack.c.bf16 %v3079_v50, %v3079_v50  ;;  %v3804_v32 = vsel %vm3803_vm15, %v3738_v52, %v3802_v58  ;;  %v2742_v46 = vrot.slane %v2728_v56, %v5230_v59  ;;  %v2743_v63 = vcombine.high %v2735_v57, %v2735_v57  ;;  %v1966_v52 = vpop.f32.mrf.mxu1 }
 0x203   : > { %v4177_v1 = vpack.c.bf16 %v3072_v53, %v3072_v53  ;;  %v4179_v3 = vpack.c.bf16 %v3086_v60, %v3086_v60  ;;  %v3739_v4 = vunpack.c.l.b16 %v4176_v61  ;;  %v3087_v5 = vsel %vm3030_vm12, %v2735_v57, -inf }
 0x204   : > { %v3741_v48 = vunpack.c.l.b16 %v4178_v62  ;;  %v2744_v6 = vcombine.high %v2742_v46, %v2742_v46  ;;  %v3088_v8 = vrot.slane %v3087_v5, 4  ;;  %v3094_v0 = vsel %vm3030_vm12, %v2743_v63, -inf }
 0x205   : > { %v3740_v9 = vunpack.c.l.b16 %v4177_v1  ;;  %v3742_v10 = vunpack.c.l.b16 %v4179_v3  ;;  %v3806_v11 = vsel %vm3805_vm0, %v3739_v4, %v3804_v32  ;;  %v3095_v12 = vrot.slane %v3094_v0, 4  ;;  %v2021_v32 = vld [vmem:[#allocation3 + $0xc0] sm:$0xff]  ;;  %v5315_v3 = vpop.f32.mrf.mxu0 }
 0x206   : > { %v3089_v15 = vmax.f32 %v3087_v5, %v3088_v8  ;;  %v3101_v16 = vsel %vm3030_vm12, %v2742_v46, -inf  ;;  %v3108_v17 = vsel %vm3030_vm12, %v2744_v6, -inf  ;;  %v2605_v19 = vmax.f32 %v5265_v47, 0.0 }
 0x207   : > { %v3808_v21 = vsel %vm3807_vm1, %v3740_v9, %v3806_v11  ;;  %v3096_v22 = vmax.f32 %v3094_v0, %v3095_v12  ;;  %v3102_v23 = vrot.slane %v3101_v16, 4  ;;  %v3109_v25 = vrot.slane %v3108_v17, 4 }
 0x208   : > { %v3810_v27 = vsel %vm3809_vm2, %v3741_v48, %v3808_v21  ;;  %v3090_v28 = vrot.slane %v3089_v15, 2  ;;  %v2571_v29 = vadd.f32 %v5215_v18, %v2532_v13  ;;  %v2576_v31 = vadd.f32 %v5215_v18, %v2537_v14  ;;  %v5323_v21 = vpop.f32.mrf.mxu0 }
 0x209   : > { %v3812_v47 = vsel %vm3811_vm3, %v3742_v10, %v3810_v27  ;;  %v3097_v33 = vrot.slane %v3096_v22, 2  ;;  %v3103_v34 = vmax.f32 %v3101_v16, %v3102_v23  ;;  %v3110_v35 = vmax.f32 %v3108_v17, %v3109_v25 }
 0x20a   : > { %v3862_v36 = vpack.c.b16 %v3812_v47, %v3812_v47  ;;  %v3091_v37 = vmax.f32 %v3089_v15, %v3090_v28  ;;  %v2640_v39 = vsel %vm1626_vm11, %v2605_v19, -inf  ;;  %v2603_v41 = vmax.f32 %v2571_v29, 0.0 }
 0x20b   : > { %v3098_v43 = vmax.f32 %v3096_v22, %v3097_v33  ;;  %v3104_v45 = vrot.slane %v3103_v34, 2  ;;  %v3111_v49 = vrot.slane %v3110_v35, 2  ;;  %v2574_v50 = vadd.f32 %v5215_v18, %v2535_v2 }
 0x20c   : > { %3879 = vst.msk [vmem:[%s5304_s12] sm:$0xf] %vm3878_vm4, %v3862_v36  ;;  %v3092_v55 = vrot.slane %v3091_v37, 1  ;;  %v2639_v56 = vsel %vm1626_vm11, %v2603_v41, -inf  ;;  %v2608_v57 = vmax.f32 %v2576_v31, 0.0  ;;  %v2055_v58 = vadd.f32 %v4356_v26, %v2023_v51 }
 0x20d   : > { %v3099_v53 = vrot.slane %v3098_v43, 1  ;;  %v3105_v60 = vmax.f32 %v3103_v34, %v3104_v45  ;;  %v3112_v61 = vmax.f32 %v3110_v35, %v3111_v49  ;;  %v2641_v62 = vmax.f32 %v2639_v56, %v2640_v39  ;;  %v5328_v35 = vpop.f32.mrf.mxu1 }
 0x20e   : > { %v3093_v46 = vmax.f32 %v3091_v37, %v3092_v55  ;;  %v2606_v63 = vmax.f32 %v2574_v50, 0.0  ;;  %2087 = vst.msk [vmem:[#allocation3 + $0xd0] sm:$0xff] %vm1626_vm11, %v2055_v58  ;;  %v2053_v1 = vadd.f32 %v2021_v32, %v1966_v52  ;;  %v2643_v9 = vsel %vm1626_vm11, %v2608_v57, -inf }
 0x20f   : > { %v3100_v4 = vmax.f32 %v3098_v43, %v3099_v53  ;;  %v3106_v5 = vrot.slane %v3105_v60, 1  ;;  %v3113_v48 = vrot.slane %v3112_v61, 1  ;;  %v2745_v6 = vcombine.high %v2641_v62, %v2641_v62  ;;  %v5332_v43 = vpop.f32.mrf.mxu0 }
 0x210   : > { %v4180_v8 = vpack.c.bf16 %v3093_v46, %v3093_v46  ;;  %v2752_v0 = vrot.slane %v2641_v62, %v5230_v59  ;;  %v2642_v10 = vsel %vm1626_vm11, %v2606_v63, -inf  ;;  %2085 = vst.msk [vmem:[#allocation3 + $0xc0] sm:$0xff] %vm1626_vm11, %v2053_v1  ;;  %v5338_v62 = vpop.f32.mrf.mxu1 }
 0x211   : > { %v3107_v11 = vmax.f32 %v3105_v60, %v3106_v5  ;;  %v3114_v12 = vmax.f32 %v3112_v61, %v3113_v48  ;;  %v4181_v13 = vpack.c.bf16 %v3100_v4, %v3100_v4  ;;  %v2759_v14 = vrot.slane %v2745_v6, %v5230_v59  ;;  %v5341_v4 = vpop.f32.mrf.mxu0 }
 0x212   : > { %v3743_v15 = vunpack.c.l.b16 %v4180_v8  ;;  %v2760_v16 = vcombine.high %v2752_v0, %v2752_v0  ;;  %v3115_v17 = vsel %vm3030_vm12, %v2752_v0, -inf  ;;  %v2644_v19 = vmax.f32 %v2642_v10, %v2643_v9 }
 0x213   : > { %v4182_v22 = vpack.c.bf16 %v3107_v11, %v3107_v11  ;;  %v4183_v23 = vpack.c.bf16 %v3114_v12, %v3114_v12  ;;  %v3744_v25 = vunpack.c.l.b16 %v4181_v13  ;;  %v2761_v26 = vcombine.high %v2759_v14, %v2759_v14 }
 0x214   : > { %v3116_v27 = vrot.slane %v3115_v17, 4  ;;  %v3122_v28 = vsel %vm3030_vm12, %v2760_v16, -inf  ;;  %v3129_v29 = vsel %vm3030_vm12, %v2759_v14, -inf  ;;  %v2762_v31 = vcombine.high %v2644_v19, %v2644_v19  ;;  %v5345_v16 = vpop.f32.mrf.mxu1 }
 0x215   : > { %v3745_v2 = vunpack.c.l.b16 %v4182_v22  ;;  %v3746_v47 = vunpack.c.l.b16 %v4183_v23  ;;  %v3813_v33 = vsel %vm3799_vm13, %v3744_v25, %v3743_v15  ;;  %v3123_v34 = vrot.slane %v3122_v28, 4  ;;  %v5347_v25 = vpop.f32.mrf.mxu0 }
 0x216   : > { %v3117_v36 = vmax.f32 %v3115_v17, %v3116_v27  ;;  %v3130_v37 = vrot.slane %v3129_v29, 4  ;;  %v3136_v39 = vsel %vm3030_vm12, %v2761_v26, -inf  ;;  %v2769_v41 = vrot.slane %v2644_v19, %v5230_v59 }
 0x217   : > { %v3814_v45 = vsel %vm3801_vm14, %v3745_v2, %v3813_v33  ;;  %v3124_v49 = vmax.f32 %v3122_v28, %v3123_v34  ;;  %v3137_v50 = vrot.slane %v3136_v39, 4  ;;  %v2776_v51 = vrot.slane %v2762_v31, %v5230_v59 }
 0x218   : > { %v3118_v52 = vrot.slane %v3117_v36, 2  ;;  %v3131_v55 = vmax.f32 %v3129_v29, %v3130_v37  ;;  %v3815_v56 = vsel %vm3803_vm15, %v3746_v47, %v3814_v45  ;;  %v2777_v57 = vcombine.high %v2769_v41, %v2769_v41 }
 0x219   : > { %v3125_v58 = vrot.slane %v3124_v49, 2  ;;  %v3138_v53 = vmax.f32 %v3136_v39, %v3137_v50  ;;  %v2778_v60 = vcombine.high %v2776_v51, %v2776_v51  ;;  %v3143_v61 = vsel %vm3030_vm12, %v2769_v41, -inf  ;;  %v1982_v41 = vpop.f32.mrf.mxu1 }
 0x21a   : > { %v3119_v32 = vmax.f32 %v3117_v36, %v3118_v52  ;;  %v3132_v46 = vrot.slane %v3131_v55, 2  ;;  %v3144_v63 = vrot.slane %v3143_v61, 4  ;;  %v3150_v1 = vsel %vm3030_vm12, %v2777_v57, -inf  ;;  %v5349_v52 = vpop.f32.mrf.mxu0 }
 0x21b   : > { %v3126_v5 = vmax.f32 %v3124_v49, %v3125_v58  ;;  %v3139_v48 = vrot.slane %v3138_v53, 2  ;;  %v3151_v6 = vrot.slane %v3150_v1, 4  ;;  %v3157_v8 = vsel %vm3030_vm12, %v2776_v51, -inf }
 0x21c   : > { %v3120_v0 = vrot.slane %v3119_v32, 1  ;;  %v3133_v9 = vmax.f32 %v3131_v55, %v3132_v46  ;;  %v3145_v10 = vmax.f32 %v3143_v61, %v3144_v63  ;;  %v3158_v11 = vrot.slane %v3157_v8, 4 }
 0x21d   : > { %v3127_v12 = vrot.slane %v3126_v5, 1  ;;  %v3140_v13 = vmax.f32 %v3138_v53, %v3139_v48  ;;  %v3152_v14 = vmax.f32 %v3150_v1, %v3151_v6  ;;  %v3164_v15 = vsel %vm3030_vm12, %v2778_v60, -inf  ;;  %v4361_v6 = vpop.f32.mrf.mxu1 }
 0x21e   : > { %v3121_v17 = vmax.f32 %v3119_v32, %v3120_v0  ;;  %v3134_v19 = vrot.slane %v3133_v9, 1  ;;  %v3146_v22 = vrot.slane %v3145_v10, 2  ;;  %v3159_v23 = vmax.f32 %v3157_v8, %v3158_v11  ;;  %v5354_v11 = vpop.f32.mrf.mxu0 }
 0x21f   : > { %v3128_v26 = vmax.f32 %v3126_v5, %v3127_v12  ;;  %v3141_v27 = vrot.slane %v3140_v13, 1  ;;  %v3153_v28 = vrot.slane %v3152_v14, 2  ;;  %v3165_v29 = vrot.slane %v3164_v15, 4 }
 0x220   : > { %v3135_v31 = vmax.f32 %v3133_v9, %v3134_v19  ;;  %v4184_v2 = vpack.c.bf16 %v3121_v17, %v3121_v17  ;;  %v3147_v47 = vmax.f32 %v3145_v10, %v3146_v22  ;;  %v3160_v33 = vrot.slane %v3159_v23, 2  ;;  %v2440_v10 = vld [vmem:[#allocation3 + $0x48] sm:$0xff]  ;;  %v2024_v17 = vld [vmem:[#allocation3 + $0xd8] sm:$0xff] }
 0x221   : > { %v3142_v34 = vmax.f32 %v3140_v13, %v3141_v27  ;;  %v4185_v36 = vpack.c.bf16 %v3128_v26, %v3128_v26  ;;  %v3154_v37 = vmax.f32 %v3152_v14, %v3153_v28  ;;  %v3166_v39 = vmax.f32 %v3164_v15, %v3165_v29  ;;  %v2445_v26 = vld [vmem:[#allocation3 + $0x70] sm:$0xff]  ;;  %v2022_v27 = vld [vmem:[#allocation3 + $0xc8] sm:$0xff] }
 0x222   : > { %v4186_v45 = vpack.c.bf16 %v3135_v31, %v3135_v31  ;;  %v3747_v49 = vunpack.c.l.b16 %v4184_v2  ;;  %v3148_v50 = vrot.slane %v3147_v47, 1  ;;  %v3161_v51 = vmax.f32 %v3159_v23, %v3160_v33  ;;  %v2027_v33 = vld [vmem:[#allocation3 + $0xf0] sm:$0xff] }
 0x223   : > { %v4187_v55 = vpack.c.bf16 %v3142_v34, %v3142_v34  ;;  %v3748_v57 = vunpack.c.l.b16 %v4185_v36  ;;  %v3155_v58 = vrot.slane %v3154_v37, 1  ;;  %v3167_v53 = vrot.slane %v3166_v39, 2  ;;  %v1985_v34 = vpop.f32.mrf.mxu1 }
 0x224   : > { %v3749_v60 = vunpack.c.l.b16 %v4186_v45  ;;  %v3816_v61 = vsel %vm3805_vm0, %v3747_v49, %v3815_v56  ;;  %v3149_v32 = vmax.f32 %v3147_v47, %v3148_v50  ;;  %v3162_v46 = vrot.slane %v3161_v51, 1  ;;  %v2538_v56 = vld [vmem:[#allocation3 + $0x58] sm:$0xff]  ;;  %v2443_v47 = vld [vmem:[#allocation3 + $0x60] sm:$0xff]  ;;  %v2444_v45 = vld [vmem:[#allocation3 + $0x68] sm:$0xff]  ;;  %v5373_v49 = vpop.f32.mrf.mxu0 }
 0x225   : > { %v3750_v63 = vunpack.c.l.b16 %v4187_v55  ;;  %v3817_v1 = vsel %vm3807_vm1, %v3748_v57, %v3816_v61  ;;  %v3156_v5 = vmax.f32 %v3154_v37, %v3155_v58  ;;  %v3168_v48 = vmax.f32 %v3166_v39, %v3167_v53  ;;  %v2449_v58 = vld [vmem:[#allocation3 + $0x90] sm:$0xff]  ;;  %v2447_v53 = vld [vmem:[#allocation3 + $0x80] sm:$0xff] }
 0x226   : > { %v3818_v8 = vsel %vm3809_vm2, %v3749_v60, %v3817_v1  ;;  %v3163_v0 = vmax.f32 %v3161_v51, %v3162_v46  ;;  %v4188_v9 = vpack.c.bf16 %v3149_v32, %v3149_v32  ;;  %v2472_v15 = vadd.f32 %v2440_v10, %v5248_v30  ;;  %v2446_v30 = vld [vmem:[#allocation3 + $0x78] sm:$0xff]  ;;  %v2453_v46 = vld [vmem:[#allocation3 + $0xb0] sm:$0xff]  ;;  %v2455_v10 = vld [vmem:[#allocation3 + $0xc0] sm:$0xff] }
 0x227   : > { %v3819_v12 = vsel %vm3811_vm3, %v3750_v63, %v3818_v8  ;;  %v3169_v13 = vrot.slane %v3168_v48, 1  ;;  %v4189_v14 = vpack.c.bf16 %v3156_v5, %v3156_v5  ;;  %v2056_v23 = vadd.f32 %v5328_v35, %v2024_v17  ;;  %v2450_v32 = vld [vmem:[#allocation3 + $0x98] sm:$0xff]  ;;  %v2452_v8 = vld [vmem:[#allocation3 + $0xa8] sm:$0xff] }
 0x228   : > { %v3863_v19 = vpack.c.b16 %v3819_v12, %v3819_v12  ;;  %v4190_v22 = vpack.c.bf16 %v3163_v0, %v3163_v0  ;;  %2504 = vst.msk [vmem:[#allocation3 + $0x48] sm:$0xff] %vm1626_vm11, %v2472_v15  ;;  %v2477_v31 = vadd.f32 %v5256_v38, %v2445_v26  ;;  %v2054_v2 = vadd.f32 %v2022_v27, %v5338_v62  ;;  %v2025_v38 = vld [vmem:[#allocation3 + $0xe0] sm:$0xff]  ;;  %v2028_v62 = vld [vmem:[#allocation3 + $0xf8] sm:$0xff] }
 0x229   : > { %v5359_v28 = vmax.f32 %v3168_v48, %v3169_v13  ;;  %v3752_v29 = vunpack.c.l.b16 %v4189_v14  ;;  %v5367_v36 = vadd.f32 %v5215_v18, %v2538_v56  ;;  %2088 = vst.msk [vmem:[#allocation3 + $0xd8] sm:$0xff] %vm1626_vm11, %v2056_v23  ;;  %v2475_v35 = vadd.f32 %v2443_v47, %v5267_v54  ;;  %v2026_v54 = vld [vmem:[#allocation3 + $0xe8] sm:$0xff]  ;;  %v2451_v48 = vld [vmem:[#allocation3 + $0xa0] sm:$0xff] }
 0x22a   : > { %3880 = vst.msk [vmem:[%s5304_s12 + $0x4] sm:$0xf] %vm3878_vm4, %v3863_v19  ;;  %v2059_v37 = vadd.f32 %v5345_v16, %v2027_v33  ;;  %v2478_v39 = vadd.f32 %v5273_v7, %v2446_v30  ;;  %v3751_v50 = vunpack.c.l.b16 %v4188_v9  ;;  %v3753_v51 = vunpack.c.l.b16 %v4190_v22 }
 0x22b   : > { %2509 = vst.msk [vmem:[#allocation3 + $0x70] sm:$0xff] %vm1626_vm11, %v2477_v31  ;;  %2086 = vst.msk [vmem:[#allocation3 + $0xc8] sm:$0xff] %vm1626_vm11, %v2054_v2  ;;  %v2057_v55 = vadd.f32 %v2025_v38, %v1982_v41  ;;  %v2476_v57 = vadd.f32 %v2444_v45, %v5275_v24  ;;  %v4191_v7 = vpack.c.bf16 %v5359_v28, %v5359_v28  ;;  %v2448_v41 = vld [vmem:[#allocation3 + $0x88] sm:$0xff]  ;;  %v2609_v12 = vmax.f32 %v5367_v36, 0.0 }
 0x22c   : > { %2507 = vst.msk [vmem:[#allocation3 + $0x60] sm:$0xff] %vm1626_vm11, %v2475_v35  ;;  %2091 = vst.msk [vmem:[#allocation3 + $0xf0] sm:$0xff] %vm1626_vm11, %v2059_v37  ;;  %v2060_v16 = vadd.f32 %v4361_v6, %v2028_v62  ;;  %v2481_v60 = vadd.f32 %v5279_v44, %v2449_v58  ;;  %v2058_v61 = vadd.f32 %v2026_v54, %v1985_v34  ;;  %v2454_v6 = vld [vmem:[#allocation3 + $0xb8] sm:$0xff] }
 0x22d   : > { %2510 = vst.msk [vmem:[#allocation3 + $0x78] sm:$0xff] %vm1626_vm11, %v2478_v39  ;;  %v3820_v24 = vsel %vm3799_vm13, %v3752_v29, %v3751_v50  ;;  %2089 = vst.msk [vmem:[#allocation3 + $0xe0] sm:$0xff] %vm1626_vm11, %v2057_v55  ;;  %v2479_v63 = vadd.f32 %v2447_v53, %v5286_v40  ;;  %v2482_v1 = vadd.f32 %v5295_v20, %v2450_v32  ;;  %v2457_v20 = vld [vmem:[#allocation3 + $0xd0] sm:$0xff]  ;;  %v2646_v19 = vsel %vm1626_vm11, %v2609_v12, -inf }
 0x22e   : > { %2508 = vst.msk [vmem:[#allocation3 + $0x68] sm:$0xff] %vm1626_vm11, %v2476_v57  ;;  %v2480_v5 = vadd.f32 %v2448_v41, %v5308_v42  ;;  %2092 = vst.msk [vmem:[#allocation3 + $0xf8] sm:$0xff] %vm1626_vm11, %v2060_v16  ;;  %v2485_v44 = vadd.f32 %v5315_v3, %v2453_v46  ;;  %v2483_v0 = vadd.f32 %v2451_v48, %v5323_v21  ;;  %v4396_v42 = vpop.f32.mrf.mxu0  ;;  %v3754_v21 = vunpack.c.l.b16 %v4191_v7 }
 0x22f   : > { %2513 = vst.msk [vmem:[#allocation3 + $0x90] sm:$0xff] %vm1626_vm11, %v2481_v60  ;;  %2090 = vst.msk [vmem:[#allocation3 + $0xe8] sm:$0xff] %vm1626_vm11, %v2058_v61  ;;  %v2486_v9 = vadd.f32 %v5332_v43, %v2454_v6  ;;  %v2484_v40 = vadd.f32 %v2452_v8, %v5341_v4  ;;  %v2489_v13 = vadd.f32 %v5347_v25, %v2457_v20  ;;  %v2536_v14 = vld [vmem:[#allocation3 + $0x48] sm:$0xff] }
 0x230   : > { %2511 = vst.msk [vmem:[#allocation3 + $0x80] sm:$0xff] %vm1626_vm11, %v2479_v63  ;;  %2514 = vst.msk [vmem:[#allocation3 + $0x98] sm:$0xff] %vm1626_vm11, %v2482_v1  ;;  %v2487_v3 = vadd.f32 %v2455_v10, %v5349_v52  ;;  %v3821_v43 = vsel %vm3801_vm14, %v3753_v51, %v3820_v24  ;;  %v2575_v4 = vadd.f32 %v5215_v18, %v2536_v14  ;;  %v2458_v25 = vld [vmem:[#allocation3 + $0xd8] sm:$0xff]  ;;  %v2416_v17 = vpop.f32.mrf.mxu0 }
 0x231   : > { %2512 = vst.msk [vmem:[#allocation3 + $0x88] sm:$0xff] %vm1626_vm11, %v2480_v5  ;;  %2517 = vst.msk [vmem:[#allocation3 + $0xb0] sm:$0xff] %vm1626_vm11, %v2485_v44  ;;  %v2490_v56 = vadd.f32 %v5354_v11, %v2458_v25  ;;  %v5416_v31 = vsel %vm3803_vm15, %v3754_v21, %v3821_v43 }
 0x232   : > { %2515 = vst.msk [vmem:[#allocation3 + $0xa0] sm:$0xff] %vm1626_vm11, %v2483_v0  ;;  %2518 = vst.msk [vmem:[#allocation3 + $0xb8] sm:$0xff] %vm1626_vm11, %v2486_v9  ;;  %v2541_v52 = vld [vmem:[#allocation3 + $0x70] sm:$0xff]  ;;  %v2456_v15 = vld [vmem:[#allocation3 + $0xc8] sm:$0xff]  ;;  %v2607_v22 = vmax.f32 %v2575_v4, 0.0 }
 0x233   : > { %2516 = vst.msk [vmem:[#allocation3 + $0xa8] sm:$0xff] %vm1626_vm11, %v2484_v40  ;;  %2521 = vst.msk [vmem:[#allocation3 + $0xd0] sm:$0xff] %vm1626_vm11, %v2489_v13  ;;  %v2580_v23 = vadd.f32 %v5215_v18, %v2541_v52  ;;  %v2539_v26 = vld [vmem:[#allocation3 + $0x60] sm:$0xff]  ;;  %v2488_v28 = vadd.f32 %v2456_v15, %v5373_v49  ;;  %v2461_v29 = vld [vmem:[#allocation3 + $0xf0] sm:$0xff] }
 0x234   : > { %2519 = vst.msk [vmem:[#allocation3 + $0xc0] sm:$0xff] %vm1626_vm11, %v2487_v3  ;;  %v2542_v27 = vld [vmem:[#allocation3 + $0x78] sm:$0xff]  ;;  %v2578_v2 = vadd.f32 %v5215_v18, %v2539_v26  ;;  %2522 = vst.msk [vmem:[#allocation3 + $0xd8] sm:$0xff] %vm1626_vm11, %v2490_v56  ;;  %v2493_v33 = vadd.f32 %v4396_v42, %v2461_v29  ;;  %v2459_v30 = vld [vmem:[#allocation3 + $0xe0] sm:$0xff]  ;;  %v2645_v34 = vsel %vm1626_vm11, %v2607_v22, -inf }
 0x235   : > { %v2581_v47 = vadd.f32 %v5215_v18, %v2542_v27  ;;  %v2540_v11 = vld [vmem:[#allocation3 + $0x68] sm:$0xff]  ;;  %v2612_v36 = vmax.f32 %v2580_v23, 0.0  ;;  %2520 = vst.msk [vmem:[#allocation3 + $0xc8] sm:$0xff] %vm1626_vm11, %v2488_v28  ;;  %v2491_v39 = vadd.f32 %v2459_v30, %v2416_v17  ;;  %v2647_v38 = vmax.f32 %v2645_v34, %v2646_v19 }
 0x236   : > { %v2579_v35 = vadd.f32 %v5215_v18, %v2540_v11  ;;  %v2545_v37 = vld [vmem:[#allocation3 + $0x90] sm:$0xff]  ;;  %v2610_v45 = vmax.f32 %v2578_v2, 0.0  ;;  %2525 = vst.msk [vmem:[#allocation3 + $0xf0] sm:$0xff] %vm1626_vm11, %v2493_v33 }
 0x237   : > { %v2613_v62 = vmax.f32 %v2581_v47, 0.0  ;;  %v2584_v49 = vadd.f32 %v5215_v18, %v2545_v37  ;;  %v2543_v50 = vld [vmem:[#allocation3 + $0x80] sm:$0xff]  ;;  %v2546_v51 = vld [vmem:[#allocation3 + $0x98] sm:$0xff]  ;;  %v2649_v55 = vsel %vm1626_vm11, %v2612_v36, -inf  ;;  %2523 = vst.msk [vmem:[#allocation3 + $0xe0] sm:$0xff] %vm1626_vm11, %v2491_v39  ;;  %v2779_v53 = vcombine.high %v2647_v38, %v2647_v38 }
 0x238   : > { %v2611_v57 = vmax.f32 %v2579_v35, 0.0  ;;  %v5428_v58 = vadd.f32 %v5215_v18, %v2543_v50  ;;  %v5431_v54 = vadd.f32 %v5215_v18, %v2546_v51  ;;  %v2786_v7 = vrot.slane %v2647_v38, %v5230_v59 }
 0x239   : > { %v2648_v16 = vsel %vm1626_vm11, %v2610_v45, -inf  ;;  %v2652_v60 = vsel %vm1626_vm11, %v2613_v62, -inf  ;;  %v2616_v41 = vmax.f32 %v2584_v49, 0.0  ;;  %v2793_v24 = vrot.slane %v2779_v53, %v5230_v59 }
 0x23a   : > { %v2650_v61 = vmax.f32 %v2648_v16, %v2649_v55  ;;  %v2651_v32 = vsel %vm1626_vm11, %v2611_v57, -inf  ;;  %v2614_v46 = vmax.f32 %v5428_v58, 0.0  ;;  %v2794_v63 = vcombine.high %v2786_v7, %v2786_v7 }
 0x23b   : > { %v3171_v18 = vsel %vm3030_vm12, %v2786_v7, -inf  ;;  %v5441_v1 = vmax.f32 %v2651_v32, %v2652_v60  ;;  %v5445_v8 = vsel %vm1626_vm11, %v2616_v41, -inf  ;;  %v2795_v44 = vcombine.high %v2793_v24, %v2793_v24 }
 0x23c   : > { %v3172_v5 = vrot.slane %v3171_v18, 4  ;;  %v2796_v48 = vcombine.high %v2650_v61, %v2650_v61  ;;  %v2803_v6 = vrot.slane %v2650_v61, %v5230_v59  ;;  %v3178_v0 = vsel %vm3030_vm12, %v2794_v63, -inf }
 0x23d   : > { %v3185_v9 = vsel %vm3030_vm12, %v2793_v24, -inf  ;;  %v2813_v40 = vcombine.high %v5441_v1, %v5441_v1  ;;  %v3179_v10 = vrot.slane %v3178_v0, 4  ;;  %v3192_v13 = vsel %vm3030_vm12, %v2795_v44, -inf }
 0x23e   : > { %v3173_v20 = vmax.f32 %v3171_v18, %v3172_v5  ;;  %v3186_v42 = vrot.slane %v3185_v9, 4  ;;  %v2810_v12 = vrot.slane %v2796_v48, %v5230_v59  ;;  %v2811_v3 = vcombine.high %v2803_v6, %v2803_v6 }
 0x23f   : > { %v3199_v21 = vsel %vm3030_vm12, %v2803_v6, -inf  ;;  %v5456_v14 = vrot.slane %v5441_v1, %v5230_v59  ;;  %v3180_v4 = vmax.f32 %v3178_v0, %v3179_v10  ;;  %v3193_v52 = vrot.slane %v3192_v13, 4 }
 0x240   : > { %v3174_v43 = vrot.slane %v3173_v20, 2  ;;  %v3187_v25 = vmax.f32 %v3185_v9, %v3186_v42  ;;  %v2812_v56 = vcombine.high %v2810_v12, %v2810_v12  ;;  %v3200_v15 = vrot.slane %v3199_v21, 4 }
 0x241   : > { %v3206_v17 = vsel %vm3030_vm12, %v2811_v3, -inf  ;;  %v3213_v19 = vsel %vm3030_vm12, %v2810_v12, -inf  ;;  %v3181_v23 = vrot.slane %v3180_v4, 2  ;;  %v3194_v27 = vmax.f32 %v3192_v13, %v3193_v52 }
 0x242   : > { %v3175_v22 = vmax.f32 %v3173_v20, %v3174_v43  ;;  %v3188_v26 = vrot.slane %v3187_v25, 2  ;;  %v3201_v28 = vmax.f32 %v3199_v21, %v3200_v15  ;;  %v3207_v29 = vrot.slane %v3206_v17, 4 }
 0x243   : > { %v3214_v2 = vrot.slane %v3213_v19, 4  ;;  %v3220_v47 = vsel %vm3030_vm12, %v2812_v56, -inf  ;;  %v3182_v33 = vmax.f32 %v3180_v4, %v3181_v23  ;;  %v3195_v34 = vrot.slane %v3194_v27, 2 }
 0x244   : > { %v3176_v11 = vrot.slane %v3175_v22, 1  ;;  %v3189_v30 = vmax.f32 %v3187_v25, %v3188_v26  ;;  %v3202_v36 = vrot.slane %v3201_v28, 2  ;;  %v3208_v35 = vmax.f32 %v3206_v17, %v3207_v29 }
 0x245   : > { %v3215_v37 = vmax.f32 %v3213_v19, %v3214_v2  ;;  %v3221_v39 = vrot.slane %v3220_v47, 4  ;;  %v3183_v45 = vrot.slane %v3182_v33, 1  ;;  %v3196_v49 = vmax.f32 %v3194_v27, %v3195_v34 }
 0x246   : > { %v3177_v38 = vmax.f32 %v3175_v22, %v3176_v11  ;;  %v3190_v62 = vrot.slane %v3189_v30, 1  ;;  %v3203_v50 = vmax.f32 %v3201_v28, %v3202_v36  ;;  %v3209_v51 = vrot.slane %v3208_v35, 2 }
 0x247   : > { %v3216_v55 = vrot.slane %v3215_v37, 2  ;;  %v3222_v57 = vmax.f32 %v3220_v47, %v3221_v39  ;;  %v3184_v53 = vmax.f32 %v3182_v33, %v3183_v45  ;;  %v3197_v16 = vrot.slane %v3196_v49, 1 }
 0x248   : > { %v3191_v7 = vmax.f32 %v3189_v30, %v3190_v62  ;;  %v4192_v60 = vpack.c.bf16 %v3177_v38, %v3177_v38  ;;  %v3204_v61 = vrot.slane %v3203_v50, 1  ;;  %v3210_v32 = vmax.f32 %v3208_v35, %v3209_v51 }
 0x249   : > { %v3217_v41 = vmax.f32 %v3215_v37, %v3216_v55  ;;  %v3223_v24 = vrot.slane %v3222_v57, 2  ;;  %v3198_v63 = vmax.f32 %v3196_v49, %v3197_v16  ;;  %v4193_v18 = vpack.c.bf16 %v3184_v53, %v3184_v53  ;;  %v2544_v37 = vld [vmem:[#allocation3 + $0x88] sm:$0xff] }
 0x24a   : > { %v4194_v5 = vpack.c.bf16 %v3191_v7, %v3191_v7  ;;  %v3755_v48 = vunpack.c.l.b16 %v4192_v60  ;;  %v3205_v6 = vmax.f32 %v3203_v50, %v3204_v61  ;;  %v3211_v44 = vrot.slane %v3210_v32, 1  ;;  %v5490_v7 = vld [vmem:[%s5628_s2] ss:$0 sm:$0xff] }
 0x24b   : > { %v3218_v0 = vrot.slane %v3217_v41, 1  ;;  %v3224_v9 = vmax.f32 %v3222_v57, %v3223_v24  ;;  %v4195_v20 = vpack.c.bf16 %v3198_v63, %v3198_v63  ;;  %v3756_v10 = vunpack.c.l.b16 %v4193_v18 }
 0x24c   : > { %v3757_v42 = vunpack.c.l.b16 %v4194_v5  ;;  %v3823_v12 = vsel %vm3805_vm0, %v3755_v48, %v5416_v31  ;;  %v3212_v13 = vmax.f32 %v3210_v32, %v3211_v44  ;;  %v4196_v43 = vpack.c.bf16 %v3205_v6, %v3205_v6 }
 0x24d   : > { %v3219_v3 = vmax.f32 %v3217_v41, %v3218_v0  ;;  %v3225_v21 = vrot.slane %v3224_v9, 1  ;;  %v3758_v4 = vunpack.c.l.b16 %v4195_v20  ;;  %v3824_v25 = vsel %vm3807_vm1, %v3756_v10, %v3823_v12 }
 0x24e   : > { %v2827_v52 = vrot.slane %v2813_v40, %v5230_v59  ;;  %v2828_v56 = vcombine.high %v5456_v14, %v5456_v14  ;;  %v3825_v15 = vsel %vm3809_vm2, %v3757_v42, %v3824_v25  ;;  %v4197_v31 = vpack.c.bf16 %v3212_v13, %v3212_v13 }
 0x24f   : > { %v3226_v17 = vmax.f32 %v3224_v9, %v3225_v21  ;;  %v4198_v19 = vpack.c.bf16 %v3219_v3, %v3219_v3  ;;  %v3826_v22 = vsel %vm3811_vm3, %v3758_v4, %v3825_v15  ;;  %v3759_v23 = vunpack.c.l.b16 %v4196_v43 }
 0x250   : > { %v2829_v26 = vcombine.high %v2827_v52, %v2827_v52  ;;  %v3227_v27 = vsel %vm3030_vm12, %v5456_v14, -inf  ;;  %v3864_v28 = vpack.c.b16 %v3826_v22, %v3826_v22  ;;  %v3760_v1 = vunpack.c.l.b16 %v4197_v31 }
 0x251   : > { %v4199_v29 = vpack.c.bf16 %v3226_v17, %v3226_v17  ;;  %v3761_v40 = vunpack.c.l.b16 %v4198_v19  ;;  %v3228_v2 = vrot.slane %v3227_v27, 4  ;;  %v3234_v47 = vsel %vm3030_vm12, %v2828_v56, -inf }
 0x252   : > { %v3241_v11 = vsel %vm3030_vm12, %v2827_v52, -inf  ;;  %v3248_v33 = vsel %vm3030_vm12, %v2829_v26, -inf  ;;  %3881 = vst.msk [vmem:[%s5304_s12 + $0x8] sm:$0xf] %vm3878_vm4, %v3864_v28  ;;  %v3827_v34 = vsel %vm3799_vm13, %v3760_v1, %v3759_v23  ;;  %v3235_v36 = vrot.slane %v3234_v47, 4 }
 0x253   : > { %v3762_v30 = vunpack.c.l.b16 %v4199_v29  ;;  %v3242_v35 = vrot.slane %v3241_v11, 4  ;;  %v3828_v14 = vsel %vm3801_vm14, %v3761_v40, %v3827_v34  ;;  %v3229_v39 = vmax.f32 %v3227_v27, %v3228_v2 }
 0x254   : > { %v3249_v38 = vrot.slane %v3248_v33, 4  ;;  %v2654_v45 = vsel %vm1626_vm11, %v2614_v46, -inf  ;;  %v3236_v62 = vmax.f32 %v3234_v47, %v3235_v36  ;;  %v2617_v53 = vmax.f32 %v5431_v54, 0.0 }
 0x255   : > { %v3243_v49 = vmax.f32 %v3241_v11, %v3242_v35  ;;  %v3829_v50 = vsel %vm3803_vm15, %v3762_v30, %v3828_v14  ;;  %v2656_v51 = vmax.f32 %v2654_v45, %v5445_v8  ;;  %v3230_v55 = vrot.slane %v3229_v39, 2 }
 0x256   : > { %v3250_v57 = vmax.f32 %v3248_v33, %v3249_v38  ;;  %v2583_v16 = vadd.f32 %v5490_v7, %v2544_v37  ;;  %v3237_v58 = vrot.slane %v3236_v62, 2  ;;  %v2658_v8 = vsel %vm1626_vm11, %v2617_v53, -inf  ;;  %v2549_v33 = vld [vmem:[#allocation3 + $0xb0] sm:$0xff] }
 0x257   : > { %v3244_v60 = vrot.slane %v3243_v49, 2  ;;  %v2830_v46 = vcombine.high %v2656_v51, %v2656_v51  ;;  %v2837_v61 = vrot.slane %v2656_v51, %v5230_v59  ;;  %v3231_v32 = vmax.f32 %v3229_v39, %v3230_v55 }
 0x258   : > { %v3251_v41 = vrot.slane %v3250_v57, 2  ;;  %v2615_v24 = vmax.f32 %v2583_v16, 0.0  ;;  %v3238_v63 = vmax.f32 %v3236_v62, %v3237_v58  ;;  %v2588_v51 = vadd.f32 %v5490_v7, %v2549_v33 }
 0x259   : > { %v3245_v18 = vmax.f32 %v3243_v49, %v3244_v60  ;;  %v2844_v54 = vrot.slane %v2830_v46, %v5230_v59  ;;  %v2845_v5 = vcombine.high %v2837_v61, %v2837_v61  ;;  %v3232_v48 = vrot.slane %v3231_v32, 1 }
 0x25a   : > { %v3252_v6 = vmax.f32 %v3250_v57, %v3251_v41  ;;  %v3255_v44 = vsel %vm3030_vm12, %v2837_v61, -inf  ;;  %v2657_v0 = vsel %vm1626_vm11, %v2615_v24, -inf  ;;  %v3239_v9 = vrot.slane %v3238_v63, 1 }
 0x25b   : > { %v3246_v20 = vrot.slane %v3245_v18, 1  ;;  %v2846_v10 = vcombine.high %v2844_v54, %v2844_v54  ;;  %v3256_v42 = vrot.slane %v3255_v44, 4  ;;  %v3233_v12 = vmax.f32 %v3231_v32, %v3232_v48 }
 0x25c   : > { %v3253_v13 = vrot.slane %v3252_v6, 1  ;;  %v3262_v3 = vsel %vm3030_vm12, %v2845_v5, -inf  ;;  %v3269_v21 = vsel %vm3030_vm12, %v2844_v54, -inf  ;;  %v3240_v43 = vmax.f32 %v3238_v63, %v3239_v9 }
 0x25d   : > { %v3247_v4 = vmax.f32 %v3245_v18, %v3246_v20  ;;  %v3257_v25 = vmax.f32 %v3255_v44, %v3256_v42  ;;  %v3263_v52 = vrot.slane %v3262_v3, 4  ;;  %v4200_v15 = vpack.c.bf16 %v3233_v12, %v3233_v12 }
 0x25e   : > { %v3254_v56 = vmax.f32 %v3252_v6, %v3253_v13  ;;  %v3270_v17 = vrot.slane %v3269_v21, 4  ;;  %v3276_v31 = vsel %vm3030_vm12, %v2846_v10, -inf  ;;  %v4201_v19 = vpack.c.bf16 %v3240_v43, %v3240_v43 }
 0x25f   : > { %v4202_v22 = vpack.c.bf16 %v3247_v4, %v3247_v4  ;;  %v3258_v23 = vrot.slane %v3257_v25, 2  ;;  %v3264_v26 = vmax.f32 %v3262_v3, %v3263_v52  ;;  %v3763_v28 = vunpack.c.l.b16 %v4200_v15 }
 0x260   : > { %v4203_v27 = vpack.c.bf16 %v3254_v56, %v3254_v56  ;;  %v3271_v29 = vmax.f32 %v3269_v21, %v3270_v17  ;;  %v3277_v1 = vrot.slane %v3276_v31, 4  ;;  %v3764_v40 = vunpack.c.l.b16 %v4201_v19  ;;  %v2547_v21 = vld [vmem:[#allocation3 + $0xa0] sm:$0xff]  ;;  %v2550_v56 = vld [vmem:[#allocation3 + $0xb8] sm:$0xff] }
 0x261   : > { %v3765_v2 = vunpack.c.l.b16 %v4202_v22  ;;  %v3259_v47 = vmax.f32 %v3257_v25, %v3258_v23  ;;  %v3265_v11 = vrot.slane %v3264_v26, 2  ;;  %v3830_v34 = vsel %vm3805_vm0, %v3763_v28, %v3829_v50  ;;  %v2548_v22 = vld [vmem:[#allocation3 + $0xa8] sm:$0xff] }
 0x262   : > { %v3766_v30 = vunpack.c.l.b16 %v4203_v27  ;;  %v3272_v36 = vrot.slane %v3271_v29, 2  ;;  %v3278_v35 = vmax.f32 %v3276_v31, %v3277_v1  ;;  %v3831_v37 = vsel %vm3807_vm1, %v3764_v40, %v3830_v34 }
 0x263   : > { %v3260_v14 = vrot.slane %v3259_v47, 1  ;;  %v3266_v39 = vmax.f32 %v3264_v26, %v3265_v11  ;;  %v2659_v38 = vmax.f32 %v2657_v0, %v2658_v8  ;;  %v3832_v45 = vsel %vm3809_vm2, %v3765_v2, %v3831_v37 }
 0x264   : > { %v3273_v62 = vmax.f32 %v3271_v29, %v3272_v36  ;;  %v3279_v49 = vrot.slane %v3278_v35, 2  ;;  %v3833_v55 = vsel %vm3811_vm3, %v3766_v30, %v3832_v45  ;;  %v2620_v8 = vmax.f32 %v2588_v51, 0.0 }
 0x265   : > { %v3261_v57 = vmax.f32 %v3259_v47, %v3260_v14  ;;  %v3267_v53 = vrot.slane %v3266_v39, 1  ;;  %v2847_v16 = vcombine.high %v2659_v38, %v2659_v38  ;;  %v3865_v50 = vpack.c.b16 %v3833_v55, %v3833_v55  ;;  %v2553_v47 = vld [vmem:[#allocation3 + $0xd0] sm:$0xff] }
 0x266   : > { %v3274_v58 = vrot.slane %v3273_v62, 1  ;;  %v3280_v60 = vmax.f32 %v3278_v35, %v3279_v49  ;;  %v2854_v46 = vrot.slane %v2659_v38, %v5230_v59  ;;  %v2661_v52 = vsel %vm1626_vm11, %v2620_v8, -inf }
 0x267   : > { %v3268_v61 = vmax.f32 %v3266_v39, %v3267_v53  ;;  %v4204_v32 = vpack.c.bf16 %v3261_v57, %v3261_v57  ;;  %v2861_v41 = vrot.slane %v2847_v16, %v5230_v59  ;;  %3882 = vst.msk [vmem:[%s5304_s12 + $0xc] sm:$0xf] %vm3878_vm4, %v3865_v50  ;;  %v2586_v28 = vadd.f32 %v5490_v7, %v2547_v21 }
 0x268   : > { %v3275_v24 = vmax.f32 %v3273_v62, %v3274_v58  ;;  %v3281_v63 = vrot.slane %v3280_v60, 1  ;;  %v2862_v18 = vcombine.high %v2854_v46, %v2854_v46  ;;  %v3283_v54 = vsel %vm3030_vm12, %v2854_v46, -inf }
 0x269   : > { %v4205_v5 = vpack.c.bf16 %v3268_v61, %v3268_v61  ;;  %v3767_v48 = vunpack.c.l.b16 %v4204_v32  ;;  %v2863_v6 = vcombine.high %v2861_v41, %v2861_v41  ;;  %v3284_v44 = vrot.slane %v3283_v54, 4 }
 0x26a   : > { %v3282_v0 = vmax.f32 %v3280_v60, %v3281_v63  ;;  %v4206_v9 = vpack.c.bf16 %v3275_v24, %v3275_v24  ;;  %v3290_v20 = vsel %vm3030_vm12, %v2862_v18, -inf  ;;  %v3297_v10 = vsel %vm3030_vm12, %v2861_v41, -inf }
 0x26b   : > { %v3768_v42 = vunpack.c.l.b16 %v4205_v5  ;;  %v3285_v12 = vmax.f32 %v3283_v54, %v3284_v44  ;;  %v3291_v13 = vrot.slane %v3290_v20, 4  ;;  %v3298_v3 = vrot.slane %v3297_v10, 4 }
 0x26c   : > { %v4207_v43 = vpack.c.bf16 %v3282_v0, %v3282_v0  ;;  %v3769_v4 = vunpack.c.l.b16 %v4206_v9  ;;  %v3304_v25 = vsel %vm3030_vm12, %v2863_v6, -inf  ;;  %v2589_v2 = vadd.f32 %v5490_v7, %v2550_v56 }
 0x26d   : > { %v3834_v15 = vsel %vm3799_vm13, %v3768_v42, %v3767_v48  ;;  %v3286_v17 = vrot.slane %v3285_v12, 2  ;;  %v3292_v31 = vmax.f32 %v3290_v20, %v3291_v13  ;;  %v3299_v19 = vmax.f32 %v3297_v10, %v3298_v3 }
 0x26e   : > { %v3770_v23 = vunpack.c.l.b16 %v4207_v43  ;;  %v3835_v26 = vsel %vm3801_vm14, %v3769_v4, %v3834_v15  ;;  %v3305_v27 = vrot.slane %v3304_v25, 4  ;;  %v2618_v30 = vmax.f32 %v2586_v28, 0.0  ;;  %v2551_v15 = vld [vmem:[#allocation3 + $0xc0] sm:$0xff] }
 0x26f   : > { %v3287_v29 = vmax.f32 %v3285_v12, %v3286_v17  ;;  %v3293_v1 = vrot.slane %v3292_v31, 2  ;;  %v3300_v40 = vrot.slane %v3299_v19, 2  ;;  %v2587_v34 = vadd.f32 %v5490_v7, %v2548_v22 }
 0x270   : > { %v3306_v11 = vmax.f32 %v3304_v25, %v3305_v27  ;;  %v3836_v33 = vsel %vm3803_vm15, %v3770_v23, %v3835_v26  ;;  %v2621_v14 = vmax.f32 %v2589_v2, 0.0  ;;  %v2660_v38 = vsel %vm1626_vm11, %v2618_v30, -inf }
 0x271   : > { %v3288_v36 = vrot.slane %v3287_v29, 1  ;;  %v3294_v35 = vmax.f32 %v3292_v31, %v3293_v1  ;;  %v3301_v37 = vmax.f32 %v3299_v19, %v3300_v40  ;;  %v2619_v45 = vmax.f32 %v2587_v34, 0.0 }
 0x272   : > { %v3307_v39 = vrot.slane %v3306_v11, 2  ;;  %v2592_v62 = vadd.f32 %v5490_v7, %v2553_v47  ;;  %v2662_v57 = vmax.f32 %v2660_v38, %v2661_v52  ;;  %v2664_v16 = vsel %vm1626_vm11, %v2621_v14, -inf }
 0x273   : > { %v3289_v49 = vmax.f32 %v3287_v29, %v3288_v36  ;;  %v3295_v51 = vrot.slane %v3294_v35, 1  ;;  %v3302_v55 = vrot.slane %v3301_v37, 1  ;;  %v2663_v50 = vsel %vm1626_vm11, %v2619_v45, -inf }
 0x274   : > { %v3308_v53 = vmax.f32 %v3306_v11, %v3307_v39  ;;  %v2624_v58 = vmax.f32 %v2592_v62, 0.0  ;;  %v2864_v32 = vcombine.high %v2662_v57, %v2662_v57  ;;  %v2871_v8 = vrot.slane %v2662_v57, %v5230_v59 }
 0x275   : > { %v3296_v60 = vmax.f32 %v3294_v35, %v3295_v51  ;;  %v3303_v46 = vmax.f32 %v3301_v37, %v3302_v55  ;;  %v4208_v61 = vpack.c.bf16 %v3289_v49, %v3289_v49  ;;  %v2665_v24 = vmax.f32 %v2663_v50, %v2664_v16 }
 0x276   : > { %v3309_v41 = vrot.slane %v3308_v53, 1  ;;  %v5527_v63 = vsel %vm1626_vm11, %v2624_v58, -inf  ;;  %v2878_v48 = vrot.slane %v2864_v32, %v5230_v59  ;;  %v2879_v44 = vcombine.high %v2871_v8, %v2871_v8 }
 0x277   : > { %v4209_v18 = vpack.c.bf16 %v3296_v60, %v3296_v60  ;;  %v4210_v54 = vpack.c.bf16 %v3303_v46, %v3303_v46  ;;  %v3771_v5 = vunpack.c.l.b16 %v4208_v61  ;;  %v3311_v0 = vsel %vm3030_vm12, %v2871_v8, -inf }
 0x278   : > { %v3310_v6 = vmax.f32 %v3308_v53, %v3309_v41  ;;  %v2881_v9 = vcombine.high %v2665_v24, %v2665_v24  ;;  %v2880_v12 = vcombine.high %v2878_v48, %v2878_v48  ;;  %v3312_v3 = vrot.slane %v3311_v0, 4 }
 0x279   : > { %v3772_v20 = vunpack.c.l.b16 %v4209_v18  ;;  %v3773_v10 = vunpack.c.l.b16 %v4210_v54  ;;  %v3837_v42 = vsel %vm3805_vm0, %v3771_v5, %v3836_v33  ;;  %v3318_v21 = vsel %vm3030_vm12, %v2879_v44, -inf }
 0x27a   : > { %v4211_v13 = vpack.c.bf16 %v3310_v6, %v3310_v6  ;;  %v3325_v43 = vsel %vm3030_vm12, %v2878_v48, -inf  ;;  %v3319_v25 = vrot.slane %v3318_v21, 4  ;;  %v3332_v56 = vsel %vm3030_vm12, %v2880_v12, -inf }
 0x27b   : > { %v3838_v4 = vsel %vm3807_vm1, %v3772_v20, %v3837_v42  ;;  %v3326_v52 = vrot.slane %v3325_v43, 4  ;;  %v3313_v19 = vmax.f32 %v3311_v0, %v3312_v3  ;;  %v3333_v22 = vrot.slane %v3332_v56, 4 }
 0x27c   : > { %v3774_v17 = vunpack.c.l.b16 %v4211_v13  ;;  %v3839_v31 = vsel %vm3809_vm2, %v3773_v10, %v3838_v4  ;;  %v3320_v23 = vmax.f32 %v3318_v21, %v3319_v25  ;;  %v2888_v27 = vrot.slane %v2665_v24, %v5230_v59  ;;  %v2554_v13 = vld [vmem:[#allocation3 + $0xd8] sm:$0xff] }
 0x27d   : > { %v3327_v26 = vmax.f32 %v3325_v43, %v3326_v52  ;;  %v2895_v28 = vrot.slane %v2881_v9, %v5230_v59  ;;  %v3314_v1 = vrot.slane %v3313_v19, 2  ;;  %v3334_v40 = vmax.f32 %v3332_v56, %v3333_v22 }
 0x27e   : > { %v3840_v29 = vsel %vm3811_vm3, %v3774_v17, %v3839_v31  ;;  %v2590_v2 = vadd.f32 %v5490_v7, %v2551_v15  ;;  %v3321_v11 = vrot.slane %v3320_v23, 2  ;;  %v2896_v30 = vcombine.high %v2888_v27, %v2888_v27 }
 0x27f   : > { %v3866_v47 = vpack.c.b16 %v3840_v29, %v3840_v29  ;;  %v3328_v33 = vrot.slane %v3327_v26, 2  ;;  %v3315_v34 = vmax.f32 %v3313_v19, %v3314_v1  ;;  %v3335_v36 = vrot.slane %v3334_v40, 2 }
 0x280   : > { %v2897_v35 = vcombine.high %v2895_v28, %v2895_v28  ;;  %v3339_v37 = vsel %vm3030_vm12, %v2888_v27, -inf  ;;  %v3322_v14 = vmax.f32 %v3320_v23, %v3321_v11  ;;  %v3346_v45 = vsel %vm3030_vm12, %v2896_v30, -inf  ;;  %v2552_v23 = vld [vmem:[#allocation3 + $0xc8] sm:$0xff] }
 0x281   : > { %3883 = vst.msk [vmem:[%s5304_s12 + $0x10] sm:$0xf] %vm3878_vm4, %v3866_v47  ;;  %v3329_v39 = vmax.f32 %v3327_v26, %v3328_v33  ;;  %v3340_v38 = vrot.slane %v3339_v37, 4  ;;  %v3316_v62 = vrot.slane %v3315_v34, 1  ;;  %v3336_v49 = vmax.f32 %v3334_v40, %v3335_v36 }
 0x282   : > { %v3347_v51 = vrot.slane %v3346_v45, 4  ;;  %v3353_v55 = vsel %vm3030_vm12, %v2895_v28, -inf  ;;  %v3323_v57 = vrot.slane %v3322_v14, 1  ;;  %v3360_v61 = vsel %vm3030_vm12, %v2897_v35, -inf }
 0x283   : > { %v3330_v53 = vrot.slane %v3329_v39, 1  ;;  %v3341_v16 = vmax.f32 %v3339_v37, %v3340_v38  ;;  %v3354_v50 = vrot.slane %v3353_v55, 4  ;;  %v3317_v58 = vmax.f32 %v3315_v34, %v3316_v62 }
 0x284   : > { %v3337_v60 = vrot.slane %v3336_v49, 1  ;;  %v3348_v46 = vmax.f32 %v3346_v45, %v3347_v51  ;;  %v3324_v32 = vmax.f32 %v3322_v14, %v3323_v57  ;;  %v3361_v48 = vrot.slane %v3360_v61, 4 }
 0x285   : > { %v3331_v41 = vmax.f32 %v3329_v39, %v3330_v53  ;;  %v3342_v8 = vrot.slane %v3341_v16, 2  ;;  %v3355_v24 = vmax.f32 %v3353_v55, %v3354_v50  ;;  %v4212_v54 = vpack.c.bf16 %v3317_v58, %v3317_v58 }
 0x286   : > { %v3338_v18 = vmax.f32 %v3336_v49, %v3337_v60  ;;  %v3349_v5 = vrot.slane %v3348_v46, 2  ;;  %v4213_v6 = vpack.c.bf16 %v3324_v32, %v3324_v32  ;;  %v3362_v12 = vmax.f32 %v3360_v61, %v3361_v48  ;;  %v2557_v48 = vld [vmem:[#allocation3 + $0xf0] sm:$0xff] }
 0x287   : > { %v4214_v44 = vpack.c.bf16 %v3331_v41, %v3331_v41  ;;  %v3343_v0 = vmax.f32 %v3341_v16, %v3342_v8  ;;  %v3356_v9 = vrot.slane %v3355_v24, 2  ;;  %v3775_v10 = vunpack.c.l.b16 %v4212_v54 }
 0x288   : > { %v4215_v20 = vpack.c.bf16 %v3338_v18, %v3338_v18  ;;  %v3350_v42 = vmax.f32 %v3348_v46, %v3349_v5  ;;  %v3776_v3 = vunpack.c.l.b16 %v4213_v6  ;;  %v3363_v56 = vrot.slane %v3362_v12, 2 }
 0x289   : > { %v3777_v21 = vunpack.c.l.b16 %v4214_v44  ;;  %v3344_v43 = vrot.slane %v3343_v0, 1  ;;  %v3357_v4 = vmax.f32 %v3355_v24, %v3356_v9  ;;  %v2622_v15 = vmax.f32 %v2590_v2, 0.0 }
 0x28a   : > { %v3778_v25 = vunpack.c.l.b16 %v4215_v20  ;;  %v3351_v52 = vrot.slane %v3350_v42, 1  ;;  %v3841_v17 = vsel %vm3799_vm13, %v3776_v3, %v3775_v10  ;;  %v2593_v22 = vadd.f32 %v5490_v7, %v2554_v13 }
 0x28b   : > { %v3345_v31 = vmax.f32 %v3343_v0, %v3344_v43  ;;  %v3358_v19 = vrot.slane %v3357_v4, 1  ;;  %v3842_v26 = vsel %vm3801_vm14, %v3777_v21, %v3841_v17  ;;  %v3364_v28 = vmax.f32 %v3362_v12, %v3363_v56 }
 0x28c   : > { %v3352_v27 = vmax.f32 %v3350_v42, %v3351_v52  ;;  %v2666_v29 = vsel %vm1626_vm11, %v2622_v15, -inf  ;;  %v3843_v47 = vsel %vm3803_vm15, %v3778_v25, %v3842_v26  ;;  %v2625_v30 = vmax.f32 %v2593_v22, 0.0 }
 0x28d   : > { %v3359_v1 = vmax.f32 %v3357_v4, %v3358_v19  ;;  %v4216_v40 = vpack.c.bf16 %v3345_v31, %v3345_v31  ;;  %v2668_v11 = vmax.f32 %v2666_v29, %v5527_v63  ;;  %v3365_v2 = vrot.slane %v3364_v28, 1 }
 0x28e   : > { %v4217_v33 = vpack.c.bf16 %v3352_v27, %v3352_v27  ;;  %v2591_v34 = vadd.f32 %v5490_v7, %v2552_v23  ;;  %v2670_v45 = vsel %vm1626_vm11, %v2625_v30, -inf  ;;  %v5569_v43 = vadd.f32 %v5490_v7, %v2557_v48 }
 0x28f   : > { %v4218_v36 = vpack.c.bf16 %v3359_v1, %v3359_v1  ;;  %v3779_v35 = vunpack.c.l.b16 %v4216_v40  ;;  %v2898_v37 = vcombine.high %v2668_v11, %v2668_v11  ;;  %v2905_v14 = vrot.slane %v2668_v11, %v5230_v59 }
 0x290   : > { %v3366_v39 = vmax.f32 %v3364_v28, %v3365_v2  ;;  %v3780_v38 = vunpack.c.l.b16 %v4217_v33  ;;  %v2623_v62 = vmax.f32 %v2591_v34, 0.0 }
 0x291   : > { %v3781_v49 = vunpack.c.l.b16 %v4218_v36  ;;  %v3844_v51 = vsel %vm3805_vm0, %v3779_v35, %v3843_v47  ;;  %v2912_v63 = vrot.slane %v2898_v37, %v5230_v59  ;;  %v2913_v55 = vcombine.high %v2905_v14, %v2905_v14 }
 0x292   : > { %v4219_v57 = vpack.c.bf16 %v3366_v39, %v3366_v39  ;;  %v3845_v53 = vsel %vm3807_vm1, %v3780_v38, %v3844_v51  ;;  %v3367_v16 = vsel %vm3030_vm12, %v2905_v14, -inf  ;;  %v2669_v50 = vsel %vm1626_vm11, %v2623_v62, -inf }
 0x293   : > { %v3846_v58 = vsel %vm3809_vm2, %v3781_v49, %v3845_v53  ;;  %v2914_v60 = vcombine.high %v2912_v63, %v2912_v63  ;;  %v3368_v46 = vrot.slane %v3367_v16, 4  ;;  %v3374_v61 = vsel %vm3030_vm12, %v2913_v55, -inf }
 0x294   : > { %v3782_v32 = vunpack.c.l.b16 %v4219_v57  ;;  %v3375_v41 = vrot.slane %v3374_v61, 4  ;;  %v3381_v8 = vsel %vm3030_vm12, %v2912_v63, -inf  ;;  %v2671_v24 = vmax.f32 %v2669_v50, %v2670_v45  ;;  %v4397_v63 = vpop.f32.mrf.mxu0 }
 0x295   : > { %v3369_v18 = vmax.f32 %v3367_v16, %v3368_v46  ;;  %v3382_v54 = vrot.slane %v3381_v8, 4  ;;  %v3388_v5 = vsel %vm3030_vm12, %v2914_v60, -inf }
 0x296   : > { %v3847_v6 = vsel %vm3811_vm3, %v3782_v32, %v3846_v58  ;;  %v3376_v44 = vmax.f32 %v3374_v61, %v3375_v41  ;;  %v3389_v0 = vrot.slane %v3388_v5, 4  ;;  %v2915_v9 = vcombine.high %v2671_v24, %v2671_v24  ;;  %v2555_v61 = vld [vmem:[#allocation3 + $0xe0] sm:$0xff] }
 0x297   : > { %v3867_v20 = vpack.c.b16 %v3847_v6, %v3847_v6  ;;  %v3370_v10 = vrot.slane %v3369_v18, 2  ;;  %v3383_v42 = vmax.f32 %v3381_v8, %v3382_v54  ;;  %v2922_v12 = vrot.slane %v2671_v24, %v5230_v59  ;;  %v2419_v6 = vpop.f32.mrf.mxu0 }
 0x298   : > { %v3377_v13 = vrot.slane %v3376_v44, 2  ;;  %v3390_v3 = vmax.f32 %v3388_v5, %v3389_v0  ;;  %v2929_v21 = vrot.slane %v2915_v9, %v5230_v59  ;;  %v2628_v24 = vmax.f32 %v5569_v43, 0.0 }
 0x299   : > { %3884 = vst.msk [vmem:[%s5304_s12 + $0x14] sm:$0xf] %vm3878_vm4, %v3867_v20  ;;  %v3371_v4 = vmax.f32 %v3369_v18, %v3370_v10  ;;  %v3384_v25 = vrot.slane %v3383_v42, 2  ;;  %v2930_v52 = vcombine.high %v2922_v12, %v2922_v12  ;;  %v3395_v56 = vsel %vm3030_vm12, %v2922_v12, -inf  ;;  %v2462_v10 = vld [vmem:[#allocation3 + $0xf8] sm:$0xff] }
 0x29a   : > { %v3378_v15 = vmax.f32 %v3376_v44, %v3377_v13  ;;  %v3391_v17 = vrot.slane %v3390_v3, 2  ;;  %v2931_v31 = vcombine.high %v2929_v21, %v2929_v21  ;;  %v3396_v19 = vrot.slane %v3395_v56, 4 }
 0x29b   : > { %v3372_v22 = vrot.slane %v3371_v4, 1  ;;  %v3385_v23 = vmax.f32 %v3383_v42, %v3384_v25  ;;  %v3402_v26 = vsel %vm3030_vm12, %v2930_v52, -inf  ;;  %v3409_v27 = vsel %vm3030_vm12, %v2929_v21, -inf  ;;  %v2460_v21 = vld [vmem:[#allocation3 + $0xe8] sm:$0xff] }
 0x29c   : > { %v3379_v28 = vrot.slane %v3378_v15, 1  ;;  %v3392_v29 = vmax.f32 %v3390_v3, %v3391_v17  ;;  %v3397_v1 = vmax.f32 %v3395_v56, %v3396_v19  ;;  %v3403_v40 = vrot.slane %v3402_v26, 4 }
 0x29d   : > { %v3373_v47 = vmax.f32 %v3371_v4, %v3372_v22  ;;  %v3386_v11 = vrot.slane %v3385_v23, 1  ;;  %v3410_v2 = vrot.slane %v3409_v27, 4  ;;  %v3416_v33 = vsel %vm3030_vm12, %v2931_v31, -inf }
 0x29e   : > { %v3380_v30 = vmax.f32 %v3378_v15, %v3379_v28  ;;  %v3393_v34 = vrot.slane %v3392_v29, 1  ;;  %v3398_v36 = vrot.slane %v3397_v1, 2  ;;  %v3404_v35 = vmax.f32 %v3402_v26, %v3403_v40 }
 0x29f   : > { %v3387_v37 = vmax.f32 %v3385_v23, %v3386_v11  ;;  %v4220_v14 = vpack.c.bf16 %v3373_v47, %v3373_v47  ;;  %v3411_v39 = vmax.f32 %v3409_v27, %v3410_v2  ;;  %v3417_v38 = vrot.slane %v3416_v33, 4 }
 0x2a0   : > { %v3394_v45 = vmax.f32 %v3392_v29, %v3393_v34  ;;  %v4221_v62 = vpack.c.bf16 %v3380_v30, %v3380_v30  ;;  %v3399_v49 = vmax.f32 %v3397_v1, %v3398_v36  ;;  %v3405_v51 = vrot.slane %v3404_v35, 2 }
 0x2a1   : > { %v4222_v55 = vpack.c.bf16 %v3387_v37, %v3387_v37  ;;  %v3783_v57 = vunpack.c.l.b16 %v4220_v14  ;;  %v3412_v53 = vrot.slane %v3411_v39, 2  ;;  %v3418_v16 = vmax.f32 %v3416_v33, %v3417_v38 }
 0x2a2   : > { %v4223_v50 = vpack.c.bf16 %v3394_v45, %v3394_v45  ;;  %v3784_v58 = vunpack.c.l.b16 %v4221_v62  ;;  %v3400_v60 = vrot.slane %v3399_v49, 1  ;;  %v3406_v46 = vmax.f32 %v3404_v35, %v3405_v51 }
 0x2a3   : > { %v3785_v32 = vunpack.c.l.b16 %v4222_v55  ;;  %v3413_v41 = vmax.f32 %v3411_v39, %v3412_v53  ;;  %v3419_v8 = vrot.slane %v3418_v16, 2  ;;  %v2594_v20 = vadd.f32 %v5490_v7, %v2555_v61 }
 0x2a4   : > { %v3786_v18 = vunpack.c.l.b16 %v4223_v50  ;;  %v3848_v54 = vsel %vm3799_vm13, %v3784_v58, %v3783_v57  ;;  %v3401_v5 = vmax.f32 %v3399_v49, %v3400_v60  ;;  %v3407_v48 = vrot.slane %v3406_v46, 1 }
 0x2a5   : > { %v3849_v44 = vsel %vm3801_vm14, %v3785_v32, %v3848_v54  ;;  %v3414_v0 = vrot.slane %v3413_v41, 1  ;;  %v3420_v9 = vmax.f32 %v3418_v16, %v3419_v8  ;;  %v2494_v3 = vadd.f32 %v4397_v63, %v2462_v10 }
 0x2a6   : > { %v3408_v42 = vmax.f32 %v3406_v46, %v3407_v48  ;;  %v4224_v12 = vpack.c.bf16 %v3401_v5, %v3401_v5  ;;  %v3850_v13 = vsel %vm3803_vm15, %v3786_v18, %v3849_v44  ;;  %v2626_v25 = vmax.f32 %v2594_v20, 0.0 }
 0x2a7   : > { %v3415_v43 = vmax.f32 %v3413_v41, %v3414_v0  ;;  %v3421_v4 = vrot.slane %v3420_v9, 1  ;;  %v2492_v52 = vadd.f32 %v2460_v21, %v2419_v6  ;;  %2526 = vst.msk [vmem:[#allocation3 + $0xf8] sm:$0xff] %vm1626_vm11, %v2494_v3  ;;  %v2673_v19 = vsel %vm1626_vm11, %v2628_v24, -inf }
 0x2a8   : > { %v4225_v56 = vpack.c.bf16 %v3408_v42, %v3408_v42  ;;  %v3787_v15 = vunpack.c.l.b16 %v4224_v12  ;;  %v2672_v22 = vsel %vm1626_vm11, %v2626_v25, -inf }
 0x2a9   : > { %v3422_v17 = vmax.f32 %v3420_v9, %v3421_v4  ;;  %v4226_v31 = vpack.c.bf16 %v3415_v43, %v3415_v43  ;;  %2524 = vst.msk [vmem:[#allocation3 + $0xe8] sm:$0xff] %vm1626_vm11, %v2492_v52  ;;  %v2674_v27 = vmax.f32 %v2672_v22, %v2673_v19 }
 0x2aa   : > { %v3788_v23 = vunpack.c.l.b16 %v4225_v56  ;;  %v3851_v26 = vsel %vm3805_vm0, %v3787_v15, %v3850_v13 }
 0x2ab   : > { %v4227_v28 = vpack.c.bf16 %v3422_v17, %v3422_v17  ;;  %v3789_v29 = vunpack.c.l.b16 %v4226_v31  ;;  %v2932_v40 = vcombine.high %v2674_v27, %v2674_v27  ;;  %v2939_v47 = vrot.slane %v2674_v27, %v5230_v59 }
 0x2ac   : > { %v3852_v1 = vsel %vm3807_vm1, %v3788_v23, %v3851_v26 }
 0x2ad   : > { %v3790_v11 = vunpack.c.l.b16 %v4227_v28  ;;  %v3853_v2 = vsel %vm3809_vm2, %v3789_v29, %v3852_v1  ;;  %v2946_v33 = vrot.slane %v2932_v40, %v5230_v59  ;;  %v2947_v30 = vcombine.high %v2939_v47, %v2939_v47 }
 0x2ae   : > { %v3423_v34 = vsel %vm3030_vm12, %v2939_v47, -inf  ;;  %v2558_v37 = vld [vmem:[#allocation3 + $0xf8] sm:$0xff] }
 0x2af   : > { %v3854_v36 = vsel %vm3811_vm3, %v3790_v11, %v3853_v2  ;;  %v3424_v35 = vrot.slane %v3423_v34, 4  ;;  %v2948_v39 = vcombine.high %v2946_v33, %v2946_v33  ;;  %v3430_v38 = vsel %vm3030_vm12, %v2947_v30, -inf }
 0x2b0   : > { %v3868_v14 = vpack.c.b16 %v3854_v36, %v3854_v36  ;;  %v3437_v45 = vsel %vm3030_vm12, %v2946_v33, -inf  ;;  %v2556_v62 = vld [vmem:[#allocation3 + $0xe8] sm:$0xff]  ;;  %v3431_v51 = vrot.slane %v3430_v38, 4  ;;  %v2597_v55 = vadd.f32 %v5490_v7, %v2558_v37 }
 0x2b1   : > { %v3425_v49 = vmax.f32 %v3423_v34, %v3424_v35  ;;  %v3438_v63 = vrot.slane %v3437_v45, 4  ;;  %v3444_v57 = vsel %vm3030_vm12, %v2948_v39, -inf  ;;  %v2595_v53 = vadd.f32 %v5490_v7, %v2556_v62 }
 0x2b2   : > { %3885 = vst.msk [vmem:[%s5304_s12 + $0x18] sm:$0xf] %vm3878_vm4, %v3868_v14  ;;  %v3432_v50 = vmax.f32 %v3430_v38, %v3431_v51  ;;  %v3445_v60 = vrot.slane %v3444_v57, 4  ;;  %v2629_v46 = vmax.f32 %v2597_v55, 0.0 }
 0x2b3   : > { %v3426_v16 = vrot.slane %v3425_v49, 2  ;;  %v3439_v58 = vmax.f32 %v3437_v45, %v3438_v63  ;;  %v2627_v61 = vmax.f32 %v2595_v53, 0.0 }
 0x2b4   : > { %v3433_v41 = vrot.slane %v3432_v50, 2  ;;  %v3446_v24 = vmax.f32 %v3444_v57, %v3445_v60  ;;  %v2676_v18 = vsel %vm1626_vm11, %v2629_v46, -inf }
 0x2b5   : > { %v3427_v32 = vmax.f32 %v3425_v49, %v3426_v16  ;;  %v3440_v8 = vrot.slane %v3439_v58, 2  ;;  %v2675_v54 = vsel %vm1626_vm11, %v2627_v61, -inf }
 0x2b6   : > { %v3434_v48 = vmax.f32 %v3432_v50, %v3433_v41  ;;  %v3447_v44 = vrot.slane %v3446_v24, 2  ;;  %v2677_v0 = vmax.f32 %v2675_v54, %v2676_v18 }
 0x2b7   : > { %v3428_v5 = vrot.slane %v3427_v32, 1  ;;  %v3441_v6 = vmax.f32 %v3439_v58, %v3440_v8 }
 0x2b8   : > { %v3435_v7 = vrot.slane %v3434_v48, 1  ;;  %v3448_v20 = vmax.f32 %v3446_v24, %v3447_v44  ;;  %v2949_v10 = vcombine.high %v2677_v0, %v2677_v0  ;;  %v2956_v42 = vrot.slane %v2677_v0, %v5230_v59 }
 0x2b9   : > { %v3442_v9 = vrot.slane %v3441_v6, 1  ;;  %v3429_v12 = vmax.f32 %v3427_v32, %v3428_v5 }
 0x2ba   : > { %v3436_v13 = vmax.f32 %v3434_v48, %v3435_v7  ;;  %v3449_v3 = vrot.slane %v3448_v20, 1  ;;  %v2963_v43 = vrot.slane %v2949_v10, %v5230_v59  ;;  %v2964_v4 = vcombine.high %v2956_v42, %v2956_v42 }
 0x2bb   : > { %v3443_v21 = vmax.f32 %v3441_v6, %v3442_v9  ;;  %v3451_v25 = vsel %vm3030_vm12, %v2956_v42, -inf  ;;  %v4228_v22 = vpack.c.bf16 %v3429_v12, %v3429_v12 }
 0x2bc   : > { %v4229_v52 = vpack.c.bf16 %v3436_v13, %v3436_v13  ;;  %v2965_v56 = vcombine.high %v2963_v43, %v2963_v43  ;;  %v3452_v15 = vrot.slane %v3451_v25, 4  ;;  %v3458_v17 = vsel %vm3030_vm12, %v2964_v4, -inf }
 0x2bd   : > { %v3465_v31 = vsel %vm3030_vm12, %v2963_v43, -inf  ;;  %v3450_v19 = vmax.f32 %v3448_v20, %v3449_v3  ;;  %v3459_v23 = vrot.slane %v3458_v17, 4  ;;  %v4230_v26 = vpack.c.bf16 %v3443_v21, %v3443_v21 }
 0x2be   : > { %v3453_v27 = vmax.f32 %v3451_v25, %v3452_v15  ;;  %v3466_v28 = vrot.slane %v3465_v31, 4  ;;  %v3472_v29 = vsel %vm3030_vm12, %v2965_v56, -inf  ;;  %v3792_v1 = vunpack.c.l.b16 %v4229_v52 }
 0x2bf   : > { %v3460_v59 = vmax.f32 %v3458_v17, %v3459_v23  ;;  %v3473_v40 = vrot.slane %v3472_v29, 4  ;;  %v4231_v2 = vpack.c.bf16 %v3450_v19, %v3450_v19  ;;  %v3791_v33 = vunpack.c.l.b16 %v4228_v22 }
 0x2c0   : > { %v3454_v47 = vrot.slane %v3453_v27, 2  ;;  %v3467_v11 = vmax.f32 %v3465_v31, %v3466_v28  ;;  %v3793_v36 = vunpack.c.l.b16 %v4230_v26 }
 0x2c1   : > { %v3461_v30 = vrot.slane %v3460_v59, 2  ;;  %v3474_v34 = vmax.f32 %v3472_v29, %v3473_v40  ;;  %v3855_v14 = vsel %vm3799_vm13, %v3792_v1, %v3791_v33  ;;  %v3794_v49 = vunpack.c.l.b16 %v4231_v2 }
 0x2c2   : > { %v3455_v35 = vmax.f32 %v3453_v27, %v3454_v47  ;;  %v3468_v37 = vrot.slane %v3467_v11, 2  ;;  %v3856_v55 = vsel %vm3801_vm14, %v3793_v36, %v3855_v14 }
 0x2c3   : > { %v3462_v39 = vmax.f32 %v3460_v59, %v3461_v30  ;;  %v3475_v38 = vrot.slane %v3474_v34, 2  ;;  %v3857_v32 = vsel %vm3803_vm15, %v3794_v49, %v3856_v55 }
 0x2c4   : > { %v3456_v45 = vrot.slane %v3455_v35, 1  ;;  %v3469_v62 = vmax.f32 %v3467_v11, %v3468_v37 }
 0x2c5   : > { %v3463_v51 = vrot.slane %v3462_v39, 1  ;;  %v3476_v63 = vmax.f32 %v3474_v34, %v3475_v38 }
 0x2c6   : > { %v3457_v57 = vmax.f32 %v3455_v35, %v3456_v45  ;;  %v3470_v53 = vrot.slane %v3469_v62, 1 }
 0x2c7   : > { %v3464_v16 = vmax.f32 %v3462_v39, %v3463_v51  ;;  %v3477_v50 = vrot.slane %v3476_v63, 1 }
 0x2c8   : > { %v3471_v58 = vmax.f32 %v3469_v62, %v3470_v53  ;;  %v4232_v60 = vpack.c.bf16 %v3457_v57, %v3457_v57 }
 0x2c9   : > { %v3478_v46 = vmax.f32 %v3476_v63, %v3477_v50  ;;  %v4233_v61 = vpack.c.bf16 %v3464_v16, %v3464_v16 }
 0x2ca   : > { %v4234_v41 = vpack.c.bf16 %v3471_v58, %v3471_v58  ;;  %v3795_v8 = vunpack.c.l.b16 %v4232_v60 }
 0x2cb   : > { %v4235_v24 = vpack.c.bf16 %v3478_v46, %v3478_v46  ;;  %v3796_v18 = vunpack.c.l.b16 %v4233_v61 }
 0x2cc   : > { %v3797_v54 = vunpack.c.l.b16 %v4234_v41  ;;  %v3858_v5 = vsel %vm3805_vm0, %v3795_v8, %v3857_v32 }
 0x2cd   : > { %v3798_v48 = vunpack.c.l.b16 %v4235_v24  ;;  %v3859_v6 = vsel %vm3807_vm1, %v3796_v18, %v3858_v5 }
 0x2ce   : > { %v3860_v44 = vsel %vm3809_vm2, %v3797_v54, %v3859_v6 }
 0x2cf   : > { %v3861_v0 = vsel %vm3811_vm3, %v3798_v48, %v3860_v44 }
 0x2d0   : > { %v3869_v7 = vpack.c.b16 %v3861_v0, %v3861_v0 }
 0x2d2   : > { %3886 = vst.msk [vmem:[%s5304_s12 + $0x1c] sm:$0xf] %vm3878_vm4, %v3869_v7 }
 0x2d3 PF: > { %s13_s14 = sadd.s32 1, %s4511_s14   ;;  %s5634_s12 = smov %s4507_s13 }
 0x2d4   : > { %p10_p5 = scmp.ge.s32.totalorder %s13_s14, 4   ;;  %s5635_s13 = smov %s5637_s15 }
 0x2d6   :  { %12 = sbr.rel (!%p10_p5) target bundleno = 2 (0x2), region = 67 }

// kernel: residual_net_forward.11
= control target key start
LH: loop header
LB: loop body
LE: loop exit
PB: predicated region body
PF: predicated region fallthrough
CT: control target
= control target key end

     0   :  { %s2539_s12 = smov 0   ;;  %s2541_s13 = smov 0   ;;  %s3062_s0 = inlined_call_operand.vmem [shape: bf16[2,10,10,128], index: 0, kind: input, shape index: {}]   ;;  %s3063_s1 = inlined_call_operand.vmem [shape: bf16[3,384,128], index: 1, kind: input, shape index: {}]   ;;  %s3064_s2 = inlined_call_operand.vmem [shape: f32[1,128], index: 2, kind: input, shape index: {}]   ;;  %s3065_s3 = inlined_call_operand.vmem [shape: bf16[2,8,8,128], index: 3, kind: output, shape index: {}]  }
   0x1   :  { %s2543_s14 = smov 0  }
   0x2 LB: > { %s25_s15 = sadd.s32 1, %s2513_s13  ;;  %p1905_p0 = scmp.ge.s32.totalorder %s2517_s14, 1  ;;  %s2517_s14 = sphi %s2543_s14, %s13_s14   ;;  %s2513_s13 = sphi %s2541_s13, %s3071_s13   ;;  %s2509_s12 = sphi %s2539_s12, %s3070_s12  }
   0x3   : > { %p27_p1 = scmp.ge.s32.totalorder %s25_s15, 2  ;;  %p151_p2 = scmp.lt.s32.totalorder %s2517_s14, 3 }
   0x5   : > { %s3073_s15 = smov (%p27_p1, %s25_s15), 0  ;;  %p152_p3 = pnand %p1905_p0, %p151_p2 }
   0x6   : > { %p179_p4 = scmp.lt.s32.totalorder (!%p152_p3), %s2509_s12, 1 }
   0x7   : > { %155 = sbr.rel (%p152_p3) target bundleno = 356 (0x164), region = 32 }
   0xc   : > { %v2403_v0 = vld [vmem:[%s3063_s1 + $0x78] sm:$0xff]   ;;  %v2406_v3 = vld [vmem:[%s3063_s1 + $0x70] sm:$0xff]   ;;  %v2409_v6 = vld [vmem:[%s3063_s1 + $0x68] sm:$0xff]   ;;  %s3075_s12 = smov (!%p179_p4, %s2509_s12), 1  ;;  %vm442_vm0 = vcmask 1042432   ;;  %vm443_vm1 = vcmask 1046532  }
   0xd   : > { %v2404_v1 = vld [vmem:[%s3063_s1 + $0x38] sm:$0xff]   ;;  %2150 = vmatprep.subr.bf16.mxu0 %v2403_v0  ;;  %v2407_v4 = vld [vmem:[%s3063_s1 + $0x30] sm:$0xff]   ;;  %v2410_v7 = vld [vmem:[%s3063_s1 + $0x28] sm:$0xff]   ;;  %s2378_s25 = smul.u32 80, %s3075_s12  ;;  %vm239_vm2 = vsmask.f32 3328 }
   0xe   : > { %v2405_v2 = vld [vmem:[%s3063_s1 + $0xb8] sm:$0xff]   ;;  %2151 = vmatpush3.bf16.msra.mxu0 %v2404_v1  ;;  %v2408_v5 = vld [vmem:[%s3063_s1 + $0xb0] sm:$0xff]   ;;  %v2411_v8 = vld [vmem:[%s3063_s1 + $0xa8] sm:$0xff]   ;;  %vm240_vm3 = vsmask.f32 7440  ;;  %s2126_s4 = sshll.u32 %s3075_s12, 5 }
   0xf   : > { %2306 = vmatprep.subr.bf16.mxu1 %v2405_v2  ;;  %2152 = vmatprep.subr.bf16.mxu0 %v2406_v3  ;;  %v2412_v9 = vld [vmem:[%s3063_s1 + $0x60] sm:$0xff]   ;;  %v2415_v12 = vld [vmem:[%s3063_s1 + $0x58] sm:$0xff]   ;;  %v2418_v15 = vld [vmem:[%s3063_s1 + $0x50] sm:$0xff]   ;;  %s2627_s9 = scalar_lea.vmem %s3062_s0, %s2378_s25  ;;  %s3023_s7 = scalar_lea.vmem %s3065_s3, %s2126_s4 }
  0x10   : > { %2307 = vmatpush3.bf16.msra.mxu1 %v2405_v2  ;;  %v2413_v10 = vld [vmem:[%s3063_s1 + $0x20] sm:$0xff]   ;;  %v2417_v13 = vld [vmem:[%s3063_s1 + $0x98] sm:$0xff]   ;;  %v2420_v16 = vld [vmem:[%s3063_s1 + $0x90] sm:$0xff]  }
  0x11   : > { %2308 = vmatprep.subr.bf16.mxu1 %v2408_v5  ;;  %v2414_v11 = vld [vmem:[%s3063_s1 + $0xa0] sm:$0xff]   ;;  %v2416_v14 = vld [vmem:[%s3063_s1 + $0x18] sm:$0xff]   ;;  %v2419_v17 = vld [vmem:[%s3063_s1 + $0x10] sm:$0xff]  }
  0x12   : > { %2153 = vmatpush3.bf16.msra.mxu0 %v2407_v4  ;;  %v2421_v18 = vld [vmem:[%s3063_s1 + $0x48] sm:$0xff]   ;;  %v2424_v21 = vld [vmem:[%s3063_s1 + $0x40] sm:$0xff]   ;;  %v2429_v38 = vld [vmem:[%s3063_s1 + $0x138] sm:$0xff]  }
  0x13   : > { %2154 = vmatprep.subr.bf16.mxu0 %v2409_v6  ;;  %v2422_v19 = vld [vmem:[%s3063_s1 + $0x8] sm:$0xff]   ;;  %v2426_v22 = vld [vmem:[%s3063_s1 + $0x80] sm:$0xff]   ;;  %vm2653_vm4 = vmor %vm442_vm0, %vm443_vm1 }
  0x14   : > { %2309 = vmatpush3.bf16.msra.mxu1 %v2408_v5  ;;  %v2423_v20 = vld [vmem:[%s3063_s1 + $0x88] sm:$0xff]   ;;  %v199_v23 = vld [vmem:[%s2627_s9] sm:$0xf]  ;;  %v220_v27 = vld [vmem:[%s2627_s9 + $0x4] sm:$0x1] }
  0x15   : > { %2310 = vmatprep.subr.bf16.mxu1 %v2411_v8  ;;  %v200_v24 = vld [vmem:[%s2627_s9 + $0x8] sm:$0xf]  ;;  %v219_v25 = vld [vmem:[%s2627_s9] sm:$0xf]  ;;  %209 = vst [vmem:[#allocation2] sm:$0xf] %v199_v23  ;;  %vm2662_vm5 = vmor %vm239_vm2, %vm240_vm3 }
  0x16   : > { %2155 = vmatpush3.bf16.msra.mxu0 %v2410_v7  ;;  %v2425_v26 = vld [vmem:[%s3063_s1] sm:$0xff]   ;;  %210 = vst [vmem:[#allocation2 + $0xc] sm:$0xf] %v200_v24  ;;  %v221_v28 = vld [vmem:[%s2627_s9 + $0x8] sm:$0xf]  ;;  %v243_v30 = vshrl.u32 %v219_v25, 16 }
  0x17   : > { %2156 = vmatprep.subr.bf16.mxu0 %v2412_v9  ;;  %v222_v29 = vld [vmem:[%s2627_s9 + $0xc] sm:$0x1]  ;;  %v246_v31 = vshll.u32 %v219_v25, 16  ;;  %v252_v32 = vshll.u32 %v220_v27, 16  ;;  %v257_v33 = vshrl.u32 %v221_v28, 16  ;;  %v260_v34 = vshll.u32 %v221_v28, 16 }
  0x18   : > { %2311 = vmatpush3.bf16.msra.mxu1 %v2411_v8  ;;  %v266_v35 = vshll.u32 %v222_v29, 16  ;;  %v245_v36 = vrot.slane %v243_v30, 4  ;;  %v402_v43 = vld [vmem:[%s2627_s9] sm:$0xe]  ;;  %v403_v46 = vld [vmem:[%s2627_s9 + $0x4] sm:$0x1] }
  0x19   : > { %2312 = vmatprep.subr.bf16.mxu1 %v2414_v11  ;;  %v248_v37 = vrot.slane %v246_v31, 5  ;;  %v254_v39 = vrot.slane %v252_v32, 5  ;;  %v259_v40 = vrot.slane %v257_v33, 4  ;;  %v262_v41 = vrot.slane %v260_v34, 5  ;;  %v404_v47 = vld [vmem:[%s2627_s9 + $0x8] sm:$0xe] }
  0x1a   : > { %2157 = vmatpush3.bf16.msra.mxu0 %v2413_v10  ;;  %v268_v42 = vrot.slane %v266_v35, 5  ;;  %v405_v48 = vld [vmem:[%s2627_s9 + $0xc] sm:$0x1]  ;;  %v1909_v51 = vrot.slane %v402_v43, 9  ;;  %v447_v52 = vrot.slane %v403_v46, 5  ;;  %v1910_v53 = vrot.slane %v404_v47, 9 }
  0x1b   : > { %2158 = vmatprep.subr.bf16.mxu0 %v2415_v12  ;;  %v249_v45 = vor.u32 %v248_v37, %v245_v36  ;;  %v263_v50 = vor.u32 %v262_v41, %v259_v40  ;;  %v2669_v54 = vld [vmem:[%s3063_s1 + $0x178] sm:$0xff]   ;;  %v451_v56 = vrot.slane %v405_v48, 5  ;;  %v406_v57 = vld [vmem:[%s2627_s9 + $0x10] sm:$0xe]  ;;  %v407_v60 = vld [vmem:[%s2627_s9 + $0x14] sm:$0x1] }
  0x1c   : > { %2313 = vmatpush3.bf16.msra.mxu1 %v2414_v11  ;;  %v448_v59 = vsel %vm2653_vm4, %v1909_v51, %v447_v52  ;;  %v408_v61 = vld [vmem:[%s2627_s9 + $0x18] sm:$0xe]  ;;  %v1911_v62 = vrot.slane %v406_v57, 9  ;;  %v409_v1 = vld [vmem:[%s2627_s9 + $0x1c] sm:$0x1]  ;;  %v455_v2 = vrot.slane %v407_v60, 5 }
  0x1d   : > { %2314 = vmatprep.subr.bf16.mxu1 %v2417_v13  ;;  %v250_v55 = vrot.slane %v249_v45, 4  ;;  %v264_v58 = vrot.slane %v263_v50, 4  ;;  %v452_v0 = vsel %vm2653_vm4, %v1910_v53, %v451_v56  ;;  %495 = vst [vmem:[#allocation2 + $0x8] sm:$0xf] %v448_v59  ;;  %v1912_v3 = vrot.slane %v408_v61, 9  ;;  %v2434_v25 = vld [vmem:[%s3063_s1 + $0x130] sm:$0xff]  }
  0x1e   : > { %2159 = vmatpush3.bf16.msra.mxu0 %v2416_v14  ;;  %496 = vst [vmem:[#allocation2 + $0x14] sm:$0xf] %v452_v0  ;;  %v459_v5 = vrot.slane %v409_v1, 5  ;;  %v456_v6 = vsel %vm2653_vm4, %v1911_v62, %v455_v2  ;;  %v201_v8 = vld [vmem:[%s2627_s9 + $0x10] sm:$0xf]  ;;  %v2439_v40 = vld [vmem:[%s3063_s1 + $0x128] sm:$0xff]  }
  0x1f   : > { %2160 = vmatprep.subr.bf16.mxu0 %v2418_v15  ;;  %v255_v63 = vsel %vm2662_vm5, %v250_v55, %v254_v39  ;;  %v269_v4 = vsel %vm2662_vm5, %v264_v58, %v268_v42  ;;  %497 = vst [vmem:[#allocation2 + $0x20] sm:$0xf] %v456_v6  ;;  %v202_v9 = vld [vmem:[%s2627_s9 + $0x18] sm:$0xf]  ;;  %211 = vst [vmem:[#allocation2 + $0x18] sm:$0xf] %v201_v8 }
  0x20   : > { %2315 = vmatpush3.bf16.msra.mxu1 %v2417_v13  ;;  %392 = vst [vmem:[#allocation2 + $0x4] sm:$0xf] %v255_v63  ;;  %393 = vst [vmem:[#allocation2 + $0x10] sm:$0xf] %v269_v4  ;;  %v460_v7 = vsel %vm2653_vm4, %v1912_v3, %v459_v5  ;;  %v223_v10 = vld [vmem:[%s2627_s9 + $0x10] sm:$0xf] }
  0x21   : > { %2316 = vmatprep.subr.bf16.mxu1 %v2420_v16  ;;  %498 = vst [vmem:[#allocation2 + $0x2c] sm:$0xf] %v460_v7  ;;  %212 = vst [vmem:[#allocation2 + $0x24] sm:$0xf] %v202_v9  ;;  %v224_v11 = vld [vmem:[%s2627_s9 + $0x14] sm:$0x1] }
  0x22   : > { %2161 = vmatpush3.bf16.msra.mxu0 %v2419_v17  ;;  %v225_v12 = vld [vmem:[%s2627_s9 + $0x18] sm:$0xf]  ;;  %v226_v13 = vld [vmem:[%s2627_s9 + $0x1c] sm:$0x1]  ;;  %v271_v14 = vshrl.u32 %v223_v10, 16  ;;  %v274_v15 = vshll.u32 %v223_v10, 16 }
  0x23   : > { %2162 = vmatprep.subr.bf16.mxu0 %v2421_v18  ;;  %v285_v17 = vshrl.u32 %v225_v12, 16  ;;  %v288_v18 = vshll.u32 %v225_v12, 16  ;;  %v2435_v37 = vld [vmem:[%s3063_s1 + $0xf0] sm:$0xff]   ;;  %v2441_v43 = vld [vmem:[%s3063_s1 + $0x168] sm:$0xff]   ;;  %v203_v46 = vld [vmem:[%s2627_s9 + $0x20] sm:$0xf] }
  0x24   : > { %2317 = vmatpush3.bf16.msra.mxu1 %v2420_v16  ;;  %v280_v16 = vshll.u32 %v224_v11, 16  ;;  %v273_v23 = vrot.slane %v271_v14, 4  ;;  %v276_v27 = vrot.slane %v274_v15, 5  ;;  %v2440_v45 = vld [vmem:[%s3063_s1 + $0xe8] sm:$0xff]   ;;  %v2442_v48 = vld [vmem:[%s3063_s1 + $0x120] sm:$0xff]   ;;  %v2447_v7 = vld [vmem:[%s3063_s1 + $0x118] sm:$0xff]  }
  0x25   : > { %2318 = vmatprep.subr.bf16.mxu1 %v2423_v20  ;;  %v287_v28 = vrot.slane %v285_v17, 4  ;;  %v290_v29 = vrot.slane %v288_v18, 5  ;;  %v204_v47 = vld [vmem:[%s2627_s9 + $0x28] sm:$0xf]  ;;  %v2732_v50 = vld [vmem:[%s3063_s1 + $0x160] sm:$0xff]  }
  0x26   : > { %2163 = vmatpush3.bf16.msra.mxu0 %v2422_v19  ;;  %v294_v19 = vshll.u32 %v226_v13, 16  ;;  %v282_v32 = vrot.slane %v280_v16, 5  ;;  %v277_v35 = vor.u32 %v276_v27, %v273_v23  ;;  %213 = vst [vmem:[#allocation2 + $0x30] sm:$0xf] %v203_v46  ;;  %214 = vst [vmem:[#allocation2 + $0x3c] sm:$0xf] %v204_v47 }
  0x27   : > { %2164 = vmatprep.subr.bf16.mxu0 %v2424_v21  ;;  %v2430_v21 = vld [vmem:[#allocation2 + $0x8] ss:$12 sps:$4 sm:$0xff]   ;;  %v2697_v24 = vld [vmem:[#allocation2 + $0xc] sm:$0xff]  ;;  %v291_v36 = vor.u32 %v290_v29, %v287_v28  ;;  %v227_v51 = vld [vmem:[%s2627_s9 + $0x20] sm:$0xf] }
  0x28   : > { %2319 = vmatpush3.bf16.msra.mxu1 %v2423_v20  ;;  %v505_v20 = vld [vmem:[#allocation2] sm:$0xff]  ;;  %2322 = vmatprep.mubr.bf16.mxu1 %v2430_v21  ;;  %v296_v33 = vrot.slane %v294_v19, 5  ;;  %v229_v53 = vld [vmem:[%s2627_s9 + $0x28] sm:$0xf]  ;;  %v299_v55 = vshrl.u32 %v227_v51, 16  ;;  %v302_v56 = vshll.u32 %v227_v51, 16 }
  0x29   : > { %2320 = vmatprep.subr.bf16.mxu1 %v2426_v22  ;;  %v1919_v30 = vcombine.low %v505_v20, %v2697_v24  ;;  %v1920_v31 = vcombine.high %v505_v20, %v2697_v24  ;;  %v2432_v34 = vld [vmem:[#allocation2 + $0x20] ss:$12 sps:$4 sm:$0xff]   ;;  %v292_v39 = vrot.slane %v291_v36, 4  ;;  %v228_v52 = vld [vmem:[%s2627_s9 + $0x24] sm:$0x1]  ;;  %v313_v58 = vshrl.u32 %v229_v53, 16 }
  0x2a   : > { %2165 = vmatpush3.bf16.msra.mxu0 %v2425_v26  ;;  %v2436_v26 = vld [vmem:[%s3063_s1 + $0x170] sm:$0xff]   ;;  %v308_v57 = vshll.u32 %v228_v52, 16  ;;  %v316_v59 = vshll.u32 %v229_v53, 16  ;;  %v2443_v61 = vld [vmem:[%s3063_s1 + $0xe0] sm:$0xff]   ;;  %v301_v62 = vrot.slane %v299_v55, 4  ;;  %v304_v63 = vrot.slane %v302_v56, 5 }
  0x2b   : > { %2202 = vmatprep.subr.bf16.mxu0 %v2429_v38  ;;  %809 = vmatprep.mubr.bf16.mxu0 %v1920_v31  ;;  %v278_v38 = vrot.slane %v277_v35, 4  ;;  %v297_v42 = vsel %vm2662_vm5, %v292_v39, %v296_v33  ;;  %v315_v1 = vrot.slane %v313_v58, 4  ;;  %v410_v4 = vld [vmem:[%s2627_s9 + $0x20] sm:$0xe]  ;;  %v411_v5 = vld [vmem:[%s2627_s9 + $0x24] sm:$0x1] }
  0x2c   : > { %2321 = vmatpush3.bf16.msra.mxu1 %v2426_v22  ;;  %v2431_v22 = vld [vmem:[%s3063_s1 + $0xf8] sm:$0xff]   ;;  %395 = vst [vmem:[#allocation2 + $0x28] sm:$0xf] %v297_v42  ;;  %v310_v0 = vrot.slane %v308_v57, 5  ;;  %v318_v2 = vrot.slane %v316_v59, 5  ;;  %v305_v6 = vor.u32 %v304_v63, %v301_v62  ;;  %v1913_v10 = vrot.slane %v410_v4, 9 }
  0x2d   : > { %2330 = vmatprep.subr.bf16.mxu1 %v2669_v54  ;;  %810 = vmatmul.mubr.bf16.vlgmr.msra.gmra.mxu0 %v1919_v30  ;;  %v283_v41 = vsel %vm2662_vm5, %v278_v38, %v282_v32  ;;  %v412_v8 = vld [vmem:[%s2627_s9 + $0x28] sm:$0xe]  ;;  %v413_v9 = vld [vmem:[%s2627_s9 + $0x2c] sm:$0x1]  ;;  %v463_v11 = vrot.slane %v411_v5, 5  ;;  %v2449_v21 = vld [vmem:[%s3063_s1 + $0xd8] sm:$0xff]  }
  0x2e   : > { %2203 = vmatpush3.bf16.msra.mxu0 %v2431_v22  ;;  %394 = vst [vmem:[#allocation2 + $0x1c] sm:$0xf] %v283_v41  ;;  %v319_v14 = vor.u32 %v318_v2, %v315_v1  ;;  %v1914_v15 = vrot.slane %v412_v8, 9  ;;  %v467_v16 = vrot.slane %v413_v9, 5  ;;  %v306_v19 = vrot.slane %v305_v6, 4  ;;  %v2451_v23 = vld [vmem:[%s3063_s1 + $0x158] sm:$0xff]  }
  0x2f   : > { %2323 = vmatmul.mubr.bf16.vlgmr.msra.gmra.mxu1 %v2432_v34  ;;  %2204 = vmatprep.subr.bf16.mxu0 %v2434_v25  ;;  %v464_v20 = vsel %vm2653_vm4, %v1913_v10, %v463_v11  ;;  %v414_v22 = vld [vmem:[%s2627_s9 + $0x30] sm:$0xe]  ;;  %v415_v27 = vld [vmem:[%s2627_s9 + $0x34] sm:$0x1]  ;;  %v416_v28 = vld [vmem:[%s2627_s9 + $0x38] sm:$0xe] }
  0x30   : > { %2331 = vmatpush3.bf16.msra.mxu1 %v2669_v54  ;;  %v230_v54 = vld [vmem:[%s2627_s9 + $0x2c] sm:$0x1]  ;;  %v320_v25 = vrot.slane %v319_v14, 4  ;;  %499 = vst [vmem:[#allocation2 + $0x38] sm:$0xf] %v464_v20  ;;  %v1915_v29 = vrot.slane %v414_v22, 9  ;;  %v311_v30 = vsel %vm2662_vm5, %v306_v19, %v310_v0 }
  0x31   : > { %2332 = vmatprep.subr.bf16.mxu1 %v2436_v26  ;;  %v322_v60 = vshll.u32 %v230_v54, 16  ;;  %v417_v31 = vld [vmem:[%s2627_s9 + $0x3c] sm:$0x1]  ;;  %v471_v32 = vrot.slane %v415_v27, 5  ;;  %v1916_v33 = vrot.slane %v416_v28, 9  ;;  %v2452_v36 = vld [vmem:[%s3063_s1 + $0x110] sm:$0xff]  }
  0x32   : > { %2205 = vmatpush3.bf16.msra.mxu0 %v2435_v37  ;;  %396 = vst [vmem:[#allocation2 + $0x34] sm:$0xf] %v311_v30  ;;  %v475_v35 = vrot.slane %v417_v31, 5  ;;  %v2453_v39 = vld [vmem:[%s3063_s1 + $0xd0] sm:$0xff]   ;;  %v206_v42 = vld [vmem:[%s2627_s9 + $0x38] sm:$0xf] }
  0x33   : > { %2206 = vmatprep.subr.bf16.mxu0 %v2439_v40  ;;  %v324_v3 = vrot.slane %v322_v60, 5  ;;  %v2750_v13 = vld [vmem:[#allocation2 + $0x24] sm:$0xff]  ;;  %v472_v37 = vsel %vm2653_vm4, %v1915_v29, %v471_v32  ;;  %v2454_v40 = vld [vmem:[%s3063_s1 + $0x150] sm:$0xff]   ;;  %216 = vst [vmem:[#allocation2 + $0x54] sm:$0xf] %v206_v42  ;;  %v2463_v19 = vld [vmem:[%s3063_s1 + $0x1f8] sm:$0xff]  }
  0x34   : > { %2333 = vmatpush3.bf16.msra.mxu1 %v2436_v26  ;;  %v468_v26 = vsel %vm2653_vm4, %v1914_v15, %v467_v16  ;;  %v476_v38 = vsel %vm2653_vm4, %v1916_v33, %v475_v35  ;;  %501 = vst [vmem:[#allocation2 + $0x50] sm:$0xf] %v472_v37  ;;  %v205_v41 = vld [vmem:[%s2627_s9 + $0x30] sm:$0xf]  ;;  %v233_v46 = vld [vmem:[%s2627_s9 + $0x38] sm:$0xf] }
  0x35   : > { %2334 = vmatprep.subr.bf16.mxu1 %v2441_v43  ;;  %v2748_v12 = vld [vmem:[#allocation2 + $0x18] sm:$0xff]  ;;  %500 = vst [vmem:[#allocation2 + $0x44] sm:$0xf] %v468_v26  ;;  %v325_v34 = vsel %vm2662_vm5, %v320_v25, %v324_v3  ;;  %502 = vst [vmem:[#allocation2 + $0x5c] sm:$0xf] %v476_v38  ;;  %v341_v53 = vshrl.u32 %v233_v46, 16 }
  0x36   : > { %2207 = vmatpush3.bf16.msra.mxu0 %v2440_v45  ;;  %v2755_v17 = vcombine.high %v2748_v12, %v2750_v13  ;;  %v2759_v18 = vcombine.low %v2748_v12, %v2750_v13  ;;  %397 = vst [vmem:[#allocation2 + $0x40] sm:$0xf] %v325_v34  ;;  %215 = vst [vmem:[#allocation2 + $0x48] sm:$0xf] %v205_v41  ;;  %v232_v45 = vld [vmem:[%s2627_s9 + $0x34] sm:$0x1]  ;;  %v2004_v29 = vcombine.high %v2697_v24, %v2748_v12 }
  0x37   : > { %2208 = vmatprep.subr.bf16.mxu0 %v2442_v48  ;;  %v234_v47 = vld [vmem:[%s2627_s9 + $0x3c] sm:$0x1]  ;;  %v336_v52 = vshll.u32 %v232_v45, 16  ;;  %v344_v57 = vshll.u32 %v233_v46, 16  ;;  %v2457_v59 = vld [vmem:[%s3063_s1 + $0x108] sm:$0xff]   ;;  %v343_v62 = vrot.slane %v341_v53, 4  ;;  %v2003_v33 = vcombine.low %v2697_v24, %v2748_v12 }
  0x38   : > { %2335 = vmatpush3.bf16.msra.mxu1 %v2441_v43  ;;  %817 = vmatprep.mubr.bf16.mxu0 %v2755_v17  ;;  %v231_v43 = vld [vmem:[%s2627_s9 + $0x30] sm:$0xf]  ;;  %v350_v58 = vshll.u32 %v234_v47, 16  ;;  %v2458_v63 = vld [vmem:[%s3063_s1 + $0xc8] sm:$0xff]   ;;  %v2461_v10 = vld [vmem:[%s3063_s1 + $0xc0] sm:$0xff]  }
  0x39   : > { %2336 = vmatprep.subr.bf16.mxu1 %v2732_v50  ;;  %818 = vmatmul.mubr.bf16.gmra.mxu0 %v2759_v18  ;;  %v327_v48 = vshrl.u32 %v231_v43, 16  ;;  %v2801_v54 = vld [vmem:[#allocation2 + $0x30] sm:$0xff]  ;;  %v346_v3 = vrot.slane %v344_v57, 5  ;;  %v2459_v4 = vld [vmem:[%s3063_s1 + $0x148] sm:$0xff]   ;;  %v2462_v15 = vld [vmem:[%s3063_s1 + $0x140] sm:$0xff]  }
  0x3a   : > { %2209 = vmatpush3.bf16.msra.mxu0 %v2443_v61  ;;  %v338_v61 = vrot.slane %v336_v52, 5  ;;  %v352_v6 = vrot.slane %v350_v58, 5  ;;  %v2464_v20 = vld [vmem:[#allocation2 + $0x14] ss:$12 sps:$4 sm:$0xff]   ;;  %v2467_v22 = vld [vmem:[%s3063_s1 + $0x238] sm:$0xff]   ;;  %v2473_v30 = vld [vmem:[%s3063_s1 + $0x228] sm:$0xff]  }
  0x3b   : > { %2210 = vmatprep.subr.bf16.mxu0 %v2447_v7  ;;  %v329_v55 = vrot.slane %v327_v48, 4  ;;  %v2460_v7 = vld [vmem:[%s3063_s1 + $0x100] sm:$0xff]   ;;  %v347_v9 = vor.u32 %v346_v3, %v343_v62  ;;  %v2470_v26 = vld [vmem:[%s3063_s1 + $0x230] sm:$0xff]   ;;  %v2465_v32 = vld [vmem:[%s3063_s1 + $0x1b8] sm:$0xff]   ;;  %v2006_v48 = vcombine.low %v2750_v13, %v2801_v54 }
  0x3c   : > { %2337 = vmatpush3.bf16.msra.mxu1 %v2732_v50  ;;  %v330_v50 = vshll.u32 %v231_v43, 16  ;;  %v2448_v51 = vld [vmem:[#allocation2 + $0x38] ss:$12 sps:$4 sm:$0xff]   ;;  %v2450_v5 = vld [vmem:[#allocation2 + $0x50] ss:$12 sps:$4 sm:$0xff]   ;;  %v2471_v41 = vld [vmem:[%s3063_s1 + $0x1e8] sm:$0xff]  }
  0x3d   : > { %2338 = vmatprep.subr.bf16.mxu1 %v2451_v23  ;;  %v2806_v60 = vld [vmem:[#allocation2 + $0x3c] sm:$0xff]  ;;  %2326 = vmatprep.mubr.bf16.mxu1 %v2448_v51  ;;  %v348_v14 = vrot.slane %v347_v9, 4  ;;  %v2478_v34 = vld [vmem:[#allocation2 + $0x44] ss:$12 sps:$4 sm:$0xff]   ;;  %v2472_v53 = vld [vmem:[%s3063_s1 + $0x1a8] sm:$0xff]  }
  0x3e   : > { %2211 = vmatpush3.bf16.msra.mxu0 %v2449_v21  ;;  %v332_v56 = vrot.slane %v330_v50, 5  ;;  %v2813_v0 = vcombine.high %v2801_v54, %v2806_v60  ;;  %v2817_v1 = vcombine.low %v2801_v54, %v2806_v60  ;;  %2327 = vmatmul.mubr.bf16.gmra.mxu1 %v2450_v5  ;;  %v2466_v21 = vld [vmem:[#allocation2 + $0x2c] ss:$12 sps:$4 sm:$0xff]   ;;  %v2476_v31 = vld [vmem:[%s3063_s1 + $0x220] sm:$0xff]   ;;  %v2468_v35 = vld [vmem:[%s3063_s1 + $0x1f0] sm:$0xff]  }
  0x3f   : > { %2212 = vmatprep.subr.bf16.mxu0 %v2452_v36  ;;  %v353_v16 = vsel %vm2662_vm5, %v348_v14, %v352_v6  ;;  %2346 = vmatprep.mubr.bf16.mxu1 %v2464_v20  ;;  %v2007_v36 = vcombine.high %v2750_v13, %v2801_v54  ;;  %v418_v37 = vld [vmem:[%s2627_s9 + $0x40] sm:$0xe]  ;;  %v419_v38 = vld [vmem:[%s2627_s9 + $0x44] sm:$0x1]  ;;  %v2469_v24 = vld [vmem:[%s3063_s1 + $0x1b0] sm:$0xff]  }
  0x40   : > { %2339 = vmatpush3.bf16.msra.mxu1 %v2451_v23  ;;  %v333_v2 = vor.u32 %v332_v56, %v329_v55  ;;  %825 = vmatprep.mubr.bf16.mxu0 %v2813_v0  ;;  %399 = vst [vmem:[#allocation2 + $0x58] sm:$0xf] %v353_v16  ;;  %v479_v12 = vrot.slane %v419_v38, 5  ;;  %v2484_v43 = vld [vmem:[%s3063_s1 + $0x210] sm:$0xff]   ;;  %v207_v45 = vld [vmem:[%s2627_s9 + $0x40] sm:$0xf] }
  0x41   : > { %2340 = vmatprep.subr.bf16.mxu1 %v2454_v40  ;;  %826 = vmatmul.mubr.bf16.gmra.mxu0 %v2817_v1  ;;  %217 = vst [vmem:[#allocation2 + $0x60] sm:$0xf] %v207_v45  ;;  %v235_v46 = vld [vmem:[%s2627_s9 + $0x40] sm:$0xf]  ;;  %v236_v47 = vld [vmem:[%s2627_s9 + $0x44] sm:$0x1] }
  0x42   : > { %2213 = vmatpush3.bf16.msra.mxu0 %v2453_v39  ;;  %v334_v8 = vrot.slane %v333_v2, 4  ;;  %v1917_v39 = vrot.slane %v418_v37, 9  ;;  %v355_v50 = vshrl.u32 %v235_v46, 16  ;;  %v358_v51 = vshll.u32 %v235_v46, 16  ;;  %v2474_v56 = vld [vmem:[%s3063_s1 + $0x1e0] sm:$0xff]   ;;  %v2487_v13 = vld [vmem:[%s3063_s1 + $0x208] sm:$0xff]  }
  0x43   : > { %2214 = vmatprep.subr.bf16.mxu0 %v2457_v59  ;;  %v364_v52 = vshll.u32 %v236_v47, 16  ;;  %v2475_v54 = vld [vmem:[%s3063_s1 + $0x1a0] sm:$0xff]   ;;  %v2477_v62 = vld [vmem:[%s3063_s1 + $0x1d8] sm:$0xff]   ;;  %v237_v16 = vld [vmem:[%s2627_s9 + $0x48] sm:$0xf] }
  0x44   : > { %2341 = vmatpush3.bf16.msra.mxu1 %v2454_v40  ;;  %v339_v11 = vsel %vm2662_vm5, %v334_v8, %v338_v61  ;;  %v2481_v40 = vld [vmem:[%s3063_s1 + $0x218] sm:$0xff]   ;;  %v480_v42 = vsel %vm2653_vm4, %v1917_v39, %v479_v12  ;;  %v357_v57 = vrot.slane %v355_v50, 4  ;;  %v360_v58 = vrot.slane %v358_v51, 5  ;;  %v2490_v3 = vld [vmem:[%s3063_s1 + $0x200] sm:$0xff]   ;;  %v238_v20 = vld [vmem:[%s2627_s9 + $0x4c] sm:$0x1] }
  0x45   : > { %2342 = vmatprep.subr.bf16.mxu1 %v2459_v4  ;;  %398 = vst [vmem:[#allocation2 + $0x4c] sm:$0xf] %v339_v11  ;;  %503 = vst [vmem:[#allocation2 + $0x68] sm:$0xf] %v480_v42  ;;  %v366_v61 = vrot.slane %v364_v52, 5  ;;  %v2486_v37 = vld [vmem:[%s3063_s1 + $0x188] sm:$0xff]  }
  0x46   : > { %2215 = vmatpush3.bf16.msra.mxu0 %v2458_v63  ;;  %v361_v59 = vor.u32 %v360_v58, %v357_v57  ;;  %v2491_v5 = vld [vmem:[#allocation2 + $0x20] ss:$12 sps:$4 sm:$0xff]   ;;  %v2492_v9 = vld [vmem:[#allocation2 + $0x38] ss:$12 sps:$4 sm:$0xff]  }
  0x47   : > { %2216 = vmatprep.subr.bf16.mxu0 %v2460_v7  ;;  %v2845_v25 = vld [vmem:[#allocation2 + $0x54] sm:$0xff]  ;;  %v421_v11 = vld [vmem:[%s2627_s9 + $0x4c] sm:$0x1]  ;;  %v2488_v38 = vld [vmem:[%s3063_s1 + $0x1c0] sm:$0xff]  }
  0x48   : > { %2343 = vmatpush3.bf16.msra.mxu1 %v2459_v4  ;;  %v362_v2 = vrot.slane %v361_v59, 4  ;;  %v2479_v4 = vld [vmem:[%s3063_s1 + $0x198] sm:$0xff]   ;;  %v2482_v7 = vld [vmem:[%s3063_s1 + $0x1d0] sm:$0xff]  }
  0x49   : > { %2344 = vmatprep.subr.bf16.mxu1 %v2462_v15 }
  0x4a   : > { %2217 = vmatpush3.bf16.msra.mxu0 %v2461_v10  ;;  %v367_v8 = vsel %vm2662_vm5, %v362_v2, %v366_v61  ;;  %v420_v10 = vld [vmem:[%s2627_s9 + $0x48] sm:$0xe] }
  0x4b   : > { %2254 = vmatprep.subr.bf16.mxu0 %v2463_v19  ;;  %400 = vst [vmem:[#allocation2 + $0x64] sm:$0xf] %v367_v8  ;;  %v1918_v14 = vrot.slane %v420_v10, 9  ;;  %v2493_v19 = vld [vmem:[#allocation2 + $0x50] ss:$12 sps:$4 sm:$0xff]  }
  0x4c   : > { %2345 = vmatpush3.bf16.msra.mxu1 %v2462_v15  ;;  %v2843_v23 = vld [vmem:[#allocation2 + $0x48] sm:$0xff]  ;;  %v483_v15 = vrot.slane %v421_v11, 5 }
  0x4d   : > { %2354 = vmatprep.subr.bf16.mxu1 %v2467_v22  ;;  %v2852_v27 = vcombine.high %v2843_v23, %v2845_v25  ;;  %v2856_v28 = vcombine.low %v2843_v23, %v2845_v25  ;;  %v2010_v55 = vcombine.high %v2806_v60, %v2843_v23  ;;  %v2480_v63 = vld [vmem:[#allocation2 + $0x5c] ss:$12 sps:$4 sm:$0xff]   ;;  %v2009_v6 = vcombine.low %v2806_v60, %v2843_v23  ;;  %v2483_v23 = vld [vmem:[%s3063_s1 + $0x190] sm:$0xff]  }
  0x4e   : > { %v208_v60 = vld [vmem:[%s2627_s9 + $0x48] sm:$0xf] }
  0x4f   : > { %2347 = vmatmul.mubr.bf16.vlgmr.msra.gmra.mxu1 %v2466_v21  ;;  %833 = vmatprep.mubr.bf16.mxu0 %v2852_v27  ;;  %218 = vst [vmem:[#allocation2 + $0x6c] sm:$0xf] %v208_v60  ;;  %v369_v21 = vshrl.u32 %v237_v16, 16 }
  0x50   : > { %2355 = vmatpush3.bf16.msra.mxu1 %v2467_v22  ;;  %834 = vmatmul.mubr.bf16.gmra.mxu0 %v2856_v28  ;;  %v372_v22 = vshll.u32 %v237_v16, 16 }
  0x51   : > { %2356 = vmatprep.subr.bf16.mxu1 %v2470_v26  ;;  %1221 = vmatprep.mubr.bf16.mxu0 %v2004_v29  ;;  %v378_v29 = vshll.u32 %v238_v20, 16 }
  0x52   : > { %2350 = vmatprep.mubr.bf16.mxu1 %v2478_v34 }
  0x54   : > { %2357 = vmatpush3.bf16.msra.mxu1 %v2470_v26  ;;  %v484_v26 = vsel %vm2653_vm4, %v1918_v14, %v483_v15 }
  0x55   : > { %2358 = vmatprep.subr.bf16.mxu1 %v2473_v30  ;;  %504 = vst [vmem:[#allocation2 + $0x74] sm:$0xf] %v484_v26 }
  0x57   : > { %2351 = vmatmul.mubr.bf16.gmra.mxu1 %v2480_v63 }
  0x58   : > { %2359 = vmatpush3.bf16.msra.mxu1 %v2473_v30  ;;  %1222 = vmatmul.mubr.bf16.vlgmr.msra.gmra.mxu0 %v2003_v33  ;;  %v2485_v30 = vld [vmem:[%s3063_s1 + $0x1c8] sm:$0xff]   ;;  %v930_v33 = vld [vmem:[#allocation2 + $0x60] sm:$0xff] }
  0x59   : > { %2360 = vmatprep.subr.bf16.mxu1 %v2476_v31  ;;  %2255 = vmatpush3.bf16.msra.mxu0 %v2465_v32  ;;  %v374_v32 = vrot.slane %v372_v22, 5  ;;  %v2012_v44 = vcombine.low %v2845_v25, %v930_v33 }
  0x5a   : > { %1229 = vmatprep.mubr.bf16.mxu0 %v2007_v36  ;;  %2256 = vmatprep.subr.bf16.mxu0 %v2468_v35  ;;  %v380_v35 = vrot.slane %v378_v29, 5  ;;  %v2013_v36 = vcombine.high %v2845_v25, %v930_v33  ;;  %v2489_v25 = vld [vmem:[%s3063_s1 + $0x180] sm:$0xff]  }
  0x5b   : > { %2370 = vmatprep.mubr.bf16.mxu1 %v2491_v5 }
  0x5c   : > { %2361 = vmatpush3.bf16.msra.mxu1 %v2476_v31  ;;  %v371_v31 = vrot.slane %v369_v21, 4 }
  0x5d   : > { %2362 = vmatprep.subr.bf16.mxu1 %v2481_v40  ;;  %2257 = vmatpush3.bf16.msra.mxu0 %v2469_v24  ;;  %v2494_v24 = vld [vmem:[#allocation2 + $0x68] ss:$12 sps:$4 sm:$0xff]  }
  0x5e   : > { %2258 = vmatprep.subr.bf16.mxu0 %v2471_v41  ;;  %v375_v34 = vor.u32 %v374_v32, %v371_v31 }
  0x60   : > { %2363 = vmatpush3.bf16.msra.mxu1 %v2481_v40  ;;  %1230 = vmatmul.mubr.bf16.gmra.mxu0 %v2006_v48  ;;  %v376_v39 = vrot.slane %v375_v34, 4 }
  0x61   : > { %2364 = vmatprep.subr.bf16.mxu1 %v2484_v43  ;;  %2259 = vmatpush3.bf16.msra.mxu0 %v2472_v53 }
  0x62   : > { %1237 = vmatprep.mubr.bf16.mxu0 %v2010_v55  ;;  %2260 = vmatprep.subr.bf16.mxu0 %v2474_v56  ;;  %v381_v40 = vsel %vm2662_vm5, %v376_v39, %v380_v35 }
  0x63   : > { %401 = vst [vmem:[#allocation2 + $0x70] sm:$0xf] %v381_v40 }
  0x64   : > { %2365 = vmatpush3.bf16.msra.mxu1 %v2484_v43 }
  0x65   : > { %2366 = vmatprep.subr.bf16.mxu1 %v2487_v13  ;;  %2261 = vmatpush3.bf16.msra.mxu0 %v2475_v54 }
  0x66   : > { %2262 = vmatprep.subr.bf16.mxu0 %v2477_v62 }
  0x68   : > { %2367 = vmatpush3.bf16.msra.mxu1 %v2487_v13  ;;  %1238 = vmatmul.mubr.bf16.gmra.mxu0 %v2009_v6 }
  0x69   : > { %2368 = vmatprep.subr.bf16.mxu1 %v2490_v3  ;;  %2263 = vmatpush3.bf16.msra.mxu0 %v2479_v4 }
  0x6a   : > { %2264 = vmatprep.subr.bf16.mxu0 %v2482_v7  ;;  %1245 = vmatprep.mubr.bf16.mxu0 %v2013_v36  ;;  %v1358_v49 = vld [vmem:[#allocation2 + $0x6c] sm:$0xff] }
  0x6b   : > { %v2097_v12 = vcombine.high %v930_v33, %v1358_v49  ;;  %v2096_v41 = vcombine.low %v930_v33, %v1358_v49 }
  0x6c   : > { %2369 = vmatpush3.bf16.msra.mxu1 %v2490_v3 }
  0x6d   : > { %2265 = vmatpush3.bf16.msra.mxu0 %v2483_v23 }
  0x6e   : > { %2266 = vmatprep.subr.bf16.mxu0 %v2485_v30 }
  0x6f   : > { %2371 = vmatmul.mubr.bf16.vlgmr.msra.gmra.mxu1 %v2492_v9 }
  0x70   : > { %2374 = vmatprep.mubr.bf16.mxu1 %v2493_v19  ;;  %1246 = vmatmul.mubr.bf16.gmra.mxu0 %v2012_v44 }
  0x71   : > { %2267 = vmatpush3.bf16.msra.mxu0 %v2486_v37  ;;  %1649 = vmatprep.mubr.bf16.mxu0 %v2755_v17 }
  0x72   : > { %2268 = vmatprep.subr.bf16.mxu0 %v2488_v38 }
  0x75   : > { %2269 = vmatpush3.bf16.msra.mxu0 %v2489_v25 }
  0x77   : > { %2375 = vmatmul.mubr.bf16.gmra.mxu1 %v2494_v24 }
  0x78   : > { %1650 = vmatmul.mubr.bf16.vlgmr.msra.gmra.mxu0 %v2759_v18 }
  0x79   : > { %1657 = vmatprep.mubr.bf16.mxu0 %v2813_v0 }
  0x80   : > { %1658 = vmatmul.mubr.bf16.gmra.mxu0 %v2817_v1 }
  0x81   : > { %1665 = vmatprep.mubr.bf16.mxu0 %v2852_v27 }
  0x88   : > { %1666 = vmatmul.mubr.bf16.gmra.mxu0 %v2856_v28 }
  0x89   : > { %1673 = vmatprep.mubr.bf16.mxu0 %v2097_v12 }
  0x90   : > { %1674 = vmatmul.mubr.bf16.gmra.mxu0 %v2096_v41 }
  0xed   : > { %v2166_v17 = vpop.f32.mrf.mxu0 }
  0xef   : > { %v2167_v42 = vpop.f32.mrf.mxu0  ;;  %v2965_v1 = vpop.f32.mrf.mxu1 }
  0xf0   : > { %v2168_v43 = vadd.f32 %v2167_v42, %v2166_v17 }
  0xf1   : > { %v2169_v45 = vpop.f32.mrf.mxu0  ;;  %v876_v50 = vpop.f32.mrf.mxu1 }
  0xf2   : > { %v877_v24 = vadd.f32 %v2168_v43, %v876_v50 }
  0xf3   : > { %v2170_v46 = vpop.f32.mrf.mxu0  ;;  %v2969_v51 = vpop.f32.mrf.mxu1 }
  0xf4   : > { %v2171_v49 = vadd.f32 %v2170_v46, %v2169_v45 }
  0xf5   : > { %v879_v55 = vpop.f32.mrf.mxu1 }
  0xf9   : > { %v2172_v47 = vpop.f32.mrf.mxu0 }
  0xfb   : > { %v2173_v18 = vpop.f32.mrf.mxu0 }
  0xfc   : > { %v2961_v48 = vadd.f32 %v2173_v18, %v2172_v47 }
  0xfd   : > { %v2963_v0 = vpop.f32.mrf.mxu0 }
  0xfe   : > { %v2973_v56 = vpop.f32.mrf.mxu1 }
  0xff   : > { %v2967_v27 = vpop.f32.mrf.mxu0 }
 0x100   : > { %v2977_v58 = vpop.f32.mrf.mxu1 }
 0x101   : > { %v2178_v28 = vpop.f32.mrf.mxu0 }
 0x102   : > { %v2981_v54 = vpop.f32.mrf.mxu1 }
 0x103   : > { %v2179_v52 = vpop.f32.mrf.mxu0 }
 0x104   : > { %v2971_v53 = vadd.f32 %v2179_v52, %v2178_v28  ;;  %v2985_v63 = vpop.f32.mrf.mxu1 }
 0x105   : > { %v2975_v57 = vpop.f32.mrf.mxu0 }
 0x107   : > { %v2979_v13 = vpop.f32.mrf.mxu0 }
 0x10f   : > { %v2348_v4 = vpop.f32.mrf.mxu1 }
 0x110   : > { %v2184_v59 = vpop.f32.mrf.mxu0 }
 0x111   : > { %v1288_v7 = vpop.f32.mrf.mxu1 }
 0x112   : > { %v2185_v61 = vpop.f32.mrf.mxu0 }
 0x113   : > { %v2983_v62 = vadd.f32 %v2185_v61, %v2184_v59  ;;  %v2349_v10 = vpop.f32.mrf.mxu1  ;;  %v880_v59 = vadd.f32 %v2171_v49, %v879_v55 }
 0x114   : > { %v2987_v2 = vpop.f32.mrf.mxu0 }
 0x115   : > { %v1291_v14 = vpop.f32.mrf.mxu1 }
 0x116   : > { %v2989_v3 = vpop.f32.mrf.mxu0 }
 0x117   : > { %v2991_v16 = vpop.f32.mrf.mxu1 }
 0x118   : > { %v2218_v5 = vpop.f32.mrf.mxu0 }
 0x119   : > { %v1304_v21 = vpop.f32.mrf.mxu1 }
 0x11a   : > { %v2219_v6 = vpop.f32.mrf.mxu0 }
 0x11b   : > { %v2993_v26 = vpop.f32.mrf.mxu1  ;;  %v2220_v35 = vadd.f32 %v2219_v6, %v2218_v5 }
 0x11c   : > { %v2221_v8 = vpop.f32.mrf.mxu0 }
 0x11d   : > { %v2997_v31 = vpop.f32.mrf.mxu1  ;;  %v1289_v38 = vadd.f32 %v2220_v35, %v1288_v7  ;;  %v3008_v7 = vld [vmem:[%s3064_s2] ss:$0 sm:$0xff] }
 0x11e   : > { %v2222_v9 = vpop.f32.mrf.mxu0 }
 0x11f   : > { %v2223_v39 = vadd.f32 %v2222_v9, %v2221_v8  ;;  %v1327_v42 = vadd.f32 %v1289_v38, %v877_v24  ;;  %v885_v8 = vadd.f32 %v2965_v1, %v2961_v48  ;;  %v2177_v9 = vadd.f32 %v2967_v27, %v2963_v0 }
 0x120   : > { %v2224_v11 = vpop.f32.mrf.mxu0 }
 0x121   : > { %v1292_v47 = vadd.f32 %v2223_v39, %v1291_v14  ;;  %v888_v48 = vadd.f32 %v2969_v51, %v2177_v9  ;;  %v2183_v51 = vadd.f32 %v2979_v13, %v2975_v57 }
 0x122   : > { %v2225_v15 = vpop.f32.mrf.mxu0 }
 0x123   : > { %v2226_v41 = vadd.f32 %v2225_v15, %v2224_v11  ;;  %v1328_v45 = vadd.f32 %v1292_v47, %v880_v59  ;;  %v896_v13 = vadd.f32 %v2183_v51, %v2985_v63 }
 0x124   : > { %v2227_v60 = vpop.f32.mrf.mxu0 }
 0x125   : > { %v1297_v6 = vadd.f32 %v2348_v4, %v2226_v41 }
 0x126   : > { %v2228_v19 = vpop.f32.mrf.mxu0 }
 0x127   : > { %v2229_v46 = vadd.f32 %v2228_v19, %v2227_v60  ;;  %v1329_v35 = vadd.f32 %v1297_v6, %v885_v8  ;;  %v901_v8 = vadd.f32 %v2973_v56, %v2983_v62 }
 0x128   : > { %v2230_v20 = vpop.f32.mrf.mxu0 }
 0x12a   : > { %v2231_v22 = vpop.f32.mrf.mxu0 }
 0x12b   : > { %v2232_v38 = vadd.f32 %v2231_v22, %v2230_v20 }
 0x12c   : > { %v2233_v23 = vpop.f32.mrf.mxu0 }
 0x12d   : > { %v1305_v22 = vadd.f32 %v2232_v38, %v1304_v21 }
 0x12e   : > { %v2234_v29 = vpop.f32.mrf.mxu0 }
 0x12f   : > { %v2372_v33 = vpop.f32.mrf.mxu1  ;;  %v2235_v49 = vadd.f32 %v2234_v29, %v2233_v23 }
 0x130   : > { %v2995_v30 = vpop.f32.mrf.mxu0 }
 0x131   : > { %v1716_v44 = vpop.f32.mrf.mxu1 }
 0x132   : > { %v2999_v32 = vpop.f32.mrf.mxu0 }
 0x133   : > { %v2373_v25 = vpop.f32.mrf.mxu1  ;;  %v2238_v21 = vadd.f32 %v2999_v32, %v2995_v30 }
 0x134   : > { %v3001_v34 = vpop.f32.mrf.mxu0 }
 0x135   : > { %v1719_v52 = vpop.f32.mrf.mxu1 }
 0x136   : > { %v3003_v36 = vpop.f32.mrf.mxu0 }
 0x137   : > { %v3014_v11 = vpop.f32.mrf.mxu1 }
 0x138   : > { %v2270_v37 = vpop.f32.mrf.mxu0 }
 0x139   : > { %v1732_v39 = vpop.f32.mrf.mxu1 }
 0x13a   : > { %v2271_v40 = vpop.f32.mrf.mxu0 }
 0x13b   : > { %v2272_v12 = vadd.f32 %v2271_v40, %v2270_v37  ;;  %v1300_v37 = vadd.f32 %v2349_v10, %v2229_v46  ;;  %v2241_v46 = vadd.f32 %v3003_v36, %v3001_v34 }
 0x13c   : > { %v2273_v17 = vpop.f32.mrf.mxu0 }
 0x13d   : > { %v1717_v18 = vadd.f32 %v2272_v12, %v1716_v44  ;;  %v1330_v20 = vadd.f32 %v1300_v37, %v888_v48 }
 0x13e   : > { %v2274_v28 = vpop.f32.mrf.mxu0 }
 0x13f   : > { %v1755_v61 = vadd.f32 %v1717_v18, %v1327_v42  ;;  %v2275_v5 = vadd.f32 %v2274_v28, %v2273_v17  ;;  %v2377_v17 = vpop.f32.mrf.mxu1  ;;  %v893_v42 = vadd.f32 %v2971_v53, %v2977_v58  ;;  %v1308_v18 = vadd.f32 %v2235_v49, %v2997_v31 }
 0x140   : > { %v2276_v43 = vpop.f32.mrf.mxu0  ;;  %v1313_v31 = vadd.f32 %v2991_v16, %v2238_v21 }
 0x141   : > { %v1720_v50 = vadd.f32 %v2275_v5, %v1719_v52  ;;  %v1786_v4 = vadd.f32 %v3008_v7, %v1755_v61  ;;  %v1331_v52 = vadd.f32 %v1305_v22, %v893_v42  ;;  %v1735_v53 = vpop.f32.mrf.mxu1 }
 0x142   : > { %v2277_v55 = vpop.f32.mrf.mxu0  ;;  %v1333_v16 = vadd.f32 %v1313_v31, %v901_v8 }
 0x143   : > { %v1756_v14 = vadd.f32 %v1720_v50, %v1328_v45  ;;  %v2278_v15 = vadd.f32 %v2277_v55, %v2276_v43  ;;  %v1794_v0 = vmax.f32 %v1786_v4, 0.0  ;;  %v1332_v43 = vadd.f32 %v1308_v18, %v896_v13 }
 0x144   : > { %v2279_v44 = vpop.f32.mrf.mxu0  ;;  %v2189_v50 = vadd.f32 %v2989_v3, %v2987_v2 }
 0x145   : > { %v1787_v60 = vadd.f32 %v3008_v7, %v1756_v14  ;;  %v1725_v19 = vadd.f32 %v2372_v33, %v2278_v15  ;;  %v1316_v15 = vadd.f32 %v2993_v26, %v2241_v46 }
 0x146   : > { %v2280_v1 = vpop.f32.mrf.mxu0  ;;  %v904_v2 = vadd.f32 %v2981_v54, %v2189_v50 }
 0x147   : > { %v1795_v27 = vmax.f32 %v1787_v60, 0.0  ;;  %v1757_v40 = vadd.f32 %v1725_v19, %v1329_v35  ;;  %v2281_v24 = vadd.f32 %v2280_v1, %v2279_v44 }
 0x148   : > { %v2282_v10 = vpop.f32.mrf.mxu0  ;;  %v1334_v37 = vadd.f32 %v1316_v15, %v904_v2 }
 0x149   : > { %v2130_v12 = vpack.c.bf16 %v1795_v27, %v1794_v0  ;;  %v1728_v33 = vadd.f32 %v2373_v25, %v2281_v24  ;;  %v1788_v23 = vadd.f32 %v3008_v7, %v1757_v40 }
 0x14a   : > { %v2283_v41 = vpop.f32.mrf.mxu0 }
 0x14b   : > { %2131 = vst [vmem:[%s3023_s7] sm:$0xff] %v2130_v12   ;;  %v1758_v29 = vadd.f32 %v1728_v33, %v1330_v20  ;;  %v2284_v47 = vadd.f32 %v2283_v41, %v2282_v10  ;;  %v1796_v58 = vmax.f32 %v1788_v23, 0.0 }
 0x14c   : > { %v2285_v28 = vpop.f32.mrf.mxu0 }
 0x14d   : > { %v1789_v25 = vadd.f32 %v3008_v7, %v1758_v29  ;;  %v1733_v57 = vadd.f32 %v2284_v47, %v1732_v39 }
 0x14e   : > { %v2286_v59 = vpop.f32.mrf.mxu0 }
 0x14f   : > { %v1797_v61 = vmax.f32 %v1789_v25, 0.0  ;;  %v1759_v5 = vadd.f32 %v1733_v57, %v1331_v52  ;;  %v2287_v6 = vadd.f32 %v2286_v59, %v2285_v28 }
 0x150   : > { %v2288_v45 = vpop.f32.mrf.mxu0 }
 0x151   : > { %v2135_v30 = vpack.c.bf16 %v1797_v61, %v1796_v58  ;;  %v1736_v32 = vadd.f32 %v2287_v6, %v1735_v53  ;;  %v1790_v9 = vadd.f32 %v3008_v7, %v1759_v5 }
 0x152   : > { %v2289_v63 = vpop.f32.mrf.mxu0 }
 0x153   : > { %2147 = vst [vmem:[%s3023_s7 + $0x8] sm:$0xff] %v2135_v30   ;;  %v1760_v55 = vadd.f32 %v1736_v32, %v1332_v43  ;;  %v2290_v4 = vadd.f32 %v2289_v63, %v2288_v45  ;;  %v1798_v35 = vmax.f32 %v1790_v9, 0.0 }
 0x154   : > { %v2291_v14 = vpop.f32.mrf.mxu0 }
 0x155   : > { %v1791_v34 = vadd.f32 %v3008_v7, %v1760_v55  ;;  %v1741_v36 = vadd.f32 %v3014_v11, %v2290_v4 }
 0x156   : > { %v2292_v3 = vpop.f32.mrf.mxu0 }
 0x157   : > { %v1799_v56 = vmax.f32 %v1791_v34, 0.0  ;;  %v1761_v62 = vadd.f32 %v1741_v36, %v1333_v16  ;;  %v2293_v44 = vadd.f32 %v2292_v3, %v2291_v14 }
 0x159   : > { %v2140_v38 = vpack.c.bf16 %v1799_v56, %v1798_v35  ;;  %v1744_v60 = vadd.f32 %v2377_v17, %v2293_v44  ;;  %v1792_v19 = vadd.f32 %v3008_v7, %v1761_v62 }
 0x15b   : > { %2148 = vst [vmem:[%s3023_s7 + $0x10] sm:$0xff] %v2140_v38   ;;  %v1762_v48 = vadd.f32 %v1744_v60, %v1334_v37  ;;  %v1800_v1 = vmax.f32 %v1792_v19, 0.0 }
 0x15d   : > { %v1793_v26 = vadd.f32 %v3008_v7, %v1762_v48 }
 0x15f   : > { %v1801_v39 = vmax.f32 %v1793_v26, 0.0 }
 0x161   : > { %v2145_v11 = vpack.c.bf16 %v1801_v39, %v1800_v1 }
 0x163   : > { %2149 = vst [vmem:[%s3023_s7 + $0x18] sm:$0xff] %v2145_v11  }
 0x164 PF: > { %s13_s14 = sadd.s32 1, %s2517_s14   ;;  %s3070_s12 = smov %s2513_s13 }
 0x165   : > { %p10_p5 = scmp.ge.s32.totalorder %s13_s14, 4   ;;  %s3071_s13 = smov %s3073_s15 }
 0x167   :  { %12 = sbr.rel (!%p10_p5) target bundleno = 2 (0x2), region = 67 }

// kernel: residual_net_forward.13
= control target key start
LH: loop header
LB: loop body
LE: loop exit
PB: predicated region body
PF: predicated region fallthrough
CT: control target
= control target key end

     0   :  { %v66_v2 = vlaneseq  ;;  %v2111_v9 = vmov 1966171168   ;;  %s2303_s0 = inlined_call_operand.vmem [shape: bf16[2,7680], index: 0, kind: input, shape index: {}]   ;;  %s2304_s1 = inlined_call_operand.vmem [shape: bf16[8,7680], index: 1, kind: input, shape index: {}]   ;;  %s2305_s2 = inlined_call_operand.vmem [shape: f32[1,8], index: 2, kind: input, shape index: {}]   ;;  %s2306_s3 = inlined_call_operand.hbm [shape: f32[2,8], index: 3, kind: output, shape index: {}]  }
   0x1   :  { %v24_v0 = vld [vmem:[%s2304_s1] sm:$0xff]  ;;  %v25_v1 = vld [vmem:[%s2304_s1 + $0x8] sm:$0xff]  ;;  %v26_v7 = vld [vmem:[%s2304_s1 + $0x10] sm:$0xff]  ;;  %v64_v10 = vunpack.c.l.s4 %v2111_v9 }
   0x2   :  { %v1956_v3 = vcombine.high %v24_v0, %v24_v0  ;;  %v1955_v4 = vcombine.low %v24_v0, %v24_v0  ;;  %v1958_v5 = vcombine.high %v25_v1, %v25_v1  ;;  %v1957_v6 = vcombine.low %v25_v1, %v25_v1  ;;  %v27_v8 = vld [vmem:[%s2304_s1 + $0x18] sm:$0xff]  ;;  %v16_v12 = vld [vmem:[%s2303_s0] sm:$0xff]  ;;  %v17_v18 = vld [vmem:[%s2303_s0 + $0x8] sm:$0xff] }
   0x3   :  { %v67_v11 = vshrl.u32 %v66_v2, 7  ;;  %v1960_v13 = vcombine.high %v26_v7, %v26_v7  ;;  %v1962_v14 = vcombine.high %v27_v8, %v27_v8  ;;  %v62_v15 = vcombine.high %v16_v12, %v16_v12  ;;  %v28_v25 = vld [vmem:[%s2304_s1 + $0x20] sm:$0xff]  ;;  %v29_v29 = vld [vmem:[%s2304_s1 + $0x28] sm:$0xff] }
   0x4   :  { %713 = vmatprep.subr.bf16.mxu0 %v1956_v3  ;;  %753 = vmatprep.subr.bf16.mxu1 %v1958_v5  ;;  %v65_v16 = vunpack.c.0.s8 %v64_v10  ;;  %v1959_v27 = vcombine.low %v26_v7, %v26_v7  ;;  %v1961_v30 = vcombine.low %v27_v8, %v27_v8 }
   0x5   :  { %714 = vmatpush1.bf16.xpose.msra.mxu0 %v1955_v4  ;;  %754 = vmatpush1.bf16.xpose.msra.mxu1 %v1957_v6 }
   0x6   :  { %793 = vmatprep.subr.bf16.mxu0 %v1960_v13  ;;  %833 = vmatprep.subr.bf16.mxu1 %v1962_v14  ;;  %v2148_v17 = vsub.s32 %v65_v16, %v67_v11 }
   0x8   :  { %v69_v19 = vrot.slane %v16_v12, %v2148_v17  ;;  %v76_v20 = vrot.slane %v62_v15, %v2148_v17  ;;  %v118_v24 = vrot.slane %v17_v18, %v2148_v17 }
   0xa   :  { %v77_v21 = vcombine.high %v69_v19, %v69_v19  ;;  %v85_v22 = vrot.slane %v69_v19, %v2148_v17  ;;  %v78_v23 = vcombine.high %v76_v20, %v76_v20 }
   0xc   :  { %v99_v26 = vrot.slane %v77_v21, %v2148_v17  ;;  %v106_v28 = vrot.slane %v78_v23, %v2148_v17  ;;  %v107_v31 = vcombine.high %v85_v22, %v85_v22 }
   0xd   :  { %8 = vsyncpa [#allocation3], 0  ;;  %v1964_v33 = vcombine.high %v28_v25, %v28_v25  ;;  %v126_v34 = vcombine.high %v118_v24, %v118_v24  ;;  %v111_v35 = vcombine.high %v17_v18, %v17_v18  ;;  %v1966_v37 = vcombine.high %v29_v29, %v29_v29  ;;  %v30_v40 = vld [vmem:[%s2304_s1 + $0x30] sm:$0xff]  ;;  %v31_v43 = vld [vmem:[%s2304_s1 + $0x38] sm:$0xff]  ;;  %s2112_s7 = smov [#allocation2]  }
   0xe   :  { %731 = vmatprep.mubr.bf16.mxu0 %v99_v26  ;;  %v109_v32 = vcombine.high %v99_v26, %v99_v26  ;;  %v110_v36 = vcombine.high %v106_v28, %v106_v28  ;;  %v92_v38 = vrot.slane %v76_v20, %v2148_v17  ;;  %v1963_v42 = vcombine.low %v28_v25, %v28_v25  ;;  %v18_v50 = vld [vmem:[%s2303_s0 + $0x10] sm:$0xff]  ;;  %v32_v53 = vld [vmem:[%s2304_s1 + $0x40] sm:$0xff]  ;;  %v33_v56 = vld [vmem:[%s2304_s1 + $0x48] sm:$0xff]  ;;  %s1946_s8 = sshll.u32 %s2112_s7, 4  ;;  %s1947_s8 = int_to_ptr.vmem [resolvable:$true] %s1946_s8 }
   0xf   :  { %732 = vmatmul.mubr.bf16.vlgmr.msra.gmra.mxu0 %v85_v22  ;;  %v148_v39 = vrot.slane %v126_v34, %v2148_v17  ;;  %v125_v41 = vrot.slane %v111_v35, %v2148_v17  ;;  %v1968_v45 = vcombine.high %v30_v40, %v30_v40  ;;  %v1965_v46 = vcombine.low %v29_v29, %v29_v29  ;;  %v34_v2 = vld [vmem:[%s2304_s1 + $0x50] sm:$0xff]  ;;  %v35_v5 = vld [vmem:[%s2304_s1 + $0x58] sm:$0xff]  ;;  %v36_v15 = vld [vmem:[%s2304_s1 + $0x60] sm:$0xff]  ;;  %p2094_p1 = scmp.lt.s32.totalorder %s1947_s8, %s1947_s8 }
  0x10   :  { %794 = vmatpush1.bf16.xpose.msra.mxu0 %v1959_v27  ;;  %771 = vmatprep.mubr.bf16.mxu1 %v109_v32  ;;  %v108_v44 = vcombine.high %v92_v38, %v92_v38  ;;  %v1970_v49 = vcombine.high %v31_v43, %v31_v43  ;;  %v134_v51 = vrot.slane %v118_v24, %v2148_v17  ;;  %v19_v12 = vld [vmem:[%s2303_s0 + $0x18] sm:$0xff]  ;;  %v37_v19 = vld [vmem:[%s2304_s1 + $0x68] sm:$0xff]  ;;  %v38_v29 = vld [vmem:[%s2304_s1 + $0x70] sm:$0xff]  ;;  %vm1903_vm0 = vcmask 58368  }
  0x11   :  { %772 = vmatmul.mubr.bf16.vlgmr.msra.gmra.mxu1 %v107_v31  ;;  %811 = vmatprep.mubr.bf16.mxu0 %v106_v28  ;;  %v158_v47 = vcombine.high %v148_v39, %v148_v39  ;;  %v127_v48 = vcombine.high %v125_v41, %v125_v41  ;;  %v167_v54 = vrot.slane %v18_v50, %v2148_v17  ;;  %v39_v32 = vld [vmem:[%s2304_s1 + $0x78] sm:$0xff] }
  0x12   :  { %834 = vmatpush1.bf16.xpose.msra.mxu1 %v1961_v30  ;;  %873 = vmatprep.subr.bf16.mxu0 %v1964_v33  ;;  %v1967_v55 = vcombine.low %v30_v40, %v30_v40  ;;  %v156_v57 = vcombine.high %v134_v51, %v134_v51  ;;  %v1972_v58 = vcombine.high %v32_v53, %v32_v53 }
  0x13   :  { %851 = vmatprep.mubr.bf16.mxu1 %v110_v36  ;;  %913 = vmatprep.subr.bf16.mxu1 %v1966_v37  ;;  %v155_v52 = vrot.slane %v127_v48, %v2148_v17  ;;  %v1969_v59 = vcombine.low %v31_v43, %v31_v43  ;;  %v175_v61 = vcombine.high %v167_v54, %v167_v54 }
  0x14   :  { %v160_v62 = vcombine.high %v18_v50, %v18_v50  ;;  %v1974_v63 = vcombine.high %v33_v56, %v33_v56  ;;  %v141_v0 = vrot.slane %v125_v41, %v2148_v17  ;;  %v1971_v4 = vcombine.low %v32_v53, %v32_v53 }
  0x15   :  { %v159_v60 = vcombine.high %v155_v52, %v155_v52  ;;  %v197_v1 = vrot.slane %v175_v61, %v2148_v17  ;;  %v1976_v7 = vcombine.high %v34_v2, %v34_v2  ;;  %v1973_v8 = vcombine.low %v33_v56, %v33_v56 }
  0x16   :  { %v174_v3 = vrot.slane %v160_v62, %v2148_v17  ;;  %v157_v6 = vcombine.high %v141_v0, %v141_v0  ;;  %v1978_v11 = vcombine.high %v35_v5, %v35_v5  ;;  %v183_v13 = vrot.slane %v167_v54, %v2148_v17 }
  0x17   :  { %812 = vmatmul.mubr.bf16.vlgmr.msra.gmra.mxu0 %v92_v38  ;;  %v207_v9 = vcombine.high %v197_v1, %v197_v1  ;;  %v216_v16 = vrot.slane %v19_v12, %v2148_v17  ;;  %v1975_v18 = vcombine.low %v34_v2, %v34_v2  ;;  %v1980_v21 = vcombine.high %v36_v15, %v36_v15 }
  0x18   :  { %874 = vmatpush1.bf16.xpose.msra.mxu0 %v1963_v42  ;;  %891 = vmatprep.mubr.bf16.mxu0 %v148_v39  ;;  %v176_v10 = vcombine.high %v174_v3, %v174_v3  ;;  %v205_v20 = vcombine.high %v183_v13, %v183_v13  ;;  %v1977_v22 = vcombine.low %v35_v5, %v35_v5  ;;  %v20_v39 = vld [vmem:[%s2303_s0 + $0x20] sm:$0xff] }
  0x19   :  { %852 = vmatmul.mubr.bf16.vlgmr.msra.gmra.mxu1 %v108_v44  ;;  %953 = vmatprep.subr.bf16.mxu0 %v1968_v45  ;;  %v224_v24 = vcombine.high %v216_v16, %v216_v16  ;;  %v209_v25 = vcombine.high %v19_v12, %v19_v12  ;;  %v1982_v26 = vcombine.high %v37_v19, %v37_v19  ;;  %v40_v42 = vld [vmem:[%s2304_s1 + $0x80] sm:$0xff]  ;;  %v41_v45 = vld [vmem:[%s2304_s1 + $0x88] sm:$0xff] }
  0x1a   :  { %914 = vmatpush1.bf16.xpose.msra.mxu1 %v1965_v46  ;;  %931 = vmatprep.mubr.bf16.mxu1 %v158_v47  ;;  %v204_v14 = vrot.slane %v176_v10, %v2148_v17  ;;  %v190_v27 = vrot.slane %v174_v3, %v2148_v17  ;;  %v1979_v31 = vcombine.low %v36_v15, %v36_v15 }
  0x1b   :  { %993 = vmatprep.subr.bf16.mxu1 %v1970_v49  ;;  %v246_v28 = vrot.slane %v224_v24, %v2148_v17  ;;  %v223_v30 = vrot.slane %v209_v25, %v2148_v17  ;;  %v1984_v34 = vcombine.high %v38_v29, %v38_v29  ;;  %v1981_v35 = vcombine.low %v37_v19, %v37_v19 }
  0x1c   :  { %v208_v23 = vcombine.high %v204_v14, %v204_v14  ;;  %v206_v33 = vcombine.high %v190_v27, %v190_v27  ;;  %v1986_v38 = vcombine.high %v39_v32, %v39_v32  ;;  %v232_v40 = vrot.slane %v216_v16, %v2148_v17 }
  0x1d   :  { %v256_v36 = vcombine.high %v246_v28, %v246_v28  ;;  %v225_v37 = vcombine.high %v223_v30, %v223_v30  ;;  %v265_v43 = vrot.slane %v20_v39, %v2148_v17  ;;  %v1983_v44 = vcombine.low %v38_v29, %v38_v29 }
  0x1e   :  { %v254_v46 = vcombine.high %v232_v40, %v232_v40  ;;  %v1988_v47 = vcombine.high %v40_v42, %v40_v42  ;;  %v1985_v48 = vcombine.low %v39_v32, %v39_v32  ;;  %v239_v53 = vrot.slane %v223_v30, %v2148_v17 }
  0x1f   :  { %892 = vmatmul.mubr.bf16.vlgmr.msra.gmra.mxu0 %v134_v51  ;;  %v253_v41 = vrot.slane %v225_v37, %v2148_v17  ;;  %v273_v50 = vcombine.high %v265_v43, %v265_v43  ;;  %v258_v51 = vcombine.high %v20_v39, %v20_v39  ;;  %v1989_v61 = vcombine.low %v41_v45, %v41_v45 }
  0x20   :  { %954 = vmatpush1.bf16.xpose.msra.mxu0 %v1967_v55  ;;  %971 = vmatprep.mubr.bf16.mxu0 %v155_v52  ;;  %v1990_v52 = vcombine.high %v41_v45, %v41_v45  ;;  %v42_v55 = vld [vmem:[%s2304_s1 + $0x90] sm:$0xff]  ;;  %v281_v2 = vrot.slane %v265_v43, %v2148_v17 }
  0x21   :  { %932 = vmatmul.mubr.bf16.vlgmr.msra.gmra.mxu1 %v156_v57  ;;  %1033 = vmatprep.subr.bf16.mxu0 %v1972_v58  ;;  %v257_v49 = vcombine.high %v253_v41, %v253_v41  ;;  %v295_v54 = vrot.slane %v273_v50, %v2148_v17  ;;  %v272_v56 = vrot.slane %v258_v51, %v2148_v17  ;;  %v43_v58 = vld [vmem:[%s2304_s1 + $0x98] sm:$0xff] }
  0x22   :  { %994 = vmatpush1.bf16.xpose.msra.mxu1 %v1969_v59  ;;  %1011 = vmatprep.mubr.bf16.mxu1 %v159_v60  ;;  %v1987_v57 = vcombine.low %v40_v42, %v40_v42  ;;  %v255_v59 = vcombine.high %v239_v53, %v239_v53  ;;  %v1992_v60 = vcombine.high %v42_v55, %v42_v55 }
  0x23   :  { %1073 = vmatprep.subr.bf16.mxu1 %v1974_v63  ;;  %v305_v62 = vcombine.high %v295_v54, %v295_v54  ;;  %v274_v63 = vcombine.high %v272_v56, %v272_v56  ;;  %v1993_v10 = vcombine.low %v43_v58, %v43_v58  ;;  %v288_v15 = vrot.slane %v272_v56, %v2148_v17  ;;  %v52_v56 = vld [vmem:[%s2304_s1 + $0xe0] sm:$0xff] }
  0x25   :  { %v302_v3 = vrot.slane %v274_v63, %v2148_v17 }
  0x27   :  { %972 = vmatmul.mubr.bf16.vlgmr.msra.gmra.mxu0 %v141_v0  ;;  %v1994_v0 = vcombine.high %v43_v58, %v43_v58 }
  0x28   :  { %1034 = vmatpush1.bf16.xpose.msra.mxu0 %v1971_v4  ;;  %1051 = vmatprep.mubr.bf16.mxu0 %v197_v1  ;;  %v21_v1 = vld [vmem:[%s2303_s0 + $0x28] sm:$0xff]  ;;  %v44_v4 = vld [vmem:[%s2304_s1 + $0xa0] sm:$0xff] }
  0x29   :  { %1012 = vmatmul.mubr.bf16.vlgmr.msra.gmra.mxu1 %v157_v6  ;;  %1113 = vmatprep.subr.bf16.mxu0 %v1976_v7  ;;  %v314_v5 = vrot.slane %v21_v1, %v2148_v17  ;;  %v1991_v6 = vcombine.low %v42_v55, %v42_v55  ;;  %v45_v7 = vld [vmem:[%s2304_s1 + $0xa8] sm:$0xff] }
  0x2a   :  { %1074 = vmatpush1.bf16.xpose.msra.mxu1 %v1973_v8  ;;  %1091 = vmatprep.mubr.bf16.mxu1 %v207_v9  ;;  %v303_v8 = vcombine.high %v281_v2, %v281_v2  ;;  %v1996_v9 = vcombine.high %v44_v4, %v44_v4  ;;  %v1997_v24 = vcombine.low %v45_v7, %v45_v7 }
  0x2b   :  { %1153 = vmatprep.subr.bf16.mxu1 %v1978_v11  ;;  %v306_v11 = vcombine.high %v302_v3, %v302_v3  ;;  %v322_v12 = vcombine.high %v314_v5, %v314_v5  ;;  %v330_v29 = vrot.slane %v314_v5, %v2148_v17 }
  0x2d   :  { %v344_v16 = vrot.slane %v322_v12, %v2148_v17 }
  0x2f   :  { %1052 = vmatmul.mubr.bf16.vlgmr.msra.gmra.mxu0 %v183_v13  ;;  %v307_v13 = vcombine.high %v21_v1, %v21_v1  ;;  %v354_v25 = vcombine.high %v344_v16, %v344_v16 }
  0x30   :  { %1114 = vmatpush1.bf16.xpose.msra.mxu0 %v1975_v18  ;;  %1131 = vmatprep.mubr.bf16.mxu0 %v204_v14  ;;  %v1998_v14 = vcombine.high %v45_v7, %v45_v7  ;;  %v46_v18 = vld [vmem:[%s2304_s1 + $0xb0] sm:$0xff] }
  0x31   :  { %1092 = vmatmul.mubr.bf16.vlgmr.msra.gmra.mxu1 %v205_v20  ;;  %1193 = vmatprep.subr.bf16.mxu0 %v1980_v21  ;;  %v321_v19 = vrot.slane %v307_v13, %v2148_v17  ;;  %v1995_v20 = vcombine.low %v44_v4, %v44_v4  ;;  %v47_v21 = vld [vmem:[%s2304_s1 + $0xb8] sm:$0xff]  ;;  %v2011_v4 = vcombine.low %v52_v56, %v52_v56 }
  0x32   :  { %1154 = vmatpush1.bf16.xpose.msra.mxu1 %v1977_v22  ;;  %1171 = vmatprep.mubr.bf16.mxu1 %v208_v23  ;;  %v304_v22 = vcombine.high %v288_v15, %v288_v15  ;;  %v2000_v23 = vcombine.high %v46_v18, %v46_v18  ;;  %v2001_v37 = vcombine.low %v47_v21, %v47_v21 }
  0x33   :  { %1233 = vmatprep.subr.bf16.mxu1 %v1982_v26  ;;  %v323_v26 = vcombine.high %v321_v19, %v321_v19  ;;  %v337_v42 = vrot.slane %v321_v19, %v2148_v17 }
  0x35   :  { %v351_v30 = vrot.slane %v323_v26, %v2148_v17 }
  0x37   :  { %1132 = vmatmul.mubr.bf16.vlgmr.msra.gmra.mxu0 %v190_v27  ;;  %v2002_v27 = vcombine.high %v47_v21, %v47_v21 }
  0x38   :  { %1194 = vmatpush1.bf16.xpose.msra.mxu0 %v1979_v31  ;;  %1211 = vmatprep.mubr.bf16.mxu0 %v246_v28  ;;  %v22_v28 = vld [vmem:[%s2303_s0 + $0x30] sm:$0xff]  ;;  %v48_v31 = vld [vmem:[%s2304_s1 + $0xc0] sm:$0xff] }
  0x39   :  { %1172 = vmatmul.mubr.bf16.vlgmr.msra.gmra.mxu1 %v206_v33  ;;  %1273 = vmatprep.subr.bf16.mxu0 %v1984_v34  ;;  %v363_v32 = vrot.slane %v22_v28, %v2148_v17  ;;  %v1999_v33 = vcombine.low %v46_v18, %v46_v18  ;;  %v49_v34 = vld [vmem:[%s2304_s1 + $0xc8] sm:$0xff] }
  0x3a   :  { %1234 = vmatpush1.bf16.xpose.msra.mxu1 %v1981_v35  ;;  %1251 = vmatprep.mubr.bf16.mxu1 %v256_v36  ;;  %v352_v35 = vcombine.high %v330_v29, %v330_v29  ;;  %v2004_v36 = vcombine.high %v48_v31, %v48_v31  ;;  %v2005_v50 = vcombine.low %v49_v34, %v49_v34 }
  0x3b   :  { %1313 = vmatprep.subr.bf16.mxu1 %v1986_v38  ;;  %v355_v38 = vcombine.high %v351_v30, %v351_v30  ;;  %v371_v39 = vcombine.high %v363_v32, %v363_v32 }
  0x3d   :  { %v393_v43 = vrot.slane %v371_v39, %v2148_v17 }
  0x3f   :  { %1212 = vmatmul.mubr.bf16.vlgmr.msra.gmra.mxu0 %v232_v40  ;;  %v356_v40 = vcombine.high %v22_v28, %v22_v28  ;;  %v403_v51 = vcombine.high %v393_v43, %v393_v43 }
  0x40   :  { %1274 = vmatpush1.bf16.xpose.msra.mxu0 %v1983_v44  ;;  %1291 = vmatprep.mubr.bf16.mxu0 %v253_v41  ;;  %v2006_v41 = vcombine.high %v49_v34, %v49_v34  ;;  %v50_v44 = vld [vmem:[%s2304_s1 + $0xd0] sm:$0xff] }
  0x41   :  { %1252 = vmatmul.mubr.bf16.vlgmr.msra.gmra.mxu1 %v254_v46  ;;  %1353 = vmatprep.subr.bf16.mxu0 %v1988_v47  ;;  %v370_v45 = vrot.slane %v356_v40, %v2148_v17  ;;  %v2003_v46 = vcombine.low %v48_v31, %v48_v31  ;;  %v51_v47 = vld [vmem:[%s2304_s1 + $0xd8] sm:$0xff]  ;;  %v2007_v58 = vcombine.low %v50_v44, %v50_v44 }
  0x42   :  { %1314 = vmatpush1.bf16.xpose.msra.mxu1 %v1985_v48  ;;  %1331 = vmatprep.mubr.bf16.mxu1 %v257_v49  ;;  %v353_v48 = vcombine.high %v337_v42, %v337_v42  ;;  %v2008_v49 = vcombine.high %v50_v44, %v50_v44 }
  0x43   :  { %1393 = vmatprep.subr.bf16.mxu1 %v1990_v52  ;;  %v372_v52 = vcombine.high %v370_v45, %v370_v45 }
  0x45   :  { %v400_v55 = vrot.slane %v372_v52, %v2148_v17 }
  0x47   :  { %1292 = vmatmul.mubr.bf16.vlgmr.msra.gmra.mxu0 %v239_v53  ;;  %v2010_v53 = vcombine.high %v51_v47, %v51_v47  ;;  %v404_v63 = vcombine.high %v400_v55, %v400_v55 }
  0x48   :  { %1354 = vmatpush1.bf16.xpose.msra.mxu0 %v1987_v57  ;;  %1371 = vmatprep.mubr.bf16.mxu0 %v295_v54  ;;  %v379_v54 = vrot.slane %v363_v32, %v2148_v17  ;;  %v1954_v57 = vld.sshfl [vmem:[%s2303_s0 + $0x38] sm:$0x33 pattern:$0x75316420] }
  0x49   :  { %1332 = vmatmul.mubr.bf16.vlgmr.msra.gmra.mxu1 %v255_v59  ;;  %1433 = vmatprep.subr.bf16.mxu0 %v1992_v60  ;;  %v53_v59 = vld [vmem:[%s2304_s1 + $0xe8] sm:$0xff] }
  0x4a   :  { %1394 = vmatpush1.bf16.xpose.msra.mxu1 %v1989_v61  ;;  %1411 = vmatprep.mubr.bf16.mxu1 %v305_v62  ;;  %v401_v60 = vcombine.high %v379_v54, %v379_v54  ;;  %v2012_v61 = vcombine.high %v52_v56, %v52_v56  ;;  %v2009_v62 = vcombine.low %v51_v47, %v51_v47 }
  0x4b   :  { %1473 = vmatprep.subr.bf16.mxu1 %v1994_v0  ;;  %v412_v0 = vcombine.high %v1954_v57, %v1954_v57  ;;  %v2014_v1 = vcombine.high %v53_v59, %v53_v59 }
  0x4f   :  { %1372 = vmatmul.mubr.bf16.vlgmr.msra.gmra.mxu0 %v281_v2  ;;  %v386_v2 = vrot.slane %v370_v45, %v2148_v17 }
  0x50   :  { %1434 = vmatpush1.bf16.xpose.msra.mxu0 %v1991_v6  ;;  %1451 = vmatprep.mubr.bf16.mxu0 %v302_v3  ;;  %v426_v3 = vrot.slane %v412_v0, %v2148_v17  ;;  %v2013_v6 = vcombine.low %v53_v59, %v53_v59 }
  0x51   :  { %1412 = vmatmul.mubr.bf16.vlgmr.msra.gmra.mxu1 %v303_v8  ;;  %1513 = vmatprep.subr.bf16.mxu0 %v1996_v9  ;;  %v402_v5 = vcombine.high %v386_v2, %v386_v2  ;;  %v419_v8 = vrot.slane %v1954_v57, %v2148_v17 }
  0x52   :  { %1474 = vmatpush1.bf16.xpose.msra.mxu1 %v1993_v10  ;;  %1491 = vmatprep.mubr.bf16.mxu1 %v306_v11  ;;  %v428_v7 = vcombine.high %v426_v3, %v426_v3 }
  0x53   :  { %1553 = vmatprep.subr.bf16.mxu1 %v1998_v14  ;;  %v427_v9 = vcombine.high %v419_v8, %v419_v8 }
  0x57   :  { %1452 = vmatmul.mubr.bf16.vlgmr.msra.gmra.mxu0 %v288_v15 }
  0x58   :  { %1514 = vmatpush1.bf16.xpose.msra.mxu0 %v1995_v20  ;;  %1531 = vmatprep.mubr.bf16.mxu0 %v344_v16 }
  0x59   :  { %1492 = vmatmul.mubr.bf16.vlgmr.msra.gmra.mxu1 %v304_v22  ;;  %1593 = vmatprep.subr.bf16.mxu0 %v2000_v23 }
  0x5a   :  { %1554 = vmatpush1.bf16.xpose.msra.mxu1 %v1997_v24  ;;  %1571 = vmatprep.mubr.bf16.mxu1 %v354_v25 }
  0x5b   :  { %1633 = vmatprep.subr.bf16.mxu1 %v2002_v27 }
  0x5f   :  { %1532 = vmatmul.mubr.bf16.vlgmr.msra.gmra.mxu0 %v330_v29 }
  0x60   :  { %1594 = vmatpush1.bf16.xpose.msra.mxu0 %v1999_v33  ;;  %1611 = vmatprep.mubr.bf16.mxu0 %v351_v30 }
  0x61   :  { %1572 = vmatmul.mubr.bf16.vlgmr.msra.gmra.mxu1 %v352_v35  ;;  %1673 = vmatprep.subr.bf16.mxu0 %v2004_v36 }
  0x62   :  { %1634 = vmatpush1.bf16.xpose.msra.mxu1 %v2001_v37  ;;  %1651 = vmatprep.mubr.bf16.mxu1 %v355_v38 }
  0x63   :  { %1713 = vmatprep.subr.bf16.mxu1 %v2006_v41 }
  0x67   :  { %1612 = vmatmul.mubr.bf16.vlgmr.msra.gmra.mxu0 %v337_v42 }
  0x68   :  { %1674 = vmatpush1.bf16.xpose.msra.mxu0 %v2003_v46  ;;  %1691 = vmatprep.mubr.bf16.mxu0 %v393_v43 }
  0x69   :  { %1652 = vmatmul.mubr.bf16.vlgmr.msra.gmra.mxu1 %v353_v48  ;;  %1753 = vmatprep.subr.bf16.mxu0 %v2008_v49 }
  0x6a   :  { %1714 = vmatpush1.bf16.xpose.msra.mxu1 %v2005_v50  ;;  %1731 = vmatprep.mubr.bf16.mxu1 %v403_v51 }
  0x6b   :  { %1793 = vmatprep.subr.bf16.mxu1 %v2010_v53 }
  0x6f   :  { %1692 = vmatmul.mubr.bf16.vlgmr.msra.gmra.mxu0 %v379_v54 }
  0x70   :  { %1754 = vmatpush1.bf16.xpose.msra.mxu0 %v2007_v58  ;;  %1771 = vmatprep.mubr.bf16.mxu0 %v400_v55 }
  0x71   :  { %1732 = vmatmul.mubr.bf16.vlgmr.msra.gmra.mxu1 %v401_v60  ;;  %1833 = vmatprep.subr.bf16.mxu0 %v2012_v61 }
  0x72   :  { %1794 = vmatpush1.bf16.xpose.msra.mxu1 %v2009_v62  ;;  %1811 = vmatprep.mubr.bf16.mxu1 %v404_v63 }
  0x73   :  { %1873 = vmatprep.subr.bf16.mxu1 %v2014_v1 }
  0x77   :  { %1772 = vmatmul.mubr.bf16.vlgmr.msra.gmra.mxu0 %v386_v2 }
  0x78   :  { %1834 = vmatpush1.bf16.xpose.msra.mxu0 %v2011_v4  ;;  %1851 = vmatprep.mubr.bf16.mxu0 %v426_v3 }
  0x79   :  { %1812 = vmatmul.mubr.bf16.vlgmr.msra.gmra.mxu1 %v402_v5 }
  0x7a   :  { %1874 = vmatpush1.bf16.xpose.msra.mxu1 %v2013_v6  ;;  %1891 = vmatprep.mubr.bf16.mxu1 %v428_v7 }
  0x7f   :  { %1852 = vmatmul.mubr.bf16.vlgmr.msra.gmra.mxu0 %v419_v8 }
  0x81   :  { %1892 = vmatmul.mubr.bf16.vlgmr.msra.gmra.mxu1 %v427_v9 }
  0xcf   :  { %v733_v10 = vpop.f32.mrf.mxu0 }
  0xd1   :  { %v735_v11 = vpop.f32.mrf.mxu0  ;;  %v773_v12 = vpop.f32.mrf.mxu1 }
  0xd2   :  { %v774_v43 = vadd.f32 %v773_v12, %v733_v10 }
  0xd3   :  { %v736_v13 = vpop.f32.mrf.mxu0  ;;  %v775_v14 = vpop.f32.mrf.mxu1 }
  0xd5   :  { %v737_v15 = vpop.f32.mrf.mxu0  ;;  %v776_v16 = vpop.f32.mrf.mxu1 }
  0xd7   :  { %v777_v18 = vpop.f32.mrf.mxu1  ;;  %v813_v19 = vpop.f32.mrf.mxu0 }
  0xd8   :  { %v814_v46 = vadd.f32 %v813_v19, %v774_v43 }
  0xd9   :  { %v815_v20 = vpop.f32.mrf.mxu0  ;;  %v853_v21 = vpop.f32.mrf.mxu1 }
  0xda   :  { %v854_v51 = vadd.f32 %v853_v21, %v814_v46 }
  0xdb   :  { %v816_v22 = vpop.f32.mrf.mxu0  ;;  %v855_v23 = vpop.f32.mrf.mxu1 }
  0xdd   :  { %v817_v24 = vpop.f32.mrf.mxu0  ;;  %v856_v17 = vpop.f32.mrf.mxu1 }
  0xdf   :  { %v857_v25 = vpop.f32.mrf.mxu1  ;;  %v893_v26 = vpop.f32.mrf.mxu0 }
  0xe0   :  { %v894_v54 = vadd.f32 %v893_v26, %v854_v51 }
  0xe1   :  { %v895_v27 = vpop.f32.mrf.mxu0  ;;  %v933_v28 = vpop.f32.mrf.mxu1 }
  0xe2   :  { %v934_v59 = vadd.f32 %v933_v28, %v894_v54 }
  0xe3   :  { %v896_v29 = vpop.f32.mrf.mxu0  ;;  %v935_v30 = vpop.f32.mrf.mxu1 }
  0xe5   :  { %v897_v31 = vpop.f32.mrf.mxu0  ;;  %v936_v32 = vpop.f32.mrf.mxu1 }
  0xe7   :  { %v937_v33 = vpop.f32.mrf.mxu1  ;;  %v973_v34 = vpop.f32.mrf.mxu0 }
  0xe8   :  { %v974_v62 = vadd.f32 %v973_v34, %v934_v59 }
  0xe9   :  { %v975_v35 = vpop.f32.mrf.mxu0  ;;  %v1013_v36 = vpop.f32.mrf.mxu1 }
  0xea   :  { %v1014_v3 = vadd.f32 %v1013_v36, %v974_v62 }
  0xeb   :  { %v976_v37 = vpop.f32.mrf.mxu0  ;;  %v1015_v38 = vpop.f32.mrf.mxu1 }
  0xed   :  { %v977_v39 = vpop.f32.mrf.mxu0  ;;  %v1016_v40 = vpop.f32.mrf.mxu1 }
  0xef   :  { %v1017_v41 = vpop.f32.mrf.mxu1  ;;  %v1053_v42 = vpop.f32.mrf.mxu0 }
  0xf0   :  { %v1054_v6 = vadd.f32 %v1053_v42, %v1014_v3 }
  0xf1   :  { %v1055_v44 = vpop.f32.mrf.mxu0  ;;  %v1093_v45 = vpop.f32.mrf.mxu1 }
  0xf2   :  { %v1094_v11 = vadd.f32 %v1093_v45, %v1054_v6 }
  0xf3   :  { %v1056_v47 = vpop.f32.mrf.mxu0  ;;  %v1095_v48 = vpop.f32.mrf.mxu1 }
  0xf5   :  { %v1057_v49 = vpop.f32.mrf.mxu0  ;;  %v1096_v50 = vpop.f32.mrf.mxu1 }
  0xf7   :  { %v1097_v52 = vpop.f32.mrf.mxu1  ;;  %v1133_v53 = vpop.f32.mrf.mxu0 }
  0xf8   :  { %v1134_v14 = vadd.f32 %v1133_v53, %v1094_v11 }
  0xf9   :  { %v1135_v55 = vpop.f32.mrf.mxu0  ;;  %v1173_v56 = vpop.f32.mrf.mxu1 }
  0xfa   :  { %v1174_v20 = vadd.f32 %v1173_v56, %v1134_v14 }
  0xfb   :  { %v1136_v57 = vpop.f32.mrf.mxu0  ;;  %v1175_v58 = vpop.f32.mrf.mxu1 }
  0xfd   :  { %v1137_v60 = vpop.f32.mrf.mxu0  ;;  %v1176_v61 = vpop.f32.mrf.mxu1 }
  0xff   :  { %v1177_v63 = vpop.f32.mrf.mxu1  ;;  %v1213_v0 = vpop.f32.mrf.mxu0 }
 0x100   :  { %v1214_v23 = vadd.f32 %v1213_v0, %v1174_v20 }
 0x101   :  { %v1215_v1 = vpop.f32.mrf.mxu0  ;;  %v1253_v2 = vpop.f32.mrf.mxu1 }
 0x102   :  { %v1254_v27 = vadd.f32 %v1253_v2, %v1214_v23 }
 0x103   :  { %v1216_v4 = vpop.f32.mrf.mxu0  ;;  %v1255_v5 = vpop.f32.mrf.mxu1 }
 0x105   :  { %v1217_v7 = vpop.f32.mrf.mxu0  ;;  %v1256_v8 = vpop.f32.mrf.mxu1 }
 0x107   :  { %v1257_v9 = vpop.f32.mrf.mxu1  ;;  %v1293_v10 = vpop.f32.mrf.mxu0 }
 0x108   :  { %v1294_v30 = vadd.f32 %v1293_v10, %v1254_v27 }
 0x109   :  { %v1295_v12 = vpop.f32.mrf.mxu0  ;;  %v1333_v13 = vpop.f32.mrf.mxu1 }
 0x10a   :  { %v1334_v35 = vadd.f32 %v1333_v13, %v1294_v30 }
 0x10b   :  { %v1296_v15 = vpop.f32.mrf.mxu0  ;;  %v1335_v16 = vpop.f32.mrf.mxu1 }
 0x10d   :  { %v1297_v18 = vpop.f32.mrf.mxu0  ;;  %v1336_v19 = vpop.f32.mrf.mxu1 }
 0x10f   :  { %v1337_v21 = vpop.f32.mrf.mxu1  ;;  %v1373_v22 = vpop.f32.mrf.mxu0 }
 0x110   :  { %v1374_v38 = vadd.f32 %v1373_v22, %v1334_v35 }
 0x111   :  { %v1375_v24 = vpop.f32.mrf.mxu0  ;;  %v1413_v17 = vpop.f32.mrf.mxu1 }
 0x112   :  { %v1414_v43 = vadd.f32 %v1413_v17, %v1374_v38 }
 0x113   :  { %v1376_v25 = vpop.f32.mrf.mxu0  ;;  %v1415_v26 = vpop.f32.mrf.mxu1 }
 0x115   :  { %v1377_v28 = vpop.f32.mrf.mxu0  ;;  %v1416_v29 = vpop.f32.mrf.mxu1 }
 0x117   :  { %v1417_v31 = vpop.f32.mrf.mxu1  ;;  %v1453_v32 = vpop.f32.mrf.mxu0 }
 0x118   :  { %v1454_v46 = vadd.f32 %v1453_v32, %v1414_v43  ;;  %v2015_v31 = vld [vmem:[%s2305_s2] ss:$0 sm:$0xff]  ;;  %s2089_s2 = scalar_lea.vmem %s1947_s8, 32 }
 0x119   :  { %v1455_v33 = vpop.f32.mrf.mxu0  ;;  %v1493_v34 = vpop.f32.mrf.mxu1  ;;  %p2090_p0 = scmp.ne.s32.totalorder %s1947_s8, %s2089_s2  ;;  %p2095_p2 = scmp.lt.s32.totalorder %s2089_s2, %s2089_s2 }
 0x11a   :  { %v1494_v51 = vadd.f32 %v1493_v34, %v1454_v46 }
 0x11b   :  { %v1456_v36 = vpop.f32.mrf.mxu0  ;;  %v1495_v37 = vpop.f32.mrf.mxu1  ;;  %p2096_p3 = por %p2095_p2, %p2094_p1 }
 0x11d   :  { %v1457_v39 = vpop.f32.mrf.mxu0  ;;  %v1496_v40 = vpop.f32.mrf.mxu1  ;;  %p2097_p4 = pnand %p2096_p3, %p2090_p0 }
 0x11f   :  { %v1497_v41 = vpop.f32.mrf.mxu1  ;;  %v1533_v42 = vpop.f32.mrf.mxu0 }
 0x120   :  { %v1534_v54 = vadd.f32 %v1533_v42, %v1494_v51 }
 0x121   :  { %v1535_v44 = vpop.f32.mrf.mxu0  ;;  %v1573_v45 = vpop.f32.mrf.mxu1 }
 0x122   :  { %v1574_v59 = vadd.f32 %v1573_v45, %v1534_v54 }
 0x123   :  { %v1536_v47 = vpop.f32.mrf.mxu0  ;;  %v1575_v48 = vpop.f32.mrf.mxu1 }
 0x125   :  { %v1537_v49 = vpop.f32.mrf.mxu0  ;;  %v1576_v50 = vpop.f32.mrf.mxu1 }
 0x127   :  { %v1577_v52 = vpop.f32.mrf.mxu1  ;;  %v1613_v53 = vpop.f32.mrf.mxu0 }
 0x128   :  { %v1614_v62 = vadd.f32 %v1613_v53, %v1574_v59 }
 0x129   :  { %v1615_v55 = vpop.f32.mrf.mxu0  ;;  %v1653_v56 = vpop.f32.mrf.mxu1 }
 0x12a   :  { %v1654_v3 = vadd.f32 %v1653_v56, %v1614_v62 }
 0x12b   :  { %v1616_v57 = vpop.f32.mrf.mxu0  ;;  %v1655_v58 = vpop.f32.mrf.mxu1 }
 0x12d   :  { %v1617_v60 = vpop.f32.mrf.mxu0  ;;  %v1656_v61 = vpop.f32.mrf.mxu1 }
 0x12f   :  { %v1657_v63 = vpop.f32.mrf.mxu1  ;;  %v1693_v0 = vpop.f32.mrf.mxu0 }
 0x130   :  { %v1694_v6 = vadd.f32 %v1693_v0, %v1654_v3 }
 0x131   :  { %v1695_v1 = vpop.f32.mrf.mxu0  ;;  %v1733_v2 = vpop.f32.mrf.mxu1 }
 0x132   :  { %v1734_v11 = vadd.f32 %v1733_v2, %v1694_v6 }
 0x133   :  { %v1696_v4 = vpop.f32.mrf.mxu0  ;;  %v1735_v5 = vpop.f32.mrf.mxu1 }
 0x135   :  { %v1697_v7 = vpop.f32.mrf.mxu0  ;;  %v1736_v8 = vpop.f32.mrf.mxu1 }
 0x137   :  { %v1737_v9 = vpop.f32.mrf.mxu1  ;;  %v1773_v10 = vpop.f32.mrf.mxu0 }
 0x138   :  { %v1774_v14 = vadd.f32 %v1773_v10, %v1734_v11 }
 0x139   :  { %v1775_v12 = vpop.f32.mrf.mxu0  ;;  %v1813_v13 = vpop.f32.mrf.mxu1 }
 0x13a   :  { %v1814_v20 = vadd.f32 %v1813_v13, %v1774_v14 }
 0x13b   :  { %v1776_v15 = vpop.f32.mrf.mxu0  ;;  %v1815_v16 = vpop.f32.mrf.mxu1 }
 0x13d   :  { %v1777_v18 = vpop.f32.mrf.mxu0  ;;  %v1816_v19 = vpop.f32.mrf.mxu1 }
 0x13f   :  { %v1817_v21 = vpop.f32.mrf.mxu1  ;;  %v1853_v22 = vpop.f32.mrf.mxu0 }
 0x140   :  { %v1854_v23 = vadd.f32 %v1853_v22, %v1814_v20 }
 0x141   :  { %v1855_v24 = vpop.f32.mrf.mxu0  ;;  %v1893_v17 = vpop.f32.mrf.mxu1 }
 0x142   :  { %v1894_v25 = vadd.f32 %v1893_v17, %v1854_v23 }
 0x143   :  { %v1856_v26 = vpop.f32.mrf.mxu0  ;;  %v1895_v27 = vpop.f32.mrf.mxu1 }
 0x144   :  { %1904 = vst.msk [vmem:[#allocation2] sm:$0x3] %vm1903_vm0, %v1894_v25 }
 0x145   :  { %v1857_v28 = vpop.f32.mrf.mxu0  ;;  %v1896_v29 = vpop.f32.mrf.mxu1 }
 0x147   :  { %v1897_v30 = vpop.f32.mrf.mxu1 }
 0x14b   :  { %v1916_v32 = vld [vmem:[#allocation2] sm:$0x3] }
 0x14c   :  { %v1924_v33 = vadd.f32 %v2015_v31, %v1916_v32 }
 0x14e   :  { %v1926_v34 = vsel %vm1903_vm0, %v1924_v33, -inf }
 0x14f   :  { %1927 = vmax.xlane.f32.xlu0 %v1926_v34 }
 0x1d8   :  { %v1928_v35 = vpop.xlane.xlu0 %1927 }
 0x1d9   :  { %v1929_v36 = vsub.f32 %v1924_v33, %v1928_v35 }
 0x1db   :  { %v1930_v37 = vmul.f32 1.442695, %v1929_v36 }
 0x1dd   :  { %2085 = vpow2.f32 %v1930_v37 }
 0x1ea   :  { %v2086_v38 = vpop.eup %2085 }
 0x1eb   :  { %v1932_v39 = vsel %vm1903_vm0, %v2086_v38, 0.0 }
 0x1ec   :  { %1933 = vadd.xlane.f32.xlu0 %v1932_v39 }
 0x275   :  { %v1934_v40 = vpop.xlane.xlu0 %1933 }
 0x276   :  { %2087 = vlog2.f32 %v1934_v40 }
 0x283   :  { %v2088_v41 = vpop.eup %2087 }
 0x284   :  { %v1936_v42 = vmul.f32 0.6931472, %v2088_v41 }
 0x286   :  { %v1937_v43 = vadd.f32 %v1936_v42, %v1928_v35 }
 0x288   :  { %v1938_v44 = vsub.f32 %v1924_v33, %v1937_v43 }
 0x28a   :  { %1939 = vst.msk [vmem:[#allocation2] sm:$0x3] %vm1903_vm0, %v1938_v44 }
 0x28b   :  { %2100 = shalt.err (!%p2097_p4)
}
 0x28c   :  { %1949 = dma.vmem_to_hbm [thread:$0]  %s1947_s8, 32, %s2306_s3, [#allocation3]  }
 0x28d   :  { %2109 = dma.done.wait [#allocation3], 32  }
 0x28e   :  { %2110 = vsyncadd [#allocation3], 4294967264 }
 0x28f   :  { %1953 = vsyncpa [#allocation3], 1 }

</bundles_post_ra>
